<compile_context>
chip_gen: v7x
topology: tpu7x:2x2x1
jax: 0.10.0
libtpu: 0.0.40
codegen_flags: <defaults>
</compile_context>

<pallas_src>
import math

import jax
import jax.numpy as jnp
import numpy as np
from jax import lax
from jax.experimental import pallas as pl
from jax.experimental.pallas import tpu as pltpu

BN_EPS = 1e-5


# ---------------------------------------------------------------------------
# helpers replicated from the PyTorch source
# ---------------------------------------------------------------------------
def my_round(x):
    if x == 22.5:
        return 23
    elif x == 16.5:
        return 17
    elif x == 10.5:
        return 11
    elif x == 4.5:
        return 5
    else:
        return round(x)


def _round_up(v, m):
    return (v + m - 1) // m * m


def _bn_fold(c):
    # eval-mode BatchNorm with initialized running stats, folded to scale/bias
    gamma = jnp.ones((c,), jnp.float32)
    beta = jnp.zeros((c,), jnp.float32)
    mean = jnp.zeros((c,), jnp.float32)
    var = jnp.ones((c,), jnp.float32)
    scale = gamma / jnp.sqrt(var + BN_EPS)
    bias = beta - mean * scale
    return scale.reshape(1, c), bias.reshape(1, c)


def _pick_batch_tile(n, per_image_bytes, budget=8 * 1024 * 1024, cap=8):
    """Largest divisor of n (<= cap) whose double-buffered blocks fit budget."""
    best = 1
    for bt in range(1, min(n, cap) + 1):
        if n % bt == 0 and 2 * bt * per_image_bytes <= budget:
            best = bt
    return best


def _vmem_limit(est_bytes):
    """Scoped VMEM limit from actual buffer sizes, clamped to ~75% of physical."""
    try:
        cap = int(pltpu.get_tpu_info().vmem_capacity_bytes)
    except Exception:
        cap = 64 * 1024 * 1024          # conservative (v7x per-core) fallback
    limit = max(32 * 1024 * 1024, 2 * int(est_bytes))
    return int(min(limit, (cap * 3) // 4))


# ---------------------------------------------------------------------------
# fused InvertedResidual kernel (one batch tile per grid step)
# ---------------------------------------------------------------------------
def _make_block_kernel(*, has_expand, use_res, stride, P, Hp, Wp, Wpp,
                       Ho, Wo, H, W, cin, hid, cout, B_TILE):
    M = P * Hp

    # Static tap table: (row_offset_in_stacked_phases, col_offset) per 3x3 tap.
    # For stride=2 the glue stacks the 4 spatial phases along rows, so every
    # tap is a contiguous (Ho, Wo) slice of the scratch (no strided reads).
    taps = []
    for di in range(3):
        for dj in range(3):
            if stride == 1:
                taps.append((di, dj))
            else:
                ph = 2 * (di % 2) + (dj % 2)
                taps.append((ph * Hp + di // 2, dj // 2))

    # Static halo strips of the expanded activation that must be zero (the
    # depthwise conv zero-pads its *input*).  Replaces the full-tensor mask.
    pad_rows = []                 # single stacked rows to zero
    pad_cols = []                 # (row_start, row_end, col) strips to zero
    if stride == 1:
        pad_rows += [i for i in range(Hp) if not (1 <= i <= H)]
        pad_cols += [(0, M, j) for j in range(Wp) if not (1 <= j <= W)]
    else:
        for p in range(P):
            r, c = p // 2, p % 2
            pad_rows += [p * Hp + i for i in range(Hp)
                         if not (1 <= 2 * i + r <= H)]
            pad_cols += [(p * Hp, (p + 1) * Hp, j) for j in range(Wp)
                         if not (1 <= 2 * j + c <= W)]

    def kernel(*refs):
        if has_expand:
            (x_ref, w1_ref, s1_ref, b1_ref,
             wd_ref, sd_ref, bd_ref, w2_ref, s2_ref, b2_ref,
             o_ref, t_ref) = refs
        else:
            (x_ref, wd_ref, sd_ref, bd_ref, w2_ref, s2_ref, b2_ref,
             o_ref, t_ref) = refs

        # small per-channel BN vectors: load once per grid step
        sd_v, bd_v = sd_ref[...], bd_ref[...]
        s2_v, b2_v = s2_ref[...], b2_ref[...]
        if has_expand:
            s1_v, b1_v = s1_ref[...], b1_ref[...]

        def one_image(ib, carry):
            # ---- 1x1 pointwise expansion + BN + ReLU6 (MXU bf16 / f32 acc) ----
            if has_expand:
                x = x_ref[ib]                                  # (M, Wpp, cin) bf16
                y = jnp.dot(x.reshape(M * Wpp, cin), w1_ref[...],
                            preferred_element_type=jnp.float32)
                y = y * s1_v + b1_v
                y = jnp.minimum(jnp.maximum(y, 0.0), 6.0)
                t_ref[...] = y.reshape(M, Wpp, hid).astype(t_ref.dtype)
                # zero only the O(perimeter) halo strips (depthwise zero-pad)
                for rr in pad_rows:
                    t_ref[rr] = jnp.zeros((Wpp, hid), t_ref.dtype)
                for r0, r1, cc in pad_cols:
                    t_ref[r0:r1, cc:cc + 1, :] = jnp.zeros(
                        (r1 - r0, 1, hid), t_ref.dtype)
            else:
                # no expansion: the zero-padded bf16 input passes through as-is
                t_ref[...] = x_ref[ib]

            # ---- 3x3 depthwise conv + BN + ReLU6 (f32 math, bf16 tap loads) ----
            # TODO(synk): taps with column offset 1/2 are sublane-misaligned;
            # hoisting the column shift via pltpu.roll is a remaining micro-opt.
            acc = None
            for k, (a, b) in enumerate(taps):
                term = t_ref[a:a + Ho, b:b + Wo, :] * wd_ref[k]   # -> f32
                acc = term if acc is None else acc + term
            d = acc.reshape(Ho * Wo, hid)
            d = d * sd_v + bd_v
            d = jnp.minimum(jnp.maximum(d, 0.0), 6.0)

            # ---- 1x1 linear projection + BN (+ fused residual) ----
            z = jnp.dot(d.astype(jnp.bfloat16), w2_ref[...],
                        preferred_element_type=jnp.float32)
            z = z * s2_v + b2_v
            if use_res:
                # use_res => stride == 1, cin == cout: residual is the interior
                # of the padded input already resident in VMEM (bf16).
                res = x_ref[ib, 1:1 + Ho, 1:1 + Wo, :]
                z = z + res.reshape(Ho * Wo, cout).astype(jnp.float32)
            o_ref[ib] = z.astype(o_ref.dtype)
            return carry

        # non-unrolled loop over the batch tile keeps each image's accumulator /
        # expansion intermediates in a bounded register live range.
        lax.fori_loop(0, B_TILE, one_image, 0)

    return kernel


# ---------------------------------------------------------------------------
# glue: zero-pad + (for stride 2) 2x2 spatial phase decomposition (all in bf16)
# ---------------------------------------------------------------------------
def _phase_split_input(x_nhwc, stride, Ho, Wo):
    N, H, W, C = x_nhwc.shape
    if stride == 1:
        P, Hp, Wp = 1, H + 2, W + 2
        Hpad, Wpad = Hp, Wp
    else:
        P, Hp, Wp = 4, Ho + 1, Wo + 1
        Hpad, Wpad = 2 * Hp, 2 * Wp

    xp = jnp.pad(x_nhwc, ((0, 0), (1, Hpad - H - 1), (1, Wpad - W - 1), (0, 0)))
    if stride == 1:
        xph = xp
    else:
        xph = jnp.concatenate(
            [xp[:, r::2, c::2, :] for r in range(2) for c in range(2)], axis=1)

    M = P * Hp
    xph = xph.reshape(N, M, Wp, C)

    # pad the sublane (W) dim to a multiple of 8 so in-kernel reshapes are
    # tile-aligned (lane dim = channels stays untouched)
    Wpp = _round_up(Wp, 8)
    if Wpp != Wp:
        xph = jnp.pad(xph, ((0, 0), (0, 0), (0, Wpp - Wp), (0, 0)))
    return xph, P, Hp, Wp, Wpp


# ---------------------------------------------------------------------------
# forward (one fused pallas_call per block)
# ---------------------------------------------------------------------------
def inverted_residual_forward(x_nchw, params):
    cfg = params["cfg"]
    stride, use_res, has_expand = cfg["stride"], cfg["use_res"], cfg["has_expand"]
    cin, hid, cout = cfg["cin"], cfg["hid"], cfg["cout"]
    if not has_expand:
        assert hid == cin

    # TODO(synk): in a full NHWC bf16 model this transpose / pad / phase-split
    # glue would be hoisted out of the per-block wrapper (or folded into the
    # BlockSpec index_map) instead of being re-done around every block.
    x = jnp.transpose(x_nchw, (0, 2, 3, 1)).astype(jnp.bfloat16)   # NHWC, bf16
    N, H, W, cx = x.shape
    assert cx == cin
    Ho = (H + 2 - 3) // stride + 1
    Wo = (W + 2 - 3) // stride + 1
    # TODO(synk): non-multiple-of-8 output widths and output-row tiling with a
    # 1-row halo (needed at real MobileNet sizes on v7x's 64 MiB VMEM) are not
    # implemented here.
    assert Wo % 8 == 0

    xph, P, Hp, Wp, Wpp = _phase_split_input(x, stride, Ho, Wo)
    M = P * Hp

    # ---- batch tile: amortize per-grid-step overhead, enlarge DMA slabs ----
    per_image_io_bytes = (M * Wpp * cin + Ho * Wo * cout) * 2          # bf16
    B_TILE = _pick_batch_tile(N, per_image_io_bytes)

    kernel = _make_block_kernel(
        has_expand=has_expand, use_res=use_res, stride=stride,
        P=P, Hp=Hp, Wp=Wp, Wpp=Wpp, Ho=Ho, Wo=Wo, H=H, W=W,
        cin=cin, hid=hid, cout=cout, B_TILE=B_TILE)

    in_specs = [pl.BlockSpec((B_TILE, M, Wpp, cin), lambda n: (n, 0, 0, 0))]
    args = [xph]
    if has_expand:
        in_specs += [pl.BlockSpec((cin, hid), lambda n: (0, 0)),
                     pl.BlockSpec((1, hid), lambda n: (0, 0)),
                     pl.BlockSpec((1, hid), lambda n: (0, 0))]
        args += [params["w1"], params["s1"], params["b1"]]
    in_specs += [pl.BlockSpec((9, 1, 1, hid), lambda n: (0, 0, 0, 0)),
                 pl.BlockSpec((1, hid), lambda n: (0, 0)),
                 pl.BlockSpec((1, hid), lambda n: (0, 0)),
                 pl.BlockSpec((hid, cout), lambda n: (0, 0)),
                 pl.BlockSpec((1, cout), lambda n: (0, 0)),
                 pl.BlockSpec((1, cout), lambda n: (0, 0))]
    args += [params["wd"], params["sd"], params["bd"],
             params["w2"], params["s2"], params["b2"]]

    # ---- cost estimate + VMEM budget from actual buffer sizes ----
    w_bytes = int(sum(int(np.prod(params[k].shape)) * params[k].dtype.itemsize
                      for k in params if k != "cfg"))
    flops = int(N * ((2 * M * Wpp * cin * hid) if has_expand else 0)
                + N * (18 * Ho * Wo * hid + 2 * Ho * Wo * hid * cout))
    bytes_accessed = int(N * per_image_io_bytes + w_bytes)
    vmem_est = (2 * (B_TILE * M * Wpp * cin * 2
                     + B_TILE * Ho * Wo * cout * 2 + w_bytes)
                + M * Wpp * hid * 2)

    out = pl.pallas_call(
        kernel,
        out_shape=jax.ShapeDtypeStruct((N, Ho * Wo, cout), jnp.bfloat16),
        grid=(N // B_TILE,),
        in_specs=in_specs,
        out_specs=pl.BlockSpec((B_TILE, Ho * Wo, cout), lambda n: (n, 0, 0)),
        scratch_shapes=[pltpu.VMEM((M, Wpp, hid), jnp.bfloat16)],
        compiler_params=pltpu.CompilerParams(
            dimension_semantics=("parallel",),
            vmem_limit_bytes=_vmem_limit(vmem_est)),
        cost_estimate=pl.CostEstimate(flops=flops, transcendentals=0,
                                      bytes_accessed=bytes_accessed),
    )(*args)

    out = out.reshape(N, Ho, Wo, cout)
    return jnp.transpose(out, (0, 3, 1, 2))             # back to NCHW (bf16)


# ---------------------------------------------------------------------------
# parameter construction (deterministic; mirrors InvertedResidual.__init__)
# ---------------------------------------------------------------------------
def init_inverted_residual(key, inp, oup, stride, expand_ratio, channel_ratio=1.0):
    assert stride in (1, 2)
    hidden_dim = int(round(inp * expand_ratio))
    use_res = stride == 1 and inp == oup
    has_expand = expand_ratio != 1
    cin = my_round(inp * channel_ratio)
    hid = my_round(hidden_dim * channel_ratio)
    cout = my_round(oup * channel_ratio)

    k1, k2, k3 = jax.random.split(key, 3)
    params = dict(cfg=dict(stride=stride, use_res=use_res, has_expand=has_expand,
                           cin=cin, hid=hid, cout=cout))
    if has_expand:
        w1 = math.sqrt(2.0 / hid) * jax.random.normal(k1, (cin, hid), jnp.float32)
        s1, b1 = _bn_fold(hid)
        params.update(w1=w1.astype(jnp.bfloat16), s1=s1, b1=b1)
    wd = math.sqrt(2.0 / (9 * hid)) * jax.random.normal(k2, (9, 1, 1, hid),
                                                        jnp.float32)
    sd, bd = _bn_fold(hid)
    w2 = math.sqrt(2.0 / cout) * jax.random.normal(k3, (hid, cout), jnp.float32)
    s2, b2 = _bn_fold(cout)
    params.update(wd=wd, sd=sd, bd=bd, w2=w2.astype(jnp.bfloat16), s2=s2, b2=b2)
    return params


# ---------------------------------------------------------------------------
# pure-JAX reference (mirrors the kernel's bf16 quantization points)
# ---------------------------------------------------------------------------
def inverted_residual_reference(x_nchw, params):
    cfg = params["cfg"]
    stride, hid = cfg["stride"], cfg["hid"]
    x = jnp.transpose(x_nchw, (0, 2, 3, 1))
    xq = x.astype(jnp.bfloat16).astype(jnp.float32)      # bf16 activation I/O
    y = xq
    if cfg["has_expand"]:
        w1 = params["w1"].astype(jnp.float32)
        y = jnp.einsum("nhwc,cd->nhwd", y, w1, precision=lax.Precision.HIGHEST)
        y = y * params["s1"][0] + params["b1"][0]
        y = jnp.clip(y, 0.0, 6.0)
        y = y.astype(jnp.bfloat16).astype(jnp.float32)   # bf16 scratch storage
    wdw = params["wd"].reshape(3, 3, 1, hid)
    y = lax.conv_general_dilated(
        y, wdw, window_strides=(stride, stride), padding=((1, 1), (1, 1)),
        dimension_numbers=("NHWC", "HWIO", "NHWC"),
        feature_group_count=hid, precision=lax.Precision.HIGHEST)
    y = y * params["sd"][0] + params["bd"][0]
    y = jnp.clip(y, 0.0, 6.0)
    y = y.astype(jnp.bfloat16).astype(jnp.float32)       # bf16 matmul input
    w2 = params["w2"].astype(jnp.float32)
    z = jnp.einsum("nhwc,cd->nhwd", y, w2, precision=lax.Precision.HIGHEST)
    z = z * params["s2"][0] + params["b2"][0]
    if cfg["use_res"]:
        z = z + xq
    return jnp.transpose(z, (0, 3, 1, 2))


# ---------------------------------------------------------------------------
if __name__ == "__main__":
    key = jax.random.PRNGKey(0)
    kp1, kp2, kp3, kx = jax.random.split(key, 4)

    # small input consistent with the module: batch=2, 32 channels, 16x16 (NCHW)
    x = jax.random.normal(kx, (2, 32, 16, 16), dtype=jnp.float32)

    configs = [
        # (inp, oup, stride, expand_ratio)
        (32, 32, 1, 6),    # stride-1 block with residual connection
        (32, 64, 2, 6),    # stride-2 downsampling block (phase-split path)
        (32, 16, 1, 1),    # expand_ratio == 1 (no pointwise expansion)
    ]
    for (inp, oup, stride, t), kp in zip(configs, [kp1, kp2, kp3]):
        params = init_inverted_residual(kp, inp, oup, stride, t)
        fwd = jax.jit(lambda xx, p=params: inverted_residual_forward(xx, p))
        out = jax.block_until_ready(fwd(x))

        ho = (16 + 2 - 3) // stride + 1
        assert out.shape == (2, params["cfg"]["cout"], ho, ho), out.shape
        out_f32 = np.asarray(jnp.asarray(out, jnp.float32))
        assert np.all(np.isfinite(out_f32))

        ref = np.asarray(inverted_residual_reference(x, params))
        np.testing.assert_allclose(out_f32, ref, rtol=2e-2, atol=2e-2)

    print("KERNEL_OK")
</pallas_src>

<mosaic_0001>
module attributes {stable_mosaic.version = 11 : i64} {
  func.func @kernel(%arg0: i32, %arg1: memref<2x18x24x32xbf16, #tpu.memory_space<vmem>>, %arg2: memref<32x192xbf16, #tpu.memory_space<vmem>>, %arg3: memref<1x192xf32, #tpu.memory_space<vmem>>, %arg4: memref<1x192xf32, #tpu.memory_space<vmem>>, %arg5: memref<9x1x1x192xf32, #tpu.memory_space<vmem>>, %arg6: memref<1x192xf32, #tpu.memory_space<vmem>>, %arg7: memref<1x192xf32, #tpu.memory_space<vmem>>, %arg8: memref<192x32xbf16, #tpu.memory_space<vmem>>, %arg9: memref<1x32xf32, #tpu.memory_space<vmem>>, %arg10: memref<1x32xf32, #tpu.memory_space<vmem>>, %arg11: memref<2x256x32xbf16, #tpu.memory_space<vmem>>, %arg12: memref<18x24x192xbf16, #tpu.memory_space<vmem>>) attributes {dimension_semantics = [#tpu.dimension_semantics<parallel>], iteration_bounds = array<i64: 1>, scalar_prefetch = 0 : i64, scratch_operands = 1 : i64, tpu.core_type = #tpu.core_type<tc>, window_params = [{transform_indices = @transform_0, window_bounds = array<i64: 2, 18, 24, 32>}, {pipeline_mode = #tpu.pipeline_mode<synchronous>, transform_indices = @transform_1, window_bounds = array<i64: 32, 192>}, {pipeline_mode = #tpu.pipeline_mode<synchronous>, transform_indices = @transform_2, window_bounds = array<i64: 1, 192>}, {pipeline_mode = #tpu.pipeline_mode<synchronous>, transform_indices = @transform_3, window_bounds = array<i64: 1, 192>}, {pipeline_mode = #tpu.pipeline_mode<synchronous>, transform_indices = @transform_4, window_bounds = array<i64: 9, 1, 1, 192>}, {pipeline_mode = #tpu.pipeline_mode<synchronous>, transform_indices = @transform_5, window_bounds = array<i64: 1, 192>}, {pipeline_mode = #tpu.pipeline_mode<synchronous>, transform_indices = @transform_6, window_bounds = array<i64: 1, 192>}, {pipeline_mode = #tpu.pipeline_mode<synchronous>, transform_indices = @transform_7, window_bounds = array<i64: 192, 32>}, {pipeline_mode = #tpu.pipeline_mode<synchronous>, transform_indices = @transform_8, window_bounds = array<i64: 1, 32>}, {pipeline_mode = #tpu.pipeline_mode<synchronous>, transform_indices = @transform_9, window_bounds = array<i64: 1, 32>}, {transform_indices = @transform_10, window_bounds = array<i64: 2, 256, 32>}]} {
    %c0 = arith.constant 0 : index
    %c0_0 = arith.constant 0 : index
    %0 = vector.load %arg6[%c0, %c0_0] : memref<1x192xf32, #tpu.memory_space<vmem>>, vector<1x192xf32>
    %c0_1 = arith.constant 0 : index
    %c0_2 = arith.constant 0 : index
    %1 = vector.load %arg7[%c0_1, %c0_2] : memref<1x192xf32, #tpu.memory_space<vmem>>, vector<1x192xf32>
    %c0_3 = arith.constant 0 : index
    %c0_4 = arith.constant 0 : index
    %2 = vector.load %arg9[%c0_3, %c0_4] : memref<1x32xf32, #tpu.memory_space<vmem>>, vector<1x32xf32>
    %c0_5 = arith.constant 0 : index
    %c0_6 = arith.constant 0 : index
    %3 = vector.load %arg10[%c0_5, %c0_6] : memref<1x32xf32, #tpu.memory_space<vmem>>, vector<1x32xf32>
    %c0_7 = arith.constant 0 : index
    %c0_8 = arith.constant 0 : index
    %4 = vector.load %arg3[%c0_7, %c0_8] : memref<1x192xf32, #tpu.memory_space<vmem>>, vector<1x192xf32>
    %c0_9 = arith.constant 0 : index
    %c0_10 = arith.constant 0 : index
    %5 = vector.load %arg4[%c0_9, %c0_10] : memref<1x192xf32, #tpu.memory_space<vmem>>, vector<1x192xf32>
    %c0_i32 = arith.constant 0 : i32
    %c2_i32 = arith.constant 2 : i32
    %6 = arith.addi %c0_i32, %c2_i32 : i32
    %c1_i32 = arith.constant 1 : i32
    scf.for %arg13 = %c0_i32 to %6 step %c1_i32  : i32 {
      %7 = arith.index_cast %arg13 : i32 to index
      %c0_12 = arith.constant 0 : index
      %c0_13 = arith.constant 0 : index
      %c0_14 = arith.constant 0 : index
      %8 = vector.load %arg1[%7, %c0_12, %c0_13, %c0_14] : memref<2x18x24x32xbf16, #tpu.memory_space<vmem>>, vector<1x18x24x32xbf16>
      %9 = vector.shape_cast %8 : vector<1x18x24x32xbf16> to vector<18x24x32xbf16>
      %10 = vector.shape_cast %9 : vector<18x24x32xbf16> to vector<432x32xbf16>
      %c0_15 = arith.constant 0 : index
      %c0_16 = arith.constant 0 : index
      %11 = vector.load %arg2[%c0_15, %c0_16] : memref<32x192xbf16, #tpu.memory_space<vmem>>, vector<32x192xbf16>
      %cst = arith.constant dense<0.000000e+00> : vector<432x192xf32>
      %12 = tpu.matmul %10, %11, %cst {dimension_numbers = #tpu.dot_dimension_numbers<[1], [0], [0], [1], [0, 0, 1, 1], [], []>} : vector<432x32xbf16>, vector<32x192xbf16>, vector<432x192xf32> -> vector<432x192xf32>
      %13 = vector.broadcast %4 : vector<1x192xf32> to vector<432x192xf32>
      %14 = arith.mulf %12, %13 : vector<432x192xf32>
      %15 = vector.broadcast %5 : vector<1x192xf32> to vector<432x192xf32>
      %16 = arith.addf %14, %15 : vector<432x192xf32>
      %cst_17 = arith.constant 0.000000e+00 : f32
      %17 = vector.broadcast %cst_17 : f32 to vector<432x192xf32>
      %18 = arith.maximumf %16, %17 : vector<432x192xf32>
      %cst_18 = arith.constant 6.000000e+00 : f32
      %19 = vector.broadcast %cst_18 : f32 to vector<432x192xf32>
      %20 = arith.minimumf %18, %19 : vector<432x192xf32>
      %21 = vector.shape_cast %20 : vector<432x192xf32> to vector<18x24x192xf32>
      %22 = arith.truncf %21 : vector<18x24x192xf32> to vector<18x24x192xbf16>
      %c0_19 = arith.constant 0 : index
      %c0_20 = arith.constant 0 : index
      %c0_21 = arith.constant 0 : index
      %23 = vector.load %arg12[%c0_19, %c0_20, %c0_21] : memref<18x24x192xbf16, #tpu.memory_space<vmem>>, vector<18x24x192xbf16>
      tpu.vector_store %arg12[%c0_19, %c0_20, %c0_21], %22 {strides = array<i32>} : memref<18x24x192xbf16, #tpu.memory_space<vmem>>, vector<18x24x192xbf16>,
      %cst_22 = arith.constant 0.000000e+00 : bf16
      %24 = vector.broadcast %cst_22 : bf16 to vector<24x192xbf16>
      %c0_23 = arith.constant 0 : index
      %c0_24 = arith.constant 0 : index
      %c0_25 = arith.constant 0 : index
      %25 = vector.load %arg12[%c0_23, %c0_24, %c0_25] : memref<18x24x192xbf16, #tpu.memory_space<vmem>>, vector<1x24x192xbf16>
      %26 = vector.shape_cast %25 : vector<1x24x192xbf16> to vector<24x192xbf16>
      %27 = vector.shape_cast %24 : vector<24x192xbf16> to vector<1x24x192xbf16>
      tpu.vector_store %arg12[%c0_23, %c0_24, %c0_25], %27 {strides = array<i32>} : memref<18x24x192xbf16, #tpu.memory_space<vmem>>, vector<1x24x192xbf16>,
      %cst_26 = arith.constant 0.000000e+00 : bf16
      %28 = vector.broadcast %cst_26 : bf16 to vector<24x192xbf16>
      %c17 = arith.constant 17 : index
      %c0_27 = arith.constant 0 : index
      %c0_28 = arith.constant 0 : index
      %29 = vector.load %arg12[%c17, %c0_27, %c0_28] : memref<18x24x192xbf16, #tpu.memory_space<vmem>>, vector<1x24x192xbf16>
      %30 = vector.shape_cast %29 : vector<1x24x192xbf16> to vector<24x192xbf16>
      %31 = vector.shape_cast %28 : vector<24x192xbf16> to vector<1x24x192xbf16>
      tpu.vector_store %arg12[%c17, %c0_27, %c0_28], %31 {strides = array<i32>} : memref<18x24x192xbf16, #tpu.memory_space<vmem>>, vector<1x24x192xbf16>,
      %cst_29 = arith.constant 0.000000e+00 : bf16
      %32 = vector.broadcast %cst_29 : bf16 to vector<18x1x192xbf16>
      %c0_30 = arith.constant 0 : index
      %c0_31 = arith.constant 0 : index
      %c0_32 = arith.constant 0 : index
      %33 = vector.load %arg12[%c0_30, %c0_31, %c0_32] : memref<18x24x192xbf16, #tpu.memory_space<vmem>>, vector<18x1x192xbf16>
      tpu.vector_store %arg12[%c0_30, %c0_31, %c0_32], %32 {strides = array<i32>} : memref<18x24x192xbf16, #tpu.memory_space<vmem>>, vector<18x1x192xbf16>,
      %cst_33 = arith.constant 0.000000e+00 : bf16
      %34 = vector.broadcast %cst_33 : bf16 to vector<18x1x192xbf16>
      %c0_34 = arith.constant 0 : index
      %c17_35 = arith.constant 17 : index
      %c0_36 = arith.constant 0 : index
      %35 = vector.load %arg12[%c0_34, %c17_35, %c0_36] : memref<18x24x192xbf16, #tpu.memory_space<vmem>>, vector<18x1x192xbf16>
      tpu.vector_store %arg12[%c0_34, %c17_35, %c0_36], %34 {strides = array<i32>} : memref<18x24x192xbf16, #tpu.memory_space<vmem>>, vector<18x1x192xbf16>,
      %c0_37 = arith.constant 0 : index
      %c0_38 = arith.constant 0 : index
      %c0_39 = arith.constant 0 : index
      %36 = vector.load %arg12[%c0_37, %c0_38, %c0_39] : memref<18x24x192xbf16, #tpu.memory_space<vmem>>, vector<16x16x192xbf16>
      %c0_40 = arith.constant 0 : index
      %c0_41 = arith.constant 0 : index
      %c0_42 = arith.constant 0 : index
      %c0_43 = arith.constant 0 : index
      %37 = vector.load %arg5[%c0_40, %c0_41, %c0_42, %c0_43] : memref<9x1x1x192xf32, #tpu.memory_space<vmem>>, vector<1x1x1x192xf32>
      %38 = vector.shape_cast %37 : vector<1x1x1x192xf32> to vector<1x1x192xf32>
      %39 = arith.extf %36 : vector<16x16x192xbf16> to vector<16x16x192xf32>
      %40 = vector.broadcast %38 : vector<1x1x192xf32> to vector<16x16x192xf32>
      %41 = arith.mulf %39, %40 : vector<16x16x192xf32>
      %c0_44 = arith.constant 0 : index
      %c1 = arith.constant 1 : index
      %c0_45 = arith.constant 0 : index
      %42 = vector.load %arg12[%c0_44, %c1, %c0_45] : memref<18x24x192xbf16, #tpu.memory_space<vmem>>, vector<16x16x192xbf16>
      %c1_46 = arith.constant 1 : index
      %c0_47 = arith.constant 0 : index
      %c0_48 = arith.constant 0 : index
      %c0_49 = arith.constant 0 : index
      %43 = vector.load %arg5[%c1_46, %c0_47, %c0_48, %c0_49] : memref<9x1x1x192xf32, #tpu.memory_space<vmem>>, vector<1x1x1x192xf32>
      %44 = vector.shape_cast %43 : vector<1x1x1x192xf32> to vector<1x1x192xf32>
      %45 = arith.extf %42 : vector<16x16x192xbf16> to vector<16x16x192xf32>
      %46 = vector.broadcast %44 : vector<1x1x192xf32> to vector<16x16x192xf32>
      %47 = arith.mulf %45, %46 : vector<16x16x192xf32>
      %48 = arith.addf %41, %47 : vector<16x16x192xf32>
      %c0_50 = arith.constant 0 : index
      %c2 = arith.constant 2 : index
      %c0_51 = arith.constant 0 : index
      %49 = vector.load %arg12[%c0_50, %c2, %c0_51] : memref<18x24x192xbf16, #tpu.memory_space<vmem>>, vector<16x16x192xbf16>
      %c2_52 = arith.constant 2 : index
      %c0_53 = arith.constant 0 : index
      %c0_54 = arith.constant 0 : index
      %c0_55 = arith.constant 0 : index
      %50 = vector.load %arg5[%c2_52, %c0_53, %c0_54, %c0_55] : memref<9x1x1x192xf32, #tpu.memory_space<vmem>>, vector<1x1x1x192xf32>
      %51 = vector.shape_cast %50 : vector<1x1x1x192xf32> to vector<1x1x192xf32>
      %52 = arith.extf %49 : vector<16x16x192xbf16> to vector<16x16x192xf32>
      %53 = vector.broadcast %51 : vector<1x1x192xf32> to vector<16x16x192xf32>
      %54 = arith.mulf %52, %53 : vector<16x16x192xf32>
      %55 = arith.addf %48, %54 : vector<16x16x192xf32>
      %c1_56 = arith.constant 1 : index
      %c0_57 = arith.constant 0 : index
      %c0_58 = arith.constant 0 : index
      %56 = vector.load %arg12[%c1_56, %c0_57, %c0_58] : memref<18x24x192xbf16, #tpu.memory_space<vmem>>, vector<16x16x192xbf16>
      %c3 = arith.constant 3 : index
      %c0_59 = arith.constant 0 : index
      %c0_60 = arith.constant 0 : index
      %c0_61 = arith.constant 0 : index
      %57 = vector.load %arg5[%c3, %c0_59, %c0_60, %c0_61] : memref<9x1x1x192xf32, #tpu.memory_space<vmem>>, vector<1x1x1x192xf32>
      %58 = vector.shape_cast %57 : vector<1x1x1x192xf32> to vector<1x1x192xf32>
      %59 = arith.extf %56 : vector<16x16x192xbf16> to vector<16x16x192xf32>
      %60 = vector.broadcast %58 : vector<1x1x192xf32> to vector<16x16x192xf32>
      %61 = arith.mulf %59, %60 : vector<16x16x192xf32>
      %62 = arith.addf %55, %61 : vector<16x16x192xf32>
      %c1_62 = arith.constant 1 : index
      %c1_63 = arith.constant 1 : index
      %c0_64 = arith.constant 0 : index
      %63 = vector.load %arg12[%c1_62, %c1_63, %c0_64] : memref<18x24x192xbf16, #tpu.memory_space<vmem>>, vector<16x16x192xbf16>
      %c4 = arith.constant 4 : index
      %c0_65 = arith.constant 0 : index
      %c0_66 = arith.constant 0 : index
      %c0_67 = arith.constant 0 : index
      %64 = vector.load %arg5[%c4, %c0_65, %c0_66, %c0_67] : memref<9x1x1x192xf32, #tpu.memory_space<vmem>>, vector<1x1x1x192xf32>
      %65 = vector.shape_cast %64 : vector<1x1x1x192xf32> to vector<1x1x192xf32>
      %66 = arith.extf %63 : vector<16x16x192xbf16> to vector<16x16x192xf32>
      %67 = vector.broadcast %65 : vector<1x1x192xf32> to vector<16x16x192xf32>
      %68 = arith.mulf %66, %67 : vector<16x16x192xf32>
      %69 = arith.addf %62, %68 : vector<16x16x192xf32>
      %c1_68 = arith.constant 1 : index
      %c2_69 = arith.constant 2 : index
      %c0_70 = arith.constant 0 : index
      %70 = vector.load %arg12[%c1_68, %c2_69, %c0_70] : memref<18x24x192xbf16, #tpu.memory_space<vmem>>, vector<16x16x192xbf16>
      %c5 = arith.constant 5 : index
      %c0_71 = arith.constant 0 : index
      %c0_72 = arith.constant 0 : index
      %c0_73 = arith.constant 0 : index
      %71 = vector.load %arg5[%c5, %c0_71, %c0_72, %c0_73] : memref<9x1x1x192xf32, #tpu.memory_space<vmem>>, vector<1x1x1x192xf32>
      %72 = vector.shape_cast %71 : vector<1x1x1x192xf32> to vector<1x1x192xf32>
      %73 = arith.extf %70 : vector<16x16x192xbf16> to vector<16x16x192xf32>
      %74 = vector.broadcast %72 : vector<1x1x192xf32> to vector<16x16x192xf32>
      %75 = arith.mulf %73, %74 : vector<16x16x192xf32>
      %76 = arith.addf %69, %75 : vector<16x16x192xf32>
      %c2_74 = arith.constant 2 : index
      %c0_75 = arith.constant 0 : index
      %c0_76 = arith.constant 0 : index
      %77 = vector.load %arg12[%c2_74, %c0_75, %c0_76] : memref<18x24x192xbf16, #tpu.memory_space<vmem>>, vector<16x16x192xbf16>
      %c6 = arith.constant 6 : index
      %c0_77 = arith.constant 0 : index
      %c0_78 = arith.constant 0 : index
      %c0_79 = arith.constant 0 : index
      %78 = vector.load %arg5[%c6, %c0_77, %c0_78, %c0_79] : memref<9x1x1x192xf32, #tpu.memory_space<vmem>>, vector<1x1x1x192xf32>
      %79 = vector.shape_cast %78 : vector<1x1x1x192xf32> to vector<1x1x192xf32>
      %80 = arith.extf %77 : vector<16x16x192xbf16> to vector<16x16x192xf32>
      %81 = vector.broadcast %79 : vector<1x1x192xf32> to vector<16x16x192xf32>
      %82 = arith.mulf %80, %81 : vector<16x16x192xf32>
      %83 = arith.addf %76, %82 : vector<16x16x192xf32>
      %c2_80 = arith.constant 2 : index
      %c1_81 = arith.constant 1 : index
      %c0_82 = arith.constant 0 : index
      %84 = vector.load %arg12[%c2_80, %c1_81, %c0_82] : memref<18x24x192xbf16, #tpu.memory_space<vmem>>, vector<16x16x192xbf16>
      %c7 = arith.constant 7 : index
      %c0_83 = arith.constant 0 : index
      %c0_84 = arith.constant 0 : index
      %c0_85 = arith.constant 0 : index
      %85 = vector.load %arg5[%c7, %c0_83, %c0_84, %c0_85] : memref<9x1x1x192xf32, #tpu.memory_space<vmem>>, vector<1x1x1x192xf32>
      %86 = vector.shape_cast %85 : vector<1x1x1x192xf32> to vector<1x1x192xf32>
      %87 = arith.extf %84 : vector<16x16x192xbf16> to vector<16x16x192xf32>
      %88 = vector.broadcast %86 : vector<1x1x192xf32> to vector<16x16x192xf32>
      %89 = arith.mulf %87, %88 : vector<16x16x192xf32>
      %90 = arith.addf %83, %89 : vector<16x16x192xf32>
      %c2_86 = arith.constant 2 : index
      %c2_87 = arith.constant 2 : index
      %c0_88 = arith.constant 0 : index
      %91 = vector.load %arg12[%c2_86, %c2_87, %c0_88] : memref<18x24x192xbf16, #tpu.memory_space<vmem>>, vector<16x16x192xbf16>
      %c8 = arith.constant 8 : index
      %c0_89 = arith.constant 0 : index
      %c0_90 = arith.constant 0 : index
      %c0_91 = arith.constant 0 : index
      %92 = vector.load %arg5[%c8, %c0_89, %c0_90, %c0_91] : memref<9x1x1x192xf32, #tpu.memory_space<vmem>>, vector<1x1x1x192xf32>
      %93 = vector.shape_cast %92 : vector<1x1x1x192xf32> to vector<1x1x192xf32>
      %94 = arith.extf %91 : vector<16x16x192xbf16> to vector<16x16x192xf32>
      %95 = vector.broadcast %93 : vector<1x1x192xf32> to vector<16x16x192xf32>
      %96 = arith.mulf %94, %95 : vector<16x16x192xf32>
      %97 = arith.addf %90, %96 : vector<16x16x192xf32>
      %98 = vector.shape_cast %97 : vector<16x16x192xf32> to vector<256x192xf32>
      %99 = vector.broadcast %0 : vector<1x192xf32> to vector<256x192xf32>
      %100 = arith.mulf %98, %99 : vector<256x192xf32>
      %101 = vector.broadcast %1 : vector<1x192xf32> to vector<256x192xf32>
      %102 = arith.addf %100, %101 : vector<256x192xf32>
      %cst_92 = arith.constant 0.000000e+00 : f32
      %103 = vector.broadcast %cst_92 : f32 to vector<256x192xf32>
      %104 = arith.maximumf %102, %103 : vector<256x192xf32>
      %cst_93 = arith.constant 6.000000e+00 : f32
      %105 = vector.broadcast %cst_93 : f32 to vector<256x192xf32>
      %106 = arith.minimumf %104, %105 : vector<256x192xf32>
      %107 = arith.truncf %106 : vector<256x192xf32> to vector<256x192xbf16>
      %c0_94 = arith.constant 0 : index
      %c0_95 = arith.constant 0 : index
      %108 = vector.load %arg8[%c0_94, %c0_95] : memref<192x32xbf16, #tpu.memory_space<vmem>>, vector<192x32xbf16>
      %cst_96 = arith.constant dense<0.000000e+00> : vector<256x32xf32>
      %109 = tpu.matmul %107, %108, %cst_96 {dimension_numbers = #tpu.dot_dimension_numbers<[1], [0], [0], [1], [0, 0, 1, 1], [], []>} : vector<256x192xbf16>, vector<192x32xbf16>, vector<256x32xf32> -> vector<256x32xf32>
      %110 = vector.broadcast %2 : vector<1x32xf32> to vector<256x32xf32>
      %111 = arith.mulf %109, %110 : vector<256x32xf32>
      %112 = vector.broadcast %3 : vector<1x32xf32> to vector<256x32xf32>
      %113 = arith.addf %111, %112 : vector<256x32xf32>
      %114 = arith.index_cast %arg13 : i32 to index
      %c1_97 = arith.constant 1 : index
      %c1_98 = arith.constant 1 : index
      %c0_99 = arith.constant 0 : index
      %115 = vector.load %arg1[%114, %c1_97, %c1_98, %c0_99] : memref<2x18x24x32xbf16, #tpu.memory_space<vmem>>, vector<1x16x16x32xbf16>
      %116 = vector.shape_cast %115 : vector<1x16x16x32xbf16> to vector<16x16x32xbf16>
      %117 = vector.shape_cast %116 : vector<16x16x32xbf16> to vector<256x32xbf16>
      %118 = arith.extf %117 : vector<256x32xbf16> to vector<256x32xf32>
      %119 = arith.addf %113, %118 : vector<256x32xf32>
      %120 = arith.truncf %119 : vector<256x32xf32> to vector<256x32xbf16>
      %121 = arith.index_cast %arg13 : i32 to index
      %c0_100 = arith.constant 0 : index
      %c0_101 = arith.constant 0 : index
      %122 = vector.load %arg11[%121, %c0_100, %c0_101] : memref<2x256x32xbf16, #tpu.memory_space<vmem>>, vector<1x256x32xbf16>
      %123 = vector.shape_cast %122 : vector<1x256x32xbf16> to vector<256x32xbf16>
      %124 = vector.shape_cast %120 : vector<256x32xbf16> to vector<1x256x32xbf16>
      tpu.vector_store %arg11[%121, %c0_100, %c0_101], %124 {strides = array<i32>} : memref<2x256x32xbf16, #tpu.memory_space<vmem>>, vector<1x256x32xbf16>,
    }
    %c2_i32_11 = arith.constant 2 : i32
    return
  }
  func.func @transform_0(%arg0: i32) -> (i32, i32, i32, i32) {
    %c0_i32 = arith.constant 0 : i32
    %c0_i32_0 = arith.constant 0 : i32
    %c0_i32_1 = arith.constant 0 : i32
    %c0_i32_2 = arith.constant 0 : i32
    return %arg0, %c0_i32, %c0_i32_0, %c0_i32_1 : i32, i32, i32, i32
  }
  func.func @transform_1(%arg0: i32) -> (i32, i32) {
    %c0_i32 = arith.constant 0 : i32
    %c0_i32_0 = arith.constant 0 : i32
    %c0_i32_1 = arith.constant 0 : i32
    return %c0_i32, %c0_i32_0 : i32, i32
  }
  func.func @transform_2(%arg0: i32) -> (i32, i32) {
    %c0_i32 = arith.constant 0 : i32
    %c0_i32_0 = arith.constant 0 : i32
    %c0_i32_1 = arith.constant 0 : i32
    return %c0_i32, %c0_i32_0 : i32, i32
  }
  func.func @transform_3(%arg0: i32) -> (i32, i32) {
    %c0_i32 = arith.constant 0 : i32
    %c0_i32_0 = arith.constant 0 : i32
    %c0_i32_1 = arith.constant 0 : i32
    return %c0_i32, %c0_i32_0 : i32, i32
  }
  func.func @transform_4(%arg0: i32) -> (i32, i32, i32, i32) {
    %c0_i32 = arith.constant 0 : i32
    %c0_i32_0 = arith.constant 0 : i32
    %c0_i32_1 = arith.constant 0 : i32
    %c0_i32_2 = arith.constant 0 : i32
    %c0_i32_3 = arith.constant 0 : i32
    return %c0_i32, %c0_i32_0, %c0_i32_1, %c0_i32_2 : i32, i32, i32, i32
  }
  func.func @transform_5(%arg0: i32) -> (i32, i32) {
    %c0_i32 = arith.constant 0 : i32
    %c0_i32_0 = arith.constant 0 : i32
    %c0_i32_1 = arith.constant 0 : i32
    return %c0_i32, %c0_i32_0 : i32, i32
  }
  func.func @transform_6(%arg0: i32) -> (i32, i32) {
    %c0_i32 = arith.constant 0 : i32
    %c0_i32_0 = arith.constant 0 : i32
    %c0_i32_1 = arith.constant 0 : i32
    return %c0_i32, %c0_i32_0 : i32, i32
  }
  func.func @transform_7(%arg0: i32) -> (i32, i32) {
    %c0_i32 = arith.constant 0 : i32
    %c0_i32_0 = arith.constant 0 : i32
    %c0_i32_1 = arith.constant 0 : i32
    return %c0_i32, %c0_i32_0 : i32, i32
  }
  func.func @transform_8(%arg0: i32) -> (i32, i32) {
    %c0_i32 = arith.constant 0 : i32
    %c0_i32_0 = arith.constant 0 : i32
    %c0_i32_1 = arith.constant 0 : i32
    return %c0_i32, %c0_i32_0 : i32, i32
  }
  func.func @transform_9(%arg0: i32) -> (i32, i32) {
    %c0_i32 = arith.constant 0 : i32
    %c0_i32_0 = arith.constant 0 : i32
    %c0_i32_1 = arith.constant 0 : i32
    return %c0_i32, %c0_i32_0 : i32, i32
  }
  func.func @transform_10(%arg0: i32) -> (i32, i32, i32) {
    %c0_i32 = arith.constant 0 : i32
    %c0_i32_0 = arith.constant 0 : i32
    %c0_i32_1 = arith.constant 0 : i32
    return %arg0, %c0_i32, %c0_i32_0 : i32, i32, i32
  }
}

</mosaic_0001>

<bundles_post_ra>
// kernel: _lambda_.1
= control target key start
LH: loop header
LB: loop body
LE: loop exit
PB: predicated region body
PF: predicated region fallthrough
CT: control target
= control target key end

     0   :  { %15 = vsyncpa [#allocation4], 0  ;;  %s11167_s0 = inlined_call_operand.vmem [shape: bf16[2,18,24,32], index: 0, kind: input, shape index: {}]   ;;  %s11168_s1 = inlined_call_operand.vmem [shape: bf16[32,192], index: 1, kind: input, shape index: {}]   ;;  %s11169_s2 = inlined_call_operand.vmem [shape: f32[1,192], index: 2, kind: input, shape index: {}, may-alias: {2,5}]   ;;  %s11170_s3 = inlined_call_operand.vmem [shape: f32[1,192], index: 3, kind: input, shape index: {}, may-alias: {3,6}]   ;;  %s11171_s4 = inlined_call_operand.vmem [shape: f32[9,1,1,192], index: 4, kind: input, shape index: {}]   ;;  %s11172_s5 = inlined_call_operand.vmem [shape: f32[1,192], index: 5, kind: input, shape index: {}, may-alias: {2,5}]   ;;  %s11173_s6 = inlined_call_operand.vmem [shape: f32[1,192], index: 6, kind: input, shape index: {}, may-alias: {3,6}]   ;;  %s11174_s7 = inlined_call_operand.vmem [shape: bf16[192,32], index: 7, kind: input, shape index: {}]   ;;  %s11175_s8 = inlined_call_operand.vmem [shape: f32[1,32], index: 8, kind: input, shape index: {}]   ;;  %s11176_s9 = inlined_call_operand.vmem [shape: f32[1,32], index: 9, kind: input, shape index: {}]   ;;  %s11177_s10 = inlined_call_operand.hbm [shape: bf16[2,256,32], index: 10, kind: output, shape index: {}]  }
   0x1   :  { %v7438_v0 = vld [vmem:[%s11172_s5] sm:$0x3] }
   0x2   :  { %11263 = vst [vmem:[#allocation6_spill] sm:$0xff] %v7438_v0  ;;  %v7443_v1 = vld [vmem:[%s11173_s6] sm:$0x3]  ;;  %s7465_s6 = smov 0  }
   0x3   :  { %11264 = vst [vmem:[#allocation7_spill] sm:$0xff] %v7443_v1  ;;  %v7448_v2 = vld [vmem:[%s11175_s8] ss:$0 sm:$0xff] }
   0x4   :  { %11265 = vst [vmem:[#allocation8_spill] sm:$0xff] %v7448_v2  ;;  %v7453_v3 = vld [vmem:[%s11176_s9] ss:$0 sm:$0xff] }
   0x5   :  { %11266 = vst [vmem:[#allocation9_spill] sm:$0xff] %v7453_v3  ;;  %v7458_v4 = vld [vmem:[%s11169_s2] sm:$0x3] }
   0x6   :  { %11267 = vst [vmem:[#allocation10_spill] sm:$0xff] %v7458_v4  ;;  %v7463_v5 = vld [vmem:[%s11170_s3] sm:$0x3] }
   0x7   :  { %11268 = vst [vmem:[#allocation11_spill] sm:$0xff] %v7463_v5 }
   0x8 LB: > { %v7297_v6 = vld [vmem:[%s11168_s1 + $0x4] ss:$8 sps:$4 sm:$0xff]   ;;  %v7299_v7 = vld [vmem:[%s11168_s1] ss:$8 sps:$4 sm:$0xff]   ;;  %v11178_v8 = vmov 0   ;;  %s7197_s28 = smul.u32 216, %s7374_s6  ;;  %v651_v49 = vlaneseq  ;;  %s7374_s6 = sphi %s7465_s6, %s48_s6  }
   0x9   : > { %v11272_v0 = vld [vmem:[#allocation6_spill] sm:$0xff]  ;;  %379 = vmatprep.mubr.bf16.mxu0 %v11178_v8  ;;  %5999 = vmatprep.subr.bf16.mxu1 %v11178_v8  ;;  %vm265_vm0 = vcmask 261120   ;;  %v7330_v27 = vld [vmem:[%s11174_s7] sm:$0xff]   ;;  %v7331_v28 = vld [vmem:[%s11174_s7 + $0x8] sm:$0xff]   ;;  %vm1464_vm1 = vcmask 1043456   ;;  %vm1465_vm2 = vcmask 523268  }
   0xa   : > { %v11271_v1 = vld [vmem:[#allocation7_spill] sm:$0xff]  ;;  %347 = vmatprep.subr.bf16.mxu0 %v7297_v6  ;;  %s7488_s11 = scalar_lea.vmem %s11167_s0, %s7197_s28  ;;  %6000 = vmatpush1.bf16.msra.mxu1 %v7330_v27  ;;  %v7332_v30 = vld [vmem:[%s11174_s7 + $0x10] sm:$0xff]   ;;  %v7334_v33 = vld [vmem:[%s11174_s7 + $0x20] sm:$0xff]   ;;  %v652_v50 = vshrl.u32 %v651_v49, 7  ;;  %vm1528_vm3 = vcmask 1040384   ;;  %vm1531_vm6 = vcmask 520196  }
   0xb   : > { %v7300_v9 = vld [vmem:[%s11168_s1 + $0x14] ss:$8 sps:$4 sm:$0xff]   ;;  %v7302_v10 = vld [vmem:[%s11168_s1 + $0x10] ss:$8 sps:$4 sm:$0xff]   ;;  %348 = vmatpush1.bf16.msra.mxu0 %v7299_v7  ;;  %v7303_v11 = vld [vmem:[%s7488_s11] sm:$0xff]   ;;  %6001 = vmatprep.subr.bf16.mxu1 %v11178_v8  ;;  %vm2615_vm13 = vcmask 1045504  }
   0xc   : > { %349 = vmatprep.subr.bf16.mxu0 %v7300_v9  ;;  %v7304_v12 = vld [vmem:[%s7488_s11 + $0x8] sm:$0xff]   ;;  %v7305_v13 = vld [vmem:[%s7488_s11 + $0x10] sm:$0xff]   ;;  %v7306_v14 = vld [vmem:[%s7488_s11 + $0x18] sm:$0xff]   ;;  %v7616_v52 = vsub.s32 0, %v652_v50  ;;  %v7618_v53 = vsub.s32 1, %v652_v50  ;;  %s7284_s25 = sshll.u32 %s7374_s6, 7 }
   0xd   : > { %v11270_v4 = vld [vmem:[#allocation10_spill] sm:$0xff]  ;;  %v7307_v15 = vld [vmem:[%s7488_s11 + $0x20] sm:$0xff]   ;;  %v7308_v16 = vld [vmem:[%s7488_s11 + $0x28] sm:$0xff]   ;;  %vm1529_vm4 = vsmask.f32 256  ;;  %s10911_s26 = scalar_lea.vmem [#allocation3], %s7284_s25 }
   0xe   : > { %v11269_v5 = vld [vmem:[#allocation11_spill] sm:$0xff]  ;;  %v7309_v17 = vld [vmem:[%s7488_s11 + $0x30] sm:$0xff]   ;;  %v7311_v19 = vld [vmem:[%s7488_s11 + $0x40] sm:$0xff]   ;;  %6002 = vmatpush1.bf16.msra.mxu1 %v7331_v28  ;;  %v7623_v54 = vrot.slane %v11270_v4, %v7616_v52  ;;  %v7627_v55 = vrot.slane %v11270_v4, %v7618_v53  ;;  %vm1532_vm5 = vsmask.f32 4352  ;;  %s48_s6 = sadd.s32 1, %s7374_s6  }
   0xf   : > { %350 = vmatpush1.bf16.msra.mxu0 %v7302_v10  ;;  %v7310_v18 = vld [vmem:[%s7488_s11 + $0x38] sm:$0xff]   ;;  %v7312_v20 = vld [vmem:[%s7488_s11 + $0x48] sm:$0xff]   ;;  %v7313_v21 = vld [vmem:[%s7488_s11 + $0x50] sm:$0xff]   ;;  %6003 = vmatprep.subr.bf16.mxu1 %v11178_v8  ;;  %v7631_v56 = vrot.slane %v11269_v5, %v7616_v52  ;;  %v7635_v58 = vrot.slane %v11269_v5, %v7618_v53  ;;  %vm1589_vm8 = vsmask.f32 7938  ;;  %p45_p0 = scmp.ge.s32.totalorder %s48_s6, 2  }
  0x10   : > { %v7314_v22 = vld [vmem:[%s7488_s11 + $0x58] sm:$0xff]   ;;  %v7315_v23 = vld [vmem:[%s7488_s11 + $0x60] sm:$0xff]   ;;  %v7316_v24 = vld [vmem:[%s7488_s11 + $0x68] sm:$0xff]   ;;  %vm1591_vm9 = vsmask.f32 7954 }
  0x11   : > { %v7317_v25 = vld [vmem:[%s7488_s11 + $0x70] sm:$0xff]   ;;  %v7318_v26 = vld [vmem:[%s7488_s11 + $0x78] sm:$0xff]   ;;  %v7319_v29 = vld [vmem:[%s7488_s11 + $0x80] sm:$0xff]  }
  0x12   : > { %6995 = vmatmul.mubr.msk.bf16.vlgmr.msra.gmra.mrb[0].mxu0 %vm265_vm0, %v7303_v11  ;;  %6004 = vmatpush1.bf16.msra.mxu1 %v7332_v30  ;;  %v7333_v31 = vld [vmem:[%s11174_s7 + $0x18] sm:$0xff]   ;;  %v7320_v32 = vld [vmem:[%s7488_s11 + $0x88] sm:$0xff]   ;;  %v7321_v35 = vld [vmem:[%s7488_s11 + $0x90] sm:$0xff]  }
  0x13   : > { %389 = vmatprep.mubr.bf16.mxu0 %v11178_v8  ;;  %6005 = vmatprep.subr.bf16.mxu1 %v11178_v8  ;;  %v7335_v34 = vld [vmem:[%s11174_s7 + $0x28] sm:$0xff]   ;;  %v7336_v36 = vld [vmem:[%s11174_s7 + $0x30] sm:$0xff]   ;;  %v7337_v37 = vld [vmem:[%s11174_s7 + $0x38] sm:$0xff]  }
  0x14   : > { %v7322_v38 = vld [vmem:[%s7488_s11 + $0x98] sm:$0xff]   ;;  %v7338_v39 = vld [vmem:[%s11174_s7 + $0x40] sm:$0xff]   ;;  %v7339_v40 = vld [vmem:[%s11174_s7 + $0x48] sm:$0xff]  }
  0x15   : > { %v7323_v41 = vld [vmem:[%s7488_s11 + $0xa0] sm:$0xff]   ;;  %v7340_v42 = vld [vmem:[%s11174_s7 + $0x50] sm:$0xff]   ;;  %v7341_v43 = vld [vmem:[%s11174_s7 + $0x58] sm:$0xff]  }
  0x16   : > { %6006 = vmatpush1.bf16.msra.mxu1 %v7333_v31  ;;  %v7324_v44 = vld [vmem:[%s7488_s11 + $0xa8] sm:$0xff]   ;;  %v7325_v45 = vld [vmem:[%s7488_s11 + $0xb0] sm:$0xff]   ;;  %v7326_v46 = vld [vmem:[%s7488_s11 + $0xb8] sm:$0xff]  }
  0x17   : > { %6007 = vmatprep.subr.bf16.mxu1 %v11178_v8  ;;  %v7327_v47 = vld [vmem:[%s7488_s11 + $0xc0] sm:$0xff]   ;;  %v7328_v48 = vld [vmem:[%s7488_s11 + $0xc8] sm:$0xff]   ;;  %v7329_v51 = vld [vmem:[%s7488_s11 + $0xd0] sm:$0xff]  }
  0x18   : > { %vm7658_vm7 = vmor %vm1465_vm2, %vm1464_vm1  ;;  %v7078_v30 = vld [vmem:[%s11171_s4 + $0x6] sm:$0x3]  ;;  %vm2073_vm1 = vcmask 1046528   ;;  %vm5950_vm2 = vcmask 523264  }
  0x19   : > { %v7705_v50 = vrot.slane %v7078_v30, %v7618_v53  ;;  %vm7715_vm10 = vmand %vm1528_vm3, %vm1529_vm4  ;;  %vm6288_vm4 = vsmask.f32 7440 }
  0x1a   : > { %6996 = vmatmul.mubr.msk.bf16.gmra.mrb[4].mxu0 %vm265_vm0, %v7304_v12  ;;  %6008 = vmatpush1.bf16.msra.mxu1 %v7334_v33  ;;  %vm7733_vm11 = vmand %vm1531_vm6, %vm1532_vm5  ;;  %vm6901_vm5 = vcmask 257024  }
  0x1b   : > { %399 = vmatprep.mubr.bf16.mxu0 %v11178_v8  ;;  %6009 = vmatprep.subr.bf16.mxu1 %v11178_v8  ;;  %11279 = vst [vmem:[#allocation16_spill] sm:$0xff] %v7705_v50  ;;  %vm7763_vm12 = vmor %vm7733_vm11, %vm7715_vm10 }
  0x1c   : > { %vm7797_vm14 = vmand %vm1528_vm3, %vm1589_vm8  ;;  %vm6287_vm3 = vsmask.f32 3328 }
  0x1d   : > { %vm7810_vm15 = vmand %vm1531_vm6, %vm1591_vm9 }
  0x1e   : > { %6010 = vmatpush1.bf16.msra.mxu1 %v7335_v34  ;;  %vm10889_vm6 = vmor %vm6287_vm3, %vm6288_vm4 }
  0x1f   : > { %6011 = vmatprep.subr.bf16.mxu1 %v11178_v8 }
  0x22   : > { %6997 = vmatmul.mubr.msk.bf16.gmra.mrb[8].mxu0 %vm265_vm0, %v7305_v13  ;;  %6012 = vmatpush1.bf16.msra.mxu1 %v7336_v36  ;;  %v7077_v13 = vld [vmem:[%s11171_s4 + $0x4] sm:$0x3]  ;;  %v7080_v36 = vld [vmem:[%s11171_s4 + $0xa] sm:$0x3] }
  0x23   : > { %409 = vmatprep.mubr.bf16.mxu0 %v11178_v8  ;;  %6013 = vmatprep.subr.bf16.mxu1 %v11178_v8 }
  0x26   : > { %6014 = vmatpush1.bf16.msra.mxu1 %v7337_v37 }
  0x27   : > { %6015 = vmatprep.subr.bf16.mxu1 %v11178_v8 }
  0x2a   : > { %6998 = vmatmul.mubr.msk.bf16.gmra.mrb[12].mxu0 %vm265_vm0, %v7306_v14  ;;  %6016 = vmatpush1.bf16.msra.mxu1 %v7338_v39 }
  0x2b   : > { %419 = vmatprep.mubr.bf16.mxu0 %v11178_v8  ;;  %6017 = vmatprep.subr.bf16.mxu1 %v11178_v8 }
  0x2e   : > { %6018 = vmatpush1.bf16.msra.mxu1 %v7339_v40 }
  0x2f   : > { %6019 = vmatprep.subr.bf16.mxu1 %v11178_v8 }
  0x32   : > { %6999 = vmatmul.mubr.msk.bf16.gmra.mrb[16].mxu0 %vm265_vm0, %v7307_v15  ;;  %6020 = vmatpush1.bf16.msra.mxu1 %v7340_v42  ;;  %v7079_v42 = vld [vmem:[%s11171_s4 + $0x8] sm:$0x3] }
  0x33   : > { %429 = vmatprep.mubr.bf16.mxu0 %v11178_v8  ;;  %6021 = vmatprep.subr.bf16.mxu1 %v11178_v8 }
  0x36   : > { %6022 = vmatpush1.bf16.msra.mxu1 %v7341_v43 }
  0x3a   : > { %7000 = vmatmul.mubr.msk.bf16.gmra.mrb[20].mxu0 %vm265_vm0, %v7308_v16  ;;  %v7076_v16 = vld [vmem:[%s11171_s4 + $0x2] sm:$0x3] }
  0x3b   : > { %439 = vmatprep.mubr.bf16.mxu0 %v11178_v8  ;;  %v7664_v28 = vrot.slane %v7076_v16, %v7616_v52 }
  0x42   : > { %7001 = vmatmul.mubr.msk.bf16.gmra.mrb[24].mxu0 %vm265_vm0, %v7309_v17 }
  0x43   : > { %449 = vmatprep.mubr.bf16.mxu0 %v11178_v8 }
  0x4a   : > { %7002 = vmatmul.mubr.msk.bf16.gmra.mrb[28].mxu0 %vm265_vm0, %v7310_v18 }
  0x4b   : > { %459 = vmatprep.mubr.bf16.mxu0 %v11178_v8 }
  0x52   : > { %7003 = vmatmul.mubr.msk.bf16.gmra.mrb[32].mxu0 %vm265_vm0, %v7311_v19 }
  0x53   : > { %469 = vmatprep.mubr.bf16.mxu0 %v11178_v8 }
  0x5a   : > { %7004 = vmatmul.mubr.msk.bf16.gmra.mrb[36].mxu0 %vm265_vm0, %v7312_v20 }
  0x5b   : > { %479 = vmatprep.mubr.bf16.mxu0 %v11178_v8 }
  0x62   : > { %7005 = vmatmul.mubr.msk.bf16.gmra.mrb[40].mxu0 %vm265_vm0, %v7313_v21 }
  0x63   : > { %489 = vmatprep.mubr.bf16.mxu0 %v11178_v8 }
  0x6a   : > { %7006 = vmatmul.mubr.msk.bf16.gmra.mrb[44].mxu0 %vm265_vm0, %v7314_v22  ;;  %v1680_v22 = vld [vmem:[%s11171_s4] sm:$0x3] }
  0x6b   : > { %499 = vmatprep.mubr.bf16.mxu0 %v11178_v8  ;;  %v7682_v40 = vrot.slane %v1680_v22, %v7616_v52 }
  0x6d   : > { %11278 = vst [vmem:[#allocation15_spill] sm:$0xff] %v7682_v40 }
  0x72   : > { %7007 = vmatmul.mubr.msk.bf16.gmra.mrb[48].mxu0 %vm265_vm0, %v7315_v23  ;;  %v7655_v23 = vrot.slane %v7077_v13, %v7616_v52 }
  0x73   : > { %509 = vmatprep.mubr.bf16.mxu0 %v11178_v8 }
  0x7a   : > { %7008 = vmatmul.mubr.msk.bf16.gmra.mrb[52].mxu0 %vm265_vm0, %v7316_v24  ;;  %v11273_v24 = vmov 0 }
  0x7b   : > { %519 = vmatprep.mubr.bf16.mxu0 %v11178_v8  ;;  %v11274_v24 = vsel %vm7658_vm7, 4294967295, %v11273_v24 }
  0x7c   : > { %11275 = vst [vmem:[#allocation12_spill] sm:$0xff] %v11274_v24 }
  0x82   : > { %7009 = vmatmul.mubr.msk.bf16.gmra.mrb[56].mxu0 %vm265_vm0, %v7317_v25 }
  0x83   : > { %529 = vmatprep.mubr.bf16.mxu0 %v11178_v8 }
  0x8a   : > { %7010 = vmatmul.mubr.msk.bf16.gmra.mrb[60].mxu0 %vm265_vm0, %v7318_v26 }
  0x8b   : > { %539 = vmatprep.mubr.bf16.mxu0 %v11178_v8 }
  0x92   : > { %7011 = vmatmul.mubr.msk.bf16.gmra.mrb[64].mxu0 %vm265_vm0, %v7319_v29  ;;  %v7667_v29 = vrot.slane %v7077_v13, %v7618_v53 }
  0x93   : > { %549 = vmatprep.mubr.bf16.mxu0 %v11178_v8 }
  0x94   : > { %11276 = vst [vmem:[#allocation13_spill] sm:$0xff] %v7667_v29 }
  0x9a   : > { %7012 = vmatmul.mubr.msk.bf16.gmra.mrb[68].mxu0 %vm265_vm0, %v7320_v32 }
  0x9b   : > { %559 = vmatprep.mubr.bf16.mxu0 %v11178_v8 }
  0xa2   : > { %7013 = vmatmul.mubr.msk.bf16.gmra.mrb[72].mxu0 %vm265_vm0, %v7321_v35  ;;  %v7674_v35 = vrot.slane %v7076_v16, %v7618_v53 }
  0xa3   : > { %569 = vmatprep.mubr.bf16.mxu0 %v11178_v8 }
  0xa4   : > { %11277 = vst [vmem:[#allocation14_spill] sm:$0xff] %v7674_v35 }
  0xaa   : > { %7014 = vmatmul.mubr.msk.bf16.gmra.mrb[76].mxu0 %vm265_vm0, %v7322_v38 }
  0xab   : > { %579 = vmatprep.mubr.bf16.mxu0 %v11178_v8 }
  0xb2   : > { %7015 = vmatmul.mubr.msk.bf16.gmra.mrb[80].mxu0 %vm265_vm0, %v7323_v41  ;;  %v7685_v41 = vrot.slane %v1680_v22, %v7618_v53 }
  0xb3   : > { %589 = vmatprep.mubr.bf16.mxu0 %v11178_v8 }
  0xba   : > { %7016 = vmatmul.mubr.msk.bf16.gmra.mrb[84].mxu0 %vm265_vm0, %v7324_v44 }
  0xbb   : > { %599 = vmatprep.mubr.bf16.mxu0 %v11178_v8 }
  0xc2   : > { %7017 = vmatmul.mubr.msk.bf16.gmra.mrb[88].mxu0 %vm265_vm0, %v7325_v45 }
  0xc3   : > { %609 = vmatprep.mubr.bf16.mxu0 %v11178_v8 }
  0xca   : > { %7018 = vmatmul.mubr.msk.bf16.gmra.mrb[92].mxu0 %vm265_vm0, %v7326_v46  ;;  %v7695_v46 = vrot.slane %v7078_v30, %v7616_v52 }
  0xcb   : > { %619 = vmatprep.mubr.bf16.mxu0 %v11178_v8 }
  0xd2   : > { %7019 = vmatmul.mubr.msk.bf16.gmra.mrb[96].mxu0 %vm265_vm0, %v7327_v47  ;;  %v7081_v47 = vld [vmem:[%s11171_s4 + $0xc] sm:$0x3] }
  0xd3   : > { %629 = vmatprep.mubr.bf16.mxu0 %v11178_v8  ;;  %v7747_v16 = vrot.slane %v7081_v47, %v7618_v53 }
  0xd5   : > { %11286 = vst [vmem:[#allocation19_spill] sm:$0xff] %v7747_v16 }
  0xda   : > { %7020 = vmatmul.mubr.msk.bf16.gmra.mrb[100].mxu0 %vm265_vm0, %v7328_v48 }
  0xdb   : > { %639 = vmatprep.mubr.bf16.mxu0 %v11178_v8 }
  0xe2   : > { %7021 = vmatmul.mubr.msk.bf16.gmra.mrb[104].mxu0 %vm265_vm0, %v7329_v51  ;;  %v7708_v51 = vrot.slane %v7080_v36, %v7616_v52  ;;  %vm7831_vm0 = vmor %vm7810_vm15, %vm7797_vm14 }
  0xe5   : > { %v381_v57 = vpop.f32.mrb[0].mxu0 }
  0xe6   : > { %v661_v59 = vmul.f32 %v7623_v54, %v381_v57  ;;  %v383_v60 = vpop.f32.mrb[1].mxu0  ;;  %v7082_v57 = vld [vmem:[%s11171_s4 + $0xe] sm:$0x3] }
  0xe7   : > { %v662_v61 = vmul.f32 %v7627_v55, %v383_v60  ;;  %v385_v62 = vpop.f32.mrb[2].mxu0 }
  0xe8   : > { %v780_v63 = vadd.f32 %v7631_v56, %v661_v59  ;;  %v663_v6 = vmul.f32 %v7623_v54, %v385_v62  ;;  %v387_v7 = vpop.f32.mrb[3].mxu0  ;;  %v7723_v62 = vrot.slane %v7079_v42, %v7616_v52 }
  0xe9   : > { %v781_v9 = vadd.f32 %v7635_v58, %v662_v61  ;;  %v664_v10 = vmul.f32 %v7627_v55, %v387_v7 }
  0xea   : > { %v888_v11 = vmax.f32 %v780_v63, 0.0  ;;  %v782_v12 = vadd.f32 %v7631_v56, %v663_v6  ;;  %v7726_v63 = vrot.slane %v7080_v36, %v7618_v53  ;;  %v7083_v6 = vld [vmem:[%s11171_s4 + $0x10] sm:$0x3] }
  0xeb   : > { %v889_v14 = vmax.f32 %v781_v9, 0.0  ;;  %v783_v15 = vadd.f32 %v7635_v58, %v664_v10  ;;  %v7757_v22 = vrot.slane %v7083_v6, %v7616_v52 }
  0xec   : > { %v996_v17 = vmin.f32 %v888_v11, 6.0  ;;  %v890_v18 = vmax.f32 %v782_v12, 0.0  ;;  %11282 = vst [vmem:[#allocation17_spill] sm:$0xff] %v7726_v63  ;;  %v7741_v11 = vrot.slane %v7079_v42, %v7618_v53  ;;  %v7744_v12 = vrot.slane %v7081_v47, %v7616_v52 }
  0xed   : > { %v997_v19 = vmin.f32 %v889_v14, 6.0  ;;  %v891_v20 = vmax.f32 %v783_v15, 0.0  ;;  %v391_v21 = vpop.f32.mrb[4].mxu0  ;;  %v7787_v47 = vrot.slane %v11272_v0, %v7616_v52 }
  0xee   : > { %v998_v25 = vmin.f32 %v890_v18, 6.0  ;;  %v665_v26 = vmul.f32 %v7623_v54, %v391_v21  ;;  %v393_v27 = vpop.f32.mrb[5].mxu0  ;;  %11285 = vst [vmem:[#allocation18_spill] sm:$0xff] %v7741_v11  ;;  %v7754_v21 = vrot.slane %v7082_v57, %v7618_v53 }
  0xef   : > { %v7198_v31 = vpack.c.bf16 %v997_v19, %v996_v17  ;;  %v999_v32 = vmin.f32 %v891_v20, 6.0  ;;  %v666_v33 = vmul.f32 %v7627_v55, %v393_v27  ;;  %v395_v34 = vpop.f32.mrb[6].mxu0  ;;  %v7750_v17 = vrot.slane %v7082_v57, %v7616_v52 }
  0xf0   : > { %v784_v37 = vadd.f32 %v7631_v56, %v665_v26  ;;  %v667_v38 = vmul.f32 %v7623_v54, %v395_v34  ;;  %v397_v39 = vpop.f32.mrb[7].mxu0  ;;  %11287 = vst [vmem:[#allocation20_spill] sm:$0xff] %v7754_v21 }
  0xf1   : > { %1467 = vst.msk [vmem:[#allocation2] sm:$0xff] %vm7658_vm7, %v7198_v31  ;;  %v7199_v43 = vpack.c.bf16 %v999_v32, %v998_v25  ;;  %v785_v44 = vadd.f32 %v7635_v58, %v666_v33  ;;  %v668_v45 = vmul.f32 %v7627_v55, %v397_v39  ;;  %v11288_v25 = vmov 0 }
  0xf2   : > { %1521 = vst.msk [vmem:[#allocation2] sm:$0xff] %vm7658_vm7, %v11178_v8  ;;  %v892_v48 = vmax.f32 %v784_v37, 0.0  ;;  %v786_v49 = vadd.f32 %v7631_v56, %v667_v38  ;;  %v11289_v25 = vsel %vm7763_vm12, 4294967295, %v11288_v25  ;;  %v7769_v32 = vrot.slane %v7083_v6, %v7618_v53 }
  0xf3   : > { %1468 = vst.msk [vmem:[#allocation2 + $0x8] sm:$0xff] %vm7658_vm7, %v7199_v43  ;;  %v893_v60 = vmax.f32 %v785_v44, 0.0  ;;  %v787_v61 = vadd.f32 %v7635_v58, %v668_v45  ;;  %11290 = vst [vmem:[#allocation21_spill] sm:$0xff] %v11289_v25  ;;  %v7775_v37 = vrot.slane %v11272_v0, %v7618_v53  ;;  %v7779_v38 = vrot.slane %v11271_v1, %v7618_v53 }
  0xf4   : > { %1522 = vst.msk [vmem:[#allocation2 + $0x8] sm:$0xff] %vm7658_vm7, %v11178_v8  ;;  %v1000_v9 = vmin.f32 %v892_v48, 6.0  ;;  %v894_v10 = vmax.f32 %v786_v49, 0.0 }
  0xf5   : > { %v1001_v13 = vmin.f32 %v893_v60, 6.0  ;;  %v895_v14 = vmax.f32 %v787_v61, 0.0  ;;  %v401_v15 = vpop.f32.mrb[8].mxu0 }
  0xf6   : > { %v1002_v18 = vmin.f32 %v894_v10, 6.0  ;;  %v669_v19 = vmul.f32 %v7623_v54, %v401_v15  ;;  %v403_v20 = vpop.f32.mrb[9].mxu0 }
  0xf7   : > { %v7200_v26 = vpack.c.bf16 %v1001_v13, %v1000_v9  ;;  %v1003_v27 = vmin.f32 %v895_v14, 6.0  ;;  %v670_v30 = vmul.f32 %v7627_v55, %v403_v20  ;;  %v405_v31 = vpop.f32.mrb[10].mxu0  ;;  %v7806_v9 = vrot.slane %v11271_v1, %v7616_v52 }
  0xf8   : > { %v788_v33 = vadd.f32 %v7631_v56, %v669_v19  ;;  %v671_v34 = vmul.f32 %v7623_v54, %v405_v31  ;;  %v407_v36 = vpop.f32.mrb[11].mxu0 }
  0xf9   : > { %v1535_v39 = vld [vmem:[#allocation2] sm:$0x11]  ;;  %1469 = vst.msk [vmem:[#allocation2 + $0x10] sm:$0xff] %vm7658_vm7, %v7200_v26  ;;  %v7201_v42 = vpack.c.bf16 %v1003_v27, %v1002_v18  ;;  %v789_v43 = vadd.f32 %v7635_v58, %v670_v30  ;;  %v672_v44 = vmul.f32 %v7627_v55, %v407_v36  ;;  %v2362_v45 = vld [vmem:[#allocation2] sm:$0xee]  ;;  %11293 = vst [vmem:[#allocation22_spill] sm:$0xff] %v7806_v9 }
  0xfa   : > { %v1536_v48 = vsel %vm7763_vm12, 0, %v1535_v39  ;;  %1523 = vst.msk [vmem:[#allocation2 + $0x10] sm:$0xff] %vm7658_vm7, %v11178_v8  ;;  %v896_v53 = vmax.f32 %v788_v33, 0.0  ;;  %v790_v49 = vadd.f32 %v7631_v56, %v671_v34  ;;  %v2380_v57 = vunpack.c.l.bf16 %v2362_v45 }
  0xfb   : > { %1537 = vst [vmem:[#allocation2] sm:$0x11] %v1536_v48  ;;  %1470 = vst.msk [vmem:[#allocation2 + $0x18] sm:$0xff] %vm7658_vm7, %v7201_v42  ;;  %v897_v60 = vmax.f32 %v789_v43, 0.0  ;;  %v791_v61 = vadd.f32 %v7635_v58, %v672_v44  ;;  %v1649_v6 = vld [vmem:[#allocation2 + $0x8] sm:$0xff]  ;;  %v2381_v7 = vunpack.c.h.bf16 %v2362_v45  ;;  %v11296_v39 = vmov 0 }
  0xfc   : > { %v1004_v13 = vmin.f32 %v896_v53, 6.0  ;;  %v898_v14 = vmax.f32 %v790_v49, 0.0  ;;  %v7814_v15 = vunpack.c.l.bf16 %v1649_v6  ;;  %v1684_v18 = vunpack.c.h.bf16 %v1649_v6 }
  0xfd   : > { %v1005_v19 = vmin.f32 %v897_v60, 6.0  ;;  %v899_v20 = vmax.f32 %v791_v61, 0.0  ;;  %v411_v26 = vpop.f32.mrb[12].mxu0  ;;  %v2424_v27 = vmul.f32 %v7667_v29, %v2381_v7  ;;  %v7818_v30 = vmul.f32 %v7655_v23, %v2380_v57 }
  0xfe   : > { %v1006_v52 = vmin.f32 %v898_v14, 6.0  ;;  %v673_v31 = vmul.f32 %v7623_v54, %v411_v26  ;;  %v413_v33 = vpop.f32.mrb[13].mxu0  ;;  %v7822_v34 = vmul.f32 %v7685_v41, %v1684_v18  ;;  %v7825_v36 = vmul.f32 %v7674_v35, %v1684_v18 }
  0xff   : > { %v11297_v39 = vsel %vm7831_vm0, 4294967295, %v11296_v39  ;;  %v7202_v42 = vpack.c.bf16 %v1005_v19, %v1004_v13  ;;  %v1007_v43 = vmin.f32 %v899_v20, 6.0  ;;  %v674_v44 = vmul.f32 %v7627_v55, %v413_v33  ;;  %v415_v45 = vpop.f32.mrb[14].mxu0 }
 0x100   : > { %11298 = vst [vmem:[#allocation23_spill] sm:$0xff] %v11297_v39  ;;  %v7837_v48 = vmul.f32 %v7667_v29, %v1684_v18  ;;  %v792_v53 = vadd.f32 %v7631_v56, %v673_v31  ;;  %v675_v49 = vmul.f32 %v7623_v54, %v415_v45  ;;  %v417_v57 = vpop.f32.mrb[15].mxu0  ;;  %v2619_v60 = vrot.slane %v2424_v27, 2 }
 0x101   : > { %v1594_v61 = vld [vmem:[#allocation2 + $0x10] sm:$0x11]  ;;  %1471 = vst.msk [vmem:[#allocation2 + $0x20] sm:$0xff] %vm7658_vm7, %v7202_v42  ;;  %v7203_v6 = vpack.c.bf16 %v1007_v43, %v1006_v52  ;;  %v793_v7 = vadd.f32 %v7635_v58, %v674_v44  ;;  %v676_v10 = vmul.f32 %v7627_v55, %v417_v57  ;;  %v7852_v27 = vmul.f32 %v7682_v40, %v7814_v15 }
 0x102   : > { %v11180_v13 = vrot.slane %v7837_v48, 2  ;;  %v1595_v14 = vsel %vm7831_vm0, 0, %v1594_v61  ;;  %v1538_v18 = vld [vmem:[#allocation2 + $0x18] sm:$0x11]  ;;  %v900_v19 = vmax.f32 %v792_v53, 0.0  ;;  %v794_v20 = vadd.f32 %v7631_v56, %v675_v49  ;;  %v1648_v26 = vld [vmem:[#allocation2] sm:$0xff] }
 0x103   : > { %1596 = vst [vmem:[#allocation2 + $0x10] sm:$0x11] %v1595_v14  ;;  %v1539_v52 = vsel %vm7763_vm12, 0, %v1538_v18  ;;  %1472 = vst.msk [vmem:[#allocation2 + $0x28] sm:$0xff] %vm7658_vm7, %v7203_v6  ;;  %v901_v31 = vmax.f32 %v793_v7, 0.0  ;;  %v795_v33 = vadd.f32 %v7635_v58, %v676_v10  ;;  %v1681_v42 = vunpack.c.l.bf16 %v1648_v26 }
 0x104   : > { %v7859_v43 = vld [vmem:[#allocation2 + $0x18] sm:$0xee]  ;;  %1540 = vst [vmem:[#allocation2 + $0x18] sm:$0x11] %v1539_v52  ;;  %v1008_v44 = vmin.f32 %v900_v19, 6.0  ;;  %v902_v45 = vmax.f32 %v794_v20, 0.0  ;;  %v1682_v53 = vunpack.c.h.bf16 %v1648_v26  ;;  %v2621_v49 = vsel %vm2615_vm13, %v2619_v60, %v11180_v13 }
 0x105   : > { %v1009_v57 = vmin.f32 %v901_v31, 6.0  ;;  %v903_v61 = vmax.f32 %v795_v33, 0.0  ;;  %v421_v14 = vpop.f32.mrb[16].mxu0  ;;  %v7865_v18 = vmul.f32 %v7664_v28, %v1681_v42 }
 0x106   : > { %v1010_v7 = vmin.f32 %v902_v45, 6.0  ;;  %v677_v10 = vmul.f32 %v7623_v54, %v421_v14  ;;  %v423_v8 = vpop.f32.mrb[17].mxu0  ;;  %v1757_v19 = vmul.f32 %v7685_v41, %v1682_v53  ;;  %v1882_v20 = vmul.f32 %v7674_v35, %v1682_v53 }
 0x107   : > { %v7204_v26 = vpack.c.bf16 %v1009_v57, %v1008_v44  ;;  %v1011_v52 = vmin.f32 %v903_v61, 6.0  ;;  %v678_v60 = vmul.f32 %v7627_v55, %v423_v8  ;;  %v425_v31 = vpop.f32.mrb[18].mxu0  ;;  %v7876_v14 = vmul.f32 %v7682_v40, %v1681_v42 }
 0x108   : > { %v796_v13 = vadd.f32 %v7631_v56, %v677_v10  ;;  %v679_v59 = vmul.f32 %v7623_v54, %v425_v31  ;;  %v427_v6 = vpop.f32.mrb[19].mxu0  ;;  %v2077_v45 = vrot.slane %v1882_v20, 1  ;;  %v2906_v0 = vld [vmem:[#allocation2 + $0x20] sm:$0xff]  ;;  %v11299_v20 = vrot.slane %v7825_v36, 1 }
 0x109   : > { %1473 = vst.msk [vmem:[#allocation2 + $0x30] sm:$0xff] %vm7658_vm7, %v7204_v26  ;;  %v7205_v44 = vpack.c.bf16 %v1011_v52, %v1010_v7  ;;  %v797_v53 = vadd.f32 %v7635_v58, %v678_v60  ;;  %v680_v8 = vmul.f32 %v7627_v55, %v427_v6  ;;  %v7882_v57 = vunpack.c.l.bf16 %v2906_v0 }
 0x10a   : > { %v1597_v61 = vld [vmem:[#allocation2 + $0x28] sm:$0x11]  ;;  %v904_v10 = vmax.f32 %v796_v13, 0.0  ;;  %v798_v31 = vadd.f32 %v7631_v56, %v679_v59  ;;  %v7885_v33 = vld [vmem:[#allocation2 + $0x10] sm:$0x11]  ;;  %v2079_v42 = vsel %vm2073_vm1, %v2077_v45, %v11299_v20  ;;  %v7890_v1 = vunpack.c.h.bf16 %v2906_v0 }
 0x10b   : > { %v1598_v7 = vsel %vm7831_vm0, 0, %v1597_v61  ;;  %1474 = vst.msk [vmem:[#allocation2 + $0x38] sm:$0xff] %vm7658_vm7, %v7205_v44  ;;  %v905_v6 = vmax.f32 %v797_v53, 0.0  ;;  %v799_v26 = vadd.f32 %v7635_v58, %v680_v8  ;;  %v2905_v59 = vld [vmem:[#allocation2 + $0x18] sm:$0xff]  ;;  %v1839_v4 = vunpack.c.h.bf16 %v7885_v33 }
 0x10c   : > { %1599 = vst [vmem:[#allocation2 + $0x28] sm:$0x11] %v1598_v7  ;;  %v1012_v52 = vmin.f32 %v904_v10, 6.0  ;;  %v906_v60 = vmax.f32 %v798_v31, 0.0  ;;  %v2299_v45 = vadd.f32 %v2079_v42, %v1757_v19  ;;  %v7899_v3 = vunpack.c.l.bf16 %v2905_v59 }
 0x10d   : > { %v1013_v0 = vmin.f32 %v905_v6, 6.0  ;;  %v907_v20 = vmax.f32 %v799_v26, 0.0  ;;  %v431_v5 = vpop.f32.mrb[20].mxu0  ;;  %v7901_v61 = vunpack.c.h.bf16 %v2905_v59  ;;  %v1886_v13 = vmul.f32 %v7674_v35, %v1839_v4 }
 0x10e   : > { %v1014_v44 = vmin.f32 %v906_v60, 6.0  ;;  %v681_v53 = vmul.f32 %v7623_v54, %v431_v5  ;;  %v433_v8 = vpop.f32.mrb[21].mxu0  ;;  %v2428_v7 = vmul.f32 %v7667_v29, %v1839_v4  ;;  %v2841_v42 = vadd.f32 %v2621_v49, %v2299_v45 }
 0x10f   : > { %v7206_v10 = vpack.c.bf16 %v1013_v0, %v1012_v52  ;;  %v1015_v31 = vmin.f32 %v907_v20, 6.0  ;;  %v682_v2 = vmul.f32 %v7627_v55, %v433_v8  ;;  %v435_v19 = vpop.f32.mrb[22].mxu0  ;;  %v2082_v60 = vrot.slane %v1886_v13, 1 }
 0x110   : > { %v1541_v6 = vld [vmem:[#allocation2 + $0x30] sm:$0x11]  ;;  %v800_v26 = vadd.f32 %v7631_v56, %v681_v53  ;;  %v683_v59 = vmul.f32 %v7623_v54, %v435_v19  ;;  %v437_v40 = vpop.f32.mrb[23].mxu0  ;;  %v2624_v9 = vrot.slane %v2428_v7, 2  ;;  %v11300_v20 = vrot.slane %v7825_v36, 1 }
 0x111   : > { %v1542_v5 = vsel %vm7763_vm12, 0, %v1541_v6  ;;  %1475 = vst.msk [vmem:[#allocation2 + $0x40] sm:$0xff] %vm7658_vm7, %v7206_v10  ;;  %v7207_v4 = vpack.c.bf16 %v1015_v31, %v1014_v44  ;;  %v801_v52 = vadd.f32 %v7635_v58, %v682_v2  ;;  %v684_v0 = vmul.f32 %v7627_v55, %v437_v40 }
 0x112   : > { %1543 = vst [vmem:[#allocation2 + $0x30] sm:$0x11] %v1542_v5  ;;  %v908_v49 = vmax.f32 %v800_v26, 0.0  ;;  %v802_v45 = vadd.f32 %v7631_v56, %v683_v59  ;;  %v2083_v13 = vsel %vm2073_vm1, %v11300_v20, %v2082_v60  ;;  %v11301_v53 = vrot.slane %v7837_v48, 2 }
 0x113   : > { %1476 = vst.msk [vmem:[#allocation2 + $0x48] sm:$0xff] %vm7658_vm7, %v7207_v4  ;;  %v909_v44 = vmax.f32 %v801_v52, 0.0  ;;  %v803_v2 = vadd.f32 %v7635_v58, %v684_v0  ;;  %v2301_v40 = vadd.f32 %v2083_v13, %v7822_v34  ;;  %v3015_v7 = vmul.f32 %v7705_v50, %v7901_v61  ;;  %v7928_v10 = vld [vmem:[#allocation2 + $0x28] sm:$0x11] }
 0x114   : > { %v2625_v8 = vsel %vm2615_vm13, %v11301_v53, %v2624_v9  ;;  %v1016_v36 = vmin.f32 %v908_v49, 6.0  ;;  %v910_v31 = vmax.f32 %v802_v45, 0.0  ;;  %v3017_v48 = vmul.f32 %v7705_v50, %v7890_v1 }
 0x115   : > { %v1017_v19 = vmin.f32 %v909_v44, 6.0  ;;  %v911_v6 = vmax.f32 %v803_v2, 0.0  ;;  %v441_v26 = vpop.f32.mrb[24].mxu0  ;;  %v2843_v59 = vadd.f32 %v2625_v8, %v2301_v40  ;;  %v3079_v60 = vadd.f32 %v3015_v7, %v2841_v42 }
 0x116   : > { %v1018_v5 = vmin.f32 %v910_v31, 6.0  ;;  %v685_v34 = vmul.f32 %v7623_v54, %v441_v26  ;;  %v443_v4 = vpop.f32.mrb[25].mxu0  ;;  %v3161_v52 = vunpack.c.h.bf16 %v7928_v10  ;;  %v3204_v0 = vmul.f32 %v7741_v11, %v7901_v61 }
 0x117   : > { %v7208_v49 = vpack.c.bf16 %v1017_v19, %v1016_v36  ;;  %v1019_v45 = vmin.f32 %v911_v6, 6.0  ;;  %v686_v20 = vmul.f32 %v7627_v55, %v443_v4  ;;  %v445_v13 = vpop.f32.mrb[26].mxu0  ;;  %v3081_v53 = vadd.f32 %v3017_v48, %v2843_v59 }
 0x118   : > { %v1600_v44 = vld [vmem:[#allocation2 + $0x40] sm:$0x11]  ;;  %v804_v2 = vadd.f32 %v7631_v56, %v685_v34  ;;  %v687_v42 = vmul.f32 %v7623_v54, %v445_v13  ;;  %v447_v8 = vpop.f32.mrb[27].mxu0  ;;  %v3206_v40 = vmul.f32 %v7741_v11, %v7890_v1  ;;  %v3208_v7 = vmul.f32 %v7741_v11, %v3161_v52 }
 0x119   : > { %v1601_v31 = vsel %vm7831_vm0, 0, %v1600_v44  ;;  %1477 = vst.msk [vmem:[#allocation2 + $0x50] sm:$0xff] %vm7658_vm7, %v7208_v49  ;;  %v7209_v36 = vpack.c.bf16 %v1019_v45, %v1018_v5  ;;  %v805_v48 = vadd.f32 %v7635_v58, %v686_v20  ;;  %v688_v19 = vmul.f32 %v7627_v55, %v447_v8 }
 0x11a   : > { %1602 = vst [vmem:[#allocation2 + $0x40] sm:$0x11] %v1601_v31  ;;  %v1544_v6 = vld [vmem:[#allocation2 + $0x48] sm:$0x11]  ;;  %v912_v26 = vmax.f32 %v804_v2, 0.0  ;;  %v806_v59 = vadd.f32 %v7631_v56, %v687_v42  ;;  %v3398_v34 = vrot.slane %v3204_v0, 1  ;;  %v11302_v2 = vunpack.c.h.bf16 %v7859_v43 }
 0x11b   : > { %v3399_v4 = vrot.slane %v3206_v40, 1  ;;  %v1545_v13 = vsel %vm7763_vm12, 0, %v1544_v6  ;;  %1478 = vst.msk [vmem:[#allocation2 + $0x58] sm:$0xff] %vm7658_vm7, %v7209_v36  ;;  %v913_v44 = vmax.f32 %v805_v48, 0.0  ;;  %v807_v5 = vadd.f32 %v7635_v58, %v688_v19 }
 0x11c   : > { %v3403_v49 = vrot.slane %v3208_v7, 1  ;;  %1546 = vst [vmem:[#allocation2 + $0x48] sm:$0x11] %v1545_v13  ;;  %v1020_v45 = vmin.f32 %v912_v26, 6.0  ;;  %v914_v20 = vmax.f32 %v806_v59, 0.0  ;;  %v3745_v0 = vmul.f32 %v7726_v63, %v11302_v2 }
 0x11d   : > { %v3400_v8 = vsel %vm2073_vm1, %v3398_v34, %v3399_v4  ;;  %v1021_v42 = vmin.f32 %v913_v44, 6.0  ;;  %v915_v40 = vmax.f32 %v807_v5, 0.0  ;;  %v451_v31 = vpop.f32.mrb[28].mxu0  ;;  %v3747_v26 = vmul.f32 %v7726_v63, %v7890_v1  ;;  %v4225_v5 = vld [vmem:[#allocation2 + $0x30] sm:$0xff] }
 0x11e   : > { %v3404_v6 = vsel %vm2073_vm1, %v3399_v4, %v3403_v49  ;;  %v3620_v9 = vadd.f32 %v3400_v8, %v3079_v60  ;;  %v1022_v36 = vmin.f32 %v914_v20, 6.0  ;;  %v689_v48 = vmul.f32 %v7623_v54, %v451_v31  ;;  %v453_v19 = vpop.f32.mrb[29].mxu0 }
 0x11f   : > { %v3622_v7 = vadd.f32 %v3404_v6, %v3081_v53  ;;  %v7210_v59 = vpack.c.bf16 %v1021_v42, %v1020_v45  ;;  %v1023_v34 = vmin.f32 %v915_v40, 6.0  ;;  %v690_v13 = vmul.f32 %v7627_v55, %v453_v19  ;;  %v455_v11 = vpop.f32.mrb[30].mxu0 }
 0x120   : > { %v3749_v44 = vmul.f32 %v7726_v63, %v3161_v52  ;;  %v808_v2 = vadd.f32 %v7631_v56, %v689_v48  ;;  %v691_v60 = vmul.f32 %v7623_v54, %v455_v11  ;;  %v457_v4 = vpop.f32.mrb[31].mxu0  ;;  %v3939_v49 = vrot.slane %v3745_v0, 2  ;;  %v4226_v48 = vld [vmem:[#allocation2 + $0x38] sm:$0xff]  ;;  %v8231_v25 = vld [vmem:[#allocation2 + $0x50] sm:$0xff] }
 0x121   : > { %v3940_v20 = vrot.slane %v3747_v26, 2  ;;  %1479 = vst.msk [vmem:[#allocation2 + $0x60] sm:$0xff] %vm7658_vm7, %v7210_v59  ;;  %v7211_v53 = vpack.c.bf16 %v1023_v34, %v1022_v36  ;;  %v809_v45 = vadd.f32 %v7635_v58, %v690_v13  ;;  %v692_v8 = vmul.f32 %v7627_v55, %v457_v4  ;;  %v7981_v59 = vld [vmem:[#allocation2 + $0x40] sm:$0x11] }
 0x122   : > { %v3944_v42 = vrot.slane %v3749_v44, 2  ;;  %v1603_v40 = vld [vmem:[#allocation2 + $0x58] sm:$0x11]  ;;  %v916_v31 = vmax.f32 %v808_v2, 0.0  ;;  %v810_v52 = vadd.f32 %v7631_v56, %v691_v60  ;;  %v7973_v11 = vunpack.c.l.bf16 %v4225_v5 }
 0x123   : > { %v3941_v6 = vsel %vm2615_vm13, %v3939_v49, %v3940_v20  ;;  %v1604_v0 = vsel %vm7831_vm0, 0, %v1603_v40  ;;  %1480 = vst.msk [vmem:[#allocation2 + $0x68] sm:$0xff] %vm7658_vm7, %v7211_v53  ;;  %v917_v36 = vmax.f32 %v809_v45, 0.0  ;;  %v811_v19 = vadd.f32 %v7635_v58, %v692_v8 }
 0x124   : > { %v3945_v26 = vsel %vm2615_vm13, %v3940_v20, %v3944_v42  ;;  %1605 = vst [vmem:[#allocation2 + $0x58] sm:$0x11] %v1604_v0  ;;  %v1024_v34 = vmin.f32 %v916_v31, 6.0  ;;  %v918_v13 = vmax.f32 %v810_v52, 0.0  ;;  %v4161_v44 = vadd.f32 %v3941_v6, %v3620_v9 }
 0x125   : > { %v4163_v2 = vadd.f32 %v3945_v26, %v3622_v7  ;;  %v1025_v60 = vmin.f32 %v917_v36, 6.0  ;;  %v919_v4 = vmax.f32 %v811_v19, 0.0  ;;  %v461_v49 = vpop.f32.mrb[32].mxu0  ;;  %v7983_v63 = vunpack.c.h.bf16 %v4225_v5 }
 0x126   : > { %v7985_v40 = vunpack.c.l.bf16 %v4226_v48  ;;  %v1026_v53 = vmin.f32 %v918_v13, 6.0  ;;  %v693_v45 = vmul.f32 %v7623_v54, %v461_v49  ;;  %v463_v8 = vpop.f32.mrb[33].mxu0  ;;  %v7988_v50 = vunpack.c.h.bf16 %v4226_v48 }
 0x127   : > { %11303 = vst [vmem:[#allocation24_spill] sm:$0xff] %v7983_v63  ;;  %v7212_v42 = vpack.c.bf16 %v1025_v60, %v1024_v34  ;;  %v1027_v31 = vmin.f32 %v919_v4, 6.0  ;;  %v694_v9 = vmul.f32 %v7627_v55, %v463_v8  ;;  %v465_v7 = vpop.f32.mrb[34].mxu0  ;;  %v4335_v52 = vmul.f32 %v7747_v16, %v7983_v63  ;;  %v8005_v4 = vld [vmem:[#allocation2 + $0x30] sm:$0xee] }
 0x128   : > { %11304 = vst [vmem:[#allocation25_spill] sm:$0xff] %v7988_v50  ;;  %v1547_v5 = vld [vmem:[#allocation2 + $0x60] sm:$0x11]  ;;  %v812_v6 = vadd.f32 %v7631_v56, %v693_v45  ;;  %v695_v0 = vmul.f32 %v7623_v54, %v465_v7  ;;  %v467_v36 = vpop.f32.mrb[35].mxu0  ;;  %v4337_v48 = vmul.f32 %v7747_v16, %v7988_v50  ;;  %v4481_v19 = vunpack.c.h.bf16 %v7981_v59 }
 0x129   : > { %v1548_v26 = vsel %vm7763_vm12, 0, %v1547_v5  ;;  %1481 = vst.msk [vmem:[#allocation2 + $0x70] sm:$0xff] %vm7658_vm7, %v7212_v42  ;;  %v7213_v34 = vpack.c.bf16 %v1027_v31, %v1026_v53  ;;  %v813_v13 = vadd.f32 %v7635_v58, %v694_v9  ;;  %v696_v60 = vmul.f32 %v7627_v55, %v467_v36 }
 0x12a   : > { %1549 = vst [vmem:[#allocation2 + $0x60] sm:$0x11] %v1548_v26  ;;  %v920_v49 = vmax.f32 %v812_v6, 0.0  ;;  %v814_v45 = vadd.f32 %v7631_v56, %v695_v0  ;;  %v4399_v8 = vadd.f32 %v4335_v52, %v4161_v44  ;;  %v4401_v7 = vadd.f32 %v4337_v48, %v4163_v2 }
 0x12b   : > { %1482 = vst.msk [vmem:[#allocation2 + $0x78] sm:$0xff] %vm7658_vm7, %v7213_v34  ;;  %v921_v5 = vmax.f32 %v813_v13, 0.0  ;;  %v815_v20 = vadd.f32 %v7635_v58, %v696_v60  ;;  %v4524_v53 = vmul.f32 %v7754_v21, %v7983_v63  ;;  %v4526_v42 = vmul.f32 %v7754_v21, %v7988_v50 }
 0x12c   : > { %v1028_v31 = vmin.f32 %v920_v49, 6.0  ;;  %v922_v9 = vmax.f32 %v814_v45, 0.0  ;;  %v4528_v6 = vmul.f32 %v7754_v21, %v4481_v19  ;;  %v5022_v16 = vunpack.c.h.bf16 %v8005_v4 }
 0x12d   : > { %v1029_v44 = vmin.f32 %v921_v5, 6.0  ;;  %v923_v2 = vmax.f32 %v815_v20, 0.0  ;;  %v471_v52 = vpop.f32.mrb[36].mxu0  ;;  %v4718_v36 = vrot.slane %v4524_v53, 1  ;;  %v4719_v48 = vrot.slane %v4526_v42, 1 }
 0x12e   : > { %v1030_v26 = vmin.f32 %v922_v9, 6.0  ;;  %v697_v34 = vmul.f32 %v7623_v54, %v471_v52  ;;  %v473_v13 = vpop.f32.mrb[37].mxu0  ;;  %v4723_v60 = vrot.slane %v4528_v6, 1 }
 0x12f   : > { %v7214_v63 = vpack.c.bf16 %v1029_v44, %v1028_v31  ;;  %v1031_v29 = vmin.f32 %v923_v2, 6.0  ;;  %v698_v49 = vmul.f32 %v7627_v55, %v473_v13  ;;  %v475_v45 = vpop.f32.mrb[38].mxu0  ;;  %v4720_v21 = vsel %vm2073_vm1, %v4718_v36, %v4719_v48 }
 0x130   : > { %v1606_v0 = vld [vmem:[#allocation2 + $0x70] sm:$0x11]  ;;  %v816_v20 = vadd.f32 %v7631_v56, %v697_v34  ;;  %v699_v5 = vmul.f32 %v7623_v54, %v475_v45  ;;  %v477_v53 = vpop.f32.mrb[39].mxu0  ;;  %v4724_v42 = vsel %vm2073_vm1, %v4719_v48, %v4723_v60  ;;  %v4940_v9 = vadd.f32 %v4720_v21, %v4399_v8 }
 0x131   : > { %v1607_v6 = vsel %vm7831_vm0, 0, %v1606_v0  ;;  %1483 = vst.msk [vmem:[#allocation2 + $0x80] sm:$0xff] %vm7658_vm7, %v7214_v63  ;;  %v7215_v31 = vpack.c.bf16 %v1031_v29, %v1030_v26  ;;  %v817_v44 = vadd.f32 %v7635_v58, %v698_v49  ;;  %v700_v2 = vmul.f32 %v7627_v55, %v477_v53 }
 0x132   : > { %1608 = vst [vmem:[#allocation2 + $0x70] sm:$0x11] %v1607_v6  ;;  %v1550_v52 = vld [vmem:[#allocation2 + $0x78] sm:$0x11]  ;;  %v924_v36 = vmax.f32 %v816_v20, 0.0  ;;  %v818_v34 = vadd.f32 %v7631_v56, %v699_v5  ;;  %v4942_v13 = vadd.f32 %v4724_v42, %v4401_v7  ;;  %v5065_v48 = vmul.f32 %v7769_v32, %v5022_v16 }
 0x133   : > { %v1551_v21 = vsel %vm7763_vm12, 0, %v1550_v52  ;;  %1484 = vst.msk [vmem:[#allocation2 + $0x88] sm:$0xff] %vm7658_vm7, %v7215_v31  ;;  %v925_v63 = vmax.f32 %v817_v44, 0.0  ;;  %v819_v29 = vadd.f32 %v7635_v58, %v700_v2  ;;  %v5067_v8 = vmul.f32 %v7769_v32, %v7988_v50 }
 0x134   : > { %1552 = vst [vmem:[#allocation2 + $0x78] sm:$0x11] %v1551_v21  ;;  %v1032_v0 = vmin.f32 %v924_v36, 6.0  ;;  %v926_v26 = vmax.f32 %v818_v34, 0.0  ;;  %v5069_v60 = vmul.f32 %v7769_v32, %v4481_v19  ;;  %v5259_v7 = vrot.slane %v5065_v48, 2 }
 0x135   : > { %v1033_v49 = vmin.f32 %v925_v63, 6.0  ;;  %v927_v16 = vmax.f32 %v819_v29, 0.0  ;;  %v481_v45 = vpop.f32.mrb[40].mxu0  ;;  %v5260_v20 = vrot.slane %v5067_v8, 2  ;;  %v1883_v5 = vmul.f32 %v7664_v28, %v7814_v15 }
 0x136   : > { %v1034_v53 = vmin.f32 %v926_v26, 6.0  ;;  %v701_v42 = vmul.f32 %v7623_v54, %v481_v45  ;;  %v483_v6 = vpop.f32.mrb[41].mxu0  ;;  %v5264_v31 = vrot.slane %v5069_v60, 2  ;;  %v11305_v44 = vunpack.c.l.bf16 %v7885_v33 }
 0x137   : > { %v7216_v52 = vpack.c.bf16 %v1033_v49, %v1032_v0  ;;  %v1035_v36 = vmin.f32 %v927_v16, 6.0  ;;  %v702_v19 = vmul.f32 %v7627_v55, %v483_v6  ;;  %v485_v34 = vpop.f32.mrb[42].mxu0  ;;  %v5261_v48 = vsel %vm2615_vm13, %v5259_v7, %v5260_v20 }
 0x138   : > { %v1885_v2 = vmul.f32 %v7664_v28, %v11305_v44  ;;  %v820_v21 = vadd.f32 %v7631_v56, %v701_v42  ;;  %v703_v63 = vmul.f32 %v7623_v54, %v485_v34  ;;  %v5265_v29 = vsel %vm2615_vm13, %v5260_v20, %v5264_v31  ;;  %v487_v26 = vpop.f32.mrb[43].mxu0 }
 0x139   : > { %v5481_v8 = vadd.f32 %v5261_v48, %v4940_v9  ;;  %1485 = vst.msk [vmem:[#allocation2 + $0x90] sm:$0xff] %vm7658_vm7, %v7216_v52  ;;  %v7217_v60 = vpack.c.bf16 %v1035_v36, %v1034_v53  ;;  %v821_v0 = vadd.f32 %v7635_v58, %v702_v19  ;;  %v5483_v49 = vadd.f32 %v5265_v29, %v4942_v13 }
 0x13a   : > { %v704_v16 = vmul.f32 %v7627_v55, %v487_v26  ;;  %v1609_v45 = vld [vmem:[#allocation2 + $0x88] sm:$0x11]  ;;  %v928_v6 = vmax.f32 %v820_v21, 0.0  ;;  %v822_v7 = vadd.f32 %v7631_v56, %v703_v63  ;;  %v2074_v20 = vrot.slane %v7865_v18, 1 }
 0x13b   : > { %v5556_v42 = vmul.f32 %v7775_v37, %v5481_v8  ;;  %v1610_v9 = vsel %vm7831_vm0, 0, %v1609_v45  ;;  %1486 = vst.msk [vmem:[#allocation2 + $0x98] sm:$0xff] %vm7658_vm7, %v7217_v60  ;;  %v929_v53 = vmax.f32 %v821_v0, 0.0  ;;  %v5558_v13 = vmul.f32 %v7775_v37, %v5483_v49 }
 0x13c   : > { %v823_v31 = vadd.f32 %v7635_v58, %v704_v16  ;;  %1611 = vst [vmem:[#allocation2 + $0x88] sm:$0x11] %v1610_v9  ;;  %v1036_v44 = vmin.f32 %v928_v6, 6.0  ;;  %v930_v52 = vmax.f32 %v822_v7, 0.0  ;;  %v2075_v19 = vrot.slane %v1883_v5, 1 }
 0x13d   : > { %v5631_v36 = vadd.f32 %v7779_v38, %v5556_v42  ;;  %v1037_v34 = vmin.f32 %v929_v53, 6.0  ;;  %v5633_v18 = vadd.f32 %v7779_v38, %v5558_v13  ;;  %v2080_v21 = vrot.slane %v1885_v2, 1  ;;  %v8066_v63 = vpop.f32.mrb[44].mxu0 }
 0x13e   : > { %v931_v48 = vmax.f32 %v823_v31, 0.0  ;;  %v1038_v29 = vmin.f32 %v930_v52, 6.0  ;;  %v2076_v26 = vsel %vm2073_vm1, %v2074_v20, %v2075_v19  ;;  %v2425_v60 = vmul.f32 %v7655_v23, %v7814_v15  ;;  %v8071_v0 = vpop.f32.mrb[45].mxu0 }
 0x13f   : > { %v5695_v8 = vmax.f32 %v5631_v36, 0.0  ;;  %v7218_v49 = vpack.c.bf16 %v1037_v34, %v1036_v44  ;;  %v5697_v16 = vmax.f32 %v5633_v18, 0.0  ;;  %v2081_v5 = vsel %vm2073_vm1, %v2075_v19, %v2080_v21  ;;  %v8074_v6 = vpop.f32.mrb[46].mxu0 }
 0x140   : > { %v1039_v45 = vmin.f32 %v931_v48, 6.0  ;;  %v1553_v7 = vld [vmem:[#allocation2 + $0x90] sm:$0x11]  ;;  %v2298_v42 = vadd.f32 %v2076_v26, %v7876_v14  ;;  %v2300_v9 = vadd.f32 %v2081_v5, %v7852_v27  ;;  %v11306_v20 = vunpack.c.l.bf16 %v7885_v33  ;;  %v8081_v15 = vpop.f32.mrb[47].mxu0 }
 0x141   : > { %v5759_v2 = vmin.f32 %v5695_v8, 6.0  ;;  %v1554_v13 = vsel %vm7763_vm12, 0, %v1553_v7  ;;  %1487 = vst.msk [vmem:[#allocation2 + $0xa0] sm:$0xff] %vm7658_vm7, %v7218_v49  ;;  %v5761_v31 = vmin.f32 %v5697_v16, 6.0  ;;  %v2616_v52 = vrot.slane %v7818_v30, 2 }
 0x142   : > { %v2427_v53 = vmul.f32 %v7655_v23, %v11306_v20  ;;  %v7219_v44 = vpack.c.bf16 %v1039_v45, %v1038_v29  ;;  %1555 = vst [vmem:[#allocation2 + $0x90] sm:$0x11] %v1554_v13  ;;  %v2617_v14 = vrot.slane %v2425_v60, 2  ;;  %v3014_v27 = vmul.f32 %v7695_v46, %v7899_v3 }
 0x143   : > { %v3016_v33 = vmul.f32 %v7695_v46, %v7882_v57  ;;  %v5823_v19 = vpack.c.bf16 %v5761_v31, %v5759_v2  ;;  %v3203_v34 = vmul.f32 %v7723_v62, %v7899_v3  ;;  %v3205_v18 = vmul.f32 %v7723_v62, %v7882_v57 }
 0x144   : > { %v2622_v36 = vrot.slane %v2427_v53, 2  ;;  %1488 = vst.msk [vmem:[#allocation2 + $0xa8] sm:$0xff] %vm7658_vm7, %v7219_v44  ;;  %v11307_v30 = vunpack.c.l.bf16 %v7928_v10  ;;  %v2618_v21 = vsel %vm2615_vm13, %v2616_v52, %v2617_v14  ;;  %v11308_v8 = vunpack.c.l.bf16 %v7859_v43 }
 0x145   : > { %v3746_v60 = vmul.f32 %v7708_v51, %v7882_v57  ;;  %7096 = vmatprep.mubr.msk.bf16.mxu1 %vm5950_vm2, %v5823_v19  ;;  %v2840_v49 = vadd.f32 %v2618_v21, %v2298_v42  ;;  %v3395_v45 = vrot.slane %v3203_v34, 1  ;;  %v3396_v5 = vrot.slane %v3205_v18, 1  ;;  %v8109_v7 = vpop.f32.mrb[48].mxu0 }
 0x146   : > { %v3207_v48 = vmul.f32 %v7723_v62, %v11307_v30  ;;  %v2623_v29 = vsel %vm2615_vm13, %v2617_v14, %v2622_v36  ;;  %v3744_v26 = vmul.f32 %v7708_v51, %v11308_v8  ;;  %v11309_v20 = vmov %v11307_v30  ;;  %v8114_v31 = vpop.f32.mrb[49].mxu0 }
 0x147   : > { %v2842_v16 = vadd.f32 %v2623_v29, %v2300_v9  ;;  %v3748_v53 = vmul.f32 %v7708_v51, %v11309_v20  ;;  %v3937_v43 = vrot.slane %v3746_v60, 2  ;;  %v3078_v44 = vadd.f32 %v3014_v27, %v2840_v49  ;;  %v8119_v9 = vpop.f32.mrb[50].mxu0 }
 0x148   : > { %v3401_v2 = vrot.slane %v3207_v48, 1  ;;  %v3936_v13 = vrot.slane %v3744_v26, 2  ;;  %v3397_v14 = vsel %vm2073_vm1, %v3395_v45, %v3396_v5  ;;  %v4334_v42 = vmul.f32 %v7744_v12, %v7973_v11  ;;  %v1612_v36 = vld [vmem:[#allocation2 + $0xa0] sm:$0x11]  ;;  %v8125_v30 = vpop.f32.mrb[51].mxu0 }
 0x149   : > { %v3080_v52 = vadd.f32 %v3016_v33, %v2842_v16  ;;  %v3942_v34 = vrot.slane %v3748_v53, 2  ;;  %v4336_v18 = vmul.f32 %v7744_v12, %v7985_v40  ;;  %v1613_v27 = vsel %vm7831_vm0, 0, %v1612_v36 }
 0x14a   : > { %v3402_v19 = vsel %vm2073_vm1, %v3396_v5, %v3401_v2  ;;  %v3938_v10 = vsel %vm2615_vm13, %v3936_v13, %v3937_v43  ;;  %v3619_v33 = vadd.f32 %v3397_v14, %v3078_v44  ;;  %v4523_v21 = vmul.f32 %v7750_v17, %v7973_v11  ;;  %1614 = vst [vmem:[#allocation2 + $0xa0] sm:$0x11] %v1613_v27 }
 0x14b   : > { %v3621_v48 = vadd.f32 %v3402_v19, %v3080_v52  ;;  %v1556_v29 = vld [vmem:[#allocation2 + $0xa8] sm:$0x11]  ;;  %v3943_v8 = vsel %vm2615_vm13, %v3937_v43, %v3942_v34  ;;  %v4525_v26 = vmul.f32 %v7750_v17, %v7985_v40  ;;  %v11310_v60 = vunpack.c.l.bf16 %v7981_v59 }
 0x14c   : > { %v11311_v16 = vunpack.c.l.bf16 %v8005_v4  ;;  %v1557_v5 = vsel %vm7763_vm12, 0, %v1556_v29  ;;  %v4160_v2 = vadd.f32 %v3938_v10, %v3619_v33  ;;  %v4715_v53 = vrot.slane %v4523_v21, 1 }
 0x14d   : > { %v4527_v49 = vmul.f32 %v7750_v17, %v11310_v60  ;;  %v4162_v20 = vadd.f32 %v3943_v8, %v3621_v48  ;;  %1558 = vst [vmem:[#allocation2 + $0xa8] sm:$0x11] %v1557_v5  ;;  %v4716_v13 = vrot.slane %v4525_v26, 1  ;;  %v5066_v44 = vmul.f32 %v7757_v22, %v7985_v40  ;;  %v8149_v27 = vpop.f32.mrb[52].mxu0 }
 0x14e   : > { %v5064_v45 = vmul.f32 %v7757_v22, %v11311_v16  ;;  %v11312_v52 = vmov %v11310_v60  ;;  %v4398_v36 = vadd.f32 %v4334_v42, %v4160_v2  ;;  %v705_v34 = vmul.f32 %v7623_v54, %v8066_v63  ;;  %v8153_v29 = vpop.f32.mrb[53].mxu0 }
 0x14f   : > { %v4721_v43 = vrot.slane %v4527_v49, 1  ;;  %v5068_v14 = vmul.f32 %v7757_v22, %v11312_v52  ;;  %v4400_v4 = vadd.f32 %v4336_v18, %v4162_v20  ;;  %v4717_v10 = vsel %vm2073_vm1, %v4715_v53, %v4716_v13  ;;  %v8158_v18 = vpop.f32.mrb[54].mxu0 }
 0x150   : > { %v5256_v19 = vrot.slane %v5064_v45, 2  ;;  %v5257_v48 = vrot.slane %v5066_v44, 2  ;;  %v4939_v8 = vadd.f32 %v4717_v10, %v4398_v36  ;;  %v824_v26 = vadd.f32 %v7631_v56, %v705_v34  ;;  %v8166_v45 = vpop.f32.mrb[55].mxu0 }
 0x151   : > { %v4722_v33 = vsel %vm2073_vm1, %v4716_v13, %v4721_v43  ;;  %v5262_v21 = vrot.slane %v5068_v14, 2  ;;  %v706_v42 = vmul.f32 %v7627_v55, %v8071_v0  ;;  %v707_v49 = vmul.f32 %v7623_v54, %v8074_v6  ;;  %11313 = vst [vmem:[#allocation26_spill] sm:$0xff] %v8166_v45  ;;  %v8169_v0 = vld [vmem:[#allocation2 + $0x28] sm:$0x11] }
 0x152   : > { %v4941_v59 = vadd.f32 %v4722_v33, %v4400_v4  ;;  %v5258_v63 = vsel %vm2615_vm13, %v5256_v19, %v5257_v48  ;;  %v708_v16 = vmul.f32 %v7627_v55, %v8081_v15  ;;  %v932_v20 = vmax.f32 %v824_v26, 0.0  ;;  %v11314_v33 = vld [vmem:[#allocation22_spill] sm:$0xff]  ;;  %v8186_v26 = vld [vmem:[#allocation2 + $0x18] sm:$0xee] }
 0x153   : > { %v5263_v60 = vsel %vm2615_vm13, %v5257_v48, %v5262_v21  ;;  %v5480_v5 = vadd.f32 %v5258_v63, %v4939_v8  ;;  %v825_v53 = vadd.f32 %v7635_v58, %v706_v42  ;;  %v826_v13 = vadd.f32 %v7631_v56, %v707_v49 }
 0x154   : > { %v5482_v2 = vadd.f32 %v5263_v60, %v4941_v59  ;;  %v827_v43 = vadd.f32 %v7635_v58, %v708_v16  ;;  %v1761_v44 = vmul.f32 %v7901_v61, %v7685_v41  ;;  %v1763_v6 = vmul.f32 %v7890_v1, %v7685_v41 }
 0x155   : > { %v5555_v15 = vmul.f32 %v7787_v47, %v5480_v5  ;;  %v1040_v14 = vmin.f32 %v932_v20, 6.0  ;;  %v933_v36 = vmax.f32 %v825_v53, 0.0  ;;  %v934_v4 = vmax.f32 %v826_v13, 0.0  ;;  %v8188_v42 = vpop.f32.mrb[56].mxu0 }
 0x156   : > { %v5557_v52 = vmul.f32 %v7787_v47, %v5482_v2  ;;  %v935_v19 = vmax.f32 %v827_v43, 0.0  ;;  %v1841_v34 = vunpack.c.h.bf16 %v8169_v0  ;;  %v1888_v10 = vmul.f32 %v7901_v61, %v7674_v35  ;;  %11315 = vst [vmem:[#allocation22_spill] sm:$0xff] %v8188_v42  ;;  %v8191_v5 = vpop.f32.mrb[57].mxu0 }
 0x157   : > { %v5630_v48 = vadd.f32 %v11314_v33, %v5555_v15  ;;  %v1041_v8 = vmin.f32 %v933_v36, 6.0  ;;  %v1890_v59 = vmul.f32 %v7890_v1, %v7674_v35  ;;  %v1042_v63 = vmin.f32 %v934_v4, 6.0  ;;  %11316 = vst [vmem:[#allocation27_spill] sm:$0xff] %v8191_v5  ;;  %v8193_v13 = vpop.f32.mrb[58].mxu0  ;;  %v11318_v36 = vld [vmem:[#allocation13_spill] sm:$0xff] }
 0x158   : > { %v5632_v21 = vadd.f32 %v11314_v33, %v5557_v52  ;;  %v1043_v60 = vmin.f32 %v935_v19, 6.0  ;;  %v1892_v49 = vmul.f32 %v7674_v35, %v1841_v34  ;;  %v2087_v16 = vrot.slane %v1888_v10, 1  ;;  %11317 = vst [vmem:[#allocation28_spill] sm:$0xff] %v8193_v13  ;;  %v8198_v4 = vpop.f32.mrb[59].mxu0  ;;  %v11322_v13 = vld [vmem:[#allocation18_spill] sm:$0xff] }
 0x159   : > { %v5694_v61 = vmax.f32 %v5630_v48, 0.0  ;;  %v7220_v20 = vpack.c.bf16 %v1041_v8, %v1040_v14  ;;  %v2088_v53 = vrot.slane %v1890_v59, 1  ;;  %v2383_v52 = vunpack.c.h.bf16 %v8186_v26  ;;  %11319 = vst [vmem:[#allocation29_spill] sm:$0xff] %v8198_v4  ;;  %v8204_v48 = vld [vmem:[#allocation2 + $0x40] sm:$0x11] }
 0x15a   : > { %v5696_v2 = vmax.f32 %v5632_v21, 0.0  ;;  %v7221_v43 = vpack.c.bf16 %v1043_v60, %v1042_v63  ;;  %v2092_v15 = vrot.slane %v1892_v49, 1  ;;  %v2432_v42 = vmul.f32 %v7890_v1, %v11318_v36  ;;  %v8210_v63 = vld [vmem:[#allocation2 + $0x30] sm:$0xee] }
 0x15b   : > { %v5758_v19 = vmin.f32 %v5694_v61, 6.0  ;;  %1489 = vst.msk [vmem:[#allocation2 + $0xb0] sm:$0xff] %vm7658_vm7, %v7220_v20  ;;  %v2089_v10 = vsel %vm2073_vm1, %v2087_v16, %v2088_v53  ;;  %v2434_v14 = vmul.f32 %v11318_v36, %v1841_v34  ;;  %v2430_v1 = vmul.f32 %v11318_v36, %v2383_v52  ;;  %v11321_v16 = vld [vmem:[#allocation24_spill] sm:$0xff]  ;;  %v8225_v52 = vld [vmem:[#allocation2 + $0x48] sm:$0xff] }
 0x15c   : > { %v5760_v45 = vmin.f32 %v5696_v2, 6.0  ;;  %1490 = vst.msk [vmem:[#allocation2 + $0xb8] sm:$0xff] %vm7658_vm7, %v7221_v43  ;;  %v2093_v21 = vsel %vm2073_vm1, %v2088_v53, %v2092_v15  ;;  %v2303_v8 = vadd.f32 %v2089_v10, %v1761_v44  ;;  %v2630_v59 = vrot.slane %v2432_v42, 2  ;;  %v11320_v2 = vld [vmem:[#allocation16_spill] sm:$0xff]  ;;  %v11323_v53 = vld [vmem:[#allocation17_spill] sm:$0xff] }
 0x15d   : > { %v2305_v49 = vadd.f32 %v2093_v21, %v1763_v6  ;;  %v2634_v61 = vrot.slane %v2434_v14, 2  ;;  %v3019_v20 = vmul.f32 %v11321_v16, %v11320_v2  ;;  %v2629_v34 = vrot.slane %v2430_v1, 2 }
 0x15e   : > { %v5822_v60 = vpack.c.bf16 %v5760_v45, %v5758_v19  ;;  %v3021_v4 = vmul.f32 %v7988_v50, %v11320_v2  ;;  %v3163_v43 = vunpack.c.h.bf16 %v8204_v48  ;;  %v3210_v44 = vmul.f32 %v11321_v16, %v11322_v13 }
 0x15f   : > { %v2635_v42 = vsel %vm2615_vm13, %v2630_v59, %v2634_v61  ;;  %v3212_v45 = vmul.f32 %v7988_v50, %v11322_v13  ;;  %v3704_v6 = vunpack.c.h.bf16 %v8210_v63  ;;  %v3753_v15 = vmul.f32 %v7988_v50, %v11323_v53 }
 0x160   : > { %6032 = vmatmul.mubr.bf16.vlgmr.msra.gmra.mrb[0].mxu1 %v5822_v60  ;;  %v2631_v19 = vsel %vm2615_vm13, %v2629_v34, %v2630_v59  ;;  %v2847_v10 = vadd.f32 %v2635_v42, %v2305_v49  ;;  %v3214_v14 = vmul.f32 %v11322_v13, %v3163_v43  ;;  %v3408_v21 = vrot.slane %v3210_v44, 1 }
 0x161   : > { %v2845_v1 = vadd.f32 %v2631_v19, %v2303_v8  ;;  %v3409_v60 = vrot.slane %v3212_v45, 1  ;;  %v3751_v61 = vmul.f32 %v11323_v53, %v3704_v6  ;;  %v3755_v5 = vmul.f32 %v11323_v53, %v3163_v43  ;;  %v8237_v8 = vld [vmem:[#allocation2 + $0x58] sm:$0x11] }
 0x162   : > { %v3085_v2 = vadd.f32 %v3021_v4, %v2847_v10  ;;  %v3413_v36 = vrot.slane %v3214_v14, 1  ;;  %v3950_v35 = vrot.slane %v3753_v15, 2  ;;  %v8234_v50 = vunpack.c.h.bf16 %v8225_v52  ;;  %v11325_v45 = vld [vmem:[#allocation19_spill] sm:$0xff]  ;;  %v8247_v15 = vld [vmem:[#allocation2 + $0x48] sm:$0xee]  ;;  %v11326_v14 = vld [vmem:[#allocation20_spill] sm:$0xff] }
 0x163   : > { %v1615_v24 = vld [vmem:[#allocation2 + $0xb8] sm:$0x11]  ;;  %v3083_v59 = vadd.f32 %v3019_v20, %v2845_v1  ;;  %v3410_v49 = vsel %vm2073_vm1, %v3408_v21, %v3409_v60  ;;  %v3949_v34 = vrot.slane %v3751_v61, 2  ;;  %v3954_v44 = vrot.slane %v3755_v5, 2 }
 0x164   : > { %v1616_v42 = vsel %vm7831_vm0, 0, %v1615_v24  ;;  %v3414_v43 = vsel %vm2073_vm1, %v3409_v60, %v3413_v36  ;;  %v8243_v4 = vunpack.c.h.bf16 %v8231_v25  ;;  %v4339_v6 = vmul.f32 %v11325_v45, %v8234_v50 }
 0x165   : > { %1617 = vst [vmem:[#allocation2 + $0xb8] sm:$0x11] %v1616_v42  ;;  %v3624_v20 = vadd.f32 %v3410_v49, %v3083_v59  ;;  %v3626_v19 = vadd.f32 %v3414_v43, %v3085_v2  ;;  %v3951_v5 = vsel %vm2615_vm13, %v3949_v34, %v3950_v35  ;;  %v3955_v10 = vsel %vm2615_vm13, %v3950_v35, %v3954_v44 }
 0x166   : > { %11324 = vst [vmem:[#allocation24_spill] sm:$0xff] %v8243_v4  ;;  %v4341_v24 = vmul.f32 %v11325_v45, %v8243_v4  ;;  %v4483_v36 = vunpack.c.h.bf16 %v8237_v8  ;;  %v4530_v21 = vmul.f32 %v11326_v14, %v8234_v50  ;;  %v4532_v1 = vmul.f32 %v11326_v14, %v8243_v4 }
 0x167   : > { %v4165_v60 = vadd.f32 %v3951_v5, %v3624_v20  ;;  %v4167_v61 = vadd.f32 %v3955_v10, %v3626_v19  ;;  %v5024_v59 = vunpack.c.h.bf16 %v8247_v15  ;;  %v5073_v2 = vmul.f32 %v7769_v32, %v8243_v4  ;;  %v11327_v5 = vld [vmem:[#allocation15_spill] sm:$0xff] }
 0x168   : > { %v4534_v35 = vmul.f32 %v11326_v14, %v4483_v36  ;;  %v4728_v49 = vrot.slane %v4530_v21, 1  ;;  %v4729_v34 = vrot.slane %v4532_v1, 1  ;;  %v5075_v44 = vmul.f32 %v7769_v32, %v4483_v36 }
 0x169   : > { %v4403_v42 = vadd.f32 %v4339_v6, %v4165_v60  ;;  %v4405_v43 = vadd.f32 %v4341_v24, %v4167_v61  ;;  %v5071_v45 = vmul.f32 %v7769_v32, %v5024_v59  ;;  %v5270_v39 = vrot.slane %v5073_v2, 2 }
 0x16a   : > { %v4730_v53 = vsel %vm2073_vm1, %v4728_v49, %v4729_v34  ;;  %v4733_v20 = vrot.slane %v4534_v35, 1  ;;  %v5274_v19 = vrot.slane %v5075_v44, 2  ;;  %v1760_v10 = vmul.f32 %v7899_v3, %v11327_v5 }
 0x16b   : > { %v4944_v13 = vadd.f32 %v4730_v53, %v4403_v42  ;;  %v5269_v4 = vrot.slane %v5071_v45, 2  ;;  %v1762_v21 = vmul.f32 %v7882_v57, %v11327_v5  ;;  %v1840_v1 = vunpack.c.l.bf16 %v8169_v0 }
 0x16c   : > { %v4734_v6 = vsel %vm2073_vm1, %v4729_v34, %v4733_v20  ;;  %v5275_v24 = vsel %vm2615_vm13, %v5270_v39, %v5274_v19  ;;  %v1887_v36 = vmul.f32 %v7899_v3, %v7664_v28  ;;  %v1889_v60 = vmul.f32 %v7882_v57, %v7664_v28 }
 0x16d   : > { %v4946_v61 = vadd.f32 %v4734_v6, %v4405_v43  ;;  %v5271_v59 = vsel %vm2615_vm13, %v5269_v4, %v5270_v39  ;;  %v1891_v53 = vmul.f32 %v7664_v28, %v1840_v1  ;;  %v2382_v45 = vunpack.c.l.bf16 %v8186_v26 }
 0x16e   : > { %v5485_v2 = vadd.f32 %v5271_v59, %v4944_v13  ;;  %v2084_v35 = vrot.slane %v1887_v36, 1  ;;  %v2085_v0 = vrot.slane %v1889_v60, 1  ;;  %v2431_v49 = vmul.f32 %v7882_v57, %v7655_v23 }
 0x16f   : > { %v5487_v34 = vadd.f32 %v5275_v24, %v4946_v61  ;;  %v2090_v44 = vrot.slane %v1891_v53, 1  ;;  %v2429_v3 = vmul.f32 %v7655_v23, %v2382_v45  ;;  %v2433_v42 = vmul.f32 %v7655_v23, %v1840_v1 }
 0x170   : > { %v5560_v43 = vmul.f32 %v7775_v37, %v5485_v2  ;;  %v2086_v39 = vsel %vm2073_vm1, %v2084_v35, %v2085_v0  ;;  %v2627_v4 = vrot.slane %v2431_v49, 2  ;;  %v3018_v26 = vmul.f32 %v7973_v11, %v7695_v46 }
 0x171   : > { %v5562_v13 = vmul.f32 %v7775_v37, %v5487_v34  ;;  %v2091_v20 = vsel %vm2073_vm1, %v2085_v0, %v2090_v44  ;;  %v2302_v19 = vadd.f32 %v2086_v39, %v1760_v10  ;;  %v2626_v57 = vrot.slane %v2429_v3, 2 }
 0x172   : > { %v5635_v6 = vadd.f32 %v7779_v38, %v5560_v43  ;;  %v2304_v24 = vadd.f32 %v2091_v20, %v1762_v21  ;;  %v2632_v36 = vrot.slane %v2433_v42, 2  ;;  %v3020_v1 = vmul.f32 %v7985_v40, %v7695_v46  ;;  %v8302_v43 = vpop.f32.mrb[60].mxu0 }
 0x173   : > { %v5637_v60 = vadd.f32 %v7779_v38, %v5562_v13  ;;  %v2628_v61 = vsel %vm2615_vm13, %v2626_v57, %v2627_v4  ;;  %v3162_v59 = vunpack.c.l.bf16 %v8204_v48  ;;  %v3209_v53 = vmul.f32 %v7973_v11, %v7723_v62  ;;  %11328 = vst [vmem:[#allocation30_spill] sm:$0xff] %v8302_v43  ;;  %v8306_v20 = vpop.f32.mrb[61].mxu0  ;;  %v11347_v43 = vld [vmem:[#allocation19_spill] sm:$0xff] }
 0x174   : > { %v5699_v45 = vmax.f32 %v5635_v6, 0.0  ;;  %v2633_v10 = vsel %vm2615_vm13, %v2627_v4, %v2632_v36  ;;  %v2844_v2 = vadd.f32 %v2628_v61, %v2302_v19  ;;  %v3211_v21 = vmul.f32 %v7985_v40, %v7723_v62  ;;  %11329 = vst [vmem:[#allocation31_spill] sm:$0xff] %v8306_v20 }
 0x175   : > { %v5701_v35 = vmax.f32 %v5637_v60, 0.0  ;;  %v2846_v0 = vadd.f32 %v2633_v10, %v2304_v24  ;;  %v3213_v49 = vmul.f32 %v7723_v62, %v3162_v59  ;;  %v3405_v34 = vrot.slane %v3209_v53, 1 }
 0x176   : > { %v5763_v44 = vmin.f32 %v5699_v45, 6.0  ;;  %v3082_v3 = vadd.f32 %v3018_v26, %v2844_v2  ;;  %v3406_v42 = vrot.slane %v3211_v21, 1  ;;  %v3703_v48 = vunpack.c.l.bf16 %v8210_v63  ;;  %v8318_v45 = vpop.f32.mrb[62].mxu0 }
 0x177   : > { %v5765_v11 = vmin.f32 %v5701_v35, 6.0  ;;  %v3084_v39 = vadd.f32 %v3020_v1, %v2846_v0  ;;  %v3411_v13 = vrot.slane %v3213_v49, 1  ;;  %v3752_v4 = vmul.f32 %v7985_v40, %v7708_v51  ;;  %11330 = vst [vmem:[#allocation32_spill] sm:$0xff] %v8318_v45  ;;  %v8327_v21 = vpop.f32.mrb[63].mxu0 }
 0x178   : > { %v3407_v19 = vsel %vm2073_vm1, %v3405_v34, %v3406_v42  ;;  %v3750_v57 = vmul.f32 %v7708_v51, %v3703_v48  ;;  %v3754_v6 = vmul.f32 %v7708_v51, %v3162_v59  ;;  %v8312_v26 = vunpack.c.l.bf16 %v8225_v52  ;;  %11331 = vst [vmem:[#allocation33_spill] sm:$0xff] %v8327_v21  ;;  %v8335_v34 = vpop.f32.mrb[64].mxu0 }
 0x179   : > { %v5825_v63 = vpack.c.bf16 %v5765_v11, %v5763_v44  ;;  %v3412_v24 = vsel %vm2073_vm1, %v3406_v42, %v3411_v13  ;;  %v3623_v36 = vadd.f32 %v3407_v19, %v3082_v3  ;;  %v3947_v1 = vrot.slane %v3752_v4, 2  ;;  %11332 = vst [vmem:[#allocation34_spill] sm:$0xff] %v8335_v34 }
 0x17a   : > { %v3625_v60 = vadd.f32 %v3412_v24, %v3084_v39  ;;  %v3946_v61 = vrot.slane %v3750_v57, 2  ;;  %v3952_v53 = vrot.slane %v3754_v6, 2  ;;  %v8316_v40 = vunpack.c.l.bf16 %v8231_v25 }
 0x17b   : > { %7097 = vmatprep.mubr.msk.bf16.mxu1 %vm5950_vm2, %v5825_v63  ;;  %v4338_v59 = vmul.f32 %v7744_v12, %v8312_v26  ;;  %v4482_v52 = vunpack.c.l.bf16 %v8237_v8  ;;  %v4529_v10 = vmul.f32 %v7750_v17, %v8312_v26  ;;  %v5023_v2 = vunpack.c.l.bf16 %v8247_v15  ;;  %v8338_v15 = vpop.f32.mrb[65].mxu0 }
 0x17c   : > { %v3948_v35 = vsel %vm2615_vm13, %v3946_v61, %v3947_v1  ;;  %v3953_v25 = vsel %vm2615_vm13, %v3947_v1, %v3952_v53  ;;  %v4340_v0 = vmul.f32 %v7744_v12, %v8316_v40  ;;  %v4531_v49 = vmul.f32 %v7750_v17, %v8316_v40  ;;  %11333 = vst [vmem:[#allocation35_spill] sm:$0xff] %v8338_v15  ;;  %v8344_v4 = vpop.f32.mrb[66].mxu0 }
 0x17d   : > { %v4164_v8 = vadd.f32 %v3948_v35, %v3623_v36  ;;  %v4166_v44 = vadd.f32 %v3953_v25, %v3625_v60  ;;  %v4533_v3 = vmul.f32 %v7750_v17, %v4482_v52  ;;  %v4725_v42 = vrot.slane %v4529_v10, 1  ;;  %11334 = vst [vmem:[#allocation36_spill] sm:$0xff] %v8344_v4 }
 0x17e   : > { %v4726_v48 = vrot.slane %v4531_v49, 1  ;;  %v5070_v11 = vmul.f32 %v7757_v22, %v5023_v2  ;;  %v5072_v39 = vmul.f32 %v7757_v22, %v8316_v40  ;;  %v5074_v13 = vmul.f32 %v7757_v22, %v4482_v52 }
 0x17f   : > { %v4402_v19 = vadd.f32 %v4338_v59, %v4164_v8  ;;  %v4404_v57 = vadd.f32 %v4340_v0, %v4166_v44  ;;  %v4731_v6 = vrot.slane %v4533_v3, 1  ;;  %v709_v63 = vmul.f32 %v7623_v54, %v8109_v7 }
 0x180   : > { %v4727_v24 = vsel %vm2073_vm1, %v4725_v42, %v4726_v48  ;;  %v5266_v36 = vrot.slane %v5070_v11, 2  ;;  %v5267_v1 = vrot.slane %v5072_v39, 2  ;;  %v5272_v60 = vrot.slane %v5074_v13, 2 }
 0x181   : > { %v4732_v61 = vsel %vm2073_vm1, %v4726_v48, %v4731_v6  ;;  %v4943_v53 = vadd.f32 %v4727_v24, %v4402_v19  ;;  %v828_v10 = vadd.f32 %v7631_v56, %v709_v63  ;;  %v710_v52 = vmul.f32 %v7627_v55, %v8114_v31 }
 0x182   : > { %v4945_v2 = vadd.f32 %v4732_v61, %v4404_v57  ;;  %v5268_v59 = vsel %vm2615_vm13, %v5266_v36, %v5267_v1  ;;  %v5273_v35 = vsel %vm2615_vm13, %v5267_v1, %v5272_v60  ;;  %v711_v7 = vmul.f32 %v7623_v54, %v8119_v9 }
 0x183   : > { %v5484_v25 = vadd.f32 %v5268_v59, %v4943_v53  ;;  %v936_v0 = vmax.f32 %v828_v10, 0.0  ;;  %v829_v49 = vadd.f32 %v7635_v58, %v710_v52  ;;  %v712_v8 = vmul.f32 %v7627_v55, %v8125_v30 }
 0x184   : > { %v5486_v44 = vadd.f32 %v5273_v35, %v4945_v2  ;;  %v830_v3 = vadd.f32 %v7631_v56, %v711_v7  ;;  %v713_v31 = vmul.f32 %v7623_v54, %v8149_v27  ;;  %v714_v42 = vmul.f32 %v7627_v55, %v8153_v29  ;;  %v8375_v2 = vld [vmem:[#allocation2 + $0x40] sm:$0x11] }
 0x185   : > { %v5559_v48 = vmul.f32 %v7787_v47, %v5484_v25  ;;  %v1044_v11 = vmin.f32 %v936_v0, 6.0  ;;  %v937_v9 = vmax.f32 %v829_v49, 0.0  ;;  %v831_v39 = vadd.f32 %v7635_v58, %v712_v8  ;;  %v8379_v0 = vld [vmem:[#allocation2 + $0x30] sm:$0xee] }
 0x186   : > { %v5561_v13 = vmul.f32 %v7787_v47, %v5486_v44  ;;  %v938_v19 = vmax.f32 %v830_v3, 0.0  ;;  %v832_v30 = vadd.f32 %v7631_v56, %v713_v31  ;;  %v833_v57 = vadd.f32 %v7635_v58, %v714_v42  ;;  %v11336_v3 = vld [vmem:[#allocation25_spill] sm:$0xff] }
 0x187   : > { %v5634_v6 = vadd.f32 %v11314_v33, %v5559_v48  ;;  %v1045_v63 = vmin.f32 %v937_v9, 6.0  ;;  %v939_v27 = vmax.f32 %v831_v39, 0.0  ;;  %v715_v29 = vmul.f32 %v7623_v54, %v8158_v18  ;;  %v11337_v9 = vld [vmem:[#allocation14_spill] sm:$0xff] }
 0x188   : > { %v5636_v24 = vadd.f32 %v11314_v33, %v5561_v13  ;;  %v1046_v36 = vmin.f32 %v938_v19, 6.0  ;;  %v940_v1 = vmax.f32 %v832_v30, 0.0  ;;  %v941_v60 = vmax.f32 %v833_v57, 0.0  ;;  %v11338_v57 = vld [vmem:[#allocation13_spill] sm:$0xff] }
 0x189   : > { %v5698_v61 = vmax.f32 %v5634_v6, 0.0  ;;  %v7222_v53 = vpack.c.bf16 %v1045_v63, %v1044_v11  ;;  %v1047_v10 = vmin.f32 %v939_v27, 6.0  ;;  %v834_v52 = vadd.f32 %v7631_v56, %v715_v29  ;;  %v8397_v63 = vld [vmem:[#allocation2 + $0x58] sm:$0x11] }
 0x18a   : > { %v5700_v59 = vmax.f32 %v5636_v24, 0.0  ;;  %v1048_v35 = vmin.f32 %v940_v1, 6.0  ;;  %v1049_v7 = vmin.f32 %v941_v60, 6.0  ;;  %v1765_v25 = vmul.f32 %v11321_v16, %v7685_v41 }
 0x18b   : > { %v5762_v18 = vmin.f32 %v5698_v61, 6.0  ;;  %1491 = vst.msk [vmem:[#allocation2 + $0xc0] sm:$0xff] %vm7658_vm7, %v7222_v53  ;;  %v7223_v8 = vpack.c.bf16 %v1047_v10, %v1046_v36  ;;  %v942_v44 = vmax.f32 %v834_v52, 0.0  ;;  %v1767_v31 = vmul.f32 %v11336_v3, %v7685_v41  ;;  %v11339_v61 = vld [vmem:[#allocation16_spill] sm:$0xff] }
 0x18c   : > { %v5764_v42 = vmin.f32 %v5700_v59, 6.0  ;;  %v7224_v48 = vpack.c.bf16 %v1049_v7, %v1048_v35  ;;  %v1843_v11 = vunpack.c.h.bf16 %v8375_v2  ;;  %v1894_v39 = vmul.f32 %v11321_v16, %v11337_v9  ;;  %v11340_v59 = vld [vmem:[#allocation24_spill] sm:$0xff] }
 0x18d   : > { %1492 = vst.msk [vmem:[#allocation2 + $0xc8] sm:$0xff] %vm7658_vm7, %v7223_v8  ;;  %v8390_v13 = vmin.f32 %v942_v44, 6.0  ;;  %v1896_v19 = vmul.f32 %v11336_v3, %v11337_v9  ;;  %v2385_v30 = vunpack.c.h.bf16 %v8379_v0  ;;  %v2438_v6 = vmul.f32 %v11336_v3, %v11338_v57  ;;  %v11341_v44 = vld [vmem:[#allocation18_spill] sm:$0xff] }
 0x18e   : > { %v5824_v27 = vpack.c.bf16 %v5764_v42, %v5762_v18  ;;  %1493 = vst.msk [vmem:[#allocation2 + $0xd0] sm:$0xff] %vm7658_vm7, %v7224_v48  ;;  %v1898_v16 = vmul.f32 %v11337_v9, %v1843_v11  ;;  %v2097_v29 = vrot.slane %v1894_v39, 1  ;;  %v2440_v24 = vmul.f32 %v11338_v57, %v1843_v11  ;;  %v8414_v48 = vld [vmem:[#allocation2 + $0x48] sm:$0xee] }
 0x18f   : > { %v2098_v36 = vrot.slane %v1896_v19, 1  ;;  %v2436_v1 = vmul.f32 %v11338_v57, %v2385_v30  ;;  %v2640_v60 = vrot.slane %v2438_v6, 2  ;;  %v3023_v53 = vmul.f32 %v8234_v50, %v11339_v61 }
 0x190   : > { %6040 = vmatmul.mubr.bf16.gmra.mrb[4].mxu1 %v5824_v27  ;;  %v2102_v10 = vrot.slane %v1898_v16, 1  ;;  %v2644_v52 = vrot.slane %v2440_v24, 2  ;;  %v3025_v35 = vmul.f32 %v11340_v59, %v11339_v61  ;;  %v3165_v7 = vunpack.c.h.bf16 %v8397_v63  ;;  %v8419_v27 = vld [vmem:[#allocation2 + $0x60] sm:$0xff] }
 0x191   : > { %v2099_v18 = vsel %vm2073_vm1, %v2097_v29, %v2098_v36  ;;  %v2639_v8 = vrot.slane %v2436_v1, 2  ;;  %v3216_v3 = vmul.f32 %v8234_v50, %v11341_v44  ;;  %v3218_v42 = vmul.f32 %v11340_v59, %v11341_v44 }
 0x192   : > { %v1559_v11 = vld [vmem:[#allocation2 + $0xc0] sm:$0x11]  ;;  %v2103_v39 = vsel %vm2073_vm1, %v2098_v36, %v2102_v10  ;;  %v2307_v19 = vadd.f32 %v2099_v18, %v1765_v25  ;;  %v2645_v30 = vsel %vm2615_vm13, %v2640_v60, %v2644_v52  ;;  %v3220_v6 = vmul.f32 %v11341_v44, %v3165_v7  ;;  %v8425_v25 = vpop.f32.mrb[67].mxu0  ;;  %v11344_v18 = vld [vmem:[#allocation17_spill] sm:$0xff]  ;;  %v11348_v44 = vld [vmem:[#allocation26_spill] sm:$0xff] }
 0x193   : > { %v1560_v29 = vsel %vm7763_vm12, 0, %v1559_v11  ;;  %v2309_v24 = vadd.f32 %v2103_v39, %v1767_v31  ;;  %v2641_v1 = vsel %vm2615_vm13, %v2639_v8, %v2640_v60  ;;  %v3418_v4 = vrot.slane %v3216_v3, 1  ;;  %11343 = vst [vmem:[#allocation12_spill] sm:$0xff] %v8425_v25  ;;  %v8430_v11 = vld [vmem:[#allocation2 + $0x68] sm:$0xff]  ;;  %v8435_v60 = vld [vmem:[#allocation2 + $0x70] sm:$0x11] }
 0x194   : > { %1561 = vst [vmem:[#allocation2 + $0xc0] sm:$0x11] %v1560_v29  ;;  %v2849_v15 = vadd.f32 %v2641_v1, %v2307_v19  ;;  %v3419_v34 = vrot.slane %v3218_v42, 1  ;;  %v3423_v21 = vrot.slane %v3220_v6, 1  ;;  %v3706_v36 = vunpack.c.h.bf16 %v8414_v48 }
 0x195   : > { %v1618_v10 = vld [vmem:[#allocation2 + $0xd0] sm:$0x11]  ;;  %v2851_v52 = vadd.f32 %v2645_v30, %v2309_v24  ;;  %v3759_v45 = vmul.f32 %v11340_v59, %v11344_v18  ;;  %v3761_v20 = vmul.f32 %v11344_v18, %v3165_v7  ;;  %v8433_v31 = vunpack.c.h.bf16 %v8419_v27  ;;  %v8442_v24 = vld [vmem:[#allocation2 + $0x60] sm:$0xee] }
 0x196   : > { %v1619_v3 = vsel %vm7831_vm0, 0, %v1618_v10  ;;  %v3087_v42 = vadd.f32 %v3023_v53, %v2849_v15  ;;  %v3420_v39 = vsel %vm2073_vm1, %v3418_v4, %v3419_v34  ;;  %v3424_v19 = vsel %vm2073_vm1, %v3419_v34, %v3423_v21 }
 0x197   : > { %11345 = vst [vmem:[#allocation25_spill] sm:$0xff] %v8433_v31  ;;  %1620 = vst [vmem:[#allocation2 + $0xd0] sm:$0x11] %v1619_v3  ;;  %v3089_v30 = vadd.f32 %v3025_v35, %v2851_v52  ;;  %v3757_v6 = vmul.f32 %v11344_v18, %v3706_v36  ;;  %v3960_v7 = vrot.slane %v3759_v45, 2  ;;  %v3964_v29 = vrot.slane %v3761_v20, 2 }
 0x198   : > { %v3628_v1 = vadd.f32 %v3420_v39, %v3087_v42  ;;  %v8445_v25 = vunpack.c.h.bf16 %v8430_v11  ;;  %v4343_v10 = vmul.f32 %v11347_v43, %v8433_v31  ;;  %v4485_v15 = vunpack.c.h.bf16 %v8435_v60 }
 0x199   : > { %v3630_v4 = vadd.f32 %v3424_v19, %v3089_v30  ;;  %v3959_v53 = vrot.slane %v3757_v6, 2  ;;  %v3965_v21 = vsel %vm2615_vm13, %v3960_v7, %v3964_v29  ;;  %v4536_v34 = vmul.f32 %v11326_v14, %v8433_v31 }
 0x19a   : > { %v4345_v20 = vmul.f32 %v11347_v43, %v8445_v25  ;;  %v4538_v45 = vmul.f32 %v11326_v14, %v8445_v25  ;;  %v4540_v35 = vmul.f32 %v11326_v14, %v4485_v15  ;;  %v5026_v36 = vunpack.c.h.bf16 %v8442_v24 }
 0x19b   : > { %v3961_v52 = vsel %vm2615_vm13, %v3959_v53, %v3960_v7  ;;  %v4171_v3 = vadd.f32 %v3965_v21, %v3630_v4  ;;  %v4738_v42 = vrot.slane %v4536_v34, 1  ;;  %v5079_v39 = vmul.f32 %v7769_v32, %v8445_v25 }
 0x19c   : > { %v4169_v19 = vadd.f32 %v3961_v52, %v3628_v1  ;;  %v4739_v30 = vrot.slane %v4538_v45, 1  ;;  %v4743_v6 = vrot.slane %v4540_v35, 1  ;;  %v5077_v29 = vmul.f32 %v7769_v32, %v5026_v36  ;;  %v7342_v45 = vld [vmem:[#allocation2 + $0x30] sm:$0xff] }
 0x19d   : > { %v4409_v8 = vadd.f32 %v4345_v20, %v4171_v3  ;;  %v5081_v43 = vmul.f32 %v7769_v32, %v4485_v15  ;;  %v5280_v18 = vrot.slane %v5079_v39, 2  ;;  %v716_v14 = vmul.f32 %v7627_v55, %v11348_v44  ;;  %v7343_v15 = vld [vmem:[#allocation2 + $0x38] sm:$0xff] }
 0x19e   : > { %v4407_v31 = vadd.f32 %v4343_v10, %v4169_v19  ;;  %v4740_v7 = vsel %vm2073_vm1, %v4738_v42, %v4739_v30  ;;  %v4744_v4 = vsel %vm2073_vm1, %v4739_v30, %v4743_v6  ;;  %v5279_v53 = vrot.slane %v5077_v29, 2 }
 0x19f   : > { %v4950_v21 = vadd.f32 %v4744_v4, %v4409_v8  ;;  %v5284_v34 = vrot.slane %v5081_v43, 2  ;;  %v835_v1 = vadd.f32 %v7635_v58, %v716_v14  ;;  %v1689_v35 = vunpack.c.l.bf16 %v7342_v45 }
 0x1a0   : > { %v4948_v36 = vadd.f32 %v4740_v7, %v4407_v31  ;;  %v5281_v20 = vsel %vm2615_vm13, %v5279_v53, %v5280_v18  ;;  %v1691_v52 = vunpack.c.l.bf16 %v7343_v15  ;;  %v1842_v3 = vunpack.c.l.bf16 %v8375_v2 }
 0x1a1   : > { %v5285_v44 = vsel %vm2615_vm13, %v5280_v18, %v5284_v34  ;;  %v943_v10 = vmax.f32 %v835_v1, 0.0  ;;  %v1764_v42 = vmul.f32 %v11327_v5, %v1689_v35  ;;  %v1893_v39 = vmul.f32 %v7664_v28, %v1689_v35 }
 0x1a2   : > { %v5489_v8 = vadd.f32 %v5281_v20, %v4948_v36  ;;  %v5491_v43 = vadd.f32 %v5285_v44, %v4950_v21  ;;  %v1766_v14 = vmul.f32 %v11327_v5, %v1691_v52  ;;  %v1895_v19 = vmul.f32 %v7664_v28, %v1691_v52 }
 0x1a3   : > { %v1051_v31 = vmin.f32 %v943_v10, 6.0  ;;  %v1897_v30 = vmul.f32 %v7664_v28, %v1842_v3  ;;  %v2094_v6 = vrot.slane %v1893_v39, 1  ;;  %v2384_v29 = vunpack.c.l.bf16 %v8379_v0 }
 0x1a4   : > { %v5564_v2 = vmul.f32 %v7775_v37, %v5489_v8  ;;  %v5566_v18 = vmul.f32 %v7775_v37, %v5491_v43  ;;  %v2095_v7 = vrot.slane %v1895_v19, 1  ;;  %v2437_v4 = vmul.f32 %v7655_v23, %v1691_v52 }
 0x1a5   : > { %v7225_v53 = vpack.c.bf16 %v1051_v31, %v8390_v13  ;;  %v2100_v21 = vrot.slane %v1897_v30, 1  ;;  %v2435_v34 = vmul.f32 %v7655_v23, %v2384_v29  ;;  %v2439_v1 = vmul.f32 %v7655_v23, %v1842_v3 }
 0x1a6   : > { %v5639_v45 = vadd.f32 %v7779_v38, %v5564_v2  ;;  %v5641_v35 = vadd.f32 %v7779_v38, %v5566_v18  ;;  %v2096_v0 = vsel %vm2073_vm1, %v2094_v6, %v2095_v7  ;;  %v2637_v36 = vrot.slane %v2437_v4, 2  ;;  %v8503_v4 = vpop.f32.mrb[68].mxu0 }
 0x1a7   : > { %1494 = vst.msk [vmem:[#allocation2 + $0xd8] sm:$0xff] %vm7658_vm7, %v7225_v53  ;;  %v2101_v20 = vsel %vm2073_vm1, %v2095_v7, %v2100_v21  ;;  %v2306_v15 = vadd.f32 %v2096_v0, %v1764_v42  ;;  %v2636_v52 = vrot.slane %v2435_v34, 2  ;;  %v2642_v13 = vrot.slane %v2439_v1, 2  ;;  %11349 = vst [vmem:[#allocation14_spill] sm:$0xff] %v8503_v4  ;;  %v8507_v1 = vpop.f32.mrb[69].mxu0 }
 0x1a8   : > { %v5703_v44 = vmax.f32 %v5639_v45, 0.0  ;;  %v5705_v10 = vmax.f32 %v5641_v35, 0.0  ;;  %v2308_v39 = vadd.f32 %v2101_v20, %v1766_v14  ;;  %v3022_v3 = vmul.f32 %v8312_v26, %v7695_v46  ;;  %11350 = vst [vmem:[#allocation24_spill] sm:$0xff] %v8507_v1  ;;  %v8510_v20 = vpop.f32.mrb[70].mxu0 }
 0x1a9   : > { %v2638_v8 = vsel %vm2615_vm13, %v2636_v52, %v2637_v36  ;;  %v2643_v43 = vsel %vm2615_vm13, %v2637_v36, %v2642_v13  ;;  %v3024_v19 = vmul.f32 %v8316_v40, %v7695_v46  ;;  %v3164_v31 = vunpack.c.l.bf16 %v8397_v63  ;;  %11351 = vst [vmem:[#allocation26_spill] sm:$0xff] %v8510_v20 }
 0x1aa   : > { %v5767_v30 = vmin.f32 %v5703_v44, 6.0  ;;  %v5769_v6 = vmin.f32 %v5705_v10, 6.0  ;;  %v2848_v42 = vadd.f32 %v2638_v8, %v2306_v15  ;;  %v2850_v29 = vadd.f32 %v2643_v43, %v2308_v39  ;;  %v8520_v10 = vpop.f32.mrb[71].mxu0 }
 0x1ab   : > { %v3215_v2 = vmul.f32 %v8312_v26, %v7723_v62  ;;  %v3217_v14 = vmul.f32 %v8316_v40, %v7723_v62  ;;  %v3219_v18 = vmul.f32 %v7723_v62, %v3164_v31  ;;  %v3705_v7 = vunpack.c.l.bf16 %v8414_v48  ;;  %11352 = vst [vmem:[#allocation37_spill] sm:$0xff] %v8520_v10 }
 0x1ac   : > { %v5827_v53 = vpack.c.bf16 %v5769_v6, %v5767_v30  ;;  %v3086_v21 = vadd.f32 %v3022_v3, %v2848_v42  ;;  %v3088_v34 = vadd.f32 %v3024_v19, %v2850_v29  ;;  %v3758_v63 = vmul.f32 %v8316_v40, %v7708_v51 }
 0x1ad   : > { %v3415_v45 = vrot.slane %v3215_v2, 1  ;;  %v3416_v35 = vrot.slane %v3217_v14, 1  ;;  %v3421_v0 = vrot.slane %v3219_v18, 1  ;;  %v3756_v36 = vmul.f32 %v7708_v51, %v3705_v7 }
 0x1ae   : > { %7098 = vmatprep.mubr.msk.bf16.mxu1 %vm5950_vm2, %v5827_v53  ;;  %v1562_v48 = vld [vmem:[#allocation2 + $0xd8] sm:$0x11]  ;;  %v3760_v15 = vmul.f32 %v7708_v51, %v3164_v31  ;;  %v3957_v52 = vrot.slane %v3758_v63, 2  ;;  %v8515_v13 = vunpack.c.l.bf16 %v8419_v27  ;;  %v8518_v44 = vunpack.c.l.bf16 %v8430_v11 }
 0x1af   : > { %v1563_v39 = vsel %vm7763_vm12, 0, %v1562_v48  ;;  %v3417_v3 = vsel %vm2073_vm1, %v3415_v45, %v3416_v35  ;;  %v3422_v8 = vsel %vm2073_vm1, %v3416_v35, %v3421_v0  ;;  %v3956_v43 = vrot.slane %v3756_v36, 2 }
 0x1b0   : > { %1564 = vst [vmem:[#allocation2 + $0xd8] sm:$0x11] %v1563_v39  ;;  %v3627_v19 = vadd.f32 %v3417_v3, %v3086_v21  ;;  %v3629_v31 = vadd.f32 %v3422_v8, %v3088_v34  ;;  %v3962_v30 = vrot.slane %v3760_v15, 2  ;;  %v4342_v27 = vmul.f32 %v7744_v12, %v8515_v13 }
 0x1b1   : > { %v3958_v11 = vsel %vm2615_vm13, %v3956_v43, %v3957_v52  ;;  %v4344_v6 = vmul.f32 %v7744_v12, %v8518_v44  ;;  %v4484_v42 = vunpack.c.l.bf16 %v8435_v60  ;;  %v4535_v29 = vmul.f32 %v7750_v17, %v8515_v13  ;;  %v11354_v43 = vld [vmem:[#allocation27_spill] sm:$0xff] }
 0x1b2   : > { %v3963_v2 = vsel %vm2615_vm13, %v3957_v52, %v3962_v30  ;;  %v4168_v14 = vadd.f32 %v3958_v11, %v3627_v19  ;;  %v4537_v18 = vmul.f32 %v7750_v17, %v8518_v44  ;;  %v5025_v7 = vunpack.c.l.bf16 %v8442_v24  ;;  %v11353_v52 = vld [vmem:[#allocation22_spill] sm:$0xff]  ;;  %v11355_v11 = vld [vmem:[#allocation28_spill] sm:$0xff] }
 0x1b3   : > { %v4170_v53 = vadd.f32 %v3963_v2, %v3629_v31  ;;  %v4539_v21 = vmul.f32 %v7750_v17, %v4484_v42  ;;  %v4735_v34 = vrot.slane %v4535_v29, 1  ;;  %v5078_v63 = vmul.f32 %v7757_v22, %v8518_v44 }
 0x1b4   : > { %v4406_v45 = vadd.f32 %v4342_v27, %v4168_v14  ;;  %v4736_v60 = vrot.slane %v4537_v18, 1  ;;  %v5076_v35 = vmul.f32 %v7757_v22, %v5025_v7  ;;  %v5080_v0 = vmul.f32 %v7757_v22, %v4484_v42 }
 0x1b5   : > { %v4408_v36 = vadd.f32 %v4344_v6, %v4170_v53  ;;  %v4741_v48 = vrot.slane %v4539_v21, 1  ;;  %v5277_v15 = vrot.slane %v5078_v63, 2  ;;  %v717_v39 = vmul.f32 %v7623_v54, %v11353_v52  ;;  %v11356_v21 = vld [vmem:[#allocation29_spill] sm:$0xff]  ;;  %v8558_v63 = vld [vmem:[#allocation2 + $0x58] sm:$0x11] }
 0x1b6   : > { %v4737_v24 = vsel %vm2073_vm1, %v4735_v34, %v4736_v60  ;;  %v5276_v3 = vrot.slane %v5076_v35, 2  ;;  %v5282_v8 = vrot.slane %v5080_v0, 2  ;;  %v718_v19 = vmul.f32 %v7627_v55, %v11354_v43  ;;  %v8570_v43 = vld [vmem:[#allocation2 + $0x48] sm:$0xee] }
 0x1b7   : > { %v4742_v31 = vsel %vm2073_vm1, %v4736_v60, %v4741_v48  ;;  %v4947_v30 = vadd.f32 %v4737_v24, %v4406_v45  ;;  %v836_v27 = vadd.f32 %v7631_v56, %v717_v39  ;;  %v719_v6 = vmul.f32 %v7623_v54, %v11355_v11 }
 0x1b8   : > { %v4949_v42 = vadd.f32 %v4742_v31, %v4408_v36  ;;  %v5278_v29 = vsel %vm2615_vm13, %v5276_v3, %v5277_v15  ;;  %v5283_v2 = vsel %vm2615_vm13, %v5277_v15, %v5282_v8  ;;  %v837_v14 = vadd.f32 %v7635_v58, %v718_v19 }
 0x1b9   : > { %v5488_v18 = vadd.f32 %v5278_v29, %v4947_v30  ;;  %v944_v7 = vmax.f32 %v836_v27, 0.0  ;;  %v838_v53 = vadd.f32 %v7631_v56, %v719_v6  ;;  %v720_v34 = vmul.f32 %v7627_v55, %v11356_v21 }
 0x1ba   : > { %v5490_v45 = vadd.f32 %v5283_v2, %v4949_v42  ;;  %v945_v60 = vmax.f32 %v837_v14, 0.0  ;;  %v1769_v35 = vmul.f32 %v8234_v50, %v7685_v41  ;;  %v1771_v0 = vmul.f32 %v11340_v59, %v7685_v41 }
 0x1bb   : > { %v5563_v36 = vmul.f32 %v7787_v47, %v5488_v18  ;;  %v1052_v48 = vmin.f32 %v944_v7, 6.0  ;;  %v946_v15 = vmax.f32 %v838_v53, 0.0  ;;  %v839_v52 = vadd.f32 %v7635_v58, %v720_v34 }
 0x1bc   : > { %v5565_v39 = vmul.f32 %v7787_v47, %v5490_v45  ;;  %v1053_v24 = vmin.f32 %v945_v60, 6.0  ;;  %v1845_v3 = vunpack.c.h.bf16 %v8558_v63  ;;  %v1900_v8 = vmul.f32 %v8234_v50, %v11337_v9 }
 0x1bd   : > { %v5638_v19 = vadd.f32 %v11314_v33, %v5563_v36  ;;  %v1054_v31 = vmin.f32 %v946_v15, 6.0  ;;  %v947_v30 = vmax.f32 %v839_v52, 0.0  ;;  %v1902_v27 = vmul.f32 %v11340_v59, %v11337_v9  ;;  %v8585_v15 = vld [vmem:[#allocation2 + $0x70] sm:$0x11] }
 0x1be   : > { %v5640_v11 = vadd.f32 %v11314_v33, %v5565_v39  ;;  %v7226_v6 = vpack.c.bf16 %v1053_v24, %v1052_v48  ;;  %v1904_v42 = vmul.f32 %v11337_v9, %v1845_v3  ;;  %v2107_v29 = vrot.slane %v1900_v8, 1 }
 0x1bf   : > { %v5702_v2 = vmax.f32 %v5638_v19, 0.0  ;;  %v1055_v14 = vmin.f32 %v947_v30, 6.0  ;;  %v2108_v18 = vrot.slane %v1902_v27, 1  ;;  %v2387_v50 = vunpack.c.h.bf16 %v8570_v43  ;;  %v8588_v19 = vld [vmem:[#allocation2 + $0x60] sm:$0xee] }
 0x1c0   : > { %v5704_v7 = vmax.f32 %v5640_v11, 0.0  ;;  %1495 = vst.msk [vmem:[#allocation2 + $0xe0] sm:$0xff] %vm7658_vm7, %v7226_v6  ;;  %v2112_v53 = vrot.slane %v1904_v42, 1  ;;  %v2444_v21 = vmul.f32 %v11340_v59, %v11338_v57  ;;  %v2446_v34 = vmul.f32 %v11338_v57, %v1845_v3 }
 0x1c1   : > { %v5766_v45 = vmin.f32 %v5702_v2, 6.0  ;;  %v7227_v60 = vpack.c.bf16 %v1055_v14, %v1054_v31  ;;  %v2109_v36 = vsel %vm2073_vm1, %v2107_v29, %v2108_v18  ;;  %v2442_v48 = vmul.f32 %v11338_v57, %v2387_v50  ;;  %v11357_v31 = vld [vmem:[#allocation25_spill] sm:$0xff]  ;;  %v11358_v29 = vld [vmem:[#allocation18_spill] sm:$0xff]  ;;  %v8604_v50 = vld [vmem:[#allocation2 + $0x78] sm:$0xff] }
 0x1c2   : > { %v5768_v52 = vmin.f32 %v5704_v7, 6.0  ;;  %v2113_v39 = vsel %vm2073_vm1, %v2108_v18, %v2112_v53  ;;  %v2311_v24 = vadd.f32 %v2109_v36, %v1769_v35  ;;  %v2650_v8 = vrot.slane %v2444_v21, 2 }
 0x1c3   : > { %1496 = vst.msk [vmem:[#allocation2 + $0xe8] sm:$0xff] %vm7658_vm7, %v7227_v60  ;;  %v2313_v59 = vadd.f32 %v2113_v39, %v1771_v0  ;;  %v2649_v3 = vrot.slane %v2442_v48, 2  ;;  %v2654_v30 = vrot.slane %v2446_v34, 2  ;;  %v3027_v27 = vmul.f32 %v11357_v31, %v11339_v61  ;;  %v11359_v60 = vld [vmem:[#allocation17_spill] sm:$0xff]  ;;  %v8611_v39 = vld [vmem:[#allocation2 + $0x80] sm:$0xff] }
 0x1c4   : > { %v5826_v11 = vpack.c.bf16 %v5768_v52, %v5766_v45  ;;  %v3029_v6 = vmul.f32 %v8445_v25, %v11339_v61  ;;  %v3167_v42 = vunpack.c.h.bf16 %v8585_v15  ;;  %v3222_v35 = vmul.f32 %v11357_v31, %v11358_v29 }
 0x1c5   : > { %v2651_v2 = vsel %vm2615_vm13, %v2649_v3, %v2650_v8  ;;  %v2655_v14 = vsel %vm2615_vm13, %v2650_v8, %v2654_v30  ;;  %v3224_v0 = vmul.f32 %v8445_v25, %v11358_v29  ;;  %v3708_v18 = vunpack.c.h.bf16 %v8588_v19 }
 0x1c6   : > { %6048 = vmatmul.mubr.bf16.gmra.mrb[8].mxu1 %v5826_v11  ;;  %v2853_v7 = vadd.f32 %v2651_v2, %v2311_v24  ;;  %v2855_v53 = vadd.f32 %v2655_v14, %v2313_v59  ;;  %v3226_v21 = vmul.f32 %v11358_v29, %v3167_v42  ;;  %v3428_v34 = vrot.slane %v3222_v35, 1  ;;  %v8617_v14 = vld [vmem:[#allocation2 + $0x88] sm:$0x11] }
 0x1c7   : > { %v3429_v45 = vrot.slane %v3224_v0, 1  ;;  %v3763_v36 = vmul.f32 %v11359_v60, %v3708_v18  ;;  %v3765_v48 = vmul.f32 %v8445_v25, %v11359_v60  ;;  %v3767_v52 = vmul.f32 %v11359_v60, %v3167_v42 }
 0x1c8   : > { %v3091_v8 = vadd.f32 %v3027_v27, %v2853_v7  ;;  %v3093_v3 = vadd.f32 %v3029_v6, %v2855_v53  ;;  %v3433_v30 = vrot.slane %v3226_v21, 1  ;;  %v8614_v11 = vunpack.c.h.bf16 %v8604_v50  ;;  %v11360_v27 = vld [vmem:[#allocation19_spill] sm:$0xff] }
 0x1c9   : > { %v3430_v24 = vsel %vm2073_vm1, %v3428_v34, %v3429_v45  ;;  %v3969_v59 = vrot.slane %v3763_v36, 2  ;;  %v3970_v35 = vrot.slane %v3765_v48, 2  ;;  %v3974_v2 = vrot.slane %v3767_v52, 2  ;;  %v8625_v7 = vld [vmem:[#allocation2 + $0x78] sm:$0xee] }
 0x1ca   : > { %v1621_v0 = vld [vmem:[#allocation2 + $0xe8] sm:$0x11]  ;;  %v3434_v18 = vsel %vm2073_vm1, %v3429_v45, %v3433_v30  ;;  %v3632_v10 = vadd.f32 %v3430_v24, %v3091_v8  ;;  %v8621_v42 = vunpack.c.h.bf16 %v8611_v39  ;;  %v4347_v6 = vmul.f32 %v11360_v27, %v8614_v11  ;;  %v11362_v30 = vld [vmem:[#allocation20_spill] sm:$0xff] }
 0x1cb   : > { %v1622_v21 = vsel %vm7831_vm0, 0, %v1621_v0  ;;  %v3634_v34 = vadd.f32 %v3434_v18, %v3093_v3  ;;  %v3971_v36 = vsel %vm2615_vm13, %v3969_v59, %v3970_v35  ;;  %v3975_v48 = vsel %vm2615_vm13, %v3970_v35, %v3974_v2 }
 0x1cc   : > { %1623 = vst [vmem:[#allocation2 + $0xe8] sm:$0x11] %v1622_v21  ;;  %v4173_v52 = vadd.f32 %v3971_v36, %v3632_v10  ;;  %v4349_v45 = vmul.f32 %v11360_v27, %v8621_v42  ;;  %v4487_v8 = vunpack.c.h.bf16 %v8617_v14  ;;  %v4542_v24 = vmul.f32 %v11362_v30, %v8614_v11 }
 0x1cd   : > { %v4175_v20 = vadd.f32 %v3975_v48, %v3634_v34  ;;  %v4544_v1 = vmul.f32 %v11362_v30, %v8621_v42  ;;  %v5028_v3 = vunpack.c.h.bf16 %v8625_v7  ;;  %v5085_v59 = vmul.f32 %v7769_v32, %v8621_v42 }
 0x1ce   : > { %v4411_v35 = vadd.f32 %v4347_v6, %v4173_v52  ;;  %v4546_v10 = vmul.f32 %v11362_v30, %v4487_v8  ;;  %v4748_v2 = vrot.slane %v4542_v24, 1  ;;  %v5087_v0 = vmul.f32 %v7769_v32, %v4487_v8 }
 0x1cf   : > { %v4413_v18 = vadd.f32 %v4349_v45, %v4175_v20  ;;  %v4749_v21 = vrot.slane %v4544_v1, 1  ;;  %v5083_v36 = vmul.f32 %v7769_v32, %v5028_v3  ;;  %v5290_v4 = vrot.slane %v5085_v59, 2 }
 0x1d0   : > { %v4753_v34 = vrot.slane %v4546_v10, 1  ;;  %v5294_v48 = vrot.slane %v5087_v0, 2  ;;  %v1768_v27 = vmul.f32 %v8312_v26, %v11327_v5  ;;  %v1770_v53 = vmul.f32 %v8316_v40, %v11327_v5 }
 0x1d1   : > { %v4750_v6 = vsel %vm2073_vm1, %v4748_v2, %v4749_v21  ;;  %v5289_v52 = vrot.slane %v5083_v36, 2  ;;  %v1844_v24 = vunpack.c.l.bf16 %v8558_v63  ;;  %v1899_v20 = vmul.f32 %v8312_v26, %v7664_v28 }
 0x1d2   : > { %v4754_v1 = vsel %vm2073_vm1, %v4749_v21, %v4753_v34  ;;  %v4952_v45 = vadd.f32 %v4750_v6, %v4411_v35  ;;  %v5295_v8 = vsel %vm2615_vm13, %v5290_v4, %v5294_v48  ;;  %v1901_v3 = vmul.f32 %v8316_v40, %v7664_v28 }
 0x1d3   : > { %v4954_v59 = vadd.f32 %v4754_v1, %v4413_v18  ;;  %v5291_v10 = vsel %vm2615_vm13, %v5289_v52, %v5290_v4  ;;  %v1903_v0 = vmul.f32 %v7664_v28, %v1844_v24  ;;  %v2104_v2 = vrot.slane %v1899_v20, 1 }
 0x1d4   : > { %v5493_v36 = vadd.f32 %v5291_v10, %v4952_v45  ;;  %v2105_v5 = vrot.slane %v1901_v3, 1  ;;  %v2386_v63 = vunpack.c.l.bf16 %v8570_v43  ;;  %v2443_v26 = vmul.f32 %v8316_v40, %v7655_v23 }
 0x1d5   : > { %v5495_v21 = vadd.f32 %v5295_v8, %v4954_v59  ;;  %v2110_v35 = vrot.slane %v1903_v0, 1  ;;  %v2445_v34 = vmul.f32 %v7655_v23, %v1844_v24  ;;  %v3026_v48 = vmul.f32 %v8515_v13, %v7695_v46 }
 0x1d6   : > { %v5568_v18 = vmul.f32 %v7775_v37, %v5493_v36  ;;  %v2106_v4 = vsel %vm2073_vm1, %v2104_v2, %v2105_v5  ;;  %v2441_v6 = vmul.f32 %v7655_v23, %v2386_v63  ;;  %v2647_v52 = vrot.slane %v2443_v26, 2 }
 0x1d7   : > { %v5570_v20 = vmul.f32 %v7775_v37, %v5495_v21  ;;  %v2111_v43 = vsel %vm2073_vm1, %v2105_v5, %v2110_v35  ;;  %v2310_v1 = vadd.f32 %v2106_v4, %v1768_v27  ;;  %v2652_v40 = vrot.slane %v2445_v34, 2 }
 0x1d8   : > { %v5643_v45 = vadd.f32 %v7779_v38, %v5568_v18  ;;  %v2312_v8 = vadd.f32 %v2111_v43, %v1770_v53  ;;  %v2646_v24 = vrot.slane %v2441_v6, 2  ;;  %v3028_v3 = vmul.f32 %v8518_v44, %v7695_v46  ;;  %v8682_v6 = vpop.f32.mrb[72].mxu0 }
 0x1d9   : > { %v5645_v59 = vadd.f32 %v7779_v38, %v5570_v20  ;;  %v2653_v10 = vsel %vm2615_vm13, %v2647_v52, %v2652_v40  ;;  %v3166_v0 = vunpack.c.l.bf16 %v8585_v15  ;;  %v3221_v2 = vmul.f32 %v8515_v13, %v7723_v62  ;;  %11363 = vst [vmem:[#allocation22_spill] sm:$0xff] %v8682_v6 }
 0x1da   : > { %v5707_v36 = vmax.f32 %v5643_v45, 0.0  ;;  %v2648_v5 = vsel %vm2615_vm13, %v2646_v24, %v2647_v52  ;;  %v2854_v27 = vadd.f32 %v2653_v10, %v2312_v8  ;;  %v3223_v53 = vmul.f32 %v8518_v44, %v7723_v62  ;;  %v8686_v45 = vpop.f32.mrb[73].mxu0 }
 0x1db   : > { %v5709_v63 = vmax.f32 %v5645_v59, 0.0  ;;  %v2852_v26 = vadd.f32 %v2648_v5, %v2310_v1  ;;  %v3225_v21 = vmul.f32 %v7723_v62, %v3166_v0  ;;  %v3425_v35 = vrot.slane %v3221_v2, 1  ;;  %11364 = vst [vmem:[#allocation27_spill] sm:$0xff] %v8686_v45  ;;  %v8695_v2 = vpop.f32.mrb[74].mxu0 }
 0x1dc   : > { %v5771_v34 = vmin.f32 %v5707_v36, 6.0  ;;  %v3092_v18 = vadd.f32 %v3028_v3, %v2854_v27  ;;  %v3426_v4 = vrot.slane %v3223_v53, 1  ;;  %v3707_v15 = vunpack.c.l.bf16 %v8588_v19  ;;  %11365 = vst [vmem:[#allocation28_spill] sm:$0xff] %v8695_v2 }
 0x1dd   : > { %v5773_v20 = vmin.f32 %v5709_v63, 6.0  ;;  %v3090_v43 = vadd.f32 %v3026_v48, %v2852_v26  ;;  %v3431_v40 = vrot.slane %v3225_v21, 1  ;;  %v3764_v52 = vmul.f32 %v8518_v44, %v7708_v51  ;;  %v8700_v63 = vpop.f32.mrb[75].mxu0 }
 0x1de   : > { %v3427_v1 = vsel %vm2073_vm1, %v3425_v35, %v3426_v4  ;;  %v3762_v8 = vmul.f32 %v7708_v51, %v3707_v15  ;;  %v3766_v24 = vmul.f32 %v7708_v51, %v3166_v0  ;;  %v8692_v3 = vunpack.c.l.bf16 %v8604_v50  ;;  %11366 = vst [vmem:[#allocation29_spill] sm:$0xff] %v8700_v63  ;;  %v8709_v35 = vpop.f32.mrb[76].mxu0 }
 0x1df   : > { %v5829_v19 = vpack.c.bf16 %v5773_v20, %v5771_v34  ;;  %v3432_v59 = vsel %vm2073_vm1, %v3426_v4, %v3431_v40  ;;  %v3631_v10 = vadd.f32 %v3427_v1, %v3090_v43  ;;  %v3967_v48 = vrot.slane %v3764_v52, 2  ;;  %11367 = vst [vmem:[#allocation25_spill] sm:$0xff] %v8709_v35  ;;  %v8717_v15 = vpop.f32.mrb[77].mxu0 }
 0x1e0   : > { %v3633_v36 = vadd.f32 %v3432_v59, %v3092_v18  ;;  %v3966_v5 = vrot.slane %v3762_v8, 2  ;;  %v3972_v27 = vrot.slane %v3766_v24, 2  ;;  %v8698_v53 = vunpack.c.l.bf16 %v8611_v39  ;;  %11368 = vst [vmem:[#allocation38_spill] sm:$0xff] %v8717_v15 }
 0x1e1   : > { %7099 = vmatprep.mubr.msk.bf16.mxu1 %vm5950_vm2, %v5829_v19  ;;  %v4346_v50 = vmul.f32 %v7744_v12, %v8692_v3  ;;  %v4486_v0 = vunpack.c.l.bf16 %v8617_v14  ;;  %v4541_v26 = vmul.f32 %v7750_v17, %v8692_v3  ;;  %v5027_v21 = vunpack.c.l.bf16 %v8625_v7  ;;  %v8720_v7 = vpop.f32.mrb[78].mxu0 }
 0x1e2   : > { %v3968_v34 = vsel %vm2615_vm13, %v3966_v5, %v3967_v48  ;;  %v3973_v39 = vsel %vm2615_vm13, %v3967_v48, %v3972_v27  ;;  %v4348_v18 = vmul.f32 %v7744_v12, %v8698_v53  ;;  %v4543_v4 = vmul.f32 %v7750_v17, %v8698_v53  ;;  %11369 = vst [vmem:[#allocation39_spill] sm:$0xff] %v8720_v7  ;;  %v11370_v5 = vld [vmem:[#allocation30_spill] sm:$0xff]  ;;  %v11371_v7 = vld [vmem:[#allocation31_spill] sm:$0xff]  ;;  %v8804_v63 = vpop.f32.mrb[79].mxu0 }
 0x1e3   : > { %v4172_v14 = vadd.f32 %v3968_v34, %v3631_v10  ;;  %v4174_v20 = vadd.f32 %v3973_v39, %v3633_v36  ;;  %v4545_v43 = vmul.f32 %v7750_v17, %v4486_v0  ;;  %v4745_v40 = vrot.slane %v4541_v26, 1  ;;  %11377 = vst [vmem:[#allocation30_spill] sm:$0xff] %v8804_v63 }
 0x1e4   : > { %v4746_v52 = vrot.slane %v4543_v4, 1  ;;  %v5082_v1 = vmul.f32 %v7757_v22, %v5027_v21  ;;  %v5084_v8 = vmul.f32 %v7757_v22, %v8698_v53  ;;  %v5086_v24 = vmul.f32 %v7757_v22, %v4486_v0 }
 0x1e5   : > { %v4410_v19 = vadd.f32 %v4346_v50, %v4172_v14  ;;  %v4412_v59 = vadd.f32 %v4348_v18, %v4174_v20  ;;  %v4751_v48 = vrot.slane %v4545_v43, 1  ;;  %v721_v10 = vmul.f32 %v7623_v54, %v11370_v5  ;;  %v11372_v14 = vld [vmem:[#allocation32_spill] sm:$0xff] }
 0x1e6   : > { %v4747_v36 = vsel %vm2073_vm1, %v4745_v40, %v4746_v52  ;;  %v5286_v27 = vrot.slane %v5082_v1, 2  ;;  %v5287_v26 = vrot.slane %v5084_v8, 2  ;;  %v5292_v34 = vrot.slane %v5086_v24, 2  ;;  %v11373_v8 = vld [vmem:[#allocation33_spill] sm:$0xff] }
 0x1e7   : > { %v4752_v39 = vsel %vm2073_vm1, %v4746_v52, %v4751_v48  ;;  %v4951_v4 = vadd.f32 %v4747_v36, %v4410_v19  ;;  %v840_v21 = vadd.f32 %v7631_v56, %v721_v10  ;;  %v722_v15 = vmul.f32 %v7627_v55, %v11371_v7  ;;  %v11374_v48 = vld [vmem:[#allocation34_spill] sm:$0xff] }
 0x1e8   : > { %v4953_v0 = vadd.f32 %v4752_v39, %v4412_v59  ;;  %v5288_v50 = vsel %vm2615_vm13, %v5286_v27, %v5287_v26  ;;  %v5293_v18 = vsel %vm2615_vm13, %v5287_v26, %v5292_v34  ;;  %v723_v20 = vmul.f32 %v7623_v54, %v11372_v14  ;;  %v11375_v59 = vld [vmem:[#allocation35_spill] sm:$0xff] }
 0x1e9   : > { %v5492_v43 = vadd.f32 %v5288_v50, %v4951_v4  ;;  %v948_v40 = vmax.f32 %v840_v21, 0.0  ;;  %v841_v1 = vadd.f32 %v7635_v58, %v722_v15  ;;  %v724_v52 = vmul.f32 %v7627_v55, %v11373_v8 }
 0x1ea   : > { %v5494_v24 = vadd.f32 %v5293_v18, %v4953_v0  ;;  %v842_v19 = vadd.f32 %v7631_v56, %v723_v20  ;;  %v725_v7 = vmul.f32 %v7623_v54, %v11374_v48  ;;  %v726_v5 = vmul.f32 %v7627_v55, %v11375_v59  ;;  %v11376_v18 = vld [vmem:[#allocation36_spill] sm:$0xff]  ;;  %v8755_v48 = vld [vmem:[#allocation2 + $0x70] sm:$0x11] }
 0x1eb   : > { %v5567_v10 = vmul.f32 %v7787_v47, %v5492_v43  ;;  %v1056_v36 = vmin.f32 %v948_v40, 6.0  ;;  %v949_v27 = vmax.f32 %v841_v1, 0.0  ;;  %v843_v26 = vadd.f32 %v7635_v58, %v724_v52 }
 0x1ec   : > { %v5569_v15 = vmul.f32 %v7787_v47, %v5494_v24  ;;  %v950_v34 = vmax.f32 %v842_v19, 0.0  ;;  %v844_v39 = vadd.f32 %v7631_v56, %v725_v7  ;;  %v845_v4 = vadd.f32 %v7635_v58, %v726_v5 }
 0x1ed   : > { %v5642_v21 = vadd.f32 %v11314_v33, %v5567_v10  ;;  %v1057_v0 = vmin.f32 %v949_v27, 6.0  ;;  %v951_v50 = vmax.f32 %v843_v26, 0.0  ;;  %v727_v14 = vmul.f32 %v7623_v54, %v11376_v18  ;;  %v8759_v27 = vld [vmem:[#allocation2 + $0x60] sm:$0xee] }
 0x1ee   : > { %v5644_v20 = vadd.f32 %v11314_v33, %v5569_v15  ;;  %v1058_v43 = vmin.f32 %v950_v34, 6.0  ;;  %v952_v40 = vmax.f32 %v844_v39, 0.0  ;;  %v953_v1 = vmax.f32 %v845_v4, 0.0 }
 0x1ef   : > { %v5706_v8 = vmax.f32 %v5642_v21, 0.0  ;;  %v7228_v52 = vpack.c.bf16 %v1057_v0, %v1056_v36  ;;  %v1059_v24 = vmin.f32 %v951_v50, 6.0  ;;  %v846_v19 = vadd.f32 %v7631_v56, %v727_v14 }
 0x1f0   : > { %v5708_v7 = vmax.f32 %v5644_v20, 0.0  ;;  %v1060_v59 = vmin.f32 %v952_v40, 6.0  ;;  %v1061_v5 = vmin.f32 %v953_v1, 6.0  ;;  %v1773_v10 = vmul.f32 %v11357_v31, %v7685_v41 }
 0x1f1   : > { %v5770_v26 = vmin.f32 %v5706_v8, 6.0  ;;  %1497 = vst.msk [vmem:[#allocation2 + $0xf0] sm:$0xff] %vm7658_vm7, %v7228_v52  ;;  %v7229_v15 = vpack.c.bf16 %v1059_v24, %v1058_v43  ;;  %v954_v34 = vmax.f32 %v846_v19, 0.0  ;;  %v1775_v36 = vmul.f32 %v8445_v25, %v7685_v41  ;;  %v8777_v43 = vld [vmem:[#allocation2 + $0x88] sm:$0x11] }
 0x1f2   : > { %v5772_v39 = vmin.f32 %v5708_v7, 6.0  ;;  %v7230_v4 = vpack.c.bf16 %v1061_v5, %v1060_v59  ;;  %v1847_v21 = vunpack.c.h.bf16 %v8755_v48  ;;  %v1906_v0 = vmul.f32 %v11357_v31, %v11337_v9 }
 0x1f3   : > { %1498 = vst.msk [vmem:[#allocation2 + $0xf8] sm:$0xff] %vm7658_vm7, %v7229_v15  ;;  %v8770_v50 = vmin.f32 %v954_v34, 6.0  ;;  %v1908_v18 = vmul.f32 %v8445_v25, %v11337_v9  ;;  %v2389_v14 = vunpack.c.h.bf16 %v8759_v27  ;;  %v2450_v20 = vmul.f32 %v8445_v25, %v11338_v57 }
 0x1f4   : > { %v5828_v40 = vpack.c.bf16 %v5772_v39, %v5770_v26  ;;  %1499 = vst.msk [vmem:[#allocation2 + $0x100] sm:$0xff] %vm7658_vm7, %v7230_v4  ;;  %v1910_v31 = vmul.f32 %v11337_v9, %v1847_v21  ;;  %v2117_v1 = vrot.slane %v1906_v0, 1  ;;  %v2452_v8 = vmul.f32 %v11338_v57, %v1847_v21  ;;  %v8794_v21 = vld [vmem:[#allocation2 + $0x78] sm:$0xee] }
 0x1f5   : > { %v2118_v52 = vrot.slane %v1908_v18, 1  ;;  %v2448_v24 = vmul.f32 %v11338_v57, %v2389_v14  ;;  %v2660_v19 = vrot.slane %v2450_v20, 2  ;;  %v3031_v7 = vmul.f32 %v8614_v11, %v11339_v61 }
 0x1f6   : > { %6056 = vmatmul.mubr.bf16.gmra.mrb[12].mxu1 %v5828_v40  ;;  %v2122_v25 = vrot.slane %v1910_v31, 1  ;;  %v2664_v59 = vrot.slane %v2452_v8, 2  ;;  %v3033_v5 = vmul.f32 %v8621_v42, %v11339_v61  ;;  %v3169_v26 = vunpack.c.h.bf16 %v8777_v43  ;;  %v8799_v31 = vld [vmem:[#allocation2 + $0x90] sm:$0xff] }
 0x1f7   : > { %v2119_v15 = vsel %vm2073_vm1, %v2117_v1, %v2118_v52  ;;  %v2659_v34 = vrot.slane %v2448_v24, 2  ;;  %v3228_v39 = vmul.f32 %v8614_v11, %v11358_v29  ;;  %v3230_v4 = vmul.f32 %v8621_v42, %v11358_v29 }
 0x1f8   : > { %v1565_v0 = vld [vmem:[#allocation2 + $0xf0] sm:$0x11]  ;;  %v2123_v18 = vsel %vm2073_vm1, %v2118_v52, %v2122_v25  ;;  %v2315_v14 = vadd.f32 %v2119_v15, %v1773_v10  ;;  %v2665_v20 = vsel %vm2615_vm13, %v2660_v19, %v2664_v59  ;;  %v3232_v40 = vmul.f32 %v11358_v29, %v3169_v26 }
 0x1f9   : > { %v1566_v1 = vsel %vm7763_vm12, 0, %v1565_v0  ;;  %v2317_v8 = vadd.f32 %v2123_v18, %v1775_v36  ;;  %v2661_v24 = vsel %vm2615_vm13, %v2659_v34, %v2660_v19  ;;  %v3438_v35 = vrot.slane %v3228_v39, 1  ;;  %v8810_v0 = vld [vmem:[#allocation2 + $0x98] sm:$0xff]  ;;  %v8815_v19 = vld [vmem:[#allocation2 + $0xa0] sm:$0x11] }
 0x1fa   : > { %1567 = vst [vmem:[#allocation2 + $0xf0] sm:$0x11] %v1566_v1  ;;  %v2857_v2 = vadd.f32 %v2661_v24, %v2315_v14  ;;  %v3439_v45 = vrot.slane %v3230_v4, 1  ;;  %v3443_v52 = vrot.slane %v3232_v40, 1  ;;  %v3710_v10 = vunpack.c.h.bf16 %v8794_v21  ;;  %v11380_v34 = vld [vmem:[#allocation19_spill] sm:$0xff] }
 0x1fb   : > { %v1624_v25 = vld [vmem:[#allocation2 + $0x100] sm:$0x11]  ;;  %v2859_v59 = vadd.f32 %v2665_v20, %v2317_v8  ;;  %v3771_v15 = vmul.f32 %v8621_v42, %v11359_v60  ;;  %v3773_v6 = vmul.f32 %v11359_v60, %v3169_v26  ;;  %v8813_v36 = vunpack.c.h.bf16 %v8799_v31  ;;  %v8822_v8 = vld [vmem:[#allocation2 + $0x90] sm:$0xee] }
 0x1fc   : > { %v1625_v39 = vsel %vm7831_vm0, 0, %v1624_v25  ;;  %v3095_v4 = vadd.f32 %v3031_v7, %v2857_v2  ;;  %v3440_v18 = vsel %vm2073_vm1, %v3438_v35, %v3439_v45  ;;  %v3444_v14 = vsel %vm2073_vm1, %v3439_v45, %v3443_v52 }
 0x1fd   : > { %11378 = vst [vmem:[#allocation31_spill] sm:$0xff] %v8813_v36  ;;  %1626 = vst [vmem:[#allocation2 + $0x100] sm:$0x11] %v1625_v39  ;;  %v3097_v20 = vadd.f32 %v3033_v5, %v2859_v59  ;;  %v3769_v40 = vmul.f32 %v11359_v60, %v3710_v10  ;;  %v3980_v26 = vrot.slane %v3771_v15, 2  ;;  %v3984_v1 = vrot.slane %v3773_v6, 2 }
 0x1fe   : > { %v3636_v24 = vadd.f32 %v3440_v18, %v3095_v4  ;;  %v8825_v63 = vunpack.c.h.bf16 %v8810_v0  ;;  %v4351_v25 = vmul.f32 %v11380_v34, %v8813_v36  ;;  %v4489_v2 = vunpack.c.h.bf16 %v8815_v19 }
 0x1ff   : > { %v3638_v35 = vadd.f32 %v3444_v14, %v3097_v20  ;;  %v3979_v7 = vrot.slane %v3769_v40, 2  ;;  %v3985_v45 = vsel %vm2615_vm13, %v3980_v26, %v3984_v1  ;;  %v4548_v5 = vmul.f32 %v11362_v30, %v8813_v36  ;;  %v11381_v36 = vld [vmem:[#allocation12_spill] sm:$0xff] }
 0x200   : > { %v4353_v6 = vmul.f32 %v11380_v34, %v8825_v63  ;;  %v4550_v52 = vmul.f32 %v11362_v30, %v8825_v63  ;;  %v4552_v10 = vmul.f32 %v11362_v30, %v4489_v2  ;;  %v5030_v59 = vunpack.c.h.bf16 %v8822_v8 }
 0x201   : > { %v3981_v15 = vsel %vm2615_vm13, %v3979_v7, %v3980_v26  ;;  %v4179_v39 = vadd.f32 %v3985_v45, %v3638_v35  ;;  %v4758_v4 = vrot.slane %v4548_v5, 1  ;;  %v5091_v18 = vmul.f32 %v7769_v32, %v8825_v63 }
 0x202   : > { %v4177_v14 = vadd.f32 %v3981_v15, %v3636_v24  ;;  %v4759_v20 = vrot.slane %v4550_v52, 1  ;;  %v4763_v40 = vrot.slane %v4552_v10, 1  ;;  %v5089_v1 = vmul.f32 %v7769_v32, %v5030_v59  ;;  %v11382_v52 = vld [vmem:[#allocation15_spill] sm:$0xff] }
 0x203   : > { %v4417_v34 = vadd.f32 %v4353_v6, %v4179_v39  ;;  %v5093_v60 = vmul.f32 %v7769_v32, %v4489_v2  ;;  %v5300_v29 = vrot.slane %v5091_v18, 2  ;;  %v728_v30 = vmul.f32 %v7627_v55, %v11381_v36 }
 0x204   : > { %v4415_v61 = vadd.f32 %v4351_v25, %v4177_v14  ;;  %v4760_v26 = vsel %vm2073_vm1, %v4758_v4, %v4759_v20  ;;  %v4764_v35 = vsel %vm2073_vm1, %v4759_v20, %v4763_v40  ;;  %v5299_v7 = vrot.slane %v5089_v1, 2 }
 0x205   : > { %v4958_v45 = vadd.f32 %v4764_v35, %v4417_v34  ;;  %v5304_v5 = vrot.slane %v5093_v60, 2  ;;  %v847_v24 = vadd.f32 %v7635_v58, %v728_v30  ;;  %v1772_v10 = vmul.f32 %v8515_v13, %v11382_v52 }
 0x206   : > { %v4956_v6 = vadd.f32 %v4760_v26, %v4415_v61  ;;  %v5301_v2 = vsel %vm2615_vm13, %v5299_v7, %v5300_v29  ;;  %v1774_v59 = vmul.f32 %v8518_v44, %v11382_v52  ;;  %v1846_v36 = vunpack.c.l.bf16 %v8755_v48 }
 0x207   : > { %v5305_v25 = vsel %vm2615_vm13, %v5300_v29, %v5304_v5  ;;  %v955_v15 = vmax.f32 %v847_v24, 0.0  ;;  %v1905_v34 = vmul.f32 %v8515_v13, %v7664_v28  ;;  %v1907_v60 = vmul.f32 %v8518_v44, %v7664_v28 }
 0x208   : > { %v5497_v30 = vadd.f32 %v5301_v2, %v4956_v6  ;;  %v5499_v39 = vadd.f32 %v5305_v25, %v4958_v45  ;;  %v1909_v61 = vmul.f32 %v7664_v28, %v1846_v36  ;;  %v2388_v4 = vunpack.c.l.bf16 %v8759_v27 }
 0x209   : > { %v1063_v18 = vmin.f32 %v955_v15, 6.0  ;;  %v2114_v14 = vrot.slane %v1905_v34, 1  ;;  %v2115_v20 = vrot.slane %v1907_v60, 1  ;;  %v2449_v48 = vmul.f32 %v8518_v44, %v7655_v23 }
 0x20a   : > { %v5572_v29 = vmul.f32 %v7775_v37, %v5497_v30  ;;  %v5574_v40 = vmul.f32 %v7775_v37, %v5499_v39  ;;  %v2120_v13 = vrot.slane %v1909_v61, 1  ;;  %v2447_v1 = vmul.f32 %v7655_v23, %v2388_v4 }
 0x20b   : > { %v7231_v26 = vpack.c.bf16 %v1063_v18, %v8770_v50  ;;  %v2116_v35 = vsel %vm2073_vm1, %v2114_v14, %v2115_v20  ;;  %v2451_v7 = vmul.f32 %v7655_v23, %v1846_v36  ;;  %v2657_v27 = vrot.slane %v2449_v48, 2 }
 0x20c   : > { %v5647_v45 = vadd.f32 %v7779_v38, %v5572_v29  ;;  %v5649_v5 = vadd.f32 %v7779_v38, %v5574_v40  ;;  %v2121_v44 = vsel %vm2073_vm1, %v2115_v20, %v2120_v13  ;;  %v2314_v24 = vadd.f32 %v2116_v35, %v1772_v10  ;;  %v8888_v40 = vpop.f32.mrb[80].mxu0 }
 0x20d   : > { %1500 = vst.msk [vmem:[#allocation2 + $0x108] sm:$0xff] %vm7658_vm7, %v7231_v26  ;;  %v2316_v6 = vadd.f32 %v2121_v44, %v1774_v59  ;;  %v2656_v2 = vrot.slane %v2447_v1, 2  ;;  %v2662_v25 = vrot.slane %v2451_v7, 2  ;;  %v3030_v50 = vmul.f32 %v8692_v3, %v7695_v46  ;;  %11383 = vst [vmem:[#allocation32_spill] sm:$0xff] %v8888_v40  ;;  %v8892_v7 = vpop.f32.mrb[81].mxu0 }
 0x20e   : > { %v5711_v15 = vmax.f32 %v5647_v45, 0.0  ;;  %v5713_v34 = vmax.f32 %v5649_v5, 0.0  ;;  %v3032_v36 = vmul.f32 %v8698_v53, %v7695_v46  ;;  %v3168_v60 = vunpack.c.l.bf16 %v8777_v43  ;;  %11384 = vst [vmem:[#allocation33_spill] sm:$0xff] %v8892_v7  ;;  %v9002_v7 = vld [vmem:[#allocation2 + $0xb8] sm:$0x11] }
 0x20f   : > { %v2658_v30 = vsel %vm2615_vm13, %v2656_v2, %v2657_v27  ;;  %v2663_v10 = vsel %vm2615_vm13, %v2657_v27, %v2662_v25  ;;  %v3227_v39 = vmul.f32 %v8692_v3, %v7723_v62  ;;  %v3229_v59 = vmul.f32 %v8698_v53, %v7723_v62 }
 0x210   : > { %v5775_v61 = vmin.f32 %v5711_v15, 6.0  ;;  %v5777_v4 = vmin.f32 %v5713_v34, 6.0  ;;  %v2856_v18 = vadd.f32 %v2658_v30, %v2314_v24  ;;  %v2858_v14 = vadd.f32 %v2663_v10, %v2316_v6  ;;  %v8897_v24 = vpop.f32.mrb[82].mxu0 }
 0x211   : > { %v3231_v20 = vmul.f32 %v7723_v62, %v3168_v60  ;;  %v3435_v48 = vrot.slane %v3227_v39, 1  ;;  %v3436_v29 = vrot.slane %v3229_v59, 1  ;;  %v3709_v43 = vunpack.c.l.bf16 %v8794_v21  ;;  %11385 = vst [vmem:[#allocation34_spill] sm:$0xff] %v8897_v24  ;;  %v8906_v15 = vpop.f32.mrb[83].mxu0 }
 0x212   : > { %v5831_v13 = vpack.c.bf16 %v5777_v4, %v5775_v61  ;;  %v3094_v1 = vadd.f32 %v3030_v50, %v2856_v18  ;;  %v3096_v26 = vadd.f32 %v3032_v36, %v2858_v14  ;;  %v3770_v35 = vmul.f32 %v8698_v53, %v7708_v51  ;;  %11386 = vst [vmem:[#allocation35_spill] sm:$0xff] %v8906_v15 }
 0x213   : > { %v3437_v27 = vsel %vm2073_vm1, %v3435_v48, %v3436_v29  ;;  %v3441_v45 = vrot.slane %v3231_v20, 1  ;;  %v3768_v5 = vmul.f32 %v7708_v51, %v3709_v43  ;;  %v3772_v44 = vmul.f32 %v7708_v51, %v3168_v60 }
 0x214   : > { %7100 = vmatprep.mubr.msk.bf16.mxu1 %vm5950_vm2, %v5831_v13  ;;  %v1568_v21 = vld [vmem:[#allocation2 + $0x108] sm:$0x11]  ;;  %v3635_v6 = vadd.f32 %v3437_v27, %v3094_v1  ;;  %v3977_v2 = vrot.slane %v3770_v35, 2  ;;  %v8901_v25 = vunpack.c.l.bf16 %v8799_v31  ;;  %v8904_v50 = vunpack.c.l.bf16 %v8810_v0 }
 0x215   : > { %v1569_v34 = vsel %vm7763_vm12, 0, %v1568_v21  ;;  %v3442_v36 = vsel %vm2073_vm1, %v3436_v29, %v3441_v45  ;;  %v3976_v60 = vrot.slane %v3768_v5, 2  ;;  %v3982_v30 = vrot.slane %v3772_v44, 2 }
 0x216   : > { %1570 = vst [vmem:[#allocation2 + $0x108] sm:$0x11] %v1569_v34  ;;  %v3637_v10 = vadd.f32 %v3442_v36, %v3096_v26  ;;  %v4350_v39 = vmul.f32 %v7744_v12, %v8901_v25  ;;  %v4352_v31 = vmul.f32 %v7744_v12, %v8904_v50  ;;  %v4488_v0 = vunpack.c.l.bf16 %v8815_v19 }
 0x217   : > { %v3978_v59 = vsel %vm2615_vm13, %v3976_v60, %v3977_v2  ;;  %v3983_v61 = vsel %vm2615_vm13, %v3977_v2, %v3982_v30  ;;  %v4547_v4 = vmul.f32 %v7750_v17, %v8901_v25  ;;  %v4549_v18 = vmul.f32 %v7750_v17, %v8904_v50  ;;  %v11388_v60 = vld [vmem:[#allocation24_spill] sm:$0xff] }
 0x218   : > { %v4176_v14 = vadd.f32 %v3978_v59, %v3635_v6  ;;  %v4178_v20 = vadd.f32 %v3983_v61, %v3637_v10  ;;  %v4551_v48 = vmul.f32 %v7750_v17, %v4488_v0  ;;  %v5029_v29 = vunpack.c.l.bf16 %v8822_v8  ;;  %v11387_v6 = vld [vmem:[#allocation14_spill] sm:$0xff]  ;;  %v8938_v61 = vld [vmem:[#allocation2 + $0x88] sm:$0x11] }
 0x219   : > { %v4755_v43 = vrot.slane %v4547_v4, 1  ;;  %v4756_v13 = vrot.slane %v4549_v18, 1  ;;  %v5090_v19 = vmul.f32 %v7757_v22, %v8904_v50  ;;  %v5092_v1 = vmul.f32 %v7757_v22, %v4488_v0  ;;  %v11389_v0 = vld [vmem:[#allocation26_spill] sm:$0xff] }
 0x21a   : > { %v4414_v26 = vadd.f32 %v4350_v39, %v4176_v14  ;;  %v4416_v35 = vadd.f32 %v4352_v31, %v4178_v20  ;;  %v4761_v27 = vrot.slane %v4551_v48, 1  ;;  %v5088_v45 = vmul.f32 %v7757_v22, %v5029_v29  ;;  %v11390_v14 = vld [vmem:[#allocation37_spill] sm:$0xff] }
 0x21b   : > { %v4757_v5 = vsel %vm2073_vm1, %v4755_v43, %v4756_v13  ;;  %v5297_v44 = vrot.slane %v5090_v19, 2  ;;  %v5302_v21 = vrot.slane %v5092_v1, 2  ;;  %v729_v2 = vmul.f32 %v7623_v54, %v11387_v6 }
 0x21c   : > { %v4762_v8 = vsel %vm2073_vm1, %v4756_v13, %v4761_v27  ;;  %v4955_v34 = vadd.f32 %v4757_v5, %v4414_v26  ;;  %v5296_v36 = vrot.slane %v5088_v45, 2  ;;  %v730_v30 = vmul.f32 %v7627_v55, %v11388_v60 }
 0x21d   : > { %v4957_v10 = vadd.f32 %v4762_v8, %v4416_v35  ;;  %v5303_v39 = vsel %vm2615_vm13, %v5297_v44, %v5302_v21  ;;  %v848_v31 = vadd.f32 %v7631_v56, %v729_v2  ;;  %v731_v59 = vmul.f32 %v7623_v54, %v11389_v0 }
 0x21e   : > { %v5298_v4 = vsel %vm2615_vm13, %v5296_v36, %v5297_v44  ;;  %v849_v18 = vadd.f32 %v7635_v58, %v730_v30  ;;  %v732_v20 = vmul.f32 %v7627_v55, %v11390_v14  ;;  %v1777_v48 = vmul.f32 %v8614_v11, %v7685_v41  ;;  %v8957_v36 = vld [vmem:[#allocation2 + $0x78] sm:$0xee] }
 0x21f   : > { %v5496_v29 = vadd.f32 %v5298_v4, %v4955_v34  ;;  %v5498_v43 = vadd.f32 %v5303_v39, %v4957_v10  ;;  %v956_v13 = vmax.f32 %v848_v31, 0.0  ;;  %v850_v19 = vadd.f32 %v7631_v56, %v731_v59 }
 0x220   : > { %v957_v1 = vmax.f32 %v849_v18, 0.0  ;;  %v851_v26 = vadd.f32 %v7635_v58, %v732_v20  ;;  %v1779_v35 = vmul.f32 %v8621_v42, %v7685_v41  ;;  %v1849_v27 = vunpack.c.h.bf16 %v8938_v61 }
 0x221   : > { %v5571_v45 = vmul.f32 %v7787_v47, %v5496_v29  ;;  %v5573_v5 = vmul.f32 %v7787_v47, %v5498_v43  ;;  %v1064_v44 = vmin.f32 %v956_v13, 6.0  ;;  %v958_v21 = vmax.f32 %v850_v19, 0.0 }
 0x222   : > { %v1065_v6 = vmin.f32 %v957_v1, 6.0  ;;  %v959_v2 = vmax.f32 %v851_v26, 0.0  ;;  %v1912_v8 = vmul.f32 %v8614_v11, %v11337_v9  ;;  %v1914_v34 = vmul.f32 %v8621_v42, %v11337_v9  ;;  %v8969_v1 = vld [vmem:[#allocation2 + $0xa0] sm:$0x11] }
 0x223   : > { %v5646_v60 = vadd.f32 %v11314_v33, %v5571_v45  ;;  %v5648_v30 = vadd.f32 %v11314_v33, %v5573_v5  ;;  %v1066_v10 = vmin.f32 %v958_v21, 6.0  ;;  %v1916_v39 = vmul.f32 %v11337_v9, %v1849_v27 }
 0x224   : > { %v7232_v31 = vpack.c.bf16 %v1065_v6, %v1064_v44  ;;  %v1067_v0 = vmin.f32 %v959_v2, 6.0  ;;  %v2127_v59 = vrot.slane %v1912_v8, 1  ;;  %v2128_v4 = vrot.slane %v1914_v34, 1  ;;  %v8975_v34 = vld [vmem:[#allocation2 + $0x90] sm:$0xee] }
 0x225   : > { %v5710_v18 = vmax.f32 %v5646_v60, 0.0  ;;  %v5712_v14 = vmax.f32 %v5648_v30, 0.0  ;;  %v2132_v20 = vrot.slane %v1916_v39, 1  ;;  %v2391_v11 = vunpack.c.h.bf16 %v8957_v36  ;;  %v11391_v60 = vld [vmem:[#allocation16_spill] sm:$0xff] }
 0x226   : > { %1501 = vst.msk [vmem:[#allocation2 + $0x110] sm:$0xff] %vm7658_vm7, %v7232_v31  ;;  %v7233_v29 = vpack.c.bf16 %v1067_v0, %v1066_v10  ;;  %v2129_v43 = vsel %vm2073_vm1, %v2127_v59, %v2128_v4  ;;  %v2456_v13 = vmul.f32 %v8621_v42, %v11338_v57  ;;  %v2458_v19 = vmul.f32 %v11338_v57, %v1849_v27  ;;  %v11392_v27 = vld [vmem:[#allocation31_spill] sm:$0xff]  ;;  %v11393_v0 = vld [vmem:[#allocation18_spill] sm:$0xff] }
 0x227   : > { %v5774_v26 = vmin.f32 %v5710_v18, 6.0  ;;  %v5776_v45 = vmin.f32 %v5712_v14, 6.0  ;;  %v2133_v5 = vsel %vm2073_vm1, %v2128_v4, %v2132_v20  ;;  %v2319_v44 = vadd.f32 %v2129_v43, %v1777_v48  ;;  %v11394_v20 = vld [vmem:[#allocation17_spill] sm:$0xff] }
 0x228   : > { %1502 = vst.msk [vmem:[#allocation2 + $0x118] sm:$0xff] %vm7658_vm7, %v7233_v29  ;;  %v2321_v21 = vadd.f32 %v2133_v5, %v1779_v35  ;;  %v2454_v6 = vmul.f32 %v11338_v57, %v2391_v11  ;;  %v2670_v2 = vrot.slane %v2456_v13, 2  ;;  %v2674_v8 = vrot.slane %v2458_v19, 2  ;;  %v8991_v29 = vld [vmem:[#allocation2 + $0xa8] sm:$0xff] }
 0x229   : > { %v5830_v42 = vpack.c.bf16 %v5776_v45, %v5774_v26  ;;  %v3035_v30 = vmul.f32 %v11392_v27, %v11391_v60  ;;  %v3037_v10 = vmul.f32 %v8825_v63, %v11391_v60  ;;  %v3171_v39 = vunpack.c.h.bf16 %v8969_v1  ;;  %v8995_v45 = vld [vmem:[#allocation2 + $0xb0] sm:$0xff] }
 0x22a   : > { %v2669_v48 = vrot.slane %v2454_v6, 2  ;;  %v2675_v31 = vsel %vm2615_vm13, %v2670_v2, %v2674_v8  ;;  %v3234_v35 = vmul.f32 %v11392_v27, %v11393_v0  ;;  %v3236_v59 = vmul.f32 %v8825_v63, %v11393_v0 }
 0x22b   : > { %6064 = vmatmul.mubr.bf16.gmra.mrb[16].mxu1 %v5830_v42  ;;  %v2863_v4 = vadd.f32 %v2675_v31, %v2321_v21  ;;  %v3238_v18 = vmul.f32 %v11393_v0, %v3171_v39  ;;  %v3712_v14 = vunpack.c.h.bf16 %v8975_v34  ;;  %v3777_v11 = vmul.f32 %v8825_v63, %v11394_v20 }
 0x22c   : > { %v2671_v43 = vsel %vm2615_vm13, %v2669_v48, %v2670_v2  ;;  %v3448_v13 = vrot.slane %v3234_v35, 1  ;;  %v3449_v19 = vrot.slane %v3236_v59, 1  ;;  %v3779_v26 = vmul.f32 %v11394_v20, %v3171_v39 }
 0x22d   : > { %v2861_v5 = vadd.f32 %v2671_v43, %v2319_v44  ;;  %v3101_v6 = vadd.f32 %v3037_v10, %v2863_v4  ;;  %v3453_v21 = vrot.slane %v3238_v18, 1  ;;  %v3775_v8 = vmul.f32 %v11394_v20, %v3712_v14  ;;  %v9008_v10 = vld [vmem:[#allocation2 + $0xa8] sm:$0xee] }
 0x22e   : > { %v3450_v42 = vsel %vm2073_vm1, %v3448_v13, %v3449_v19  ;;  %v3990_v31 = vrot.slane %v3777_v11, 2  ;;  %v3994_v15 = vrot.slane %v3779_v26, 2  ;;  %v9000_v24 = vunpack.c.h.bf16 %v8991_v29  ;;  %v11396_v11 = vld [vmem:[#allocation19_spill] sm:$0xff] }
 0x22f   : > { %v1627_v2 = vld [vmem:[#allocation2 + $0x118] sm:$0x11]  ;;  %v3099_v48 = vadd.f32 %v3035_v30, %v2861_v5  ;;  %v3454_v39 = vsel %vm2073_vm1, %v3449_v19, %v3453_v21  ;;  %v3989_v35 = vrot.slane %v3775_v8, 2  ;;  %v9006_v44 = vunpack.c.h.bf16 %v8995_v45  ;;  %v11397_v21 = vld [vmem:[#allocation20_spill] sm:$0xff] }
 0x230   : > { %v1628_v4 = vsel %vm7831_vm0, 0, %v1627_v2  ;;  %v3642_v18 = vadd.f32 %v3454_v39, %v3101_v6  ;;  %v3995_v14 = vsel %vm2615_vm13, %v3990_v31, %v3994_v15  ;;  %v4355_v43 = vmul.f32 %v11396_v11, %v9000_v24 }
 0x231   : > { %1629 = vst [vmem:[#allocation2 + $0x118] sm:$0x11] %v1628_v4  ;;  %v3640_v13 = vadd.f32 %v3450_v42, %v3099_v48  ;;  %v3991_v30 = vsel %vm2615_vm13, %v3989_v35, %v3990_v31  ;;  %v4357_v19 = vmul.f32 %v11396_v11, %v9006_v44  ;;  %v4491_v26 = vunpack.c.h.bf16 %v9002_v7 }
 0x232   : > { %v4183_v5 = vadd.f32 %v3995_v14, %v3642_v18  ;;  %v4554_v8 = vmul.f32 %v11397_v21, %v9000_v24  ;;  %v4556_v6 = vmul.f32 %v11397_v21, %v9006_v44  ;;  %v5032_v15 = vunpack.c.h.bf16 %v9008_v10 }
 0x233   : > { %v4181_v2 = vadd.f32 %v3991_v30, %v3640_v13  ;;  %v4558_v39 = vmul.f32 %v11397_v21, %v4491_v26  ;;  %v5097_v42 = vmul.f32 %v7769_v32, %v9006_v44  ;;  %v5099_v31 = vmul.f32 %v7769_v32, %v4491_v26 }
 0x234   : > { %v4421_v48 = vadd.f32 %v4357_v19, %v4183_v5  ;;  %v4768_v35 = vrot.slane %v4554_v8, 1  ;;  %v4769_v4 = vrot.slane %v4556_v6, 1  ;;  %v5095_v18 = vmul.f32 %v7769_v32, %v5032_v15 }
 0x235   : > { %v4419_v14 = vadd.f32 %v4355_v43, %v4181_v2  ;;  %v4773_v40 = vrot.slane %v4558_v39, 1  ;;  %v5310_v11 = vrot.slane %v5097_v42, 2  ;;  %v5314_v59 = vrot.slane %v5099_v31, 2 }
 0x236   : > { %v4770_v20 = vsel %vm2073_vm1, %v4768_v35, %v4769_v4  ;;  %v5309_v16 = vrot.slane %v5095_v18, 2  ;;  %v1776_v13 = vmul.f32 %v8692_v3, %v11382_v52  ;;  %v1778_v30 = vmul.f32 %v8698_v53, %v11382_v52 }
 0x237   : > { %v4774_v26 = vsel %vm2073_vm1, %v4769_v4, %v4773_v40  ;;  %v4960_v19 = vadd.f32 %v4770_v20, %v4419_v14  ;;  %v5315_v5 = vsel %vm2615_vm13, %v5310_v11, %v5314_v59  ;;  %v1848_v8 = vunpack.c.l.bf16 %v8938_v61 }
 0x238   : > { %v4962_v43 = vadd.f32 %v4774_v26, %v4421_v48  ;;  %v5311_v6 = vsel %vm2615_vm13, %v5309_v16, %v5310_v11  ;;  %v1911_v15 = vmul.f32 %v8692_v3, %v7664_v28  ;;  %v1913_v2 = vmul.f32 %v8698_v53, %v7664_v28 }
 0x239   : > { %v5501_v39 = vadd.f32 %v5311_v6, %v4960_v19  ;;  %v1915_v42 = vmul.f32 %v7664_v28, %v1848_v8  ;;  %v2390_v31 = vunpack.c.l.bf16 %v8957_v36  ;;  %v2455_v40 = vmul.f32 %v8698_v53, %v7655_v23 }
 0x23a   : > { %v5503_v20 = vadd.f32 %v5315_v5, %v4962_v43  ;;  %v2124_v59 = vrot.slane %v1911_v15, 1  ;;  %v2125_v61 = vrot.slane %v1913_v2, 1  ;;  %v2457_v48 = vmul.f32 %v7655_v23, %v1848_v8 }
 0x23b   : > { %v5576_v16 = vmul.f32 %v7775_v37, %v5501_v39  ;;  %v2130_v11 = vrot.slane %v1915_v42, 1  ;;  %v2453_v3 = vmul.f32 %v7655_v23, %v2390_v31  ;;  %v2667_v35 = vrot.slane %v2455_v40, 2 }
 0x23c   : > { %v5578_v4 = vmul.f32 %v7775_v37, %v5503_v20  ;;  %v2126_v18 = vsel %vm2073_vm1, %v2124_v59, %v2125_v61  ;;  %v2672_v14 = vrot.slane %v2457_v48, 2  ;;  %v3034_v36 = vmul.f32 %v8901_v25, %v7695_v46 }
 0x23d   : > { %v5651_v53 = vadd.f32 %v7779_v38, %v5576_v16  ;;  %v2131_v26 = vsel %vm2073_vm1, %v2125_v61, %v2130_v11  ;;  %v2318_v19 = vadd.f32 %v2126_v18, %v1776_v13  ;;  %v2666_v5 = vrot.slane %v2453_v3, 2  ;;  %v9067_v11 = vpop.f32.mrb[84].mxu0 }
 0x23e   : > { %v5653_v8 = vadd.f32 %v7779_v38, %v5578_v4  ;;  %v2320_v43 = vadd.f32 %v2131_v26, %v1778_v30  ;;  %v2673_v6 = vsel %vm2615_vm13, %v2667_v35, %v2672_v14  ;;  %v3036_v15 = vmul.f32 %v8904_v50, %v7695_v46  ;;  %11398 = vst [vmem:[#allocation36_spill] sm:$0xff] %v9067_v11  ;;  %v9069_v18 = vpop.f32.mrb[85].mxu0 }
 0x23f   : > { %v5715_v2 = vmax.f32 %v5651_v53, 0.0  ;;  %v2668_v39 = vsel %vm2615_vm13, %v2666_v5, %v2667_v35  ;;  %v3170_v42 = vunpack.c.l.bf16 %v8969_v1  ;;  %v3233_v31 = vmul.f32 %v8901_v25, %v7723_v62  ;;  %11399 = vst [vmem:[#allocation12_spill] sm:$0xff] %v9069_v18 }
 0x240   : > { %v5717_v40 = vmax.f32 %v5653_v8, 0.0  ;;  %v2860_v20 = vadd.f32 %v2668_v39, %v2318_v19  ;;  %v2862_v13 = vadd.f32 %v2673_v6, %v2320_v43  ;;  %v3235_v59 = vmul.f32 %v8904_v50, %v7723_v62  ;;  %v9083_v39 = vpop.f32.mrb[86].mxu0 }
 0x241   : > { %v5779_v30 = vmin.f32 %v5715_v2, 6.0  ;;  %v3237_v61 = vmul.f32 %v7723_v62, %v3170_v42  ;;  %v3445_v48 = vrot.slane %v3233_v31, 1  ;;  %v3711_v16 = vunpack.c.l.bf16 %v8975_v34  ;;  %11400 = vst [vmem:[#allocation15_spill] sm:$0xff] %v9083_v39  ;;  %v11414_v39 = vld [vmem:[#allocation17_spill] sm:$0xff] }
 0x242   : > { %v5781_v3 = vmin.f32 %v5717_v40, 6.0  ;;  %v3098_v35 = vadd.f32 %v3034_v36, %v2860_v20  ;;  %v3100_v1 = vadd.f32 %v3036_v15, %v2862_v13  ;;  %v3446_v4 = vrot.slane %v3235_v59, 1  ;;  %v9090_v20 = vpop.f32.mrb[87].mxu0 }
 0x243   : > { %v3451_v14 = vrot.slane %v3237_v61, 1  ;;  %v3774_v53 = vmul.f32 %v7708_v51, %v3711_v16  ;;  %v3776_v26 = vmul.f32 %v8904_v50, %v7708_v51  ;;  %v3778_v19 = vmul.f32 %v7708_v51, %v3170_v42  ;;  %11401 = vst [vmem:[#allocation14_spill] sm:$0xff] %v9090_v20  ;;  %v9098_v61 = vpop.f32.mrb[88].mxu0 }
 0x244   : > { %v5833_v5 = vpack.c.bf16 %v5781_v3, %v5779_v30  ;;  %v3447_v8 = vsel %vm2073_vm1, %v3445_v48, %v3446_v4  ;;  %v9077_v34 = vunpack.c.l.bf16 %v8991_v29  ;;  %v9080_v36 = vunpack.c.l.bf16 %v8995_v45  ;;  %11402 = vst [vmem:[#allocation24_spill] sm:$0xff] %v9098_v61 }
 0x245   : > { %v3452_v43 = vsel %vm2073_vm1, %v3446_v4, %v3451_v14  ;;  %v3639_v6 = vadd.f32 %v3447_v8, %v3098_v35  ;;  %v3986_v15 = vrot.slane %v3774_v53, 2  ;;  %v3987_v2 = vrot.slane %v3776_v26, 2 }
 0x246   : > { %7101 = vmatprep.mubr.msk.bf16.mxu1 %vm5950_vm2, %v5833_v5  ;;  %v3641_v31 = vadd.f32 %v3452_v43, %v3100_v1  ;;  %v3992_v42 = vrot.slane %v3778_v19, 2  ;;  %v4354_v40 = vmul.f32 %v7744_v12, %v9077_v34  ;;  %v4356_v29 = vmul.f32 %v7744_v12, %v9080_v36  ;;  %v9104_v1 = vpop.f32.mrb[89].mxu0 }
 0x247   : > { %v3988_v45 = vsel %vm2615_vm13, %v3986_v15, %v3987_v2  ;;  %v4490_v13 = vunpack.c.l.bf16 %v9002_v7  ;;  %v4553_v59 = vmul.f32 %v7750_v17, %v9077_v34  ;;  %v4555_v30 = vmul.f32 %v7750_v17, %v9080_v36  ;;  %11403 = vst [vmem:[#allocation26_spill] sm:$0xff] %v9104_v1  ;;  %v9107_v26 = vpop.f32.mrb[90].mxu0 }
 0x248   : > { %v3993_v48 = vsel %vm2615_vm13, %v3987_v2, %v3992_v42  ;;  %v4180_v16 = vadd.f32 %v3988_v45, %v3639_v6  ;;  %v5031_v3 = vunpack.c.l.bf16 %v9008_v10  ;;  %v5096_v35 = vmul.f32 %v7757_v22, %v9080_v36  ;;  %11404 = vst [vmem:[#allocation37_spill] sm:$0xff] %v9107_v26  ;;  %v11405_v2 = vld [vmem:[#allocation22_spill] sm:$0xff]  ;;  %v9186_v26 = vld [vmem:[#allocation2 + $0xc0] sm:$0xff]  ;;  %v9189_v1 = vpop.f32.mrb[91].mxu0 }
 0x249   : > { %v4182_v4 = vadd.f32 %v3993_v48, %v3641_v31  ;;  %v4557_v7 = vmul.f32 %v7750_v17, %v4490_v13  ;;  %v4765_v14 = vrot.slane %v4553_v59, 1  ;;  %v4766_v53 = vrot.slane %v4555_v30, 1  ;;  %v11406_v59 = vld [vmem:[#allocation27_spill] sm:$0xff]  ;;  %11413 = vst [vmem:[#allocation31_spill] sm:$0xff] %v9189_v1 }
 0x24a   : > { %v4418_v19 = vadd.f32 %v4354_v40, %v4180_v16  ;;  %v5094_v5 = vmul.f32 %v7757_v22, %v5031_v3  ;;  %v5098_v8 = vmul.f32 %v7757_v22, %v4490_v13  ;;  %v5307_v43 = vrot.slane %v5096_v35, 2  ;;  %v11407_v3 = vld [vmem:[#allocation28_spill] sm:$0xff] }
 0x24b   : > { %v4420_v6 = vadd.f32 %v4356_v29, %v4182_v4  ;;  %v4767_v10 = vsel %vm2073_vm1, %v4765_v14, %v4766_v53  ;;  %v4771_v15 = vrot.slane %v4557_v7, 1  ;;  %v733_v42 = vmul.f32 %v7623_v54, %v11405_v2  ;;  %v11408_v29 = vld [vmem:[#allocation29_spill] sm:$0xff] }
 0x24c   : > { %v4959_v31 = vadd.f32 %v4767_v10, %v4418_v19  ;;  %v5306_v45 = vrot.slane %v5094_v5, 2  ;;  %v5312_v48 = vrot.slane %v5098_v8, 2  ;;  %v734_v30 = vmul.f32 %v7627_v55, %v11406_v59 }
 0x24d   : > { %v4772_v40 = vsel %vm2073_vm1, %v4766_v53, %v4771_v15  ;;  %v852_v16 = vadd.f32 %v7631_v56, %v733_v42  ;;  %v735_v13 = vmul.f32 %v7623_v54, %v11407_v3  ;;  %v736_v35 = vmul.f32 %v7627_v55, %v11408_v29  ;;  %v11409_v42 = vld [vmem:[#allocation25_spill] sm:$0xff]  ;;  %v11410_v3 = vld [vmem:[#allocation38_spill] sm:$0xff] }
 0x24e   : > { %v4961_v4 = vadd.f32 %v4772_v40, %v4420_v6  ;;  %v5308_v7 = vsel %vm2615_vm13, %v5306_v45, %v5307_v43  ;;  %v5313_v14 = vsel %vm2615_vm13, %v5307_v43, %v5312_v48  ;;  %v853_v19 = vadd.f32 %v7635_v58, %v734_v30 }
 0x24f   : > { %v5500_v5 = vadd.f32 %v5308_v7, %v4959_v31  ;;  %v960_v8 = vmax.f32 %v852_v16, 0.0  ;;  %v854_v10 = vadd.f32 %v7631_v56, %v735_v13  ;;  %v855_v53 = vadd.f32 %v7635_v58, %v736_v35  ;;  %v11411_v7 = vld [vmem:[#allocation39_spill] sm:$0xff] }
 0x250   : > { %v5502_v15 = vadd.f32 %v5313_v14, %v4961_v4  ;;  %v961_v2 = vmax.f32 %v853_v19, 0.0  ;;  %v737_v59 = vmul.f32 %v7623_v54, %v11409_v42  ;;  %v738_v6 = vmul.f32 %v7627_v55, %v11410_v3  ;;  %v9144_v3 = vld [vmem:[#allocation2 + $0x90] sm:$0xee] }
 0x251   : > { %v5575_v45 = vmul.f32 %v7787_v47, %v5500_v5  ;;  %v1068_v40 = vmin.f32 %v960_v8, 6.0  ;;  %v962_v43 = vmax.f32 %v854_v10, 0.0  ;;  %v963_v48 = vmax.f32 %v855_v53, 0.0  ;;  %v9139_v53 = vld [vmem:[#allocation2 + $0xa0] sm:$0x11] }
 0x252   : > { %v5577_v31 = vmul.f32 %v7787_v47, %v5502_v15  ;;  %v1069_v30 = vmin.f32 %v961_v2, 6.0  ;;  %v856_v16 = vadd.f32 %v7631_v56, %v737_v59  ;;  %v857_v13 = vadd.f32 %v7635_v58, %v738_v6 }
 0x253   : > { %v5650_v29 = vadd.f32 %v11314_v33, %v5575_v45  ;;  %v1070_v35 = vmin.f32 %v962_v43, 6.0  ;;  %v1071_v4 = vmin.f32 %v963_v48, 6.0  ;;  %v739_v14 = vmul.f32 %v7623_v54, %v11411_v7 }
 0x254   : > { %v5652_v19 = vadd.f32 %v11314_v33, %v5577_v31  ;;  %v7234_v5 = vpack.c.bf16 %v1069_v30, %v1068_v40  ;;  %v964_v8 = vmax.f32 %v856_v16, 0.0  ;;  %v965_v10 = vmax.f32 %v857_v13, 0.0 }
 0x255   : > { %v5714_v15 = vmax.f32 %v5650_v29, 0.0  ;;  %v7235_v2 = vpack.c.bf16 %v1071_v4, %v1070_v35  ;;  %v858_v42 = vadd.f32 %v7631_v56, %v739_v14  ;;  %v1781_v59 = vmul.f32 %v11392_v27, %v7685_v41 }
 0x256   : > { %v5716_v6 = vmax.f32 %v5652_v19, 0.0  ;;  %1503 = vst.msk [vmem:[#allocation2 + $0x120] sm:$0xff] %vm7658_vm7, %v7234_v5  ;;  %v1072_v45 = vmin.f32 %v964_v8, 6.0  ;;  %v1073_v43 = vmin.f32 %v965_v10, 6.0  ;;  %v1783_v40 = vmul.f32 %v8825_v63, %v7685_v41  ;;  %v9163_v8 = vld [vmem:[#allocation2 + $0xb8] sm:$0x11] }
 0x257   : > { %v5778_v48 = vmin.f32 %v5714_v15, 6.0  ;;  %1504 = vst.msk [vmem:[#allocation2 + $0x128] sm:$0xff] %vm7658_vm7, %v7235_v2  ;;  %v966_v31 = vmax.f32 %v858_v42, 0.0  ;;  %v1851_v30 = vunpack.c.h.bf16 %v9139_v53  ;;  %v1918_v16 = vmul.f32 %v11392_v27, %v11337_v9 }
 0x258   : > { %v5780_v13 = vmin.f32 %v5716_v6, 6.0  ;;  %v7236_v29 = vpack.c.bf16 %v1073_v43, %v1072_v45  ;;  %v1920_v35 = vmul.f32 %v8825_v63, %v11337_v9  ;;  %v2393_v4 = vunpack.c.h.bf16 %v9144_v3 }
 0x259   : > { %v9158_v7 = vmin.f32 %v966_v31, 6.0  ;;  %v1922_v14 = vmul.f32 %v11337_v9, %v1851_v30  ;;  %v2137_v19 = vrot.slane %v1918_v16, 1  ;;  %v2462_v5 = vmul.f32 %v8825_v63, %v11338_v57 }
 0x25a   : > { %v5832_v10 = vpack.c.bf16 %v5780_v13, %v5778_v48  ;;  %1505 = vst.msk [vmem:[#allocation2 + $0x130] sm:$0xff] %vm7658_vm7, %v7236_v29  ;;  %v2138_v27 = vrot.slane %v1920_v35, 1  ;;  %v2460_v15 = vmul.f32 %v11338_v57, %v2393_v4  ;;  %v2464_v2 = vmul.f32 %v11338_v57, %v1851_v30 }
 0x25b   : > { %v2142_v42 = vrot.slane %v1922_v14, 1  ;;  %v2680_v6 = vrot.slane %v2462_v5, 2  ;;  %v3039_v45 = vmul.f32 %v9000_v24, %v11391_v60  ;;  %v3041_v43 = vmul.f32 %v9006_v44, %v11391_v60  ;;  %v9180_v14 = vld [vmem:[#allocation2 + $0xa8] sm:$0xee] }
 0x25c   : > { %6072 = vmatmul.mubr.bf16.gmra.mrb[20].mxu1 %v5832_v10  ;;  %v2139_v63 = vsel %vm2073_vm1, %v2137_v19, %v2138_v27  ;;  %v2679_v48 = vrot.slane %v2460_v15, 2  ;;  %v2684_v31 = vrot.slane %v2464_v2, 2  ;;  %v3173_v16 = vunpack.c.h.bf16 %v9163_v8 }
 0x25d   : > { %v1571_v13 = vld [vmem:[#allocation2 + $0x120] sm:$0x11]  ;;  %v2143_v29 = vsel %vm2073_vm1, %v2138_v27, %v2142_v42  ;;  %v2323_v35 = vadd.f32 %v2139_v63, %v1781_v59  ;;  %v3240_v30 = vmul.f32 %v9000_v24, %v11393_v0  ;;  %v3242_v4 = vmul.f32 %v9006_v44, %v11393_v0 }
 0x25e   : > { %v1572_v10 = vsel %vm7763_vm12, 0, %v1571_v13  ;;  %v2325_v19 = vadd.f32 %v2143_v29, %v1783_v40  ;;  %v2681_v15 = vsel %vm2615_vm13, %v2679_v48, %v2680_v6  ;;  %v2685_v2 = vsel %vm2615_vm13, %v2680_v6, %v2684_v31  ;;  %v9195_v13 = vld [vmem:[#allocation2 + $0xc8] sm:$0xff] }
 0x25f   : > { %1573 = vst [vmem:[#allocation2 + $0x120] sm:$0x11] %v1572_v10  ;;  %v2865_v59 = vadd.f32 %v2681_v15, %v2323_v35  ;;  %v3244_v27 = vmul.f32 %v11393_v0, %v3173_v16  ;;  %v3458_v42 = vrot.slane %v3240_v30, 1  ;;  %v3459_v63 = vrot.slane %v3242_v4, 1  ;;  %v9201_v4 = vld [vmem:[#allocation2 + $0xd0] sm:$0x11] }
 0x260   : > { %v2867_v61 = vadd.f32 %v2685_v2, %v2325_v19  ;;  %v3714_v20 = vunpack.c.h.bf16 %v9180_v14  ;;  %v3783_v40 = vmul.f32 %v9006_v44, %v11414_v39  ;;  %v3785_v48 = vmul.f32 %v11414_v39, %v3173_v16  ;;  %v11417_v0 = vld [vmem:[#allocation19_spill] sm:$0xff] }
 0x261   : > { %v1630_v6 = vld [vmem:[#allocation2 + $0x130] sm:$0x11]  ;;  %v3103_v31 = vadd.f32 %v3039_v45, %v2865_v59  ;;  %v3460_v29 = vsel %vm2073_vm1, %v3458_v42, %v3459_v63  ;;  %v3463_v35 = vrot.slane %v3244_v27, 1  ;;  %v9199_v30 = vunpack.c.h.bf16 %v9186_v26  ;;  %v9210_v27 = vld [vmem:[#allocation2 + $0xc0] sm:$0xee] }
 0x262   : > { %v1631_v19 = vsel %vm7831_vm0, 0, %v1630_v6  ;;  %v3105_v15 = vadd.f32 %v3041_v43, %v2867_v61  ;;  %v3781_v2 = vmul.f32 %v11414_v39, %v3714_v20  ;;  %v4000_v1 = vrot.slane %v3783_v40, 2 }
 0x263   : > { %11415 = vst [vmem:[#allocation22_spill] sm:$0xff] %v9199_v30  ;;  %1632 = vst [vmem:[#allocation2 + $0x130] sm:$0x11] %v1631_v19  ;;  %v3464_v16 = vsel %vm2073_vm1, %v3459_v63, %v3463_v35  ;;  %v3644_v18 = vadd.f32 %v3460_v29, %v3103_v31  ;;  %v4004_v45 = vrot.slane %v3785_v48, 2  ;;  %v9208_v59 = vunpack.c.h.bf16 %v9195_v13 }
 0x264   : > { %v3646_v42 = vadd.f32 %v3464_v16, %v3105_v15  ;;  %v3999_v11 = vrot.slane %v3781_v2, 2  ;;  %v4359_v10 = vmul.f32 %v11417_v0, %v9199_v30  ;;  %v4493_v61 = vunpack.c.h.bf16 %v9201_v4 }
 0x265   : > { %v4005_v20 = vsel %vm2615_vm13, %v4000_v1, %v4004_v45  ;;  %v4361_v43 = vmul.f32 %v11417_v0, %v9208_v59  ;;  %v4560_v63 = vmul.f32 %v11397_v21, %v9199_v30  ;;  %v4562_v40 = vmul.f32 %v11397_v21, %v9208_v59 }
 0x266   : > { %v4001_v48 = vsel %vm2615_vm13, %v3999_v11, %v4000_v1  ;;  %v4187_v6 = vadd.f32 %v4005_v20, %v3646_v42  ;;  %v4564_v31 = vmul.f32 %v11397_v21, %v4493_v61  ;;  %v5034_v29 = vunpack.c.h.bf16 %v9210_v27  ;;  %v11418_v42 = vld [vmem:[#allocation30_spill] sm:$0xff] }
 0x267   : > { %v4185_v35 = vadd.f32 %v4001_v48, %v3644_v18  ;;  %v4778_v19 = vrot.slane %v4560_v63, 1  ;;  %v4779_v15 = vrot.slane %v4562_v40, 1  ;;  %v5103_v2 = vmul.f32 %v7769_v32, %v9208_v59 }
 0x268   : > { %v4425_v16 = vadd.f32 %v4361_v43, %v4187_v6  ;;  %v4783_v45 = vrot.slane %v4564_v31, 1  ;;  %v5101_v0 = vmul.f32 %v7769_v32, %v5034_v29  ;;  %v5105_v39 = vmul.f32 %v7769_v32, %v4493_v61 }
 0x269   : > { %v4423_v30 = vadd.f32 %v4359_v10, %v4185_v35  ;;  %v4780_v11 = vsel %vm2073_vm1, %v4778_v19, %v4779_v15  ;;  %v5320_v1 = vrot.slane %v5103_v2, 2  ;;  %v740_v20 = vmul.f32 %v7627_v55, %v11418_v42 }
 0x26a   : > { %v4784_v18 = vsel %vm2073_vm1, %v4779_v15, %v4783_v45  ;;  %v5319_v63 = vrot.slane %v5101_v0, 2  ;;  %v5324_v40 = vrot.slane %v5105_v39, 2  ;;  %v1780_v48 = vmul.f32 %v8901_v25, %v11382_v52 }
 0x26b   : > { %v4964_v43 = vadd.f32 %v4780_v11, %v4423_v30  ;;  %v4966_v6 = vadd.f32 %v4784_v18, %v4425_v16  ;;  %v859_v31 = vadd.f32 %v7635_v58, %v740_v20  ;;  %v1782_v10 = vmul.f32 %v8904_v50, %v11382_v52 }
 0x26c   : > { %v5321_v61 = vsel %vm2615_vm13, %v5319_v63, %v5320_v1  ;;  %v5325_v29 = vsel %vm2615_vm13, %v5320_v1, %v5324_v40  ;;  %v1850_v35 = vunpack.c.l.bf16 %v9139_v53  ;;  %v1917_v0 = vmul.f32 %v8901_v25, %v7664_v28 }
 0x26d   : > { %v5505_v39 = vadd.f32 %v5321_v61, %v4964_v43  ;;  %v5507_v19 = vadd.f32 %v5325_v29, %v4966_v6  ;;  %v967_v15 = vmax.f32 %v859_v31, 0.0  ;;  %v1919_v30 = vmul.f32 %v8904_v50, %v7664_v28 }
 0x26e   : > { %v1921_v2 = vmul.f32 %v7664_v28, %v1850_v35  ;;  %v2134_v16 = vrot.slane %v1917_v0, 1  ;;  %v2392_v45 = vunpack.c.l.bf16 %v9144_v3  ;;  %v2461_v11 = vmul.f32 %v8904_v50, %v7655_v23 }
 0x26f   : > { %v5580_v1 = vmul.f32 %v7775_v37, %v5505_v39  ;;  %v5582_v53 = vmul.f32 %v7775_v37, %v5507_v19  ;;  %v1075_v42 = vmin.f32 %v967_v15, 6.0  ;;  %v2135_v25 = vrot.slane %v1919_v30, 1 }
 0x270   : > { %v2140_v20 = vrot.slane %v1921_v2, 1  ;;  %v2459_v18 = vmul.f32 %v7655_v23, %v2392_v45  ;;  %v2463_v63 = vmul.f32 %v7655_v23, %v1850_v35  ;;  %v2677_v40 = vrot.slane %v2461_v11, 2 }
 0x271   : > { %v5655_v43 = vadd.f32 %v7779_v38, %v5580_v1  ;;  %v5657_v6 = vadd.f32 %v7779_v38, %v5582_v53  ;;  %v7237_v3 = vpack.c.bf16 %v1075_v42, %v9158_v7  ;;  %v2136_v50 = vsel %vm2073_vm1, %v2134_v16, %v2135_v25 }
 0x272   : > { %v2141_v31 = vsel %vm2073_vm1, %v2135_v25, %v2140_v20  ;;  %v2322_v61 = vadd.f32 %v2136_v50, %v1780_v48  ;;  %v2676_v29 = vrot.slane %v2459_v18, 2  ;;  %v2682_v0 = vrot.slane %v2463_v63, 2  ;;  %v9273_v20 = vpop.f32.mrb[92].mxu0 }
 0x273   : > { %v5719_v39 = vmax.f32 %v5655_v43, 0.0  ;;  %v5721_v19 = vmax.f32 %v5657_v6, 0.0  ;;  %1506 = vst.msk [vmem:[#allocation2 + $0x138] sm:$0xff] %vm7658_vm7, %v7237_v3  ;;  %v2324_v35 = vadd.f32 %v2141_v31, %v1782_v10  ;;  %v3038_v15 = vmul.f32 %v9077_v34, %v7695_v46  ;;  %11419 = vst [vmem:[#allocation27_spill] sm:$0xff] %v9273_v20  ;;  %v9277_v43 = vpop.f32.mrb[93].mxu0 }
 0x274   : > { %v2678_v30 = vsel %vm2615_vm13, %v2676_v29, %v2677_v40  ;;  %v2683_v7 = vsel %vm2615_vm13, %v2677_v40, %v2682_v0  ;;  %v3040_v2 = vmul.f32 %v9080_v36, %v7695_v46  ;;  %v3172_v48 = vunpack.c.l.bf16 %v9163_v8  ;;  %11420 = vst [vmem:[#allocation28_spill] sm:$0xff] %v9277_v43 }
 0x275   : > { %v5783_v16 = vmin.f32 %v5719_v39, 6.0  ;;  %v5785_v45 = vmin.f32 %v5721_v19, 6.0  ;;  %v2864_v11 = vadd.f32 %v2678_v30, %v2322_v61  ;;  %v2866_v1 = vadd.f32 %v2683_v7, %v2324_v35  ;;  %v9280_v61 = vpop.f32.mrb[94].mxu0 }
 0x276   : > { %v3239_v53 = vmul.f32 %v9077_v34, %v7723_v62  ;;  %v3241_v10 = vmul.f32 %v9080_v36, %v7723_v62  ;;  %v3243_v42 = vmul.f32 %v7723_v62, %v3172_v48  ;;  %v3713_v25 = vunpack.c.l.bf16 %v9180_v14  ;;  %11421 = vst [vmem:[#allocation29_spill] sm:$0xff] %v9280_v61  ;;  %v9290_v19 = vpop.f32.mrb[95].mxu0 }
 0x277   : > { %v5835_v18 = vpack.c.bf16 %v5785_v45, %v5783_v16  ;;  %v3102_v63 = vadd.f32 %v3038_v15, %v2864_v11  ;;  %v3104_v40 = vadd.f32 %v3040_v2, %v2866_v1  ;;  %v3782_v8 = vmul.f32 %v9080_v36, %v7708_v51  ;;  %11422 = vst [vmem:[#allocation25_spill] sm:$0xff] %v9290_v19 }
 0x278   : > { %v3455_v6 = vrot.slane %v3239_v53, 1  ;;  %v3456_v3 = vrot.slane %v3241_v10, 1  ;;  %v3461_v50 = vrot.slane %v3243_v42, 1  ;;  %v3780_v31 = vmul.f32 %v7708_v51, %v3713_v25 }
 0x279   : > { %7102 = vmatprep.mubr.msk.bf16.mxu1 %vm5950_vm2, %v5835_v18  ;;  %v3784_v14 = vmul.f32 %v7708_v51, %v3172_v48  ;;  %v3997_v29 = vrot.slane %v3782_v8, 2  ;;  %v9285_v0 = vunpack.c.l.bf16 %v9186_v26  ;;  %v9288_v39 = vunpack.c.l.bf16 %v9195_v13 }
 0x27a   : > { %v1574_v35 = vld [vmem:[#allocation2 + $0x138] sm:$0x11]  ;;  %v3457_v15 = vsel %vm2073_vm1, %v3455_v6, %v3456_v3  ;;  %v3462_v30 = vsel %vm2073_vm1, %v3456_v3, %v3461_v50  ;;  %v3996_v7 = vrot.slane %v3780_v31, 2  ;;  %v4492_v2 = vunpack.c.l.bf16 %v9201_v4 }
 0x27b   : > { %v1575_v48 = vsel %vm7763_vm12, 0, %v1574_v35  ;;  %v3643_v16 = vadd.f32 %v3457_v15, %v3102_v63  ;;  %v3645_v45 = vadd.f32 %v3462_v30, %v3104_v40  ;;  %v4002_v26 = vrot.slane %v3784_v14, 2  ;;  %v11423_v15 = vld [vmem:[#allocation32_spill] sm:$0xff] }
 0x27c   : > { %1576 = vst [vmem:[#allocation2 + $0x138] sm:$0x11] %v1575_v48  ;;  %v3998_v13 = vsel %vm2615_vm13, %v3996_v7, %v3997_v29  ;;  %v4358_v11 = vmul.f32 %v7744_v12, %v9285_v0  ;;  %v4360_v1 = vmul.f32 %v7744_v12, %v9288_v39  ;;  %v4559_v53 = vmul.f32 %v7750_v17, %v9285_v0 }
 0x27d   : > { %v4003_v4 = vsel %vm2615_vm13, %v3997_v29, %v4002_v26  ;;  %v4184_v10 = vadd.f32 %v3998_v13, %v3643_v16  ;;  %v4561_v42 = vmul.f32 %v7750_v17, %v9288_v39  ;;  %v4563_v25 = vmul.f32 %v7750_v17, %v4492_v2  ;;  %v11424_v16 = vld [vmem:[#allocation33_spill] sm:$0xff] }
 0x27e   : > { %v4186_v18 = vadd.f32 %v4003_v4, %v3645_v45  ;;  %v4775_v63 = vrot.slane %v4559_v53, 1  ;;  %v5033_v40 = vunpack.c.l.bf16 %v9210_v27  ;;  %v5102_v8 = vmul.f32 %v7757_v22, %v9288_v39  ;;  %v11425_v4 = vld [vmem:[#allocation34_spill] sm:$0xff] }
 0x27f   : > { %v4422_v6 = vadd.f32 %v4358_v11, %v4184_v10  ;;  %v4776_v3 = vrot.slane %v4561_v42, 1  ;;  %v4781_v50 = vrot.slane %v4563_v25, 1  ;;  %v5104_v31 = vmul.f32 %v7757_v22, %v4492_v2  ;;  %v11426_v42 = vld [vmem:[#allocation35_spill] sm:$0xff] }
 0x280   : > { %v4424_v14 = vadd.f32 %v4360_v1, %v4186_v18  ;;  %v5100_v29 = vmul.f32 %v7757_v22, %v5033_v40  ;;  %v5317_v35 = vrot.slane %v5102_v8, 2  ;;  %v741_v30 = vmul.f32 %v7623_v54, %v11423_v15  ;;  %v9326_v18 = vld [vmem:[#allocation2 + $0xb8] sm:$0x11] }
 0x281   : > { %v4777_v7 = vsel %vm2073_vm1, %v4775_v63, %v4776_v3  ;;  %v4782_v48 = vsel %vm2073_vm1, %v4776_v3, %v4781_v50  ;;  %v5322_v27 = vrot.slane %v5104_v31, 2  ;;  %v742_v45 = vmul.f32 %v7627_v55, %v11424_v16 }
 0x282   : > { %v4963_v26 = vadd.f32 %v4777_v7, %v4422_v6  ;;  %v4965_v13 = vadd.f32 %v4782_v48, %v4424_v14  ;;  %v5316_v11 = vrot.slane %v5100_v29, 2  ;;  %v860_v2 = vadd.f32 %v7631_v56, %v741_v30 }
 0x283   : > { %v5323_v1 = vsel %vm2615_vm13, %v5317_v35, %v5322_v27  ;;  %v861_v53 = vadd.f32 %v7635_v58, %v742_v45  ;;  %v743_v10 = vmul.f32 %v7623_v54, %v11425_v4  ;;  %v744_v25 = vmul.f32 %v7627_v55, %v11426_v42 }
 0x284   : > { %v5318_v63 = vsel %vm2615_vm13, %v5316_v11, %v5317_v35  ;;  %v5506_v40 = vadd.f32 %v5323_v1, %v4965_v13  ;;  %v968_v8 = vmax.f32 %v860_v2, 0.0  ;;  %v1785_v6 = vmul.f32 %v9000_v24, %v7685_v41  ;;  %v9344_v2 = vld [vmem:[#allocation2 + $0xa8] sm:$0xee] }
 0x285   : > { %v5504_v3 = vadd.f32 %v5318_v63, %v4963_v26  ;;  %v969_v50 = vmax.f32 %v861_v53, 0.0  ;;  %v862_v31 = vadd.f32 %v7631_v56, %v743_v10  ;;  %v863_v14 = vadd.f32 %v7635_v58, %v744_v25 }
 0x286   : > { %v5581_v29 = vmul.f32 %v7787_v47, %v5506_v40  ;;  %v1076_v15 = vmin.f32 %v968_v8, 6.0  ;;  %v1787_v30 = vmul.f32 %v9006_v44, %v7685_v41  ;;  %v1853_v7 = vunpack.c.h.bf16 %v9326_v18 }
 0x287   : > { %v5579_v35 = vmul.f32 %v7787_v47, %v5504_v3  ;;  %v1077_v48 = vmin.f32 %v969_v50, 6.0  ;;  %v970_v27 = vmax.f32 %v862_v31, 0.0  ;;  %v971_v16 = vmax.f32 %v863_v14, 0.0 }
 0x288   : > { %v5656_v45 = vadd.f32 %v11314_v33, %v5581_v29  ;;  %v1924_v26 = vmul.f32 %v9000_v24, %v11337_v9  ;;  %v1926_v13 = vmul.f32 %v9006_v44, %v11337_v9  ;;  %v1928_v11 = vmul.f32 %v11337_v9, %v1853_v7 }
 0x289   : > { %v5654_v1 = vadd.f32 %v11314_v33, %v5579_v35  ;;  %v7238_v53 = vpack.c.bf16 %v1077_v48, %v1076_v15  ;;  %v1078_v4 = vmin.f32 %v970_v27, 6.0  ;;  %v1079_v10 = vmin.f32 %v971_v16, 6.0  ;;  %v9355_v35 = vld [vmem:[#allocation2 + $0xd0] sm:$0x11] }
 0x28a   : > { %v5720_v42 = vmax.f32 %v5656_v45, 0.0  ;;  %v2147_v25 = vrot.slane %v1924_v26, 1  ;;  %v2148_v63 = vrot.slane %v1926_v13, 1  ;;  %v2152_v40 = vrot.slane %v1928_v11, 1  ;;  %v9360_v26 = vld [vmem:[#allocation2 + $0xc0] sm:$0xee] }
 0x28b   : > { %v5718_v8 = vmax.f32 %v5654_v1, 0.0  ;;  %1507 = vst.msk [vmem:[#allocation2 + $0x140] sm:$0xff] %vm7658_vm7, %v7238_v53  ;;  %v7239_v24 = vpack.c.bf16 %v1079_v10, %v1078_v4  ;;  %v2395_v3 = vunpack.c.h.bf16 %v9344_v2  ;;  %v2468_v50 = vmul.f32 %v9006_v44, %v11338_v57  ;;  %v11427_v11 = vld [vmem:[#allocation22_spill] sm:$0xff] }
 0x28c   : > { %v5784_v31 = vmin.f32 %v5720_v42, 6.0  ;;  %v2149_v14 = vsel %vm2073_vm1, %v2147_v25, %v2148_v63  ;;  %v2153_v29 = vsel %vm2073_vm1, %v2148_v63, %v2152_v40  ;;  %v2470_v15 = vmul.f32 %v11338_v57, %v1853_v7  ;;  %v11428_v42 = vld [vmem:[#allocation18_spill] sm:$0xff]  ;;  %v11429_v40 = vld [vmem:[#allocation17_spill] sm:$0xff] }
 0x28d   : > { %v5782_v48 = vmin.f32 %v5718_v8, 6.0  ;;  %1508 = vst.msk [vmem:[#allocation2 + $0x148] sm:$0xff] %vm7658_vm7, %v7239_v24  ;;  %v2327_v27 = vadd.f32 %v2149_v14, %v1785_v6  ;;  %v2329_v16 = vadd.f32 %v2153_v29, %v1787_v30  ;;  %v2466_v45 = vmul.f32 %v11338_v57, %v2395_v3  ;;  %v9375_v24 = vld [vmem:[#allocation2 + $0xd8] sm:$0xff] }
 0x28e   : > { %v2690_v44 = vrot.slane %v2468_v50, 2  ;;  %v2694_v13 = vrot.slane %v2470_v15, 2  ;;  %v3043_v1 = vmul.f32 %v11427_v11, %v11391_v60  ;;  %v3045_v7 = vmul.f32 %v9208_v59, %v11391_v60 }
 0x28f   : > { %v5834_v53 = vpack.c.bf16 %v5784_v31, %v5782_v48  ;;  %v2689_v4 = vrot.slane %v2466_v45, 2  ;;  %v3175_v10 = vunpack.c.h.bf16 %v9355_v35  ;;  %v3246_v6 = vmul.f32 %v11427_v11, %v11428_v42 }
 0x290   : > { %v2695_v30 = vsel %vm2615_vm13, %v2690_v44, %v2694_v13  ;;  %v3248_v25 = vmul.f32 %v9208_v59, %v11428_v42  ;;  %v3716_v63 = vunpack.c.h.bf16 %v9360_v26  ;;  %v3789_v8 = vmul.f32 %v9208_v59, %v11429_v40  ;;  %v9381_v13 = vld [vmem:[#allocation2 + $0xe0] sm:$0xff] }
 0x291   : > { %6080 = vmatmul.mubr.bf16.gmra.mrb[24].mxu1 %v5834_v53  ;;  %v2691_v3 = vsel %vm2615_vm13, %v2689_v4, %v2690_v44  ;;  %v2871_v50 = vadd.f32 %v2695_v30, %v2329_v16  ;;  %v3250_v31 = vmul.f32 %v11428_v42, %v3175_v10  ;;  %v3468_v14 = vrot.slane %v3246_v6, 1 }
 0x292   : > { %v2869_v29 = vadd.f32 %v2691_v3, %v2327_v27  ;;  %v3469_v15 = vrot.slane %v3248_v25, 1  ;;  %v3787_v48 = vmul.f32 %v11429_v40, %v3716_v63  ;;  %v3791_v45 = vmul.f32 %v11429_v40, %v3175_v10  ;;  %v9387_v27 = vld [vmem:[#allocation2 + $0xe8] sm:$0x11]  ;;  %v11431_v63 = vld [vmem:[#allocation19_spill] sm:$0xff] }
 0x293   : > { %v3109_v19 = vadd.f32 %v3045_v7, %v2871_v50  ;;  %v3473_v61 = vrot.slane %v3250_v31, 1  ;;  %v4010_v43 = vrot.slane %v3789_v8, 2  ;;  %v9384_v20 = vunpack.c.h.bf16 %v9375_v24  ;;  %v9397_v3 = vld [vmem:[#allocation2 + $0xd8] sm:$0xee] }
 0x294   : > { %v1633_v53 = vld [vmem:[#allocation2 + $0x148] sm:$0x11]  ;;  %v3107_v44 = vadd.f32 %v3043_v1, %v2869_v29  ;;  %v3470_v16 = vsel %vm2073_vm1, %v3468_v14, %v3469_v15  ;;  %v4009_v4 = vrot.slane %v3787_v48, 2  ;;  %v4014_v6 = vrot.slane %v3791_v45, 2 }
 0x295   : > { %v1634_v25 = vsel %vm7831_vm0, 0, %v1633_v53  ;;  %v3474_v10 = vsel %vm2073_vm1, %v3469_v15, %v3473_v61  ;;  %v9393_v7 = vunpack.c.h.bf16 %v9381_v13  ;;  %v4363_v8 = vmul.f32 %v11431_v63, %v9384_v20 }
 0x296   : > { %1635 = vst [vmem:[#allocation2 + $0x148] sm:$0x11] %v1634_v25  ;;  %v3648_v1 = vadd.f32 %v3470_v16, %v3107_v44  ;;  %v3650_v50 = vadd.f32 %v3474_v10, %v3109_v19  ;;  %v4011_v31 = vsel %vm2615_vm13, %v4009_v4, %v4010_v43  ;;  %v4015_v14 = vsel %vm2615_vm13, %v4010_v43, %v4014_v6 }
 0x297   : > { %v4365_v29 = vmul.f32 %v11431_v63, %v9393_v7  ;;  %v4495_v61 = vunpack.c.h.bf16 %v9387_v27  ;;  %v4566_v15 = vmul.f32 %v11397_v21, %v9384_v20  ;;  %v4568_v48 = vmul.f32 %v11397_v21, %v9393_v7 }
 0x298   : > { %v4189_v45 = vadd.f32 %v4011_v31, %v3648_v1  ;;  %v4191_v53 = vadd.f32 %v4015_v14, %v3650_v50  ;;  %v5036_v44 = vunpack.c.h.bf16 %v9397_v3  ;;  %v5109_v19 = vmul.f32 %v7769_v32, %v9393_v7 }
 0x299   : > { %v4570_v43 = vmul.f32 %v11397_v21, %v4495_v61  ;;  %v4788_v16 = vrot.slane %v4566_v15, 1  ;;  %v4789_v4 = vrot.slane %v4568_v48, 1  ;;  %v5111_v6 = vmul.f32 %v7769_v32, %v4495_v61 }
 0x29a   : > { %v4427_v25 = vadd.f32 %v4363_v8, %v4189_v45  ;;  %v4429_v10 = vadd.f32 %v4365_v29, %v4191_v53  ;;  %v5107_v63 = vmul.f32 %v7769_v32, %v5036_v44  ;;  %v5330_v30 = vrot.slane %v5109_v19, 2 }
 0x29b   : > { %v4790_v40 = vsel %vm2073_vm1, %v4788_v16, %v4789_v4  ;;  %v4793_v1 = vrot.slane %v4570_v43, 1  ;;  %v5334_v50 = vrot.slane %v5111_v6, 2  ;;  %v1784_v31 = vmul.f32 %v9077_v34, %v11382_v52 }
 0x29c   : > { %v4968_v14 = vadd.f32 %v4790_v40, %v4427_v25  ;;  %v5329_v5 = vrot.slane %v5107_v63, 2  ;;  %v1786_v15 = vmul.f32 %v9080_v36, %v11382_v52  ;;  %v1852_v48 = vunpack.c.l.bf16 %v9326_v18 }
 0x29d   : > { %v4794_v8 = vsel %vm2073_vm1, %v4789_v4, %v4793_v1  ;;  %v5335_v29 = vsel %vm2615_vm13, %v5330_v30, %v5334_v50  ;;  %v1923_v61 = vmul.f32 %v9077_v34, %v7664_v28  ;;  %v1925_v45 = vmul.f32 %v9080_v36, %v7664_v28 }
 0x29e   : > { %v4970_v53 = vadd.f32 %v4794_v8, %v4429_v10  ;;  %v5331_v44 = vsel %vm2615_vm13, %v5329_v5, %v5330_v30  ;;  %v1927_v40 = vmul.f32 %v7664_v28, %v1852_v48  ;;  %v2394_v63 = vunpack.c.l.bf16 %v9344_v2 }
 0x29f   : > { %v5509_v19 = vadd.f32 %v5331_v44, %v4968_v14  ;;  %v2144_v43 = vrot.slane %v1923_v61, 1  ;;  %v2145_v18 = vrot.slane %v1925_v45, 1  ;;  %v2467_v16 = vmul.f32 %v9080_v36, %v7655_v23 }
 0x2a0   : > { %v5511_v4 = vadd.f32 %v5335_v29, %v4970_v53  ;;  %v2150_v6 = vrot.slane %v1927_v40, 1  ;;  %v2465_v34 = vmul.f32 %v7655_v23, %v2394_v63  ;;  %v2469_v25 = vmul.f32 %v7655_v23, %v1852_v48 }
 0x2a1   : > { %v5584_v10 = vmul.f32 %v7775_v37, %v5509_v19  ;;  %v2146_v5 = vsel %vm2073_vm1, %v2144_v43, %v2145_v18  ;;  %v2687_v30 = vrot.slane %v2467_v16, 2  ;;  %v3042_v2 = vmul.f32 %v9285_v0, %v7695_v46 }
 0x2a2   : > { %v5586_v1 = vmul.f32 %v7775_v37, %v5511_v4  ;;  %v2151_v50 = vsel %vm2073_vm1, %v2145_v18, %v2150_v6  ;;  %v2326_v14 = vadd.f32 %v2146_v5, %v1784_v31  ;;  %v2686_v36 = vrot.slane %v2465_v34, 2 }
 0x2a3   : > { %v5659_v8 = vadd.f32 %v7779_v38, %v5584_v10  ;;  %v2328_v29 = vadd.f32 %v2151_v50, %v1786_v15  ;;  %v2692_v61 = vrot.slane %v2469_v25, 2  ;;  %v3044_v48 = vmul.f32 %v9288_v39, %v7695_v46  ;;  %v9452_v10 = vpop.f32.mrb[96].mxu0 }
 0x2a4   : > { %v5661_v45 = vadd.f32 %v7779_v38, %v5586_v1  ;;  %v2688_v53 = vsel %vm2615_vm13, %v2686_v36, %v2687_v30  ;;  %v3174_v44 = vunpack.c.l.bf16 %v9355_v35  ;;  %v3245_v40 = vmul.f32 %v9285_v0, %v7723_v62  ;;  %11432 = vst [vmem:[#allocation38_spill] sm:$0xff] %v9452_v10 }
 0x2a5   : > { %v5723_v63 = vmax.f32 %v5659_v8, 0.0  ;;  %v2693_v31 = vsel %vm2615_vm13, %v2687_v30, %v2692_v61  ;;  %v2868_v19 = vadd.f32 %v2688_v53, %v2326_v14  ;;  %v3247_v15 = vmul.f32 %v9288_v39, %v7723_v62  ;;  %v9456_v14 = vpop.f32.mrb[97].mxu0 }
 0x2a6   : > { %v5725_v43 = vmax.f32 %v5661_v45, 0.0  ;;  %v2870_v18 = vadd.f32 %v2693_v31, %v2328_v29  ;;  %v3249_v16 = vmul.f32 %v7723_v62, %v3174_v44  ;;  %v3465_v4 = vrot.slane %v3245_v40, 1  ;;  %11433 = vst [vmem:[#allocation39_spill] sm:$0xff] %v9456_v14  ;;  %v9465_v53 = vpop.f32.mrb[98].mxu0 }
 0x2a7   : > { %v5787_v6 = vmin.f32 %v5723_v63, 6.0  ;;  %v3106_v34 = vadd.f32 %v3042_v2, %v2868_v19  ;;  %v3466_v25 = vrot.slane %v3247_v15, 1  ;;  %v3715_v35 = vunpack.c.l.bf16 %v9360_v26  ;;  %11434 = vst [vmem:[#allocation30_spill] sm:$0xff] %v9465_v53  ;;  %v9470_v15 = vpop.f32.mrb[99].mxu0 }
 0x2a8   : > { %v5789_v5 = vmin.f32 %v5725_v43, 6.0  ;;  %v3108_v1 = vadd.f32 %v3044_v48, %v2870_v18  ;;  %v3471_v50 = vrot.slane %v3249_v16, 1  ;;  %v3788_v30 = vmul.f32 %v9288_v39, %v7708_v51  ;;  %11435 = vst [vmem:[#allocation32_spill] sm:$0xff] %v9470_v15  ;;  %v9479_v16 = vpop.f32.mrb[100].mxu0 }
 0x2a9   : > { %v3467_v36 = vsel %vm2073_vm1, %v3465_v4, %v3466_v25  ;;  %v3786_v8 = vmul.f32 %v7708_v51, %v3715_v35  ;;  %v3790_v29 = vmul.f32 %v7708_v51, %v3174_v44  ;;  %v9462_v2 = vunpack.c.l.bf16 %v9375_v24  ;;  %11436 = vst [vmem:[#allocation33_spill] sm:$0xff] %v9479_v16 }
 0x2aa   : > { %v5837_v26 = vpack.c.bf16 %v5789_v5, %v5787_v6  ;;  %v3472_v61 = vsel %vm2073_vm1, %v3466_v25, %v3471_v50  ;;  %v3647_v45 = vadd.f32 %v3467_v36, %v3106_v34  ;;  %v4007_v48 = vrot.slane %v3788_v30, 2  ;;  %v9487_v25 = vpop.f32.mrb[101].mxu0 }
 0x2ab   : > { %v3649_v40 = vadd.f32 %v3472_v61, %v3108_v1  ;;  %v4006_v63 = vrot.slane %v3786_v8, 2  ;;  %v4012_v31 = vrot.slane %v3790_v29, 2  ;;  %v9468_v19 = vunpack.c.l.bf16 %v9381_v13  ;;  %11437 = vst [vmem:[#allocation34_spill] sm:$0xff] %v9487_v25 }
 0x2ac   : > { %7103 = vmatprep.mubr.msk.bf16.mxu1 %vm5950_vm2, %v5837_v26  ;;  %v4362_v24 = vmul.f32 %v7744_v12, %v9462_v2  ;;  %v4494_v44 = vunpack.c.l.bf16 %v9387_v27  ;;  %v4565_v43 = vmul.f32 %v7750_v17, %v9462_v2  ;;  %v5035_v18 = vunpack.c.l.bf16 %v9397_v3  ;;  %v9490_v3 = vpop.f32.mrb[102].mxu0 }
 0x2ad   : > { %v4008_v4 = vsel %vm2615_vm13, %v4006_v63, %v4007_v48  ;;  %v4013_v13 = vsel %vm2615_vm13, %v4007_v48, %v4012_v31  ;;  %v4364_v6 = vmul.f32 %v7744_v12, %v9468_v19  ;;  %v4567_v34 = vmul.f32 %v7750_v17, %v9468_v19  ;;  %11438 = vst [vmem:[#allocation35_spill] sm:$0xff] %v9490_v3  ;;  %v11439_v48 = vld [vmem:[#allocation36_spill] sm:$0xff]  ;;  %v9574_v15 = vpop.f32.mrb[103].mxu0 }
 0x2ae   : > { %v4188_v27 = vadd.f32 %v4008_v4, %v3647_v45  ;;  %v4190_v35 = vadd.f32 %v4013_v13, %v3649_v40  ;;  %v4569_v5 = vmul.f32 %v7750_v17, %v4494_v44  ;;  %v4785_v1 = vrot.slane %v4565_v43, 1  ;;  %11447 = vst [vmem:[#allocation22_spill] sm:$0xff] %v9574_v15 }
 0x2af   : > { %v4786_v50 = vrot.slane %v4567_v34, 1  ;;  %v5106_v30 = vmul.f32 %v7757_v22, %v5035_v18  ;;  %v5108_v36 = vmul.f32 %v7757_v22, %v9468_v19  ;;  %v5110_v8 = vmul.f32 %v7757_v22, %v4494_v44  ;;  %v11440_v34 = vld [vmem:[#allocation12_spill] sm:$0xff] }
 0x2b0   : > { %v4426_v29 = vadd.f32 %v4362_v24, %v4188_v27  ;;  %v4428_v26 = vadd.f32 %v4364_v6, %v4190_v35  ;;  %v4791_v61 = vrot.slane %v4569_v5, 1  ;;  %v745_v45 = vmul.f32 %v7623_v54, %v11439_v48  ;;  %v11441_v27 = vld [vmem:[#allocation15_spill] sm:$0xff]  ;;  %v11444_v48 = vld [vmem:[#allocation26_spill] sm:$0xff] }
 0x2b1   : > { %v4787_v40 = vsel %vm2073_vm1, %v4785_v1, %v4786_v50  ;;  %v5326_v63 = vrot.slane %v5106_v30, 2  ;;  %v5327_v31 = vrot.slane %v5108_v36, 2  ;;  %v5332_v43 = vrot.slane %v5110_v8, 2  ;;  %v11442_v36 = vld [vmem:[#allocation14_spill] sm:$0xff] }
 0x2b2   : > { %v4792_v4 = vsel %vm2073_vm1, %v4786_v50, %v4791_v61  ;;  %v4967_v13 = vadd.f32 %v4787_v40, %v4426_v29  ;;  %v864_v18 = vadd.f32 %v7631_v56, %v745_v45  ;;  %v746_v3 = vmul.f32 %v7627_v55, %v11440_v34  ;;  %v11443_v61 = vld [vmem:[#allocation24_spill] sm:$0xff] }
 0x2b3   : > { %v4969_v44 = vadd.f32 %v4792_v4, %v4428_v26  ;;  %v5328_v24 = vsel %vm2615_vm13, %v5326_v63, %v5327_v31  ;;  %v5333_v6 = vsel %vm2615_vm13, %v5327_v31, %v5332_v43  ;;  %v747_v35 = vmul.f32 %v7623_v54, %v11441_v27 }
 0x2b4   : > { %v5508_v5 = vadd.f32 %v5328_v24, %v4967_v13  ;;  %v972_v1 = vmax.f32 %v864_v18, 0.0  ;;  %v865_v30 = vadd.f32 %v7635_v58, %v746_v3  ;;  %v748_v50 = vmul.f32 %v7627_v55, %v11442_v36 }
 0x2b5   : > { %v5510_v8 = vadd.f32 %v5333_v6, %v4969_v44  ;;  %v866_v29 = vadd.f32 %v7631_v56, %v747_v35  ;;  %v749_v26 = vmul.f32 %v7623_v54, %v11443_v61  ;;  %v750_v45 = vmul.f32 %v7627_v55, %v11444_v48  ;;  %v11445_v6 = vld [vmem:[#allocation37_spill] sm:$0xff]  ;;  %v9525_v61 = vld [vmem:[#allocation2 + $0xd0] sm:$0x11] }
 0x2b6   : > { %v5583_v40 = vmul.f32 %v7787_v47, %v5508_v5  ;;  %v1080_v63 = vmin.f32 %v972_v1, 6.0  ;;  %v973_v31 = vmax.f32 %v865_v30, 0.0  ;;  %v867_v43 = vadd.f32 %v7635_v58, %v748_v50 }
 0x2b7   : > { %v5585_v3 = vmul.f32 %v7787_v47, %v5510_v8  ;;  %v974_v4 = vmax.f32 %v866_v29, 0.0  ;;  %v868_v13 = vadd.f32 %v7631_v56, %v749_v26  ;;  %v869_v18 = vadd.f32 %v7635_v58, %v750_v45 }
 0x2b8   : > { %v5658_v34 = vadd.f32 %v11314_v33, %v5583_v40  ;;  %v1081_v44 = vmin.f32 %v973_v31, 6.0  ;;  %v975_v24 = vmax.f32 %v867_v43, 0.0  ;;  %v751_v27 = vmul.f32 %v7623_v54, %v11445_v6  ;;  %v9529_v31 = vld [vmem:[#allocation2 + $0xc0] sm:$0xee] }
 0x2b9   : > { %v5660_v35 = vadd.f32 %v11314_v33, %v5585_v3  ;;  %v1082_v5 = vmin.f32 %v974_v4, 6.0  ;;  %v976_v1 = vmax.f32 %v868_v13, 0.0  ;;  %v977_v30 = vmax.f32 %v869_v18, 0.0 }
 0x2ba   : > { %v5722_v36 = vmax.f32 %v5658_v34, 0.0  ;;  %v7240_v50 = vpack.c.bf16 %v1081_v44, %v1080_v63  ;;  %v1083_v8 = vmin.f32 %v975_v24, 6.0  ;;  %v870_v29 = vadd.f32 %v7631_v56, %v751_v27 }
 0x2bb   : > { %v5724_v26 = vmax.f32 %v5660_v35, 0.0  ;;  %v1084_v48 = vmin.f32 %v976_v1, 6.0  ;;  %v1085_v45 = vmin.f32 %v977_v30, 6.0  ;;  %v1789_v40 = vmul.f32 %v11427_v11, %v7685_v41 }
 0x2bc   : > { %v5786_v43 = vmin.f32 %v5722_v36, 6.0  ;;  %1509 = vst.msk [vmem:[#allocation2 + $0x150] sm:$0xff] %vm7658_vm7, %v7240_v50  ;;  %v7241_v3 = vpack.c.bf16 %v1083_v8, %v1082_v5  ;;  %v978_v4 = vmax.f32 %v870_v29, 0.0  ;;  %v1791_v63 = vmul.f32 %v9208_v59, %v7685_v41  ;;  %v9547_v5 = vld [vmem:[#allocation2 + $0xe8] sm:$0x11] }
 0x2bd   : > { %v5788_v13 = vmin.f32 %v5724_v26, 6.0  ;;  %v7242_v18 = vpack.c.bf16 %v1085_v45, %v1084_v48  ;;  %v1855_v34 = vunpack.c.h.bf16 %v9525_v61  ;;  %v1930_v44 = vmul.f32 %v11427_v11, %v11337_v9 }
 0x2be   : > { %1510 = vst.msk [vmem:[#allocation2 + $0x158] sm:$0xff] %vm7658_vm7, %v7241_v3  ;;  %v9540_v24 = vmin.f32 %v978_v4, 6.0  ;;  %v1932_v6 = vmul.f32 %v9208_v59, %v11337_v9  ;;  %v2397_v27 = vunpack.c.h.bf16 %v9529_v31  ;;  %v2474_v35 = vmul.f32 %v9208_v59, %v11338_v57 }
 0x2bf   : > { %v5836_v1 = vpack.c.bf16 %v5788_v13, %v5786_v43  ;;  %1511 = vst.msk [vmem:[#allocation2 + $0x160] sm:$0xff] %vm7658_vm7, %v7242_v18  ;;  %v1934_v11 = vmul.f32 %v11337_v9, %v1855_v34  ;;  %v2157_v30 = vrot.slane %v1930_v44, 1  ;;  %v2476_v36 = vmul.f32 %v11338_v57, %v1855_v34  ;;  %v9564_v34 = vld [vmem:[#allocation2 + $0xd8] sm:$0xee] }
 0x2c0   : > { %v2158_v50 = vrot.slane %v1932_v6, 1  ;;  %v2472_v8 = vmul.f32 %v11338_v57, %v2397_v27  ;;  %v2700_v29 = vrot.slane %v2474_v35, 2  ;;  %v3047_v26 = vmul.f32 %v9384_v20, %v11391_v60 }
 0x2c1   : > { %6088 = vmatmul.mubr.bf16.gmra.mrb[28].mxu1 %v5836_v1  ;;  %v2162_v59 = vrot.slane %v1934_v11, 1  ;;  %v2704_v48 = vrot.slane %v2476_v36, 2  ;;  %v3049_v45 = vmul.f32 %v9393_v7, %v11391_v60  ;;  %v3177_v43 = vunpack.c.h.bf16 %v9547_v5  ;;  %v9569_v11 = vld [vmem:[#allocation2 + $0xf0] sm:$0xff]  ;;  %v11452_v60 = vld [vmem:[#allocation31_spill] sm:$0xff] }
 0x2c2   : > { %v2159_v3 = vsel %vm2073_vm1, %v2157_v30, %v2158_v50  ;;  %v2699_v4 = vrot.slane %v2472_v8, 2  ;;  %v3252_v13 = vmul.f32 %v9384_v20, %v11428_v42  ;;  %v3254_v18 = vmul.f32 %v9393_v7, %v11428_v42 }
 0x2c3   : > { %v1577_v44 = vld [vmem:[#allocation2 + $0x150] sm:$0x11]  ;;  %v2163_v6 = vsel %vm2073_vm1, %v2158_v50, %v2162_v59  ;;  %v2331_v27 = vadd.f32 %v2159_v3, %v1789_v40  ;;  %v2705_v35 = vsel %vm2615_vm13, %v2700_v29, %v2704_v48  ;;  %v3256_v1 = vmul.f32 %v11428_v42, %v3177_v43  ;;  %v11448_v3 = vld [vmem:[#allocation17_spill] sm:$0xff] }
 0x2c4   : > { %v1578_v36 = vsel %vm7763_vm12, 0, %v1577_v44  ;;  %v2333_v8 = vadd.f32 %v2163_v6, %v1791_v63  ;;  %v2701_v25 = vsel %vm2615_vm13, %v2699_v4, %v2700_v29  ;;  %v3478_v16 = vrot.slane %v3252_v13, 1  ;;  %v9580_v44 = vld [vmem:[#allocation2 + $0xf8] sm:$0xff]  ;;  %v9585_v29 = vld [vmem:[#allocation2 + $0x100] sm:$0x11] }
 0x2c5   : > { %1579 = vst [vmem:[#allocation2 + $0x150] sm:$0x11] %v1578_v36  ;;  %v2873_v53 = vadd.f32 %v2701_v25, %v2331_v27  ;;  %v3479_v14 = vrot.slane %v3254_v18, 1  ;;  %v3483_v50 = vrot.slane %v3256_v1, 1  ;;  %v3718_v40 = vunpack.c.h.bf16 %v9564_v34  ;;  %v9592_v36 = vld [vmem:[#allocation2 + $0xf0] sm:$0xee] }
 0x2c6   : > { %v1636_v59 = vld [vmem:[#allocation2 + $0x160] sm:$0x11]  ;;  %v2875_v48 = vadd.f32 %v2705_v35, %v2333_v8  ;;  %v3795_v10 = vmul.f32 %v9393_v7, %v11448_v3  ;;  %v3797_v42 = vmul.f32 %v11448_v3, %v3177_v43  ;;  %v9583_v63 = vunpack.c.h.bf16 %v9569_v11  ;;  %v11451_v4 = vld [vmem:[#allocation19_spill] sm:$0xff] }
 0x2c7   : > { %v1637_v25 = vsel %vm7831_vm0, 0, %v1636_v59  ;;  %v3111_v13 = vadd.f32 %v3047_v26, %v2873_v53  ;;  %v3480_v18 = vsel %vm2073_vm1, %v3478_v16, %v3479_v14  ;;  %v3484_v6 = vsel %vm2073_vm1, %v3479_v14, %v3483_v50 }
 0x2c8   : > { %11449 = vst [vmem:[#allocation36_spill] sm:$0xff] %v9583_v63  ;;  %1638 = vst [vmem:[#allocation2 + $0x160] sm:$0x11] %v1637_v25  ;;  %v3113_v27 = vadd.f32 %v3049_v45, %v2875_v48  ;;  %v3793_v35 = vmul.f32 %v11448_v3, %v3718_v40  ;;  %v4020_v43 = vrot.slane %v3795_v10, 2  ;;  %v4024_v1 = vrot.slane %v3797_v42, 2 }
 0x2c9   : > { %v3652_v8 = vadd.f32 %v3480_v18, %v3111_v13  ;;  %v9595_v15 = vunpack.c.h.bf16 %v9580_v44  ;;  %v4367_v59 = vmul.f32 %v11451_v4, %v9583_v63  ;;  %v4497_v53 = vunpack.c.h.bf16 %v9585_v29 }
 0x2ca   : > { %v3654_v16 = vadd.f32 %v3484_v6, %v3113_v27  ;;  %v4019_v26 = vrot.slane %v3793_v35, 2  ;;  %v4025_v14 = vsel %vm2615_vm13, %v4020_v43, %v4024_v1  ;;  %v4572_v45 = vmul.f32 %v11397_v21, %v9583_v63 }
 0x2cb   : > { %v4369_v42 = vmul.f32 %v11451_v4, %v9595_v15  ;;  %v4574_v10 = vmul.f32 %v11397_v21, %v9595_v15  ;;  %v4576_v50 = vmul.f32 %v11397_v21, %v4497_v53  ;;  %v5038_v40 = vunpack.c.h.bf16 %v9592_v36 }
 0x2cc   : > { %v4021_v48 = vsel %vm2615_vm13, %v4019_v26, %v4020_v43  ;;  %v4195_v25 = vadd.f32 %v4025_v14, %v3654_v16  ;;  %v4798_v13 = vrot.slane %v4572_v45, 1  ;;  %v5115_v18 = vmul.f32 %v7769_v32, %v9595_v15 }
 0x2cd   : > { %v4193_v6 = vadd.f32 %v4021_v48, %v3652_v8  ;;  %v4799_v27 = vrot.slane %v4574_v10, 1  ;;  %v4803_v35 = vrot.slane %v4576_v50, 1  ;;  %v5113_v1 = vmul.f32 %v7769_v32, %v5038_v40 }
 0x2ce   : > { %v4433_v4 = vadd.f32 %v4369_v42, %v4195_v25  ;;  %v5117_v3 = vmul.f32 %v7769_v32, %v4497_v53  ;;  %v5340_v63 = vrot.slane %v5115_v18, 2  ;;  %v752_v21 = vmul.f32 %v7627_v55, %v11452_v60 }
 0x2cf   : > { %v4431_v57 = vadd.f32 %v4367_v59, %v4193_v6  ;;  %v4800_v43 = vsel %vm2073_vm1, %v4798_v13, %v4799_v27  ;;  %v4804_v16 = vsel %vm2073_vm1, %v4799_v27, %v4803_v35  ;;  %v5339_v26 = vrot.slane %v5113_v1, 2 }
 0x2d0   : > { %v4974_v14 = vadd.f32 %v4804_v16, %v4433_v4  ;;  %v5344_v45 = vrot.slane %v5117_v3, 2  ;;  %v871_v8 = vadd.f32 %v7635_v58, %v752_v21  ;;  %v1788_v10 = vmul.f32 %v9285_v0, %v11382_v52 }
 0x2d1   : > { %v4972_v42 = vadd.f32 %v4800_v43, %v4431_v57  ;;  %v5341_v53 = vsel %vm2615_vm13, %v5339_v26, %v5340_v63  ;;  %v1790_v50 = vmul.f32 %v9288_v39, %v11382_v52  ;;  %v1854_v60 = vunpack.c.l.bf16 %v9525_v61 }
 0x2d2   : > { %v5345_v59 = vsel %vm2615_vm13, %v5340_v63, %v5344_v45  ;;  %v979_v40 = vmax.f32 %v871_v8, 0.0  ;;  %v1929_v4 = vmul.f32 %v9285_v0, %v7664_v28  ;;  %v1931_v21 = vmul.f32 %v9288_v39, %v7664_v28 }
 0x2d3   : > { %v5513_v3 = vadd.f32 %v5341_v53, %v4972_v42  ;;  %v5515_v48 = vadd.f32 %v5345_v59, %v4974_v14  ;;  %v1933_v57 = vmul.f32 %v7664_v28, %v1854_v60  ;;  %v2396_v25 = vunpack.c.l.bf16 %v9529_v31 }
 0x2d4   : > { %v1087_v13 = vmin.f32 %v979_v40, 6.0  ;;  %v2154_v18 = vrot.slane %v1929_v4, 1  ;;  %v2155_v6 = vrot.slane %v1931_v21, 1  ;;  %v2473_v61 = vmul.f32 %v9288_v39, %v7655_v23 }
 0x2d5   : > { %v5588_v63 = vmul.f32 %v7775_v37, %v5513_v3  ;;  %v5590_v27 = vmul.f32 %v7775_v37, %v5515_v48  ;;  %v2160_v0 = vrot.slane %v1933_v57, 1  ;;  %v2471_v35 = vmul.f32 %v7655_v23, %v2396_v25 }
 0x2d6   : > { %v7243_v1 = vpack.c.bf16 %v1087_v13, %v9540_v24  ;;  %v2156_v43 = vsel %vm2073_vm1, %v2154_v18, %v2155_v6  ;;  %v2475_v16 = vmul.f32 %v7655_v23, %v1854_v60  ;;  %v2697_v31 = vrot.slane %v2473_v61, 2 }
 0x2d7   : > { %v5663_v26 = vadd.f32 %v7779_v38, %v5588_v63  ;;  %v5665_v14 = vadd.f32 %v7779_v38, %v5590_v27  ;;  %v2161_v39 = vsel %vm2073_vm1, %v2155_v6, %v2160_v0  ;;  %v2330_v45 = vadd.f32 %v2156_v43, %v1788_v10  ;;  %v9658_v63 = vpop.f32.mrb[104].mxu0 }
 0x2d8   : > { %1512 = vst.msk [vmem:[#allocation2 + $0x168] sm:$0xff] %vm7658_vm7, %v7243_v1  ;;  %v2332_v8 = vadd.f32 %v2161_v39, %v1790_v50  ;;  %v2696_v42 = vrot.slane %v2471_v35, 2  ;;  %v2702_v53 = vrot.slane %v2475_v16, 2  ;;  %v3046_v24 = vmul.f32 %v9462_v2, %v7695_v46  ;;  %11453 = vst [vmem:[#allocation12_spill] sm:$0xff] %v9658_v63  ;;  %v9662_v43 = vpop.f32.mrb[105].mxu0 }
 0x2d9   : > { %v5727_v59 = vmax.f32 %v5663_v26, 0.0  ;;  %v5729_v40 = vmax.f32 %v5665_v14, 0.0  ;;  %v3048_v60 = vmul.f32 %v9468_v19, %v7695_v46  ;;  %v3176_v4 = vunpack.c.l.bf16 %v9547_v5  ;;  %11454 = vst [vmem:[#allocation15_spill] sm:$0xff] %v9662_v43  ;;  %v9667_v39 = vpop.f32.mrb[106].mxu0  ;;  %v9772_v43 = vld [vmem:[#allocation2 + $0x118] sm:$0x11] }
 0x2da   : > { %v2698_v21 = vsel %vm2615_vm13, %v2696_v42, %v2697_v31  ;;  %v2703_v10 = vsel %vm2615_vm13, %v2697_v31, %v2702_v53  ;;  %v3251_v3 = vmul.f32 %v9462_v2, %v7723_v62  ;;  %v3253_v50 = vmul.f32 %v9468_v19, %v7723_v62  ;;  %11455 = vst [vmem:[#allocation14_spill] sm:$0xff] %v9667_v39 }
 0x2db   : > { %v5791_v48 = vmin.f32 %v5727_v59, 6.0  ;;  %v5793_v57 = vmin.f32 %v5729_v40, 6.0  ;;  %v2872_v25 = vadd.f32 %v2698_v21, %v2330_v45  ;;  %v2874_v13 = vadd.f32 %v2703_v10, %v2332_v8 }
 0x2dc   : > { %v3255_v18 = vmul.f32 %v7723_v62, %v3176_v4  ;;  %v3475_v6 = vrot.slane %v3251_v3, 1  ;;  %v3476_v61 = vrot.slane %v3253_v50, 1  ;;  %v3717_v5 = vunpack.c.l.bf16 %v9564_v34 }
 0x2dd   : > { %v5839_v27 = vpack.c.bf16 %v5793_v57, %v5791_v48  ;;  %v3110_v0 = vadd.f32 %v3046_v24, %v2872_v25  ;;  %v3112_v35 = vadd.f32 %v3048_v60, %v2874_v13  ;;  %v3794_v1 = vmul.f32 %v9468_v19, %v7708_v51  ;;  %v9676_v24 = vpop.f32.mrb[107].mxu0 }
 0x2de   : > { %v3477_v16 = vsel %vm2073_vm1, %v3475_v6, %v3476_v61  ;;  %v3481_v31 = vrot.slane %v3255_v18, 1  ;;  %v3792_v26 = vmul.f32 %v7708_v51, %v3717_v5  ;;  %v3796_v14 = vmul.f32 %v7708_v51, %v3176_v4  ;;  %11456 = vst [vmem:[#allocation24_spill] sm:$0xff] %v9676_v24 }
 0x2df   : > { %7104 = vmatprep.mubr.msk.bf16.mxu1 %vm5950_vm2, %v5839_v27  ;;  %v1580_v34 = vld [vmem:[#allocation2 + $0x168] sm:$0x11]  ;;  %v3651_v45 = vadd.f32 %v3477_v16, %v3110_v0  ;;  %v4017_v8 = vrot.slane %v3794_v1, 2  ;;  %v9671_v42 = vunpack.c.l.bf16 %v9569_v11  ;;  %v9674_v53 = vunpack.c.l.bf16 %v9580_v44 }
 0x2e0   : > { %v1581_v59 = vsel %vm7763_vm12, 0, %v1580_v34  ;;  %v3482_v40 = vsel %vm2073_vm1, %v3476_v61, %v3481_v31  ;;  %v4016_v60 = vrot.slane %v3792_v26, 2  ;;  %v4022_v4 = vrot.slane %v3796_v14, 2  ;;  %v11457_v34 = vld [vmem:[#allocation27_spill] sm:$0xff] }
 0x2e1   : > { %1582 = vst [vmem:[#allocation2 + $0x168] sm:$0x11] %v1581_v59  ;;  %v3653_v21 = vadd.f32 %v3482_v40, %v3112_v35  ;;  %v4366_v10 = vmul.f32 %v7744_v12, %v9671_v42  ;;  %v4368_v11 = vmul.f32 %v7744_v12, %v9674_v53  ;;  %v4496_v44 = vunpack.c.l.bf16 %v9585_v29  ;;  %v11458_v40 = vld [vmem:[#allocation28_spill] sm:$0xff] }
 0x2e2   : > { %v4018_v3 = vsel %vm2615_vm13, %v4016_v60, %v4017_v8  ;;  %v4023_v50 = vsel %vm2615_vm13, %v4017_v8, %v4022_v4  ;;  %v4571_v48 = vmul.f32 %v7750_v17, %v9671_v42  ;;  %v4573_v57 = vmul.f32 %v7750_v17, %v9674_v53 }
 0x2e3   : > { %v4192_v25 = vadd.f32 %v4018_v3, %v3651_v45  ;;  %v4194_v13 = vadd.f32 %v4023_v50, %v3653_v21  ;;  %v4575_v18 = vmul.f32 %v7750_v17, %v4496_v44  ;;  %v5037_v6 = vunpack.c.l.bf16 %v9592_v36  ;;  %v9708_v3 = vld [vmem:[#allocation2 + $0xe8] sm:$0x11] }
 0x2e4   : > { %v4795_v61 = vrot.slane %v4571_v48, 1  ;;  %v4796_v5 = vrot.slane %v4573_v57, 1  ;;  %v5114_v29 = vmul.f32 %v7757_v22, %v9674_v53  ;;  %v5116_v27 = vmul.f32 %v7757_v22, %v4496_v44  ;;  %v11460_v57 = vld [vmem:[#allocation25_spill] sm:$0xff] }
 0x2e5   : > { %v4430_v0 = vadd.f32 %v4366_v10, %v4192_v25  ;;  %v4432_v35 = vadd.f32 %v4368_v11, %v4194_v13  ;;  %v4801_v1 = vrot.slane %v4575_v18, 1  ;;  %v5112_v16 = vmul.f32 %v7757_v22, %v5037_v6  ;;  %v11459_v11 = vld [vmem:[#allocation29_spill] sm:$0xff] }
 0x2e6   : > { %v4797_v31 = vsel %vm2073_vm1, %v4795_v61, %v4796_v5  ;;  %v5337_v26 = vrot.slane %v5114_v29, 2  ;;  %v5342_v14 = vrot.slane %v5116_v27, 2  ;;  %v753_v45 = vmul.f32 %v7623_v54, %v11457_v34 }
 0x2e7   : > { %v4802_v36 = vsel %vm2073_vm1, %v4796_v5, %v4801_v1  ;;  %v4971_v8 = vadd.f32 %v4797_v31, %v4430_v0  ;;  %v5336_v59 = vrot.slane %v5112_v16, 2  ;;  %v754_v60 = vmul.f32 %v7627_v55, %v11458_v40 }
 0x2e8   : > { %v4973_v4 = vadd.f32 %v4802_v36, %v4432_v35  ;;  %v5343_v21 = vsel %vm2615_vm13, %v5337_v26, %v5342_v14  ;;  %v872_v10 = vadd.f32 %v7631_v56, %v753_v45  ;;  %v755_v44 = vmul.f32 %v7623_v54, %v11459_v11 }
 0x2e9   : > { %v5338_v50 = vsel %vm2615_vm13, %v5336_v59, %v5337_v26  ;;  %v873_v48 = vadd.f32 %v7635_v58, %v754_v60  ;;  %v756_v25 = vmul.f32 %v7627_v55, %v11460_v57  ;;  %v1793_v13 = vmul.f32 %v9384_v20, %v7685_v41 }
 0x2ea   : > { %v5512_v18 = vadd.f32 %v5338_v50, %v4971_v8  ;;  %v5514_v6 = vadd.f32 %v5343_v21, %v4973_v4  ;;  %v980_v61 = vmax.f32 %v872_v10, 0.0  ;;  %v874_v5 = vadd.f32 %v7631_v56, %v755_v44  ;;  %v9727_v8 = vld [vmem:[#allocation2 + $0xd8] sm:$0xee] }
 0x2eb   : > { %v981_v29 = vmax.f32 %v873_v48, 0.0  ;;  %v875_v27 = vadd.f32 %v7635_v58, %v756_v25  ;;  %v1795_v0 = vmul.f32 %v9393_v7, %v7685_v41  ;;  %v1857_v35 = vunpack.c.h.bf16 %v9708_v3 }
 0x2ec   : > { %v5587_v1 = vmul.f32 %v7787_v47, %v5512_v18  ;;  %v5589_v16 = vmul.f32 %v7787_v47, %v5514_v6  ;;  %v1088_v31 = vmin.f32 %v980_v61, 6.0  ;;  %v982_v26 = vmax.f32 %v874_v5, 0.0  ;;  %v11461_v6 = vld [vmem:[#allocation13_spill] sm:$0xff] }
 0x2ed   : > { %v1089_v14 = vmin.f32 %v981_v29, 6.0  ;;  %v983_v34 = vmax.f32 %v875_v27, 0.0  ;;  %v1936_v45 = vmul.f32 %v9384_v20, %v11337_v9  ;;  %v1938_v36 = vmul.f32 %v9393_v7, %v11337_v9  ;;  %v9739_v29 = vld [vmem:[#allocation2 + $0x100] sm:$0x11] }
 0x2ee   : > { %v5662_v59 = vadd.f32 %v11314_v33, %v5587_v1  ;;  %v5664_v40 = vadd.f32 %v11314_v33, %v5589_v16  ;;  %v1090_v60 = vmin.f32 %v982_v26, 6.0  ;;  %v1940_v4 = vmul.f32 %v11337_v9, %v1857_v35 }
 0x2ef   : > { %v7244_v21 = vpack.c.bf16 %v1089_v14, %v1088_v31  ;;  %v1091_v10 = vmin.f32 %v983_v34, 6.0  ;;  %v2167_v11 = vrot.slane %v1936_v45, 1  ;;  %v2168_v44 = vrot.slane %v1938_v36, 1  ;;  %v9745_v36 = vld [vmem:[#allocation2 + $0xf0] sm:$0xee] }
 0x2f0   : > { %v5726_v50 = vmax.f32 %v5662_v59, 0.0  ;;  %v5728_v48 = vmax.f32 %v5664_v40, 0.0  ;;  %v2172_v57 = vrot.slane %v1940_v4, 1  ;;  %v2399_v20 = vunpack.c.h.bf16 %v9727_v8  ;;  %v11462_v59 = vld [vmem:[#allocation16_spill] sm:$0xff] }
 0x2f1   : > { %1513 = vst.msk [vmem:[#allocation2 + $0x170] sm:$0xff] %vm7658_vm7, %v7244_v21  ;;  %v7245_v25 = vpack.c.bf16 %v1091_v10, %v1090_v60  ;;  %v2169_v18 = vsel %vm2073_vm1, %v2167_v11, %v2168_v44  ;;  %v2480_v61 = vmul.f32 %v9393_v7, %v11461_v6  ;;  %v2482_v5 = vmul.f32 %v11461_v6, %v1857_v35  ;;  %v11463_v35 = vld [vmem:[#allocation36_spill] sm:$0xff]  ;;  %v11464_v10 = vld [vmem:[#allocation18_spill] sm:$0xff] }
 0x2f2   : > { %v5790_v27 = vmin.f32 %v5726_v50, 6.0  ;;  %v5792_v1 = vmin.f32 %v5728_v48, 6.0  ;;  %v2173_v16 = vsel %vm2073_vm1, %v2168_v44, %v2172_v57  ;;  %v2335_v31 = vadd.f32 %v2169_v18, %v1793_v13  ;;  %v11465_v57 = vld [vmem:[#allocation17_spill] sm:$0xff] }
 0x2f3   : > { %1514 = vst.msk [vmem:[#allocation2 + $0x178] sm:$0xff] %vm7658_vm7, %v7245_v25  ;;  %v2337_v26 = vadd.f32 %v2173_v16, %v1795_v0  ;;  %v2478_v14 = vmul.f32 %v11461_v6, %v2399_v20  ;;  %v2710_v34 = vrot.slane %v2480_v61, 2  ;;  %v2714_v45 = vrot.slane %v2482_v5, 2  ;;  %v9761_v25 = vld [vmem:[#allocation2 + $0x108] sm:$0xff] }
 0x2f4   : > { %v5838_v7 = vpack.c.bf16 %v5792_v1, %v5790_v27  ;;  %v3051_v40 = vmul.f32 %v11463_v35, %v11462_v59  ;;  %v3053_v60 = vmul.f32 %v9595_v15, %v11462_v59  ;;  %v3179_v4 = vunpack.c.h.bf16 %v9739_v29  ;;  %v9765_v1 = vld [vmem:[#allocation2 + $0x110] sm:$0xff] }
 0x2f5   : > { %v2709_v13 = vrot.slane %v2478_v14, 2  ;;  %v2715_v21 = vsel %vm2615_vm13, %v2710_v34, %v2714_v45  ;;  %v3258_v0 = vmul.f32 %v11463_v35, %v11464_v10  ;;  %v3260_v11 = vmul.f32 %v9595_v15, %v11464_v10 }
 0x2f6   : > { %6096 = vmatmul.mubr.bf16.gmra.mrb[32].mxu1 %v5838_v7  ;;  %v2879_v44 = vadd.f32 %v2715_v21, %v2337_v26  ;;  %v3262_v50 = vmul.f32 %v11464_v10, %v3179_v4  ;;  %v3720_v48 = vunpack.c.h.bf16 %v9745_v36  ;;  %v3801_v20 = vmul.f32 %v9595_v15, %v11465_v57 }
 0x2f7   : > { %v2711_v18 = vsel %vm2615_vm13, %v2709_v13, %v2710_v34  ;;  %v3488_v61 = vrot.slane %v3258_v0, 1  ;;  %v3489_v5 = vrot.slane %v3260_v11, 1  ;;  %v3803_v27 = vmul.f32 %v11465_v57, %v3179_v4 }
 0x2f8   : > { %v2877_v16 = vadd.f32 %v2711_v18, %v2335_v31  ;;  %v3117_v14 = vadd.f32 %v3053_v60, %v2879_v44  ;;  %v3493_v26 = vrot.slane %v3262_v50, 1  ;;  %v3799_v45 = vmul.f32 %v11465_v57, %v3720_v48  ;;  %v9778_v60 = vld [vmem:[#allocation2 + $0x108] sm:$0xee] }
 0x2f9   : > { %v3490_v7 = vsel %vm2073_vm1, %v3488_v61, %v3489_v5  ;;  %v4030_v21 = vrot.slane %v3801_v20, 2  ;;  %v4034_v24 = vrot.slane %v3803_v27, 2  ;;  %v9770_v39 = vunpack.c.h.bf16 %v9761_v25  ;;  %v11467_v20 = vld [vmem:[#allocation19_spill] sm:$0xff] }
 0x2fa   : > { %v1639_v34 = vld [vmem:[#allocation2 + $0x178] sm:$0x11]  ;;  %v3115_v13 = vadd.f32 %v3051_v40, %v2877_v16  ;;  %v3494_v4 = vsel %vm2073_vm1, %v3489_v5, %v3493_v26  ;;  %v4029_v0 = vrot.slane %v3799_v45, 2  ;;  %v9776_v31 = vunpack.c.h.bf16 %v9765_v1  ;;  %v11468_v26 = vld [vmem:[#allocation20_spill] sm:$0xff] }
 0x2fb   : > { %v1640_v44 = vsel %vm7831_vm0, 0, %v1639_v34  ;;  %v3658_v50 = vadd.f32 %v3494_v4, %v3117_v14  ;;  %v4035_v48 = vsel %vm2615_vm13, %v4030_v21, %v4034_v24  ;;  %v4371_v18 = vmul.f32 %v11467_v20, %v9770_v39 }
 0x2fc   : > { %1641 = vst [vmem:[#allocation2 + $0x178] sm:$0x11] %v1640_v44  ;;  %v3656_v61 = vadd.f32 %v3490_v7, %v3115_v13  ;;  %v4031_v40 = vsel %vm2615_vm13, %v4029_v0, %v4030_v21  ;;  %v4373_v5 = vmul.f32 %v11467_v20, %v9776_v31  ;;  %v4499_v27 = vunpack.c.h.bf16 %v9772_v43 }
 0x2fd   : > { %v4199_v16 = vadd.f32 %v4035_v48, %v3658_v50  ;;  %v4578_v45 = vmul.f32 %v11468_v26, %v9770_v39  ;;  %v4580_v14 = vmul.f32 %v11468_v26, %v9776_v31  ;;  %v5040_v24 = vunpack.c.h.bf16 %v9778_v60 }
 0x2fe   : > { %v4197_v34 = vadd.f32 %v4031_v40, %v3656_v61  ;;  %v4582_v4 = vmul.f32 %v11468_v26, %v4499_v27  ;;  %v5121_v7 = vmul.f32 %v7769_v32, %v9776_v31  ;;  %v5123_v21 = vmul.f32 %v7769_v32, %v4499_v27 }
 0x2ff   : > { %v4437_v13 = vadd.f32 %v4373_v5, %v4199_v16  ;;  %v4808_v0 = vrot.slane %v4578_v45, 1  ;;  %v4809_v44 = vrot.slane %v4580_v14, 1  ;;  %v5119_v50 = vmul.f32 %v7769_v32, %v5040_v24 }
 0x300   : > { %v4435_v48 = vadd.f32 %v4371_v18, %v4197_v34  ;;  %v4813_v63 = vrot.slane %v4582_v4, 1  ;;  %v5350_v20 = vrot.slane %v5121_v7, 2  ;;  %v5354_v11 = vrot.slane %v5123_v21, 2 }
 0x301   : > { %v4810_v57 = vsel %vm2073_vm1, %v4808_v0, %v4809_v44  ;;  %v5349_v30 = vrot.slane %v5119_v50, 2  ;;  %v1792_v61 = vmul.f32 %v9462_v2, %v11382_v52  ;;  %v1794_v40 = vmul.f32 %v9468_v19, %v11382_v52 }
 0x302   : > { %v4814_v27 = vsel %vm2073_vm1, %v4809_v44, %v4813_v63  ;;  %v4976_v5 = vadd.f32 %v4810_v57, %v4435_v48  ;;  %v5355_v16 = vsel %vm2615_vm13, %v5350_v20, %v5354_v11  ;;  %v1856_v45 = vunpack.c.l.bf16 %v9708_v3 }
 0x303   : > { %v4978_v18 = vadd.f32 %v4814_v27, %v4437_v13  ;;  %v5351_v14 = vsel %vm2615_vm13, %v5349_v30, %v5350_v20  ;;  %v1935_v24 = vmul.f32 %v9462_v2, %v7664_v28  ;;  %v1937_v34 = vmul.f32 %v9468_v19, %v7664_v28 }
 0x304   : > { %v5517_v4 = vadd.f32 %v5351_v14, %v4976_v5  ;;  %v1939_v7 = vmul.f32 %v7664_v28, %v1856_v45  ;;  %v2398_v21 = vunpack.c.l.bf16 %v9727_v8  ;;  %v2479_v63 = vmul.f32 %v9468_v19, %v7655_v23 }
 0x305   : > { %v5519_v57 = vadd.f32 %v5355_v16, %v4978_v18  ;;  %v2164_v11 = vrot.slane %v1935_v24, 1  ;;  %v2165_v3 = vrot.slane %v1937_v34, 1  ;;  %v2481_v13 = vmul.f32 %v7655_v23, %v1856_v45 }
 0x306   : > { %v5592_v30 = vmul.f32 %v7775_v37, %v5517_v4  ;;  %v2170_v20 = vrot.slane %v1939_v7, 1  ;;  %v2477_v2 = vmul.f32 %v7655_v23, %v2398_v21  ;;  %v2707_v0 = vrot.slane %v2479_v63, 2 }
 0x307   : > { %v5594_v44 = vmul.f32 %v7775_v37, %v5519_v57  ;;  %v2166_v50 = vsel %vm2073_vm1, %v2164_v11, %v2165_v3  ;;  %v2712_v48 = vrot.slane %v2481_v13, 2  ;;  %v3050_v8 = vmul.f32 %v9671_v42, %v7695_v46 }
 0x308   : > { %v5667_v19 = vadd.f32 %v7779_v38, %v5592_v30  ;;  %v2171_v27 = vsel %vm2073_vm1, %v2165_v3, %v2170_v20  ;;  %v2334_v5 = vadd.f32 %v2166_v50, %v1792_v61  ;;  %v2706_v16 = vrot.slane %v2477_v2, 2 }
 0x309   : > { %v5669_v45 = vadd.f32 %v7779_v38, %v5594_v44  ;;  %v2336_v18 = vadd.f32 %v2171_v27, %v1794_v40  ;;  %v2713_v14 = vsel %vm2615_vm13, %v2707_v0, %v2712_v48  ;;  %v3052_v24 = vmul.f32 %v9674_v53, %v7695_v46 }
 0x30a   : > { %v5731_v34 = vmax.f32 %v5667_v19, 0.0  ;;  %v2708_v4 = vsel %vm2615_vm13, %v2706_v16, %v2707_v0  ;;  %v3178_v7 = vunpack.c.l.bf16 %v9739_v29  ;;  %v3257_v21 = vmul.f32 %v9671_v42, %v7723_v62 }
 0x30b   : > { %v5733_v63 = vmax.f32 %v5669_v45, 0.0  ;;  %v2876_v57 = vadd.f32 %v2708_v4, %v2334_v5  ;;  %v2878_v61 = vadd.f32 %v2713_v14, %v2336_v18  ;;  %v3259_v11 = vmul.f32 %v9674_v53, %v7723_v62 }
 0x30c   : > { %v5795_v40 = vmin.f32 %v5731_v34, 6.0  ;;  %v3261_v3 = vmul.f32 %v7723_v62, %v3178_v7  ;;  %v3485_v13 = vrot.slane %v3257_v21, 1  ;;  %v3719_v30 = vunpack.c.l.bf16 %v9745_v36 }
 0x30d   : > { %v5797_v20 = vmin.f32 %v5733_v63, 6.0  ;;  %v3114_v2 = vadd.f32 %v3050_v8, %v2876_v57  ;;  %v3116_v0 = vadd.f32 %v3052_v24, %v2878_v61  ;;  %v3486_v44 = vrot.slane %v3259_v11, 1 }
 0x30e   : > { %v3491_v29 = vrot.slane %v3261_v3, 1  ;;  %v3798_v50 = vmul.f32 %v7708_v51, %v3719_v30  ;;  %v3800_v48 = vmul.f32 %v9674_v53, %v7708_v51  ;;  %v3802_v19 = vmul.f32 %v7708_v51, %v3178_v7 }
 0x30f   : > { %v5841_v27 = vpack.c.bf16 %v5797_v20, %v5795_v40  ;;  %v3487_v5 = vsel %vm2073_vm1, %v3485_v13, %v3486_v44  ;;  %v9843_v16 = vunpack.c.l.bf16 %v9761_v25  ;;  %v9846_v36 = vunpack.c.l.bf16 %v9765_v1 }
 0x310   : > { %v3492_v8 = vsel %vm2073_vm1, %v3486_v44, %v3491_v29  ;;  %v3655_v45 = vadd.f32 %v3487_v5, %v3114_v2  ;;  %v4026_v18 = vrot.slane %v3798_v50, 2  ;;  %v4027_v14 = vrot.slane %v3800_v48, 2 }
 0x311   : > { %7105 = vmatprep.mubr.msk.bf16.mxu1 %vm5950_vm2, %v5841_v27  ;;  %v3657_v24 = vadd.f32 %v3492_v8, %v3116_v0  ;;  %v4032_v34 = vrot.slane %v3802_v19, 2  ;;  %v4370_v4 = vmul.f32 %v7744_v12, %v9843_v16  ;;  %v4372_v7 = vmul.f32 %v7744_v12, %v9846_v36  ;;  %v11469_v19 = vld [vmem:[#allocation38_spill] sm:$0xff] }
 0x312   : > { %v4028_v25 = vsel %vm2615_vm13, %v4026_v18, %v4027_v14  ;;  %v4498_v1 = vunpack.c.l.bf16 %v9772_v43  ;;  %v4577_v21 = vmul.f32 %v7750_v17, %v9843_v16  ;;  %v4579_v63 = vmul.f32 %v7750_v17, %v9846_v36 }
 0x313   : > { %v4033_v57 = vsel %vm2615_vm13, %v4027_v14, %v4032_v34  ;;  %v4196_v61 = vadd.f32 %v4028_v25, %v3655_v45  ;;  %v5039_v11 = vunpack.c.l.bf16 %v9778_v60  ;;  %v5120_v40 = vmul.f32 %v7757_v22, %v9846_v36  ;;  %v11470_v45 = vld [vmem:[#allocation39_spill] sm:$0xff]  ;;  %v11471_v34 = vld [vmem:[#allocation30_spill] sm:$0xff] }
 0x314   : > { %v4198_v3 = vadd.f32 %v4033_v57, %v3657_v24  ;;  %v4581_v13 = vmul.f32 %v7750_v17, %v4498_v1  ;;  %v4805_v30 = vrot.slane %v4577_v21, 1  ;;  %v4806_v20 = vrot.slane %v4579_v63, 1 }
 0x315   : > { %v4434_v43 = vadd.f32 %v4370_v4, %v4196_v61  ;;  %v5118_v2 = vmul.f32 %v7757_v22, %v5039_v11  ;;  %v5122_v0 = vmul.f32 %v7757_v22, %v4498_v1  ;;  %v5347_v44 = vrot.slane %v5120_v40, 2 }
 0x316   : > { %v4436_v29 = vadd.f32 %v4372_v7, %v4198_v3  ;;  %v4807_v50 = vsel %vm2073_vm1, %v4805_v30, %v4806_v20  ;;  %v4811_v48 = vrot.slane %v4581_v13, 1  ;;  %v757_v60 = vmul.f32 %v7623_v54, %v11469_v19  ;;  %v11472_v7 = vld [vmem:[#allocation32_spill] sm:$0xff] }
 0x317   : > { %v4975_v27 = vadd.f32 %v4807_v50, %v4434_v43  ;;  %v5346_v5 = vrot.slane %v5118_v2, 2  ;;  %v5352_v8 = vrot.slane %v5122_v0, 2  ;;  %v758_v18 = vmul.f32 %v7627_v55, %v11470_v45  ;;  %v11474_v2 = vld [vmem:[#allocation34_spill] sm:$0xff] }
 0x318   : > { %v4812_v14 = vsel %vm2073_vm1, %v4806_v20, %v4811_v48  ;;  %v876_v24 = vadd.f32 %v7631_v56, %v757_v60  ;;  %v759_v4 = vmul.f32 %v7623_v54, %v11471_v34  ;;  %v760_v25 = vmul.f32 %v7627_v55, %v11472_v7  ;;  %v11473_v20 = vld [vmem:[#allocation33_spill] sm:$0xff] }
 0x319   : > { %v4977_v1 = vadd.f32 %v4812_v14, %v4436_v29  ;;  %v5348_v21 = vsel %vm2615_vm13, %v5346_v5, %v5347_v44  ;;  %v5353_v63 = vsel %vm2615_vm13, %v5347_v44, %v5352_v8  ;;  %v877_v57 = vadd.f32 %v7635_v58, %v758_v18  ;;  %v11475_v14 = vld [vmem:[#allocation35_spill] sm:$0xff] }
 0x31a   : > { %v5516_v61 = vadd.f32 %v5348_v21, %v4975_v27  ;;  %v984_v11 = vmax.f32 %v876_v24, 0.0  ;;  %v878_v40 = vadd.f32 %v7631_v56, %v759_v4  ;;  %v879_v3 = vadd.f32 %v7635_v58, %v760_v25 }
 0x31b   : > { %v5518_v13 = vadd.f32 %v5353_v63, %v4977_v1  ;;  %v985_v30 = vmax.f32 %v877_v57, 0.0  ;;  %v761_v43 = vmul.f32 %v7623_v54, %v11473_v20  ;;  %v762_v0 = vmul.f32 %v7627_v55, %v11474_v2  ;;  %v9895_v1 = vld [vmem:[#allocation2 + $0x100] sm:$0x11] }
 0x31c   : > { %v5591_v29 = vmul.f32 %v7787_v47, %v5516_v61  ;;  %v1092_v50 = vmin.f32 %v984_v11, 6.0  ;;  %v986_v44 = vmax.f32 %v878_v40, 0.0  ;;  %v987_v48 = vmax.f32 %v879_v3, 0.0  ;;  %v9900_v11 = vld [vmem:[#allocation2 + $0xf0] sm:$0xee] }
 0x31d   : > { %v5593_v19 = vmul.f32 %v7787_v47, %v5518_v13  ;;  %v1093_v60 = vmin.f32 %v985_v30, 6.0  ;;  %v880_v27 = vadd.f32 %v7631_v56, %v761_v43  ;;  %v881_v5 = vadd.f32 %v7635_v58, %v762_v0 }
 0x31e   : > { %v5666_v8 = vadd.f32 %v11314_v33, %v5591_v29  ;;  %v1094_v45 = vmin.f32 %v986_v44, 6.0  ;;  %v1095_v18 = vmin.f32 %v987_v48, 6.0  ;;  %v763_v24 = vmul.f32 %v7623_v54, %v11475_v14 }
 0x31f   : > { %v5668_v34 = vadd.f32 %v11314_v33, %v5593_v19  ;;  %v7246_v4 = vpack.c.bf16 %v1093_v60, %v1092_v50  ;;  %v988_v7 = vmax.f32 %v880_v27, 0.0  ;;  %v989_v25 = vmax.f32 %v881_v5, 0.0 }
 0x320   : > { %v5730_v21 = vmax.f32 %v5666_v8, 0.0  ;;  %v7247_v63 = vpack.c.bf16 %v1095_v18, %v1094_v45  ;;  %v882_v57 = vadd.f32 %v7631_v56, %v763_v24  ;;  %v1797_v61 = vmul.f32 %v11463_v35, %v7685_v41  ;;  %v9919_v8 = vld [vmem:[#allocation2 + $0x118] sm:$0x11] }
 0x321   : > { %v5732_v40 = vmax.f32 %v5668_v34, 0.0  ;;  %1515 = vst.msk [vmem:[#allocation2 + $0x180] sm:$0xff] %vm7658_vm7, %v7246_v4  ;;  %v1096_v3 = vmin.f32 %v988_v7, 6.0  ;;  %v1097_v13 = vmin.f32 %v989_v25, 6.0  ;;  %v1799_v30 = vmul.f32 %v9595_v15, %v7685_v41 }
 0x322   : > { %v5794_v20 = vmin.f32 %v5730_v21, 6.0  ;;  %1516 = vst.msk [vmem:[#allocation2 + $0x188] sm:$0xff] %vm7658_vm7, %v7247_v63  ;;  %v990_v43 = vmax.f32 %v882_v57, 0.0  ;;  %v1859_v2 = vunpack.c.h.bf16 %v9895_v1  ;;  %v1942_v0 = vmul.f32 %v11463_v35, %v11337_v9 }
 0x323   : > { %v5796_v29 = vmin.f32 %v5732_v40, 6.0  ;;  %v7248_v50 = vpack.c.bf16 %v1097_v13, %v1096_v3  ;;  %v1944_v44 = vmul.f32 %v9595_v15, %v11337_v9  ;;  %v2401_v48 = vunpack.c.h.bf16 %v9900_v11 }
 0x324   : > { %v9914_v19 = vmin.f32 %v990_v43, 6.0  ;;  %v1946_v60 = vmul.f32 %v11337_v9, %v1859_v2  ;;  %v2177_v27 = vrot.slane %v1942_v0, 1  ;;  %v2486_v5 = vmul.f32 %v9595_v15, %v11461_v6  ;;  %v9936_v43 = vld [vmem:[#allocation2 + $0x108] sm:$0xee] }
 0x325   : > { %v5840_v45 = vpack.c.bf16 %v5796_v29, %v5794_v20  ;;  %1517 = vst.msk [vmem:[#allocation2 + $0x190] sm:$0xff] %vm7658_vm7, %v7248_v50  ;;  %v2178_v35 = vrot.slane %v1944_v44, 1  ;;  %v2484_v18 = vmul.f32 %v11461_v6, %v2401_v48  ;;  %v2488_v14 = vmul.f32 %v11461_v6, %v1859_v2  ;;  %v9942_v48 = vld [vmem:[#allocation2 + $0x120] sm:$0xff] }
 0x326   : > { %v2182_v24 = vrot.slane %v1946_v60, 1  ;;  %v2720_v34 = vrot.slane %v2486_v5, 2  ;;  %v3055_v4 = vmul.f32 %v9770_v39, %v11462_v59  ;;  %v3057_v7 = vmul.f32 %v9776_v31, %v11462_v59 }
 0x327   : > { %6104 = vmatmul.mubr.bf16.gmra.mrb[36].mxu1 %v5840_v45  ;;  %v2179_v15 = vsel %vm2073_vm1, %v2177_v27, %v2178_v35  ;;  %v2719_v25 = vrot.slane %v2484_v18, 2  ;;  %v2724_v21 = vrot.slane %v2488_v14, 2  ;;  %v3181_v63 = vunpack.c.h.bf16 %v9919_v8  ;;  %v11477_v18 = vld [vmem:[#allocation17_spill] sm:$0xff] }
 0x328   : > { %v1583_v57 = vld [vmem:[#allocation2 + $0x180] sm:$0x11]  ;;  %v2183_v40 = vsel %vm2073_vm1, %v2178_v35, %v2182_v24  ;;  %v2339_v3 = vadd.f32 %v2179_v15, %v1797_v61  ;;  %v3264_v13 = vmul.f32 %v9770_v39, %v11464_v10  ;;  %v3266_v20 = vmul.f32 %v9776_v31, %v11464_v10  ;;  %v9949_v24 = vld [vmem:[#allocation2 + $0x128] sm:$0xff] }
 0x329   : > { %v1584_v0 = vsel %vm7763_vm12, 0, %v1583_v57  ;;  %v2341_v29 = vadd.f32 %v2183_v40, %v1799_v30  ;;  %v2721_v50 = vsel %vm2615_vm13, %v2719_v25, %v2720_v34  ;;  %v2725_v44 = vsel %vm2615_vm13, %v2720_v34, %v2724_v21  ;;  %v9955_v40 = vld [vmem:[#allocation2 + $0x130] sm:$0x11] }
 0x32a   : > { %1585 = vst [vmem:[#allocation2 + $0x180] sm:$0x11] %v1584_v0  ;;  %v2881_v61 = vadd.f32 %v2721_v50, %v2339_v3  ;;  %v3268_v60 = vmul.f32 %v11464_v10, %v3181_v63  ;;  %v3498_v27 = vrot.slane %v3264_v13, 1  ;;  %v3499_v5 = vrot.slane %v3266_v20, 1  ;;  %v11480_v10 = vld [vmem:[#allocation19_spill] sm:$0xff] }
 0x32b   : > { %v2883_v45 = vadd.f32 %v2725_v44, %v2341_v29  ;;  %v3722_v35 = vunpack.c.h.bf16 %v9936_v43  ;;  %v3807_v14 = vmul.f32 %v9776_v31, %v11477_v18  ;;  %v3809_v30 = vmul.f32 %v11477_v18, %v3181_v63 }
 0x32c   : > { %v1642_v15 = vld [vmem:[#allocation2 + $0x190] sm:$0x11]  ;;  %v3119_v34 = vadd.f32 %v3055_v4, %v2881_v61  ;;  %v3500_v25 = vsel %vm2073_vm1, %v3498_v27, %v3499_v5  ;;  %v3503_v21 = vrot.slane %v3268_v60, 1  ;;  %v9953_v57 = vunpack.c.h.bf16 %v9942_v48  ;;  %v9964_v61 = vld [vmem:[#allocation2 + $0x120] sm:$0xee] }
 0x32d   : > { %v1643_v13 = vsel %vm7831_vm0, 0, %v1642_v15  ;;  %v3121_v20 = vadd.f32 %v3057_v7, %v2883_v45  ;;  %v3805_v0 = vmul.f32 %v11477_v18, %v3722_v35  ;;  %v4040_v29 = vrot.slane %v3807_v14, 2 }
 0x32e   : > { %11478 = vst [vmem:[#allocation26_spill] sm:$0xff] %v9953_v57  ;;  %1644 = vst [vmem:[#allocation2 + $0x190] sm:$0x11] %v1643_v13  ;;  %v3504_v63 = vsel %vm2073_vm1, %v3499_v5, %v3503_v21  ;;  %v3660_v50 = vadd.f32 %v3500_v25, %v3119_v34  ;;  %v4044_v4 = vrot.slane %v3809_v30, 2  ;;  %v9962_v44 = vunpack.c.h.bf16 %v9949_v24 }
 0x32f   : > { %v3662_v60 = vadd.f32 %v3504_v63, %v3121_v20  ;;  %v4039_v27 = vrot.slane %v3805_v0, 2  ;;  %v4375_v3 = vmul.f32 %v11480_v10, %v9953_v57  ;;  %v4501_v7 = vunpack.c.h.bf16 %v9955_v40 }
 0x330   : > { %v4045_v45 = vsel %vm2615_vm13, %v4040_v29, %v4044_v4  ;;  %v4377_v35 = vmul.f32 %v11480_v10, %v9962_v44  ;;  %v4584_v5 = vmul.f32 %v11468_v26, %v9953_v57  ;;  %v4586_v14 = vmul.f32 %v11468_v26, %v9962_v44 }
 0x331   : > { %v4041_v30 = vsel %vm2615_vm13, %v4039_v27, %v4040_v29  ;;  %v4203_v15 = vadd.f32 %v4045_v45, %v3662_v60  ;;  %v4588_v34 = vmul.f32 %v11468_v26, %v4501_v7  ;;  %v5042_v25 = vunpack.c.h.bf16 %v9964_v61  ;;  %v11481_v27 = vld [vmem:[#allocation22_spill] sm:$0xff] }
 0x332   : > { %v4201_v21 = vadd.f32 %v4041_v30, %v3660_v50  ;;  %v4818_v13 = vrot.slane %v4584_v5, 1  ;;  %v4819_v20 = vrot.slane %v4586_v14, 1  ;;  %v5127_v0 = vmul.f32 %v7769_v32, %v9962_v44 }
 0x333   : > { %v4441_v63 = vadd.f32 %v4377_v35, %v4203_v15  ;;  %v4823_v4 = vrot.slane %v4588_v34, 1  ;;  %v5125_v10 = vmul.f32 %v7769_v32, %v5042_v25  ;;  %v5129_v18 = vmul.f32 %v7769_v32, %v4501_v7 }
 0x334   : > { %v4439_v57 = vadd.f32 %v4375_v3, %v4201_v21  ;;  %v4820_v29 = vsel %vm2073_vm1, %v4818_v13, %v4819_v20  ;;  %v5360_v60 = vrot.slane %v5127_v0, 2  ;;  %v764_v45 = vmul.f32 %v7627_v55, %v11481_v27 }
 0x335   : > { %v4824_v50 = vsel %vm2073_vm1, %v4819_v20, %v4823_v4  ;;  %v5359_v5 = vrot.slane %v5125_v10, 2  ;;  %v5364_v14 = vrot.slane %v5129_v18, 2  ;;  %v1796_v30 = vmul.f32 %v9671_v42, %v11382_v52 }
 0x336   : > { %v4980_v35 = vadd.f32 %v4820_v29, %v4439_v57  ;;  %v4982_v15 = vadd.f32 %v4824_v50, %v4441_v63  ;;  %v883_v34 = vadd.f32 %v7635_v58, %v764_v45  ;;  %v1798_v3 = vmul.f32 %v9674_v53, %v11382_v52 }
 0x337   : > { %v5361_v7 = vsel %vm2615_vm13, %v5359_v5, %v5360_v60  ;;  %v5365_v25 = vsel %vm2615_vm13, %v5360_v60, %v5364_v14  ;;  %v1858_v21 = vunpack.c.l.bf16 %v9895_v1  ;;  %v1941_v10 = vmul.f32 %v9671_v42, %v7664_v28 }
 0x338   : > { %v5521_v18 = vadd.f32 %v5361_v7, %v4980_v35  ;;  %v5523_v13 = vadd.f32 %v5365_v25, %v4982_v15  ;;  %v991_v20 = vmax.f32 %v883_v34, 0.0  ;;  %v1943_v57 = vmul.f32 %v9674_v53, %v7664_v28 }
 0x339   : > { %v1945_v0 = vmul.f32 %v7664_v28, %v1858_v21  ;;  %v2174_v63 = vrot.slane %v1941_v10, 1  ;;  %v2400_v4 = vunpack.c.l.bf16 %v9900_v11  ;;  %v2485_v29 = vmul.f32 %v9674_v53, %v7655_v23 }
 0x33a   : > { %v5596_v60 = vmul.f32 %v7775_v37, %v5521_v18  ;;  %v5598_v1 = vmul.f32 %v7775_v37, %v5523_v13  ;;  %v1099_v27 = vmin.f32 %v991_v20, 6.0  ;;  %v2175_v42 = vrot.slane %v1943_v57, 1 }
 0x33b   : > { %v2180_v45 = vrot.slane %v1945_v0, 1  ;;  %v2483_v50 = vmul.f32 %v7655_v23, %v2400_v4  ;;  %v2487_v5 = vmul.f32 %v7655_v23, %v1858_v21  ;;  %v2717_v14 = vrot.slane %v2485_v29, 2 }
 0x33c   : > { %v5671_v35 = vadd.f32 %v7779_v38, %v5596_v60  ;;  %v5673_v15 = vadd.f32 %v7779_v38, %v5598_v1  ;;  %v7249_v11 = vpack.c.bf16 %v1099_v27, %v9914_v19  ;;  %v2176_v53 = vsel %vm2073_vm1, %v2174_v63, %v2175_v42 }
 0x33d   : > { %v2181_v34 = vsel %vm2073_vm1, %v2175_v42, %v2180_v45  ;;  %v2338_v7 = vadd.f32 %v2176_v53, %v1796_v30  ;;  %v2716_v25 = vrot.slane %v2483_v50, 2  ;;  %v2722_v10 = vrot.slane %v2487_v5, 2 }
 0x33e   : > { %v5735_v18 = vmax.f32 %v5671_v35, 0.0  ;;  %v5737_v13 = vmax.f32 %v5673_v15, 0.0  ;;  %1518 = vst.msk [vmem:[#allocation2 + $0x198] sm:$0xff] %vm7658_vm7, %v7249_v11  ;;  %v2340_v21 = vadd.f32 %v2181_v34, %v1798_v3  ;;  %v3054_v20 = vmul.f32 %v9843_v16, %v7695_v46 }
 0x33f   : > { %v11482_v57 = vmov 0   ;;  %v2718_v19 = vsel %vm2615_vm13, %v2716_v25, %v2717_v14  ;;  %v2723_v0 = vsel %vm2615_vm13, %v2717_v14, %v2722_v10  ;;  %v3056_v30 = vmul.f32 %v9846_v36, %v7695_v46 }
 0x340   : > { %1525 = vst.msk [vmem:[#allocation2 + $0x198] sm:$0xff] %vm7658_vm7, %v11482_v57  ;;  %v3180_v63 = vunpack.c.l.bf16 %v9919_v8  ;;  %v5799_v4 = vmin.f32 %v5735_v18, 6.0  ;;  %v5801_v29 = vmin.f32 %v5737_v13, 6.0  ;;  %v2880_v60 = vadd.f32 %v2718_v19, %v2338_v7 }
 0x341   : > { %v2882_v3 = vadd.f32 %v2723_v0, %v2340_v21  ;;  %v3263_v1 = vmul.f32 %v9843_v16, %v7723_v62  ;;  %v3265_v27 = vmul.f32 %v9846_v36, %v7723_v62  ;;  %v3721_v45 = vunpack.c.l.bf16 %v9936_v43 }
 0x342   : > { %v3267_v42 = vmul.f32 %v7723_v62, %v3180_v63  ;;  %v5843_v50 = vpack.c.bf16 %v5801_v29, %v5799_v4  ;;  %v3118_v5 = vadd.f32 %v3054_v20, %v2880_v60  ;;  %v3806_v8 = vmul.f32 %v9846_v36, %v7708_v51 }
 0x343   : > { %v3120_v14 = vadd.f32 %v3056_v30, %v2882_v3  ;;  %v3495_v35 = vrot.slane %v3263_v1, 1  ;;  %v3496_v15 = vrot.slane %v3265_v27, 1  ;;  %v3804_v53 = vmul.f32 %v7708_v51, %v3721_v45 }
 0x344   : > { %v3501_v11 = vrot.slane %v3267_v42, 1  ;;  %7106 = vmatprep.mubr.msk.bf16.mxu1 %vm5950_vm2, %v5843_v50  ;;  %v3808_v34 = vmul.f32 %v7708_v51, %v3180_v63  ;;  %v4037_v7 = vrot.slane %v3806_v8, 2  ;;  %v10036_v25 = vunpack.c.l.bf16 %v9942_v48 }
 0x345   : > { %v10039_v43 = vunpack.c.l.bf16 %v9949_v24  ;;  %v3497_v10 = vsel %vm2073_vm1, %v3495_v35, %v3496_v15  ;;  %v4036_v13 = vrot.slane %v3804_v53, 2  ;;  %v4500_v21 = vunpack.c.l.bf16 %v9955_v40  ;;  %v11483_v53 = vld [vmem:[#allocation12_spill] sm:$0xff] }
 0x346   : > { %v3502_v18 = vsel %vm2073_vm1, %v3496_v15, %v3501_v11  ;;  %v3659_v19 = vadd.f32 %v3497_v10, %v3118_v5  ;;  %v4042_v30 = vrot.slane %v3808_v34, 2  ;;  %v4374_v63 = vmul.f32 %v7744_v12, %v10036_v25 }
 0x347   : > { %v1586_v20 = vld [vmem:[#allocation2 + $0x198] sm:$0x11]  ;;  %v3661_v0 = vadd.f32 %v3502_v18, %v3120_v14  ;;  %v4038_v24 = vsel %vm2615_vm13, %v4036_v13, %v4037_v7  ;;  %v4376_v4 = vmul.f32 %v7744_v12, %v10039_v43  ;;  %v4583_v29 = vmul.f32 %v7750_v17, %v10036_v25 }
 0x348   : > { %v1587_v48 = vsel %vm7763_vm12, 0, %v1586_v20  ;;  %v4043_v40 = vsel %vm2615_vm13, %v4037_v7, %v4042_v30  ;;  %v4200_v60 = vadd.f32 %v4038_v24, %v3659_v19  ;;  %v4585_v3 = vmul.f32 %v7750_v17, %v10039_v43  ;;  %v11484_v18 = vld [vmem:[#allocation15_spill] sm:$0xff] }
 0x349   : > { %1588 = vst [vmem:[#allocation2 + $0x198] sm:$0x11] %v1587_v48  ;;  %v4587_v1 = vmul.f32 %v7750_v17, %v4500_v21  ;;  %v4202_v27 = vadd.f32 %v4043_v40, %v3661_v0  ;;  %v4815_v2 = vrot.slane %v4583_v29, 1  ;;  %v5041_v42 = vunpack.c.l.bf16 %v9964_v61  ;;  %v11485_v48 = vld [vmem:[#allocation14_spill] sm:$0xff]  ;;  %v10075_v40 = vld [vmem:[#allocation2 + $0x118] sm:$0x11] }
 0x34a   : > { %v5126_v45 = vmul.f32 %v7757_v22, %v10039_v43  ;;  %v4438_v50 = vadd.f32 %v4374_v63, %v4200_v60  ;;  %v4816_v5 = vrot.slane %v4585_v3, 1  ;;  %v5128_v8 = vmul.f32 %v7757_v22, %v4500_v21 }
 0x34b   : > { %v4821_v14 = vrot.slane %v4587_v1, 1  ;;  %v4440_v35 = vadd.f32 %v4376_v4, %v4202_v27  ;;  %v5124_v15 = vmul.f32 %v7757_v22, %v5041_v42  ;;  %v765_v34 = vmul.f32 %v7623_v54, %v11483_v53  ;;  %v11486_v4 = vld [vmem:[#allocation24_spill] sm:$0xff] }
 0x34c   : > { %v5357_v11 = vrot.slane %v5126_v45, 2  ;;  %v4817_v7 = vsel %vm2073_vm1, %v4815_v2, %v4816_v5  ;;  %v5362_v61 = vrot.slane %v5128_v8, 2  ;;  %v766_v13 = vmul.f32 %v7627_v55, %v11484_v18 }
 0x34d   : > { %v4822_v10 = vsel %vm2073_vm1, %v4816_v5, %v4821_v14  ;;  %v4979_v20 = vadd.f32 %v4817_v7, %v4438_v50  ;;  %v5356_v0 = vrot.slane %v5124_v15, 2  ;;  %v884_v21 = vadd.f32 %v7631_v56, %v765_v34  ;;  %v10093_v7 = vld [vmem:[#allocation2 + $0x108] sm:$0xee] }
 0x34e   : > { %v4981_v19 = vadd.f32 %v4822_v10, %v4440_v35  ;;  %v5363_v30 = vsel %vm2615_vm13, %v5357_v11, %v5362_v61  ;;  %v885_v63 = vadd.f32 %v7635_v58, %v766_v13  ;;  %v767_v24 = vmul.f32 %v7623_v54, %v11485_v48 }
 0x34f   : > { %v768_v29 = vmul.f32 %v7627_v55, %v11486_v4  ;;  %v5358_v60 = vsel %vm2615_vm13, %v5356_v0, %v5357_v11  ;;  %v992_v1 = vmax.f32 %v884_v21, 0.0  ;;  %v1801_v27 = vmul.f32 %v9770_v39, %v7685_v41 }
 0x350   : > { %v5522_v3 = vadd.f32 %v5363_v30, %v4981_v19  ;;  %v5520_v2 = vadd.f32 %v5358_v60, %v4979_v20  ;;  %v993_v42 = vmax.f32 %v885_v63, 0.0  ;;  %v886_v45 = vadd.f32 %v7631_v56, %v767_v24 }
 0x351   : > { %v887_v50 = vadd.f32 %v7635_v58, %v768_v29  ;;  %v1100_v5 = vmin.f32 %v992_v1, 6.0  ;;  %v1803_v55 = vmul.f32 %v9776_v31, %v7685_v41  ;;  %v1861_v14 = vunpack.c.h.bf16 %v10075_v40 }
 0x352   : > { %v5597_v54 = vmul.f32 %v7787_v47, %v5522_v3  ;;  %v5595_v8 = vmul.f32 %v7787_v47, %v5520_v2  ;;  %v1101_v35 = vmin.f32 %v993_v42, 6.0  ;;  %v994_v15 = vmax.f32 %v886_v45, 0.0  ;;  %v10107_v3 = vld [vmem:[#allocation2 + $0x130] sm:$0x11]  ;;  %v10112_v45 = vld [vmem:[#allocation2 + $0x120] sm:$0xee] }
 0x353   : > { %v995_v11 = vmax.f32 %v887_v50, 0.0  ;;  %v1948_v56 = vmul.f32 %v9770_v39, %v11337_v9  ;;  %v1950_v58 = vmul.f32 %v9776_v31, %v11337_v9  ;;  %v1952_v34 = vmul.f32 %v11337_v9, %v1861_v14 }
 0x354   : > { %v5672_v53 = vadd.f32 %v11314_v33, %v5597_v54  ;;  %v5670_v10 = vadd.f32 %v11314_v33, %v5595_v8  ;;  %v7250_v61 = vpack.c.bf16 %v1101_v35, %v1100_v5  ;;  %v1102_v18 = vmin.f32 %v994_v15, 6.0  ;;  %v11487_v5 = vld [vmem:[#allocation26_spill] sm:$0xff] }
 0x355   : > { %v1103_v13 = vmin.f32 %v995_v11, 6.0  ;;  %v2187_v19 = vrot.slane %v1948_v56, 1  ;;  %v2188_v0 = vrot.slane %v1950_v58, 1  ;;  %v2192_v21 = vrot.slane %v1952_v34, 1  ;;  %v11489_v56 = vld [vmem:[#allocation17_spill] sm:$0xff]  ;;  %v10130_v34 = vld [vmem:[#allocation2 + $0x138] sm:$0xff] }
 0x356   : > { %v5736_v20 = vmax.f32 %v5672_v53, 0.0  ;;  %v5734_v30 = vmax.f32 %v5670_v10, 0.0  ;;  %1519 = vst.msk [vmem:[#allocation2 + $0x1a0] sm:$0xff] %vm7658_vm7, %v7250_v61  ;;  %v2403_v63 = vunpack.c.h.bf16 %v10093_v7  ;;  %v2492_v48 = vmul.f32 %v9776_v31, %v11461_v6 }
 0x357   : > { %v7251_v39 = vpack.c.bf16 %v1103_v13, %v1102_v18  ;;  %1526 = vst.msk [vmem:[#allocation2 + $0x1a0] sm:$0xff] %vm7658_vm7, %v11482_v57  ;;  %v2189_v4 = vsel %vm2073_vm1, %v2187_v19, %v2188_v0  ;;  %v2193_v29 = vsel %vm2073_vm1, %v2188_v0, %v2192_v21  ;;  %v2494_v60 = vmul.f32 %v11461_v6, %v1861_v14 }
 0x358   : > { %v5800_v24 = vmin.f32 %v5736_v20, 6.0  ;;  %v5798_v1 = vmin.f32 %v5734_v30, 6.0  ;;  %v2343_v2 = vadd.f32 %v2189_v4, %v1801_v27  ;;  %v2345_v42 = vadd.f32 %v2193_v29, %v1803_v55  ;;  %v11488_v55 = vld [vmem:[#allocation18_spill] sm:$0xff]  ;;  %v10136_v30 = vld [vmem:[#allocation2 + $0x140] sm:$0xff] }
 0x359   : > { %1520 = vst.msk [vmem:[#allocation2 + $0x1a8] sm:$0xff] %vm7658_vm7, %v7251_v39  ;;  %v2490_v31 = vmul.f32 %v11461_v6, %v2403_v63  ;;  %v2730_v50 = vrot.slane %v2492_v48, 2  ;;  %v2734_v54 = vrot.slane %v2494_v60, 2  ;;  %v3059_v14 = vmul.f32 %v11487_v5, %v11462_v59  ;;  %v10138_v39 = vld [vmem:[#allocation2 + $0x148] sm:$0x11] }
 0x35a   : > { %1527 = vst.msk [vmem:[#allocation2 + $0x1a8] sm:$0xff] %vm7658_vm7, %v11482_v57  ;;  %v3061_v8 = vmul.f32 %v9962_v44, %v11462_v59  ;;  %v5842_v35 = vpack.c.bf16 %v5800_v24, %v5798_v1  ;;  %v3183_v27 = vunpack.c.h.bf16 %v10107_v3  ;;  %v3270_v11 = vmul.f32 %v11487_v5, %v11488_v55 }
 0x35b   : > { %v2729_v15 = vrot.slane %v2490_v31, 2  ;;  %v2735_v53 = vsel %vm2615_vm13, %v2730_v50, %v2734_v54  ;;  %v3272_v49 = vmul.f32 %v9962_v44, %v11488_v55  ;;  %v3724_v57 = vunpack.c.h.bf16 %v10112_v45  ;;  %v11490_v54 = vld [vmem:[#allocation19_spill] sm:$0xff] }
 0x35c   : > { %v3813_v58 = vmul.f32 %v9962_v44, %v11489_v56  ;;  %6112 = vmatmul.mubr.bf16.gmra.mrb[40].mxu1 %v5842_v35  ;;  %v2887_v61 = vadd.f32 %v2735_v53, %v2345_v42  ;;  %v3274_v18 = vmul.f32 %v11488_v55, %v3183_v27  ;;  %v3508_v13 = vrot.slane %v3270_v11, 1 }
 0x35d   : > { %v2731_v10 = vsel %vm2615_vm13, %v2729_v15, %v2730_v50  ;;  %v3509_v19 = vrot.slane %v3272_v49, 1  ;;  %v3811_v0 = vmul.f32 %v11489_v56, %v3724_v57  ;;  %v3815_v21 = vmul.f32 %v11489_v56, %v3183_v27  ;;  %v10151_v15 = vld [vmem:[#allocation2 + $0x138] sm:$0xee] }
 0x35e   : > { %v2885_v20 = vadd.f32 %v2731_v10, %v2343_v2  ;;  %v3125_v63 = vadd.f32 %v3061_v8, %v2887_v61  ;;  %v3513_v48 = vrot.slane %v3274_v18, 1  ;;  %v4050_v24 = vrot.slane %v3813_v58, 2 }
 0x35f   : > { %v10141_v4 = vunpack.c.h.bf16 %v10130_v34  ;;  %v3510_v60 = vsel %vm2073_vm1, %v3508_v13, %v3509_v19  ;;  %v4049_v1 = vrot.slane %v3811_v0, 2  ;;  %v4054_v2 = vrot.slane %v3815_v21, 2 }
 0x360   : > { %v3123_v29 = vadd.f32 %v3059_v14, %v2885_v20  ;;  %v3514_v31 = vsel %vm2073_vm1, %v3509_v19, %v3513_v48  ;;  %v10146_v50 = vunpack.c.h.bf16 %v10136_v30  ;;  %v4503_v8 = vunpack.c.h.bf16 %v10138_v39 }
 0x361   : > { %v1645_v42 = vld [vmem:[#allocation2 + $0x1a8] sm:$0x11]  ;;  %v4379_v35 = vmul.f32 %v11490_v54, %v10141_v4  ;;  %v3666_v53 = vadd.f32 %v3514_v31, %v3125_v63  ;;  %v4051_v49 = vsel %vm2615_vm13, %v4049_v1, %v4050_v24  ;;  %v4055_v57 = vsel %vm2615_vm13, %v4050_v24, %v4054_v2 }
 0x362   : > { %v1646_v14 = vsel %vm7831_vm0, 0, %v1645_v42  ;;  %v3664_v11 = vadd.f32 %v3510_v60, %v3123_v29  ;;  %v4381_v58 = vmul.f32 %v11490_v54, %v10146_v50  ;;  %v4590_v10 = vmul.f32 %v11468_v26, %v10141_v4 }
 0x363   : > { %1647 = vst [vmem:[#allocation2 + $0x1a8] sm:$0x11] %v1646_v14  ;;  %v4592_v61 = vmul.f32 %v11468_v26, %v10146_v50  ;;  %v4207_v13 = vadd.f32 %v4055_v57, %v3666_v53  ;;  %v4594_v20 = vmul.f32 %v11468_v26, %v4503_v8  ;;  %v5044_v19 = vunpack.c.h.bf16 %v10151_v15 }
 0x364   : > { %v4205_v18 = vadd.f32 %v4051_v49, %v3664_v11  ;;  %v4828_v0 = vrot.slane %v4590_v10, 1  ;;  %v5133_v63 = vmul.f32 %v7769_v32, %v10146_v50  ;;  %v5135_v48 = vmul.f32 %v7769_v32, %v4503_v8 }
 0x365   : > { %v4829_v21 = vrot.slane %v4592_v61, 1  ;;  %v4445_v29 = vadd.f32 %v4381_v58, %v4207_v13  ;;  %v4833_v60 = vrot.slane %v4594_v20, 1  ;;  %v5131_v1 = vmul.f32 %v7769_v32, %v5044_v19 }
 0x366   : > { %v4443_v24 = vadd.f32 %v4379_v35, %v4205_v18  ;;  %v5370_v42 = vrot.slane %v5133_v63, 2  ;;  %v5374_v31 = vrot.slane %v5135_v48, 2  ;;  %v1800_v27 = vmul.f32 %v9843_v16, %v11382_v52 }
 0x367   : > { %v4830_v2 = vsel %vm2073_vm1, %v4828_v0, %v4829_v21  ;;  %v4834_v14 = vsel %vm2073_vm1, %v4829_v21, %v4833_v60  ;;  %v5369_v53 = vrot.slane %v5131_v1, 2  ;;  %v1802_v49 = vmul.f32 %v9846_v36, %v11382_v52 }
 0x368   : > { %v4984_v11 = vadd.f32 %v4830_v2, %v4443_v24  ;;  %v4986_v8 = vadd.f32 %v4834_v14, %v4445_v29  ;;  %v5375_v35 = vsel %vm2615_vm13, %v5370_v42, %v5374_v31  ;;  %v1860_v57 = vunpack.c.l.bf16 %v10075_v40 }
 0x369   : > { %v1947_v58 = vmul.f32 %v9843_v16, %v7664_v28  ;;  %v5371_v10 = vsel %vm2615_vm13, %v5369_v53, %v5370_v42  ;;  %v1949_v61 = vmul.f32 %v9846_v36, %v7664_v28  ;;  %v2402_v18 = vunpack.c.l.bf16 %v10093_v7 }
 0x36a   : > { %v2491_v13 = vmul.f32 %v9846_v36, %v7655_v23  ;;  %v5525_v20 = vadd.f32 %v5371_v10, %v4984_v11  ;;  %v5527_v19 = vadd.f32 %v5375_v35, %v4986_v8  ;;  %v1951_v0 = vmul.f32 %v7664_v28, %v1860_v57 }
 0x36b   : > { %v2184_v21 = vrot.slane %v1947_v58, 1  ;;  %v2185_v63 = vrot.slane %v1949_v61, 1  ;;  %v2489_v40 = vmul.f32 %v7655_v23, %v2402_v18  ;;  %v2493_v16 = vmul.f32 %v7655_v23, %v1860_v57 }
 0x36c   : > { %v2727_v48 = vrot.slane %v2491_v13, 2  ;;  %v5600_v24 = vmul.f32 %v7775_v37, %v5525_v20  ;;  %v5602_v29 = vmul.f32 %v7775_v37, %v5527_v19  ;;  %v2190_v60 = vrot.slane %v1951_v0, 1 }
 0x36d   : > { %v3058_v7 = vmul.f32 %v10036_v25, %v7695_v46  ;;  %v2186_v36 = vsel %vm2073_vm1, %v2184_v21, %v2185_v63  ;;  %v2726_v1 = vrot.slane %v2489_v40, 2  ;;  %v2732_v2 = vrot.slane %v2493_v16, 2 }
 0x36e   : > { %v3060_v42 = vmul.f32 %v10039_v43, %v7695_v46  ;;  %v5675_v31 = vadd.f32 %v7779_v38, %v5600_v24  ;;  %v5677_v14 = vadd.f32 %v7779_v38, %v5602_v29  ;;  %v2191_v11 = vsel %vm2073_vm1, %v2185_v63, %v2190_v60 }
 0x36f   : > { %v2342_v53 = vadd.f32 %v2186_v36, %v1800_v27  ;;  %v2344_v8 = vadd.f32 %v2191_v11, %v1802_v49  ;;  %v2728_v35 = vsel %vm2615_vm13, %v2726_v1, %v2727_v48  ;;  %v2733_v57 = vsel %vm2615_vm13, %v2727_v48, %v2732_v2 }
 0x370   : > { %v3182_v58 = vunpack.c.l.bf16 %v10107_v3  ;;  %v5739_v10 = vmax.f32 %v5675_v31, 0.0  ;;  %v5741_v61 = vmax.f32 %v5677_v14, 0.0  ;;  %v3269_v13 = vmul.f32 %v10036_v25, %v7723_v62 }
 0x371   : > { %v2884_v18 = vadd.f32 %v2728_v35, %v2342_v53  ;;  %v2886_v20 = vadd.f32 %v2733_v57, %v2344_v8  ;;  %v3271_v19 = vmul.f32 %v10039_v43, %v7723_v62  ;;  %v3723_v27 = vunpack.c.l.bf16 %v10112_v45 }
 0x372   : > { %v3273_v0 = vmul.f32 %v7723_v62, %v3182_v58  ;;  %v5803_v49 = vmin.f32 %v5739_v10, 6.0  ;;  %v5805_v21 = vmin.f32 %v5741_v61, 6.0  ;;  %v3505_v40 = vrot.slane %v3269_v13, 1 }
 0x373   : > { %v3122_v63 = vadd.f32 %v3058_v7, %v2884_v18  ;;  %v3124_v16 = vadd.f32 %v3060_v42, %v2886_v20  ;;  %v3506_v3 = vrot.slane %v3271_v19, 1  ;;  %v3810_v24 = vmul.f32 %v7708_v51, %v3723_v27 }
 0x374   : > { %v3511_v48 = vrot.slane %v3273_v0, 1  ;;  %v5845_v29 = vpack.c.bf16 %v5805_v21, %v5803_v49  ;;  %v3812_v60 = vmul.f32 %v10039_v43, %v7708_v51  ;;  %v3814_v36 = vmul.f32 %v7708_v51, %v3182_v58  ;;  %v10237_v21 = vld [vmem:[#allocation2 + $0x130] sm:$0x11] }
 0x375   : > { %v10212_v1 = vunpack.c.l.bf16 %v10130_v34  ;;  %v3507_v45 = vsel %vm2073_vm1, %v3505_v40, %v3506_v3  ;;  %v4046_v7 = vrot.slane %v3810_v24, 2  ;;  %v10217_v42 = vunpack.c.l.bf16 %v10136_v30 }
 0x376   : > { %v3512_v2 = vsel %vm2073_vm1, %v3506_v3, %v3511_v48  ;;  %7107 = vmatprep.mubr.msk.bf16.mxu1 %vm5950_vm2, %v5845_v29  ;;  %v3663_v31 = vadd.f32 %v3507_v45, %v3122_v63  ;;  %v4047_v11 = vrot.slane %v3812_v60, 2  ;;  %v4052_v53 = vrot.slane %v3814_v36, 2  ;;  %v10242_v60 = vld [vmem:[#allocation2 + $0x120] sm:$0xee] }
 0x377   : > { %v3665_v14 = vadd.f32 %v3512_v2, %v3124_v16  ;;  %v4378_v8 = vmul.f32 %v7744_v12, %v10212_v1  ;;  %v4380_v34 = vmul.f32 %v7744_v12, %v10217_v42  ;;  %v4502_v35 = vunpack.c.l.bf16 %v10138_v39 }
 0x378   : > { %v4589_v57 = vmul.f32 %v7750_v17, %v10212_v1  ;;  %v4048_v30 = vsel %vm2615_vm13, %v4046_v7, %v4047_v11  ;;  %v4053_v58 = vsel %vm2615_vm13, %v4047_v11, %v4052_v53  ;;  %v4591_v10 = vmul.f32 %v7750_v17, %v10217_v42 }
 0x379   : > { %v5043_v61 = vunpack.c.l.bf16 %v10151_v15  ;;  %v4204_v18 = vadd.f32 %v4048_v30, %v3663_v31  ;;  %v4206_v13 = vadd.f32 %v4053_v58, %v3665_v14  ;;  %v4593_v20 = vmul.f32 %v7750_v17, %v4502_v35 }
 0x37a   : > { %v4825_v19 = vrot.slane %v4589_v57, 1  ;;  %v4826_v0 = vrot.slane %v4591_v10, 1  ;;  %v5132_v27 = vmul.f32 %v7757_v22, %v10217_v42  ;;  %v5134_v49 = vmul.f32 %v7757_v22, %v4502_v35 }
 0x37b   : > { %v5130_v39 = vmul.f32 %v7757_v22, %v5043_v61  ;;  %v4442_v63 = vadd.f32 %v4378_v8, %v4204_v18  ;;  %v4444_v40 = vadd.f32 %v4380_v34, %v4206_v13  ;;  %v4831_v16 = vrot.slane %v4593_v20, 1 }
 0x37c   : > { %v1805_v15 = vmul.f32 %v11487_v5, %v7685_v41  ;;  %v4827_v3 = vsel %vm2073_vm1, %v4825_v19, %v4826_v0  ;;  %v5367_v24 = vrot.slane %v5132_v27, 2  ;;  %v5372_v29 = vrot.slane %v5134_v49, 2  ;;  %v10264_v49 = vld [vmem:[#allocation2 + $0x148] sm:$0x11] }
 0x37d   : > { %v5366_v48 = vrot.slane %v5130_v39, 2  ;;  %v4832_v36 = vsel %vm2073_vm1, %v4826_v0, %v4831_v16  ;;  %v4983_v45 = vadd.f32 %v4827_v3, %v4442_v63  ;;  %v1807_v2 = vmul.f32 %v9962_v44, %v7685_v41 }
 0x37e   : > { %v1863_v7 = vunpack.c.h.bf16 %v10237_v21  ;;  %v4985_v31 = vadd.f32 %v4832_v36, %v4444_v40  ;;  %v5373_v11 = vsel %vm2615_vm13, %v5367_v24, %v5372_v29  ;;  %v1954_v53 = vmul.f32 %v11487_v5, %v11337_v9  ;;  %v10271_v36 = vld [vmem:[#allocation2 + $0x138] sm:$0xee] }
 0x37f   : > { %v5368_v14 = vsel %vm2615_vm13, %v5366_v48, %v5367_v24  ;;  %v1956_v34 = vmul.f32 %v9962_v44, %v11337_v9  ;;  %v2405_v57 = vunpack.c.h.bf16 %v10242_v60  ;;  %v2498_v10 = vmul.f32 %v9962_v44, %v11461_v6 }
 0x380   : > { %v5524_v8 = vadd.f32 %v5368_v14, %v4983_v45  ;;  %v1958_v35 = vmul.f32 %v11337_v9, %v1863_v7  ;;  %v5526_v30 = vadd.f32 %v5373_v11, %v4985_v31  ;;  %v2197_v58 = vrot.slane %v1954_v53, 1 }
 0x381   : > { %v2500_v61 = vmul.f32 %v11461_v6, %v1863_v7  ;;  %v2198_v13 = vrot.slane %v1956_v34, 1  ;;  %v2496_v5 = vmul.f32 %v11461_v6, %v2405_v57  ;;  %v2740_v0 = vrot.slane %v2498_v10, 2 }
 0x382   : > { %v5599_v18 = vmul.f32 %v7787_v47, %v5524_v8  ;;  %v2202_v20 = vrot.slane %v1958_v35, 1  ;;  %v5601_v19 = vmul.f32 %v7787_v47, %v5526_v30  ;;  %v3063_v27 = vmul.f32 %v10141_v4, %v11462_v59  ;;  %v10283_v30 = vld [vmem:[#allocation2 + $0x150] sm:$0xff] }
 0x383   : > { %v2744_v39 = vrot.slane %v2500_v61, 2  ;;  %v2199_v44 = vsel %vm2073_vm1, %v2197_v58, %v2198_v13  ;;  %v2739_v16 = vrot.slane %v2496_v5, 2  ;;  %v3065_v31 = vmul.f32 %v10146_v50, %v11462_v59  ;;  %v10285_v58 = vld [vmem:[#allocation2 + $0x158] sm:$0xff] }
 0x384   : > { %v5674_v63 = vadd.f32 %v11314_v33, %v5599_v18  ;;  %v2203_v40 = vsel %vm2073_vm1, %v2198_v13, %v2202_v20  ;;  %v5676_v3 = vadd.f32 %v11314_v33, %v5601_v19  ;;  %v2347_v48 = vadd.f32 %v2199_v44, %v1805_v15 }
 0x385   : > { %v2349_v24 = vadd.f32 %v2203_v40, %v1807_v2  ;;  %v2745_v29 = vsel %vm2615_vm13, %v2740_v0, %v2744_v39  ;;  %v2741_v7 = vsel %vm2615_vm13, %v2739_v16, %v2740_v0  ;;  %v3185_v14 = vunpack.c.h.bf16 %v10264_v49  ;;  %v10297_v16 = vld [vmem:[#allocation2 + $0x160] sm:$0x11] }
 0x386   : > { %v5738_v45 = vmax.f32 %v5674_v63, 0.0  ;;  %v5740_v11 = vmax.f32 %v5676_v3, 0.0  ;;  %v2889_v53 = vadd.f32 %v2741_v7, %v2347_v48  ;;  %v3276_v34 = vmul.f32 %v10141_v4, %v11488_v55 }
 0x387   : > { %v2891_v8 = vadd.f32 %v2745_v29, %v2349_v24  ;;  %v3278_v2 = vmul.f32 %v10146_v50, %v11488_v55  ;;  %v3280_v35 = vmul.f32 %v11488_v55, %v3185_v14  ;;  %v3726_v57 = vunpack.c.h.bf16 %v10271_v36  ;;  %v10301_v29 = vld [vmem:[#allocation2 + $0x150] sm:$0xee] }
 0x388   : > { %v5802_v15 = vmin.f32 %v5738_v45, 6.0  ;;  %v5804_v10 = vmin.f32 %v5740_v11, 6.0  ;;  %v3127_v61 = vadd.f32 %v3063_v27, %v2889_v53  ;;  %v3518_v13 = vrot.slane %v3276_v34, 1 }
 0x389   : > { %v3129_v18 = vadd.f32 %v3065_v31, %v2891_v8  ;;  %v3519_v20 = vrot.slane %v3278_v2, 1  ;;  %v3523_v5 = vrot.slane %v3280_v35, 1  ;;  %v3817_v19 = vmul.f32 %v11489_v56, %v3726_v57 }
 0x38a   : > { %v3819_v0 = vmul.f32 %v10146_v50, %v11489_v56  ;;  %v5844_v39 = vpack.c.bf16 %v5804_v10, %v5802_v15  ;;  %v3821_v63 = vmul.f32 %v11489_v56, %v3185_v14  ;;  %v10292_v44 = vunpack.c.h.bf16 %v10283_v30 }
 0x38b   : > { %v10295_v40 = vunpack.c.h.bf16 %v10285_v58  ;;  %v3520_v27 = vsel %vm2073_vm1, %v3518_v13, %v3519_v20  ;;  %v3524_v3 = vsel %vm2073_vm1, %v3519_v20, %v3523_v5  ;;  %v4059_v48 = vrot.slane %v3817_v19, 2 }
 0x38c   : > { %v4060_v24 = vrot.slane %v3819_v0, 2  ;;  %6120 = vmatmul.mubr.bf16.gmra.mrb[44].mxu1 %v5844_v39  ;;  %v3668_v45 = vadd.f32 %v3520_v27, %v3127_v61  ;;  %v3670_v7 = vadd.f32 %v3524_v3, %v3129_v18  ;;  %v4064_v31 = vrot.slane %v3821_v63, 2 }
 0x38d   : > { %v4383_v14 = vmul.f32 %v11490_v54, %v10292_v44  ;;  %v4385_v53 = vmul.f32 %v11490_v54, %v10295_v40  ;;  %v4505_v8 = vunpack.c.h.bf16 %v10297_v16  ;;  %v4596_v34 = vmul.f32 %v11468_v26, %v10292_v44 }
 0x38e   : > { %v4061_v11 = vsel %vm2615_vm13, %v4059_v48, %v4060_v24  ;;  %v4065_v15 = vsel %vm2615_vm13, %v4060_v24, %v4064_v31  ;;  %v4598_v35 = vmul.f32 %v11468_v26, %v10295_v40  ;;  %v5046_v57 = vunpack.c.h.bf16 %v10301_v29 }
 0x38f   : > { %v4209_v2 = vadd.f32 %v4061_v11, %v3668_v45  ;;  %v4211_v10 = vadd.f32 %v4065_v15, %v3670_v7  ;;  %v4600_v61 = vmul.f32 %v11468_v26, %v4505_v8  ;;  %v4838_v18 = vrot.slane %v4596_v34, 1 }
 0x390   : > { %v5139_v13 = vmul.f32 %v7769_v32, %v10295_v40  ;;  %v4839_v5 = vrot.slane %v4598_v35, 1  ;;  %v5137_v19 = vmul.f32 %v7769_v32, %v5046_v57  ;;  %v5141_v0 = vmul.f32 %v7769_v32, %v4505_v8 }
 0x391   : > { %v4447_v20 = vadd.f32 %v4383_v14, %v4209_v2  ;;  %v4449_v39 = vadd.f32 %v4385_v53, %v4211_v10  ;;  %v4843_v63 = vrot.slane %v4600_v61, 1  ;;  %v1804_v3 = vmul.f32 %v10036_v25, %v11382_v52 }
 0x392   : > { %v5380_v27 = vrot.slane %v5139_v13, 2  ;;  %v4840_v48 = vsel %vm2073_vm1, %v4838_v18, %v4839_v5  ;;  %v5379_v24 = vrot.slane %v5137_v19, 2  ;;  %v5384_v45 = vrot.slane %v5141_v0, 2 }
 0x393   : > { %v1806_v7 = vmul.f32 %v10039_v43, %v11382_v52  ;;  %v4844_v31 = vsel %vm2073_vm1, %v4839_v5, %v4843_v63  ;;  %v4988_v14 = vadd.f32 %v4840_v48, %v4447_v20  ;;  %v1862_v11 = vunpack.c.l.bf16 %v10237_v21 }
 0x394   : > { %v1953_v53 = vmul.f32 %v10036_v25, %v7664_v28  ;;  %v4990_v8 = vadd.f32 %v4844_v31, %v4449_v39  ;;  %v5381_v34 = vsel %vm2615_vm13, %v5379_v24, %v5380_v27  ;;  %v5385_v15 = vsel %vm2615_vm13, %v5380_v27, %v5384_v45 }
 0x395   : > { %v1955_v2 = vmul.f32 %v10039_v43, %v7664_v28  ;;  %v5529_v35 = vadd.f32 %v5381_v34, %v4988_v14  ;;  %v1957_v57 = vmul.f32 %v7664_v28, %v1862_v11  ;;  %v2404_v61 = vunpack.c.l.bf16 %v10242_v60 }
 0x396   : > { %v2194_v10 = vrot.slane %v1953_v53, 1  ;;  %v5531_v18 = vadd.f32 %v5385_v15, %v4990_v8  ;;  %v2497_v21 = vmul.f32 %v10039_v43, %v7655_v23  ;;  %v2499_v25 = vmul.f32 %v7655_v23, %v1862_v11 }
 0x397   : > { %v2195_v13 = vrot.slane %v1955_v2, 1  ;;  %v5604_v20 = vmul.f32 %v7775_v37, %v5529_v35  ;;  %v2200_v5 = vrot.slane %v1957_v57, 1  ;;  %v2495_v19 = vmul.f32 %v7655_v23, %v2404_v61 }
 0x398   : > { %v3062_v0 = vmul.f32 %v10212_v1, %v7695_v46  ;;  %v5606_v39 = vmul.f32 %v7775_v37, %v5531_v18  ;;  %v2737_v60 = vrot.slane %v2497_v21, 2  ;;  %v2742_v27 = vrot.slane %v2499_v25, 2 }
 0x399   : > { %v2196_v63 = vsel %vm2073_vm1, %v2194_v10, %v2195_v13  ;;  %v5679_v48 = vadd.f32 %v7779_v38, %v5604_v20  ;;  %v2201_v43 = vsel %vm2073_vm1, %v2195_v13, %v2200_v5  ;;  %v2736_v45 = vrot.slane %v2495_v19, 2 }
 0x39a   : > { %v2346_v24 = vadd.f32 %v2196_v63, %v1804_v3  ;;  %v5681_v31 = vadd.f32 %v7779_v38, %v5606_v39  ;;  %v2348_v14 = vadd.f32 %v2201_v43, %v1806_v7  ;;  %v2743_v11 = vsel %vm2615_vm13, %v2737_v60, %v2742_v27 }
 0x39b   : > { %v3064_v53 = vmul.f32 %v10217_v42, %v7695_v46  ;;  %v5743_v8 = vmax.f32 %v5679_v48, 0.0  ;;  %v2738_v34 = vsel %vm2615_vm13, %v2736_v45, %v2737_v60  ;;  %v3184_v15 = vunpack.c.l.bf16 %v10264_v49 }
 0x39c   : > { %v3275_v2 = vmul.f32 %v10212_v1, %v7723_v62  ;;  %v5745_v35 = vmax.f32 %v5681_v31, 0.0  ;;  %v2888_v57 = vadd.f32 %v2738_v34, %v2346_v24  ;;  %v2890_v3 = vadd.f32 %v2743_v11, %v2348_v14 }
 0x39d   : > { %v3277_v10 = vmul.f32 %v10217_v42, %v7723_v62  ;;  %v5807_v7 = vmin.f32 %v5743_v8, 6.0  ;;  %v3279_v61 = vmul.f32 %v7723_v62, %v3184_v15  ;;  %v3725_v13 = vunpack.c.l.bf16 %v10271_v36 }
 0x39e   : > { %v3515_v18 = vrot.slane %v3275_v2, 1  ;;  %v5809_v21 = vmin.f32 %v5745_v35, 6.0  ;;  %v3126_v25 = vadd.f32 %v3062_v0, %v2888_v57  ;;  %v3128_v20 = vadd.f32 %v3064_v53, %v2890_v3 }
 0x39f   : > { %v3516_v5 = vrot.slane %v3277_v10, 1  ;;  %v3521_v49 = vrot.slane %v3279_v61, 1  ;;  %v3816_v19 = vmul.f32 %v7708_v51, %v3725_v13  ;;  %v3818_v39 = vmul.f32 %v10217_v42, %v7708_v51 }
 0x3a0   : > { %v3820_v63 = vmul.f32 %v7708_v51, %v3184_v15  ;;  %v5847_v60 = vpack.c.bf16 %v5809_v21, %v5807_v7  ;;  %v10364_v48 = vunpack.c.l.bf16 %v10283_v30  ;;  %v10367_v36 = vunpack.c.l.bf16 %v10285_v58 }
 0x3a1   : > { %v3517_v27 = vsel %vm2073_vm1, %v3515_v18, %v3516_v5  ;;  %v3522_v0 = vsel %vm2073_vm1, %v3516_v5, %v3521_v49  ;;  %v4056_v24 = vrot.slane %v3816_v19, 2  ;;  %v4057_v45 = vrot.slane %v3818_v39, 2  ;;  %v10393_v19 = vld [vmem:[#allocation2 + $0x138] sm:$0xee] }
 0x3a2   : > { %v3667_v43 = vadd.f32 %v3517_v27, %v3126_v25  ;;  %7108 = vmatprep.mubr.msk.bf16.mxu1 %vm5950_vm2, %v5847_v60  ;;  %v3669_v31 = vadd.f32 %v3522_v0, %v3128_v20  ;;  %v4062_v14 = vrot.slane %v3820_v63, 2  ;;  %v4382_v11 = vmul.f32 %v7744_v12, %v10364_v48  ;;  %v10388_v25 = vld [vmem:[#allocation2 + $0x148] sm:$0x11] }
 0x3a3   : > { %v4384_v53 = vmul.f32 %v7744_v12, %v10367_v36  ;;  %v4058_v30 = vsel %vm2615_vm13, %v4056_v24, %v4057_v45  ;;  %v4504_v58 = vunpack.c.l.bf16 %v10297_v16  ;;  %v4595_v8 = vmul.f32 %v7750_v17, %v10364_v48 }
 0x3a4   : > { %v4597_v34 = vmul.f32 %v7750_v17, %v10367_v36  ;;  %v4063_v15 = vsel %vm2615_vm13, %v4057_v45, %v4062_v14  ;;  %v4208_v2 = vadd.f32 %v4058_v30, %v3667_v43  ;;  %v5045_v35 = vunpack.c.l.bf16 %v10301_v29 }
 0x3a5   : > { %v5138_v57 = vmul.f32 %v7757_v22, %v10367_v36  ;;  %v4210_v3 = vadd.f32 %v4063_v15, %v3669_v31  ;;  %v4599_v10 = vmul.f32 %v7750_v17, %v4504_v58  ;;  %v4835_v7 = vrot.slane %v4595_v8, 1 }
 0x3a6   : > { %v4836_v61 = vrot.slane %v4597_v34, 1  ;;  %v4446_v16 = vadd.f32 %v4382_v11, %v4208_v2  ;;  %v5136_v18 = vmul.f32 %v7757_v22, %v5045_v35  ;;  %v5140_v13 = vmul.f32 %v7757_v22, %v4504_v58 }
 0x3a7   : > { %v5377_v21 = vrot.slane %v5138_v57, 2  ;;  %v4448_v20 = vadd.f32 %v4384_v53, %v4210_v3  ;;  %v4841_v29 = vrot.slane %v4599_v10, 1  ;;  %v1809_v49 = vmul.f32 %v10141_v4, %v7685_v41 }
 0x3a8   : > { %v4837_v5 = vsel %vm2073_vm1, %v4835_v7, %v4836_v61  ;;  %v5376_v63 = vrot.slane %v5136_v18, 2  ;;  %v5382_v60 = vrot.slane %v5140_v13, 2  ;;  %v1811_v27 = vmul.f32 %v10146_v50, %v7685_v41 }
 0x3a9   : > { %v4987_v39 = vadd.f32 %v4837_v5, %v4446_v16  ;;  %v4842_v0 = vsel %vm2073_vm1, %v4836_v61, %v4841_v29  ;;  %v1865_v43 = vunpack.c.h.bf16 %v10388_v25  ;;  %v1960_v24 = vmul.f32 %v10141_v4, %v11337_v9  ;;  %v10415_v61 = vld [vmem:[#allocation2 + $0x160] sm:$0x11] }
 0x3aa   : > { %v1962_v45 = vmul.f32 %v10146_v50, %v11337_v9  ;;  %v4989_v31 = vadd.f32 %v4842_v0, %v4448_v20  ;;  %v5378_v14 = vsel %vm2615_vm13, %v5376_v63, %v5377_v21  ;;  %v5383_v11 = vsel %vm2615_vm13, %v5377_v21, %v5382_v60 }
 0x3ab   : > { %v2407_v53 = vunpack.c.h.bf16 %v10393_v19  ;;  %v5528_v30 = vadd.f32 %v5378_v14, %v4987_v39  ;;  %v1964_v58 = vmul.f32 %v11337_v9, %v1865_v43  ;;  %v2207_v8 = vrot.slane %v1960_v24, 1 }
 0x3ac   : > { %v2208_v34 = vrot.slane %v1962_v45, 1  ;;  %v5530_v15 = vadd.f32 %v5383_v11, %v4989_v31  ;;  %v2504_v4 = vmul.f32 %v10146_v50, %v11461_v6  ;;  %v2506_v35 = vmul.f32 %v11461_v6, %v1865_v43  ;;  %v10425_v43 = vld [vmem:[#allocation2 + $0x150] sm:$0xee] }
 0x3ad   : > { %v2502_v2 = vmul.f32 %v11461_v6, %v2407_v53  ;;  %v5603_v57 = vmul.f32 %v7787_v47, %v5528_v30  ;;  %v2212_v10 = vrot.slane %v1964_v58, 1  ;;  %v3067_v7 = vmul.f32 %v10292_v44, %v11462_v59  ;;  %v10433_v30 = vld [vmem:[#allocation2 + $0x168] sm:$0xff] }
 0x3ae   : > { %v2209_v3 = vsel %vm2073_vm1, %v2207_v8, %v2208_v34  ;;  %v5605_v16 = vmul.f32 %v7787_v47, %v5530_v15  ;;  %v2750_v21 = vrot.slane %v2504_v4, 2  ;;  %v2754_v5 = vrot.slane %v2506_v35, 2 }
 0x3af   : > { %v2351_v18 = vadd.f32 %v2209_v3, %v1809_v49  ;;  %v2749_v13 = vrot.slane %v2502_v2, 2  ;;  %v5678_v20 = vadd.f32 %v11314_v33, %v5603_v57  ;;  %v2213_v50 = vsel %vm2073_vm1, %v2208_v34, %v2212_v10  ;;  %v10436_v2 = vld [vmem:[#allocation2 + $0x170] sm:$0xff] }
 0x3b0   : > { %v3069_v29 = vmul.f32 %v10295_v40, %v11462_v59  ;;  %v5680_v39 = vadd.f32 %v11314_v33, %v5605_v16  ;;  %v2353_v63 = vadd.f32 %v2213_v50, %v1811_v27  ;;  %v3187_v0 = vunpack.c.h.bf16 %v10415_v61 }
 0x3b1   : > { %v2751_v60 = vsel %vm2615_vm13, %v2749_v13, %v2750_v21  ;;  %v5742_v49 = vmax.f32 %v5678_v20, 0.0  ;;  %v2755_v24 = vsel %vm2615_vm13, %v2750_v21, %v2754_v5  ;;  %v3282_v31 = vmul.f32 %v10292_v44, %v11488_v55 }
 0x3b2   : > { %v2893_v45 = vadd.f32 %v2751_v60, %v2351_v18  ;;  %v5744_v14 = vmax.f32 %v5680_v39, 0.0  ;;  %v2895_v11 = vadd.f32 %v2755_v24, %v2353_v63  ;;  %v3284_v53 = vmul.f32 %v10295_v40, %v11488_v55 }
 0x3b3   : > { %v3286_v27 = vmul.f32 %v11488_v55, %v3187_v0  ;;  %v5806_v58 = vmin.f32 %v5742_v49, 6.0  ;;  %v3528_v34 = vrot.slane %v3282_v31, 1  ;;  %v3728_v15 = vunpack.c.h.bf16 %v10425_v43 }
 0x3b4   : > { %v3131_v8 = vadd.f32 %v3067_v7, %v2893_v45  ;;  %v5808_v4 = vmin.f32 %v5744_v14, 6.0  ;;  %v3133_v35 = vadd.f32 %v3069_v29, %v2895_v11  ;;  %v3529_v57 = vrot.slane %v3284_v53, 1  ;;  %v10445_v7 = vld [vmem:[#allocation2 + $0x178] sm:$0x11]  ;;  %v10452_v29 = vld [vmem:[#allocation2 + $0x168] sm:$0xee] }
 0x3b5   : > { %v3533_v3 = vrot.slane %v3286_v27, 1  ;;  %v3823_v10 = vmul.f32 %v11489_v56, %v3728_v15  ;;  %v3825_v16 = vmul.f32 %v10295_v40, %v11489_v56  ;;  %v3827_v18 = vmul.f32 %v11489_v56, %v3187_v0 }
 0x3b6   : > { %v10443_v13 = vunpack.c.h.bf16 %v10433_v30  ;;  %v5846_v21 = vpack.c.bf16 %v5808_v4, %v5806_v58  ;;  %v3530_v20 = vsel %vm2073_vm1, %v3528_v34, %v3529_v57  ;;  %v10450_v5 = vunpack.c.h.bf16 %v10436_v2  ;;  %v10469_v4 = vpop.f32.mrb[0].mxu1 }
 0x3b7   : > { %v3534_v50 = vsel %vm2073_vm1, %v3529_v57, %v3533_v3  ;;  %v3672_v39 = vadd.f32 %v3530_v20, %v3131_v8  ;;  %v4069_v60 = vrot.slane %v3823_v10, 2  ;;  %v4070_v49 = vrot.slane %v3825_v16, 2  ;;  %v6035_v16 = vpop.f32.mrb[1].mxu1 }
 0x3b8   : > { %v3674_v63 = vadd.f32 %v3534_v50, %v3133_v35  ;;  %6128 = vmatmul.mubr.bf16.gmra.mrb[48].mxu1 %v5846_v21  ;;  %v4074_v0 = vrot.slane %v3827_v18, 2  ;;  %v4387_v24 = vmul.f32 %v11490_v54, %v10443_v13  ;;  %v4389_v45 = vmul.f32 %v11490_v54, %v10450_v5 }
 0x3b9   : > { %v4507_v31 = vunpack.c.h.bf16 %v10445_v7  ;;  %v4071_v14 = vsel %vm2615_vm13, %v4069_v60, %v4070_v49  ;;  %v4602_v11 = vmul.f32 %v11468_v26, %v10443_v13  ;;  %v4604_v53 = vmul.f32 %v11468_v26, %v10450_v5  ;;  %v10473_v60 = vpop.f32.mrb[2].mxu1 }
 0x3ba   : > { %v5048_v27 = vunpack.c.h.bf16 %v10452_v29  ;;  %v4075_v58 = vsel %vm2615_vm13, %v4070_v49, %v4074_v0  ;;  %v4213_v8 = vadd.f32 %v4071_v14, %v3672_v39  ;;  %v5145_v15 = vmul.f32 %v7769_v32, %v10450_v5 }
 0x3bb   : > { %v4606_v34 = vmul.f32 %v11468_v26, %v4507_v31  ;;  %v4215_v35 = vadd.f32 %v4075_v58, %v3674_v63  ;;  %v4848_v57 = vrot.slane %v4602_v11, 1  ;;  %v4849_v3 = vrot.slane %v4604_v53, 1  ;;  %v6038_v63 = vpop.f32.mrb[3].mxu1 }
 0x3bc   : > { %v5143_v10 = vmul.f32 %v7769_v32, %v5048_v27  ;;  %v4451_v18 = vadd.f32 %v4387_v24, %v4213_v8  ;;  %v5147_v20 = vmul.f32 %v7769_v32, %v4507_v31  ;;  %v5390_v50 = vrot.slane %v5145_v15, 2  ;;  %v10481_v58 = vpop.f32.mrb[4].mxu1 }
 0x3bd   : > { %v4853_v21 = vrot.slane %v4606_v34, 1  ;;  %v4453_v39 = vadd.f32 %v4389_v45, %v4215_v35  ;;  %v4850_v49 = vsel %vm2073_vm1, %v4848_v57, %v4849_v3  ;;  %v1808_v14 = vmul.f32 %v10212_v1, %v11382_v52  ;;  %v6043_v15 = vpop.f32.mrb[5].mxu1 }
 0x3be   : > { %v5389_v0 = vrot.slane %v5143_v10, 2  ;;  %v4992_v53 = vadd.f32 %v4850_v49, %v4451_v18  ;;  %v5394_v27 = vrot.slane %v5147_v20, 2  ;;  %v1810_v24 = vmul.f32 %v10217_v42, %v11382_v52  ;;  %v10497_v49 = vpop.f32.mrb[6].mxu1 }
 0x3bf   : > { %v4854_v11 = vsel %vm2073_vm1, %v4849_v3, %v4853_v21  ;;  %v1864_v45 = vunpack.c.l.bf16 %v10388_v25  ;;  %v1959_v34 = vmul.f32 %v10212_v1, %v7664_v28  ;;  %v1961_v3 = vmul.f32 %v10217_v42, %v7664_v28  ;;  %11492 = vst [vmem:[#allocation37_spill] sm:$0xff] %v10497_v49 }
 0x3c0   : > { %v4994_v31 = vadd.f32 %v4854_v11, %v4453_v39  ;;  %v5391_v8 = vsel %vm2615_vm13, %v5389_v0, %v5390_v50  ;;  %v5395_v35 = vsel %vm2615_vm13, %v5390_v50, %v5394_v27  ;;  %v2406_v10 = vunpack.c.l.bf16 %v10393_v19 }
 0x3c1   : > { %v5533_v57 = vadd.f32 %v5391_v8, %v4992_v53  ;;  %v1963_v18 = vmul.f32 %v7664_v28, %v1864_v45  ;;  %v2204_v21 = vrot.slane %v1959_v34, 1  ;;  %v2503_v20 = vmul.f32 %v10217_v42, %v7655_v23  ;;  %v6046_v53 = vpop.f32.mrb[7].mxu1 }
 0x3c2   : > { %v5535_v16 = vadd.f32 %v5395_v35, %v4994_v31  ;;  %v2205_v39 = vrot.slane %v1961_v3, 1  ;;  %v2501_v1 = vmul.f32 %v7655_v23, %v2406_v10  ;;  %v2505_v50 = vmul.f32 %v7655_v23, %v1864_v45  ;;  %v10504_v34 = vpop.f32.mrb[8].mxu1 }
 0x3c3   : > { %v5608_v25 = vmul.f32 %v7775_v37, %v5533_v57  ;;  %v2210_v63 = vrot.slane %v1963_v18, 1  ;;  %v2747_v19 = vrot.slane %v2503_v20, 2  ;;  %v3066_v11 = vmul.f32 %v10364_v48, %v7695_v46  ;;  %11493 = vst [vmem:[#allocation31_spill] sm:$0xff] %v10504_v34  ;;  %v6051_v3 = vpop.f32.mrb[9].mxu1 }
 0x3c4   : > { %v5610_v0 = vmul.f32 %v7775_v37, %v5535_v16  ;;  %v2206_v42 = vsel %vm2073_vm1, %v2204_v21, %v2205_v39  ;;  %v2746_v31 = vrot.slane %v2501_v1, 2  ;;  %v2752_v8 = vrot.slane %v2505_v50, 2 }
 0x3c5   : > { %v5683_v27 = vadd.f32 %v7779_v38, %v5608_v25  ;;  %v2211_v15 = vsel %vm2073_vm1, %v2205_v39, %v2210_v63  ;;  %v2350_v35 = vadd.f32 %v2206_v42, %v1808_v14  ;;  %v3068_v57 = vmul.f32 %v10367_v36, %v7695_v46 }
 0x3c6   : > { %v5685_v45 = vadd.f32 %v7779_v38, %v5610_v0  ;;  %v2352_v16 = vadd.f32 %v2211_v15, %v1810_v24  ;;  %v2748_v18 = vsel %vm2615_vm13, %v2746_v31, %v2747_v19  ;;  %v2753_v20 = vsel %vm2615_vm13, %v2747_v19, %v2752_v8  ;;  %v10519_v19 = vpop.f32.mrb[10].mxu1 }
 0x3c7   : > { %v5747_v10 = vmax.f32 %v5683_v27, 0.0  ;;  %v2892_v25 = vadd.f32 %v2748_v18, %v2350_v35  ;;  %v3186_v1 = vunpack.c.l.bf16 %v10415_v61  ;;  %v3281_v50 = vmul.f32 %v10364_v48, %v7723_v62  ;;  %11494 = vst [vmem:[#allocation27_spill] sm:$0xff] %v10519_v19  ;;  %v6054_v15 = vpop.f32.mrb[11].mxu1 }
 0x3c8   : > { %v5749_v21 = vmax.f32 %v5685_v45, 0.0  ;;  %v2894_v39 = vadd.f32 %v2753_v20, %v2352_v16  ;;  %v3283_v14 = vmul.f32 %v10367_v36, %v7723_v62  ;;  %v3727_v63 = vunpack.c.l.bf16 %v10425_v43  ;;  %v10532_v20 = vpop.f32.mrb[12].mxu1 }
 0x3c9   : > { %v5811_v0 = vmin.f32 %v5747_v10, 6.0  ;;  %v3130_v24 = vadd.f32 %v3066_v11, %v2892_v25  ;;  %v3285_v27 = vmul.f32 %v7723_v62, %v3186_v1  ;;  %v3525_v42 = vrot.slane %v3281_v50, 1  ;;  %11495 = vst [vmem:[#allocation28_spill] sm:$0xff] %v10532_v20 }
 0x3ca   : > { %v5813_v53 = vmin.f32 %v5749_v21, 6.0  ;;  %v3132_v31 = vadd.f32 %v3068_v57, %v2894_v39  ;;  %v3526_v8 = vrot.slane %v3283_v14, 1  ;;  %v3822_v61 = vmul.f32 %v7708_v51, %v3727_v63 }
 0x3cb   : > { %v3824_v45 = vmul.f32 %v10367_v36, %v7708_v51  ;;  %v3531_v3 = vrot.slane %v3285_v27, 1  ;;  %v3826_v10 = vmul.f32 %v7708_v51, %v3186_v1  ;;  %v10526_v43 = vunpack.c.l.bf16 %v10433_v30  ;;  %v6059_v30 = vpop.f32.mrb[13].mxu1 }
 0x3cc   : > { %v5849_v35 = vpack.c.bf16 %v5813_v53, %v5811_v0  ;;  %v3527_v11 = vsel %vm2073_vm1, %v3525_v42, %v3526_v8  ;;  %v4066_v16 = vrot.slane %v3822_v61, 2  ;;  %v10530_v57 = vunpack.c.l.bf16 %v10436_v2 }
 0x3cd   : > { %v4067_v18 = vrot.slane %v3824_v45, 2  ;;  %v3532_v21 = vsel %vm2073_vm1, %v3526_v8, %v3531_v3  ;;  %v3671_v25 = vadd.f32 %v3527_v11, %v3130_v24  ;;  %v4072_v50 = vrot.slane %v3826_v10, 2  ;;  %v10551_v45 = vpop.f32.mrb[14].mxu1  ;;  %v10554_v10 = vld [vmem:[#allocation2 + $0x160] sm:$0x11] }
 0x3ce   : > { %7109 = vmatprep.mubr.msk.bf16.mxu1 %vm5950_vm2, %v5849_v35  ;;  %v4386_v1 = vmul.f32 %v7744_v12, %v10526_v43  ;;  %v3673_v0 = vadd.f32 %v3532_v21, %v3132_v31  ;;  %v4388_v14 = vmul.f32 %v7744_v12, %v10530_v57  ;;  %v4506_v2 = vunpack.c.l.bf16 %v10445_v7  ;;  %11496 = vst [vmem:[#allocation29_spill] sm:$0xff] %v10551_v45  ;;  %v6062_v11 = vpop.f32.mrb[15].mxu1 }
 0x3cf   : > { %v4068_v39 = vsel %vm2615_vm13, %v4066_v16, %v4067_v18  ;;  %v4073_v63 = vsel %vm2615_vm13, %v4067_v18, %v4072_v50  ;;  %v4601_v27 = vmul.f32 %v7750_v17, %v10526_v43  ;;  %v4603_v24 = vmul.f32 %v7750_v17, %v10530_v57  ;;  %v10557_v50 = vpop.f32.mrb[16].mxu1 }
 0x3d0   : > { %v4212_v53 = vadd.f32 %v4068_v39, %v3671_v25  ;;  %v4214_v42 = vadd.f32 %v4073_v63, %v3673_v0  ;;  %v4605_v8 = vmul.f32 %v7750_v17, %v4506_v2  ;;  %v5047_v31 = vunpack.c.l.bf16 %v10452_v29  ;;  %11497 = vst [vmem:[#allocation25_spill] sm:$0xff] %v10557_v50  ;;  %v10564_v39 = vld [vmem:[#allocation2 + $0x150] sm:$0xee] }
 0x3d1   : > { %v5144_v61 = vmul.f32 %v7757_v22, %v10530_v57  ;;  %v4845_v15 = vrot.slane %v4601_v27, 1  ;;  %v4846_v35 = vrot.slane %v4603_v24, 1  ;;  %v5146_v3 = vmul.f32 %v7757_v22, %v4506_v2  ;;  %v6067_v2 = vpop.f32.mrb[17].mxu1 }
 0x3d2   : > { %v4450_v7 = vadd.f32 %v4386_v1, %v4212_v53  ;;  %v4452_v16 = vadd.f32 %v4388_v14, %v4214_v42  ;;  %v4851_v18 = vrot.slane %v4605_v8, 1  ;;  %v5142_v21 = vmul.f32 %v7757_v22, %v5047_v31 }
 0x3d3   : > { %v5387_v25 = vrot.slane %v5144_v61, 2  ;;  %v4847_v29 = vsel %vm2073_vm1, %v4845_v15, %v4846_v35  ;;  %v5392_v30 = vrot.slane %v5146_v3, 2  ;;  %v1813_v1 = vmul.f32 %v10292_v44, %v7685_v41 }
 0x3d4   : > { %v1815_v0 = vmul.f32 %v10295_v40, %v7685_v41  ;;  %v4852_v14 = vsel %vm2073_vm1, %v4846_v35, %v4851_v18  ;;  %v4991_v63 = vadd.f32 %v4847_v29, %v4450_v7  ;;  %v5386_v53 = vrot.slane %v5142_v21, 2  ;;  %v10578_v35 = vpop.f32.mrb[18].mxu1 }
 0x3d5   : > { %v1867_v27 = vunpack.c.h.bf16 %v10554_v10  ;;  %v4993_v24 = vadd.f32 %v4852_v14, %v4452_v16  ;;  %v5393_v42 = vsel %vm2615_vm13, %v5387_v25, %v5392_v30  ;;  %v1966_v8 = vmul.f32 %v10292_v44, %v11337_v9  ;;  %11498 = vst [vmem:[#allocation13_spill] sm:$0xff] %v10578_v35  ;;  %v6070_v29 = vpop.f32.mrb[19].mxu1 }
 0x3d6   : > { %v1968_v31 = vmul.f32 %v10295_v40, %v11337_v9  ;;  %v5388_v61 = vsel %vm2615_vm13, %v5386_v53, %v5387_v25  ;;  %v2409_v3 = vunpack.c.h.bf16 %v10564_v39  ;;  %v2510_v7 = vmul.f32 %v10295_v40, %v11461_v6  ;;  %v10582_v14 = vpop.f32.mrb[20].mxu1 }
 0x3d7   : > { %v1970_v15 = vmul.f32 %v11337_v9, %v1867_v27  ;;  %v5532_v11 = vadd.f32 %v5388_v61, %v4991_v63  ;;  %v5534_v16 = vadd.f32 %v5393_v42, %v4993_v24  ;;  %v2217_v18 = vrot.slane %v1966_v8, 1  ;;  %11499 = vst [vmem:[#allocation16_spill] sm:$0xff] %v10582_v14  ;;  %v10589_v24 = vld [vmem:[#allocation2 + $0x178] sm:$0x11]  ;;  %v6075_v42 = vpop.f32.mrb[21].mxu1 }
 0x3d8   : > { %v2218_v21 = vrot.slane %v1968_v31, 1  ;;  %v2508_v30 = vmul.f32 %v11461_v6, %v2409_v3  ;;  %v2512_v2 = vmul.f32 %v11461_v6, %v1867_v27  ;;  %v2760_v25 = vrot.slane %v2510_v7, 2 }
 0x3d9   : > { %v2222_v44 = vrot.slane %v1970_v15, 1  ;;  %v5607_v53 = vmul.f32 %v7787_v47, %v5532_v11  ;;  %v5609_v50 = vmul.f32 %v7787_v47, %v5534_v16  ;;  %v3071_v63 = vmul.f32 %v10443_v13, %v11462_v59  ;;  %v10596_v16 = vld [vmem:[#allocation2 + $0x168] sm:$0xee] }
 0x3da   : > { %v2219_v40 = vsel %vm2073_vm1, %v2217_v18, %v2218_v21  ;;  %v2759_v61 = vrot.slane %v2508_v30, 2  ;;  %v2764_v27 = vrot.slane %v2512_v2, 2  ;;  %v3073_v11 = vmul.f32 %v10450_v5, %v11462_v59 }
 0x3db   : > { %v2223_v8 = vsel %vm2073_vm1, %v2218_v21, %v2222_v44  ;;  %v2355_v31 = vadd.f32 %v2219_v40, %v1813_v1  ;;  %v5682_v15 = vadd.f32 %v11314_v33, %v5607_v53  ;;  %v5684_v3 = vadd.f32 %v11314_v33, %v5609_v50  ;;  %v10603_v21 = vpop.f32.mrb[22].mxu1 }
 0x3dc   : > { %v2357_v7 = vadd.f32 %v2223_v8, %v1815_v0  ;;  %v2761_v18 = vsel %vm2615_vm13, %v2759_v61, %v2760_v25  ;;  %v2765_v29 = vsel %vm2615_vm13, %v2760_v25, %v2764_v27  ;;  %v3189_v42 = vunpack.c.h.bf16 %v10589_v24  ;;  %11500 = vst [vmem:[#allocation36_spill] sm:$0xff] %v10603_v21  ;;  %v6078_v2 = vpop.f32.mrb[23].mxu1  ;;  %v10609_v61 = vld [vmem:[#allocation2 + $0x180] sm:$0xff]  ;;  %v10611_v27 = vld [vmem:[#allocation2 + $0x188] sm:$0xff] }
 0x3dd   : > { %v3288_v1 = vmul.f32 %v10443_v13, %v11488_v55  ;;  %v5746_v44 = vmax.f32 %v5682_v15, 0.0  ;;  %v5748_v30 = vmax.f32 %v5684_v3, 0.0  ;;  %v2897_v50 = vadd.f32 %v2761_v18, %v2355_v31  ;;  %v10613_v3 = vpop.f32.mrb[24].mxu1 }
 0x3de   : > { %v2899_v0 = vadd.f32 %v2765_v29, %v2357_v7  ;;  %v3290_v53 = vmul.f32 %v10450_v5, %v11488_v55  ;;  %v3292_v40 = vmul.f32 %v11488_v55, %v3189_v42  ;;  %v3730_v25 = vunpack.c.h.bf16 %v10596_v16  ;;  %11501 = vst [vmem:[#allocation20_spill] sm:$0xff] %v10613_v3 }
 0x3df   : > { %v3538_v8 = vrot.slane %v3288_v1, 1  ;;  %v5810_v14 = vmin.f32 %v5746_v44, 6.0  ;;  %v5812_v35 = vmin.f32 %v5748_v30, 6.0  ;;  %v3135_v21 = vadd.f32 %v3071_v63, %v2897_v50  ;;  %v6083_v1 = vpop.f32.mrb[25].mxu1  ;;  %v10625_v63 = vld [vmem:[#allocation2 + $0x190] sm:$0x11] }
 0x3e0   : > { %v3137_v15 = vadd.f32 %v3073_v11, %v2899_v0  ;;  %v3539_v31 = vrot.slane %v3290_v53, 1  ;;  %v3543_v7 = vrot.slane %v3292_v40, 1  ;;  %v3829_v18 = vmul.f32 %v11489_v56, %v3730_v25  ;;  %v10629_v53 = vld [vmem:[#allocation2 + $0x180] sm:$0xee]  ;;  %v10633_v25 = vpop.f32.mrb[26].mxu1 }
 0x3e1   : > { %v3831_v29 = vmul.f32 %v10450_v5, %v11489_v56  ;;  %v5848_v2 = vpack.c.bf16 %v5812_v35, %v5810_v14  ;;  %v3833_v45 = vmul.f32 %v11489_v56, %v3189_v42  ;;  %v10620_v20 = vunpack.c.h.bf16 %v10609_v61  ;;  %11502 = vst [vmem:[#allocation38_spill] sm:$0xff] %v10633_v25 }
 0x3e2   : > { %v10623_v44 = vunpack.c.h.bf16 %v10611_v27  ;;  %v3540_v11 = vsel %vm2073_vm1, %v3538_v8, %v3539_v31  ;;  %v3544_v30 = vsel %vm2073_vm1, %v3539_v31, %v3543_v7  ;;  %v4079_v50 = vrot.slane %v3829_v18, 2  ;;  %v6086_v18 = vpop.f32.mrb[27].mxu1 }
 0x3e3   : > { %v4080_v0 = vrot.slane %v3831_v29, 2  ;;  %6136 = vmatmul.mubr.bf16.gmra.mrb[52].mxu1 %v5848_v2  ;;  %v3676_v35 = vadd.f32 %v3540_v11, %v3135_v21  ;;  %v3678_v14 = vadd.f32 %v3544_v30, %v3137_v15  ;;  %v4084_v42 = vrot.slane %v3833_v45, 2  ;;  %v10645_v2 = vpop.f32.mrb[28].mxu1 }
 0x3e4   : > { %v4391_v40 = vmul.f32 %v11490_v54, %v10620_v20  ;;  %v4393_v8 = vmul.f32 %v11490_v54, %v10623_v44  ;;  %v4509_v31 = vunpack.c.h.bf16 %v10625_v63  ;;  %v4608_v7 = vmul.f32 %v11468_v26, %v10620_v20  ;;  %11503 = vst [vmem:[#allocation39_spill] sm:$0xff] %v10645_v2  ;;  %v6091_v3 = vpop.f32.mrb[29].mxu1 }
 0x3e5   : > { %v4081_v1 = vsel %vm2615_vm13, %v4079_v50, %v4080_v0  ;;  %v4085_v21 = vsel %vm2615_vm13, %v4080_v0, %v4084_v42  ;;  %v4610_v45 = vmul.f32 %v11468_v26, %v10623_v44  ;;  %v5050_v29 = vunpack.c.h.bf16 %v10629_v53 }
 0x3e6   : > { %v4217_v15 = vadd.f32 %v4081_v1, %v3676_v35  ;;  %v4219_v11 = vadd.f32 %v4085_v21, %v3678_v14  ;;  %v4612_v30 = vmul.f32 %v11468_v26, %v4509_v31  ;;  %v4858_v50 = vrot.slane %v4608_v7, 1 }
 0x3e7   : > { %v5151_v25 = vmul.f32 %v7769_v32, %v10623_v44  ;;  %v4859_v18 = vrot.slane %v4610_v45, 1  ;;  %v5149_v0 = vmul.f32 %v7769_v32, %v5050_v29  ;;  %v5153_v35 = vmul.f32 %v7769_v32, %v4509_v31  ;;  %v10661_v31 = vpop.f32.mrb[30].mxu1 }
 0x3e8   : > { %v4455_v19 = vadd.f32 %v4391_v40, %v4217_v15  ;;  %v4457_v42 = vadd.f32 %v4393_v8, %v4219_v11  ;;  %v4863_v1 = vrot.slane %v4612_v30, 1  ;;  %v1812_v2 = vmul.f32 %v10364_v48, %v11382_v52  ;;  %v6094_v30 = vpop.f32.mrb[31].mxu1 }
 0x3e9   : > { %v5400_v34 = vrot.slane %v5151_v25, 2  ;;  %v4860_v14 = vsel %vm2073_vm1, %v4858_v50, %v4859_v18  ;;  %v5399_v21 = vrot.slane %v5149_v0, 2  ;;  %v5404_v7 = vrot.slane %v5153_v35, 2  ;;  %v10669_v0 = vpop.f32.mrb[32].mxu1 }
 0x3ea   : > { %v1814_v49 = vmul.f32 %v10367_v36, %v11382_v52  ;;  %v4864_v3 = vsel %vm2073_vm1, %v4859_v18, %v4863_v1  ;;  %v4996_v40 = vadd.f32 %v4860_v14, %v4455_v19  ;;  %v1866_v15 = vunpack.c.l.bf16 %v10554_v10 }
 0x3eb   : > { %v1965_v8 = vmul.f32 %v10364_v48, %v7664_v28  ;;  %v4998_v25 = vadd.f32 %v4864_v3, %v4457_v42  ;;  %v5401_v45 = vsel %vm2615_vm13, %v5399_v21, %v5400_v34  ;;  %v5405_v29 = vsel %vm2615_vm13, %v5400_v34, %v5404_v7  ;;  %v6099_v34 = vpop.f32.mrb[33].mxu1 }
 0x3ec   : > { %v1967_v11 = vmul.f32 %v10367_v36, %v7664_v28  ;;  %v5537_v50 = vadd.f32 %v5401_v45, %v4996_v40  ;;  %v1969_v18 = vmul.f32 %v7664_v28, %v1866_v15  ;;  %v2408_v10 = vunpack.c.l.bf16 %v10564_v39  ;;  %v10680_v45 = vpop.f32.mrb[34].mxu1 }
 0x3ed   : > { %v2214_v19 = vrot.slane %v1965_v8, 1  ;;  %v5539_v48 = vadd.f32 %v5405_v29, %v4998_v25  ;;  %v2509_v42 = vmul.f32 %v10367_v36, %v7655_v23  ;;  %v2511_v1 = vmul.f32 %v7655_v23, %v1866_v15  ;;  %v6102_v30 = vpop.f32.mrb[35].mxu1 }
 0x3ee   : > { %v2215_v35 = vrot.slane %v1967_v11, 1  ;;  %v5612_v14 = vmul.f32 %v7775_v37, %v5537_v50  ;;  %v2220_v21 = vrot.slane %v1969_v18, 1  ;;  %v2507_v7 = vmul.f32 %v7655_v23, %v2408_v10 }
 0x3ef   : > { %v3070_v3 = vmul.f32 %v10526_v43, %v7695_v46  ;;  %v5614_v39 = vmul.f32 %v7775_v37, %v5539_v48  ;;  %v2757_v8 = vrot.slane %v2509_v42, 2  ;;  %v2762_v25 = vrot.slane %v2511_v1, 2 }
 0x3f0   : > { %v2216_v40 = vsel %vm2073_vm1, %v2214_v19, %v2215_v35  ;;  %v5687_v36 = vadd.f32 %v7779_v38, %v5612_v14  ;;  %v2221_v15 = vsel %vm2073_vm1, %v2215_v35, %v2220_v21  ;;  %v2756_v11 = vrot.slane %v2507_v7, 2 }
 0x3f1   : > { %v2354_v29 = vadd.f32 %v2216_v40, %v1812_v2  ;;  %v5689_v50 = vadd.f32 %v7779_v38, %v5614_v39  ;;  %v2356_v18 = vadd.f32 %v2221_v15, %v1814_v49  ;;  %v2763_v10 = vsel %vm2615_vm13, %v2757_v8, %v2762_v25 }
 0x3f2   : > { %v3072_v48 = vmul.f32 %v10530_v57, %v7695_v46  ;;  %v5751_v19 = vmax.f32 %v5687_v36, 0.0  ;;  %v2758_v42 = vsel %vm2615_vm13, %v2756_v11, %v2757_v8  ;;  %v3188_v1 = vunpack.c.l.bf16 %v10589_v24 }
 0x3f3   : > { %v3287_v34 = vmul.f32 %v10526_v43, %v7723_v62  ;;  %v5753_v35 = vmax.f32 %v5689_v50, 0.0  ;;  %v2896_v2 = vadd.f32 %v2758_v42, %v2354_v29  ;;  %v2898_v14 = vadd.f32 %v2763_v10, %v2356_v18 }
 0x3f4   : > { %v3289_v21 = vmul.f32 %v10530_v57, %v7723_v62  ;;  %v5815_v49 = vmin.f32 %v5751_v19, 6.0  ;;  %v3291_v7 = vmul.f32 %v7723_v62, %v3188_v1  ;;  %v3729_v40 = vunpack.c.l.bf16 %v10596_v16 }
 0x3f5   : > { %v3535_v39 = vrot.slane %v3287_v34, 1  ;;  %v5817_v25 = vmin.f32 %v5753_v35, 6.0  ;;  %v3134_v36 = vadd.f32 %v3070_v3, %v2896_v2  ;;  %v3136_v8 = vadd.f32 %v3072_v48, %v2898_v14 }
 0x3f6   : > { %v3536_v15 = vrot.slane %v3289_v21, 1  ;;  %v3541_v24 = vrot.slane %v3291_v7, 1  ;;  %v3828_v11 = vmul.f32 %v7708_v51, %v3729_v40  ;;  %v3830_v29 = vmul.f32 %v10530_v57, %v7708_v51 }
 0x3f7   : > { %v3832_v30 = vmul.f32 %v7708_v51, %v3188_v1  ;;  %v5851_v50 = vpack.c.bf16 %v5817_v25, %v5815_v49  ;;  %v10702_v10 = vunpack.c.l.bf16 %v10609_v61  ;;  %v10705_v16 = vunpack.c.l.bf16 %v10611_v27 }
 0x3f8   : > { %v3537_v18 = vsel %vm2073_vm1, %v3535_v39, %v3536_v15  ;;  %v3542_v3 = vsel %vm2073_vm1, %v3536_v15, %v3541_v24  ;;  %v4076_v19 = vrot.slane %v3828_v11, 2  ;;  %v4077_v42 = vrot.slane %v3830_v29, 2 }
 0x3f9   : > { %v3675_v48 = vadd.f32 %v3537_v18, %v3134_v36  ;;  %7110 = vmatprep.mubr.msk.bf16.mxu1 %vm5950_vm2, %v5851_v50  ;;  %v3677_v34 = vadd.f32 %v3542_v3, %v3136_v8  ;;  %v4082_v35 = vrot.slane %v3832_v30, 2  ;;  %v4390_v1 = vmul.f32 %v7744_v12, %v10702_v10  ;;  %v10730_v3 = vld [vmem:[#allocation2 + $0x178] sm:$0x11] }
 0x3fa   : > { %v4392_v2 = vmul.f32 %v7744_v12, %v10705_v16  ;;  %v4078_v61 = vsel %vm2615_vm13, %v4076_v19, %v4077_v42  ;;  %v4508_v27 = vunpack.c.l.bf16 %v10625_v63  ;;  %v4607_v14 = vmul.f32 %v7750_v17, %v10702_v10  ;;  %v10719_v49 = vpop.f32.mrb[36].mxu1 }
 0x3fb   : > { %v4609_v21 = vmul.f32 %v7750_v17, %v10705_v16  ;;  %v4083_v7 = vsel %vm2615_vm13, %v4077_v42, %v4082_v35  ;;  %v4216_v39 = vadd.f32 %v4078_v61, %v3675_v48  ;;  %v5049_v40 = vunpack.c.l.bf16 %v10629_v53  ;;  %v6107_v36 = vpop.f32.mrb[37].mxu1  ;;  %v10735_v35 = vld [vmem:[#allocation2 + $0x168] sm:$0xee] }
 0x3fc   : > { %v5150_v25 = vmul.f32 %v7757_v22, %v10705_v16  ;;  %v4218_v8 = vadd.f32 %v4083_v7, %v3677_v34  ;;  %v4611_v63 = vmul.f32 %v7750_v17, %v4508_v27  ;;  %v4855_v15 = vrot.slane %v4607_v14, 1  ;;  %v10726_v11 = vpop.f32.mrb[38].mxu1 }
 0x3fd   : > { %v4856_v24 = vrot.slane %v4609_v21, 1  ;;  %v4454_v29 = vadd.f32 %v4390_v1, %v4216_v39  ;;  %v5148_v30 = vmul.f32 %v7757_v22, %v5049_v40  ;;  %v5152_v50 = vmul.f32 %v7757_v22, %v4508_v27  ;;  %v6110_v53 = vpop.f32.mrb[39].mxu1 }
 0x3fe   : > { %v5397_v18 = vrot.slane %v5150_v25, 2  ;;  %v4456_v48 = vadd.f32 %v4392_v2, %v4218_v8  ;;  %v4861_v42 = vrot.slane %v4611_v63, 1  ;;  %v1817_v34 = vmul.f32 %v10443_v13, %v7685_v41 }
 0x3ff   : > { %v4857_v19 = vsel %vm2073_vm1, %v4855_v15, %v4856_v24  ;;  %v5396_v14 = vrot.slane %v5148_v30, 2  ;;  %v5402_v1 = vrot.slane %v5152_v50, 2  ;;  %v1819_v21 = vmul.f32 %v10450_v5, %v7685_v41 }
 0x400   : > { %v4995_v61 = vadd.f32 %v4857_v19, %v4454_v29  ;;  %v4862_v27 = vsel %vm2073_vm1, %v4856_v24, %v4861_v42  ;;  %v1869_v7 = vunpack.c.h.bf16 %v10730_v3  ;;  %v1972_v2 = vmul.f32 %v10443_v13, %v11337_v9  ;;  %v10757_v42 = vld [vmem:[#allocation2 + $0x190] sm:$0x11] }
 0x401   : > { %v1974_v39 = vmul.f32 %v10450_v5, %v11337_v9  ;;  %v4997_v40 = vadd.f32 %v4862_v27, %v4456_v48  ;;  %v5398_v25 = vsel %vm2615_vm13, %v5396_v14, %v5397_v18  ;;  %v5403_v36 = vsel %vm2615_vm13, %v5397_v18, %v5402_v1 }
 0x402   : > { %v2411_v8 = vunpack.c.h.bf16 %v10735_v35  ;;  %v5536_v63 = vadd.f32 %v5398_v25, %v4995_v61  ;;  %v1976_v41 = vmul.f32 %v11337_v9, %v1869_v7  ;;  %v2227_v15 = vrot.slane %v1972_v2, 1 }
 0x403   : > { %v2228_v24 = vrot.slane %v1974_v39, 1  ;;  %v5538_v29 = vadd.f32 %v5403_v36, %v4997_v40  ;;  %v2516_v13 = vmul.f32 %v10450_v5, %v11461_v6  ;;  %v2518_v50 = vmul.f32 %v11461_v6, %v1869_v7  ;;  %v10767_v36 = vld [vmem:[#allocation2 + $0x180] sm:$0xee] }
 0x404   : > { %v2514_v30 = vmul.f32 %v11461_v6, %v2411_v8  ;;  %v5611_v53 = vmul.f32 %v7787_v47, %v5536_v63  ;;  %v2232_v18 = vrot.slane %v1976_v41, 1  ;;  %v3075_v19 = vmul.f32 %v10620_v20, %v11462_v59 }
 0x405   : > { %v2229_v48 = vsel %vm2073_vm1, %v2227_v15, %v2228_v24  ;;  %v5613_v9 = vmul.f32 %v7787_v47, %v5538_v29  ;;  %v2770_v1 = vrot.slane %v2516_v13, 2  ;;  %v2774_v6 = vrot.slane %v2518_v50, 2  ;;  %v10775_v29 = vld [vmem:[#allocation2 + $0x198] sm:$0xff] }
 0x406   : > { %v2359_v61 = vadd.f32 %v2229_v48, %v1817_v34  ;;  %v2769_v14 = vrot.slane %v2514_v30, 2  ;;  %v5686_v27 = vadd.f32 %v11314_v33, %v5611_v53  ;;  %v2233_v5 = vsel %vm2073_vm1, %v2228_v24, %v2232_v18  ;;  %v10778_v48 = vld [vmem:[#allocation2 + $0x1a0] sm:$0xff] }
 0x407   : > { %v3077_v7 = vmul.f32 %v10623_v44, %v11462_v59  ;;  %v5688_v2 = vadd.f32 %v11314_v33, %v5613_v9  ;;  %v2361_v39 = vadd.f32 %v2233_v5, %v1819_v21  ;;  %v3191_v25 = vunpack.c.h.bf16 %v10757_v42  ;;  %v10785_v5 = vld [vmem:[#allocation2 + $0x1a8] sm:$0x11] }
 0x408   : > { %v2771_v40 = vsel %vm2615_vm13, %v2769_v14, %v2770_v1  ;;  %v5750_v34 = vmax.f32 %v5686_v27, 0.0  ;;  %v2775_v8 = vsel %vm2615_vm13, %v2770_v1, %v2774_v6  ;;  %v3294_v41 = vmul.f32 %v10620_v20, %v11488_v55 }
 0x409   : > { %v2901_v63 = vadd.f32 %v2771_v40, %v2359_v61  ;;  %v5752_v15 = vmax.f32 %v5688_v2, 0.0  ;;  %v2903_v24 = vadd.f32 %v2775_v8, %v2361_v39  ;;  %v3296_v59 = vmul.f32 %v10623_v44, %v11488_v55  ;;  %v10790_v39 = vld [vmem:[#allocation2 + $0x198] sm:$0xee] }
 0x40a   : > { %v3298_v21 = vmul.f32 %v11488_v55, %v3191_v25  ;;  %v5814_v30 = vmin.f32 %v5750_v34, 6.0  ;;  %v3548_v50 = vrot.slane %v3294_v41, 1  ;;  %v3732_v53 = vunpack.c.h.bf16 %v10767_v36 }
 0x40b   : > { %v3139_v13 = vadd.f32 %v3075_v19, %v2901_v63  ;;  %v5816_v18 = vmin.f32 %v5752_v15, 6.0  ;;  %v3141_v9 = vadd.f32 %v3077_v7, %v2903_v24  ;;  %v3549_v61 = vrot.slane %v3296_v59, 1 }
 0x40c   : > { %v3553_v20 = vrot.slane %v3298_v21, 1  ;;  %v3835_v14 = vmul.f32 %v11489_v56, %v3732_v53  ;;  %v3837_v1 = vmul.f32 %v10623_v44, %v11489_v56  ;;  %v3839_v55 = vmul.f32 %v11489_v56, %v3191_v25 }
 0x40d   : > { %v4320_v27 = vunpack.c.h.bf16 %v10775_v29  ;;  %v5850_v19 = vpack.c.bf16 %v5816_v18, %v5814_v30  ;;  %v3550_v6 = vsel %vm2073_vm1, %v3548_v50, %v3549_v61  ;;  %v4322_v7 = vunpack.c.h.bf16 %v10778_v48 }
 0x40e   : > { %v3554_v2 = vsel %vm2073_vm1, %v3549_v61, %v3553_v20  ;;  %v3680_v40 = vadd.f32 %v3550_v6, %v3139_v13  ;;  %v4089_v8 = vrot.slane %v3835_v14, 2  ;;  %v4090_v63 = vrot.slane %v3837_v1, 2 }
 0x40f   : > { %v3682_v34 = vadd.f32 %v3554_v2, %v3141_v9  ;;  %6144 = vmatmul.mubr.bf16.gmra.mrb[56].mxu1 %v5850_v19  ;;  %v4094_v44 = vrot.slane %v3839_v55, 2  ;;  %v4395_v56 = vmul.f32 %v11490_v54, %v4320_v27  ;;  %v4397_v25 = vmul.f32 %v11490_v54, %v4322_v7 }
 0x410   : > { %v4511_v41 = vunpack.c.h.bf16 %v10785_v5  ;;  %v4091_v15 = vsel %vm2615_vm13, %v4089_v8, %v4090_v63  ;;  %v4614_v24 = vmul.f32 %v11468_v26, %v4320_v27  ;;  %v4616_v59 = vmul.f32 %v11468_v26, %v4322_v7 }
 0x411   : > { %v5052_v21 = vunpack.c.h.bf16 %v10790_v39  ;;  %v4095_v30 = vsel %vm2615_vm13, %v4090_v63, %v4094_v44  ;;  %v4221_v13 = vadd.f32 %v4091_v15, %v3680_v40  ;;  %v5157_v53 = vmul.f32 %v7769_v32, %v4322_v7 }
 0x412   : > { %v4618_v50 = vmul.f32 %v11468_v26, %v4511_v41  ;;  %v4223_v18 = vadd.f32 %v4095_v30, %v3682_v34  ;;  %v4868_v9 = vrot.slane %v4614_v24, 1  ;;  %v4869_v54 = vrot.slane %v4616_v59, 1 }
 0x413   : > { %v5155_v61 = vmul.f32 %v7769_v32, %v5052_v21  ;;  %v4459_v20 = vadd.f32 %v4395_v56, %v4221_v13  ;;  %v5159_v1 = vmul.f32 %v7769_v32, %v4511_v41  ;;  %v5410_v55 = vrot.slane %v5157_v53, 2 }
 0x414   : > { %v4873_v14 = vrot.slane %v4618_v50, 1  ;;  %v4461_v27 = vadd.f32 %v4397_v25, %v4223_v18  ;;  %v4870_v19 = vsel %vm2073_vm1, %v4868_v9, %v4869_v54  ;;  %v1816_v2 = vmul.f32 %v10526_v43, %v11382_v52 }
 0x415   : > { %v5409_v6 = vrot.slane %v5155_v61, 2  ;;  %v5000_v7 = vadd.f32 %v4870_v19, %v4459_v20  ;;  %v5414_v40 = vrot.slane %v5159_v1, 2  ;;  %v1818_v34 = vmul.f32 %v10530_v57, %v11382_v52 }
 0x416   : > { %v4874_v26 = vsel %vm2073_vm1, %v4869_v54, %v4873_v14  ;;  %v1868_v32 = vunpack.c.l.bf16 %v10730_v3  ;;  %v1971_v44 = vmul.f32 %v10526_v43, %v7664_v28  ;;  %v1973_v41 = vmul.f32 %v10530_v57, %v7664_v28 }
 0x417   : > { %v5002_v8 = vadd.f32 %v4874_v26, %v4461_v27  ;;  %v5411_v63 = vsel %vm2615_vm13, %v5409_v6, %v5410_v55  ;;  %v5415_v56 = vsel %vm2615_vm13, %v5410_v55, %v5414_v40  ;;  %v2410_v15 = vunpack.c.l.bf16 %v10735_v35 }
 0x418   : > { %v5541_v25 = vadd.f32 %v5411_v63, %v5000_v7  ;;  %v1975_v59 = vmul.f32 %v7664_v28, %v1868_v32  ;;  %v2224_v52 = vrot.slane %v1971_v44, 1  ;;  %v2515_v21 = vmul.f32 %v10530_v57, %v7655_v23 }
 0x419   : > { %v5543_v24 = vadd.f32 %v5415_v56, %v5002_v8  ;;  %v2225_v30 = vrot.slane %v1973_v41, 1  ;;  %v2513_v43 = vmul.f32 %v7655_v23, %v2410_v15  ;;  %v2517_v13 = vmul.f32 %v7655_v23, %v1868_v32 }
 0x41a   : > { %v5616_v3 = vmul.f32 %v7775_v37, %v5541_v25  ;;  %v2230_v53 = vrot.slane %v1975_v59, 1  ;;  %v2767_v18 = vrot.slane %v2515_v21, 2  ;;  %v3074_v35 = vmul.f32 %v10702_v10, %v7695_v46 }
 0x41b   : > { %v5618_v50 = vmul.f32 %v7775_v37, %v5543_v24  ;;  %v2226_v9 = vsel %vm2073_vm1, %v2224_v52, %v2225_v30  ;;  %v2766_v54 = vrot.slane %v2513_v43, 2  ;;  %v2772_v57 = vrot.slane %v2517_v13, 2 }
 0x41c   : > { %v5691_v28 = vadd.f32 %v7779_v38, %v5616_v3  ;;  %v2231_v20 = vsel %vm2073_vm1, %v2225_v30, %v2230_v53  ;;  %v2358_v14 = vadd.f32 %v2226_v9, %v1816_v2  ;;  %v3076_v23 = vmul.f32 %v10705_v16, %v7695_v46 }
 0x41d   : > { %v5693_v61 = vadd.f32 %v7779_v38, %v5618_v50  ;;  %v2360_v1 = vadd.f32 %v2231_v20, %v1818_v34  ;;  %v2768_v55 = vsel %vm2615_vm13, %v2766_v54, %v2767_v18  ;;  %v2773_v27 = vsel %vm2615_vm13, %v2767_v18, %v2772_v57 }
 0x41e   : > { %v5755_v37 = vmax.f32 %v5691_v28, 0.0  ;;  %v2900_v6 = vadd.f32 %v2768_v55, %v2358_v14  ;;  %v3190_v26 = vunpack.c.l.bf16 %v10757_v42  ;;  %v3293_v7 = vmul.f32 %v10702_v10, %v7723_v62 }
 0x41f   : > { %v5757_v19 = vmax.f32 %v5693_v61, 0.0  ;;  %v2902_v40 = vadd.f32 %v2773_v27, %v2360_v1  ;;  %v3295_v2 = vmul.f32 %v10705_v16, %v7723_v62  ;;  %v3731_v46 = vunpack.c.l.bf16 %v10767_v36 }
 0x420   : > { %v5819_v38 = vmin.f32 %v5755_v37, 6.0  ;;  %v3138_v34 = vadd.f32 %v3074_v35, %v2900_v6  ;;  %v3297_v63 = vmul.f32 %v7723_v62, %v3190_v26  ;;  %v3545_v32 = vrot.slane %v3293_v7, 1  ;;  %v7115_v37 = vld [vmem:[%s7488_s11 + $0xc] sm:$0xf] }
 0x421   : > { %v5821_v8 = vmin.f32 %v5757_v19, 6.0  ;;  %v3140_v44 = vadd.f32 %v3076_v23, %v2902_v40  ;;  %v3546_v56 = vrot.slane %v3295_v2, 1  ;;  %v3834_v25 = vmul.f32 %v7708_v51, %v3731_v46 }
 0x422   : > { %v3836_v42 = vmul.f32 %v10705_v16, %v7708_v51  ;;  %v3551_v41 = vrot.slane %v3297_v63, 1  ;;  %v3838_v15 = vmul.f32 %v7708_v51, %v3190_v26  ;;  %v4319_v24 = vunpack.c.l.bf16 %v10775_v29  ;;  %v11504_v26 = vld [vmem:[#allocation8_spill] sm:$0xff]  ;;  %v7117_v63 = vld [vmem:[%s7488_s11 + $0x14] sm:$0x1] }
 0x423   : > { %v5853_v10 = vpack.c.bf16 %v5821_v8, %v5819_v38  ;;  %v3547_v36 = vsel %vm2073_vm1, %v3545_v32, %v3546_v56  ;;  %v4086_v59 = vrot.slane %v3834_v25, 2  ;;  %v4321_v62 = vunpack.c.l.bf16 %v10778_v48  ;;  %v7118_v25 = vld [vmem:[%s7488_s11 + $0x18] sm:$0xf] }
 0x424   : > { %v4087_v52 = vrot.slane %v3836_v42, 2  ;;  %v3552_v21 = vsel %vm2073_vm1, %v3546_v56, %v3551_v41  ;;  %v3679_v3 = vadd.f32 %v3547_v36, %v3138_v34  ;;  %v4092_v30 = vrot.slane %v3838_v15, 2 }
 0x425   : > { %7111 = vmatprep.mubr.msk.bf16.mxu1 %vm5950_vm2, %v5853_v10  ;;  %v4394_v16 = vmul.f32 %v7744_v12, %v4319_v24  ;;  %v3681_v43 = vadd.f32 %v3552_v21, %v3140_v44  ;;  %v4396_v51 = vmul.f32 %v7744_v12, %v4321_v62  ;;  %v4510_v29 = vunpack.c.l.bf16 %v10785_v5 }
 0x426   : > { %v4088_v13 = vsel %vm2615_vm13, %v4086_v59, %v4087_v52  ;;  %v4093_v50 = vsel %vm2615_vm13, %v4087_v52, %v4092_v30  ;;  %v4613_v48 = vmul.f32 %v7750_v17, %v4319_v24  ;;  %v4615_v18 = vmul.f32 %v7750_v17, %v4321_v62  ;;  %v11505_v59 = vld [vmem:[#allocation9_spill] sm:$0xff] }
 0x427   : > { %v4220_v53 = vadd.f32 %v4088_v13, %v3679_v3  ;;  %v4222_v35 = vadd.f32 %v4093_v50, %v3681_v43  ;;  %v4617_v28 = vmul.f32 %v7750_v17, %v4510_v29  ;;  %v5051_v9 = vunpack.c.l.bf16 %v10790_v39  ;;  %v7116_v17 = vld [vmem:[%s7488_s11 + $0x10] sm:$0xf]  ;;  %v7119_v43 = vld [vmem:[%s7488_s11 + $0x1c] sm:$0xf] }
 0x428   : > { %v5156_v54 = vmul.f32 %v7757_v22, %v4321_v62  ;;  %v4865_v12 = vrot.slane %v4613_v48, 1  ;;  %v4866_v61 = vrot.slane %v4615_v18, 1  ;;  %v5158_v5 = vmul.f32 %v7757_v22, %v4510_v29 }
 0x429   : > { %v4458_v57 = vadd.f32 %v4394_v16, %v4220_v53  ;;  %v4871_v20 = vrot.slane %v4617_v28, 1  ;;  %v5154_v14 = vmul.f32 %v7757_v22, %v5051_v9  ;;  %v4460_v1 = vadd.f32 %v4396_v51, %v4222_v35 }
 0x42a   : > { %v5407_v23 = vrot.slane %v5156_v54, 2  ;;  %v4867_v55 = vsel %vm2073_vm1, %v4865_v12, %v4866_v61  ;;  %v5412_v27 = vrot.slane %v5158_v5, 2  ;;  %v6166_v7 = vmul.f32 %v11504_v26, %v10469_v4 }
 0x42b   : > { %v4872_v39 = vsel %vm2073_vm1, %v4866_v61, %v4871_v20  ;;  %v4999_v19 = vadd.f32 %v4867_v55, %v4458_v57  ;;  %v5406_v6 = vrot.slane %v5154_v14, 2  ;;  %v6291_v22 = vshrl.u32 %v7115_v37, 16  ;;  %v7120_v14 = vld [vmem:[%s7488_s11 + $0x20] sm:$0x1] }
 0x42c   : > { %v5001_v38 = vadd.f32 %v4872_v39, %v4460_v1  ;;  %v5413_v40 = vsel %vm2615_vm13, %v5407_v23, %v5412_v27  ;;  %v6294_v46 = vshll.u32 %v7115_v37, 16  ;;  %v6300_v8 = vshll.u32 %v7116_v17, 16  ;;  %v7121_v27 = vld [vmem:[%s7488_s11 + $0x24] sm:$0xf] }
 0x42d   : > { %v5408_v2 = vsel %vm2615_vm13, %v5406_v6, %v5407_v23  ;;  %v6304_v34 = vshrl.u32 %v7116_v17, 16  ;;  %v6293_v56 = vrot.slane %v6291_v22, 4  ;;  %v6167_v4 = vmul.f32 %v11504_v26, %v10473_v60 }
 0x42e   : > { %v5540_v32 = vadd.f32 %v5408_v2, %v4999_v19  ;;  %v5542_v44 = vadd.f32 %v5413_v40, %v5001_v38  ;;  %v6296_v42 = vrot.slane %v6294_v46, 5  ;;  %v6302_v10 = vrot.slane %v6300_v8, 5  ;;  %v11508_v19 = vld [vmem:[#allocation37_spill] sm:$0xff] }
 0x42f   : > { %v6306_v41 = vrot.slane %v6304_v34, 4  ;;  %v10875_v15 = vpop.f32.mrb[40].mxu1  ;;  %v6204_v52 = vadd.f32 %v11505_v59, %v6166_v7  ;;  %v6310_v62 = vshll.u32 %v7117_v63, 16  ;;  %v6168_v16 = vmul.f32 %v11504_v26, %v10481_v58  ;;  %v11509_v34 = vld [vmem:[#allocation31_spill] sm:$0xff] }
 0x430   : > { %v5615_v24 = vmul.f32 %v7787_v47, %v5540_v32  ;;  %v5617_v36 = vmul.f32 %v7787_v47, %v5542_v44  ;;  %v6115_v21 = vpop.f32.mrb[41].mxu1  ;;  %v6297_v3 = vor.u32 %v6296_v42, %v6293_v56  ;;  %v6315_v13 = vshrl.u32 %v7118_v25, 16  ;;  %v7122_v32 = vld [vmem:[%s7488_s11 + $0x28] sm:$0xf] }
 0x431   : > { %v6307_v30 = vor.u32 %v6306_v41, %v6302_v10  ;;  %v10883_v60 = vpop.f32.mrb[42].mxu1  ;;  %v6205_v50 = vadd.f32 %v11505_v59, %v6167_v4  ;;  %v6312_v53 = vrot.slane %v6310_v62, 5  ;;  %v6318_v28 = vshll.u32 %v7118_v25, 16  ;;  %v7123_v4 = vld [vmem:[%s7488_s11 + $0x2c] sm:$0x1] }
 0x432   : > { %v5690_v51 = vadd.f32 %v11314_v33, %v5615_v24  ;;  %v5692_v29 = vadd.f32 %v11314_v33, %v5617_v36  ;;  %v6118_v48 = vpop.f32.mrb[43].mxu1  ;;  %v6298_v58 = vrot.slane %v6297_v3, 4  ;;  %v6317_v35 = vrot.slane %v6315_v13, 4  ;;  %v11510_v13 = vld [vmem:[#allocation27_spill] sm:$0xff] }
 0x433   : > { %v6308_v18 = vrot.slane %v6307_v30, 4  ;;  %v6324_v33 = vshll.u32 %v7119_v43, 16  ;;  %v6328_v57 = vshrl.u32 %v7119_v43, 16  ;;  %v6206_v5 = vadd.f32 %v11505_v59, %v6168_v16 }
 0x434   : > { %v5754_v9 = vmax.f32 %v5690_v51, 0.0  ;;  %v5756_v54 = vmax.f32 %v5692_v29, 0.0  ;;  %v6303_v12 = vsel %vm10889_vm6, %v6298_v58, %v6302_v10  ;;  %v6320_v20 = vrot.slane %v6318_v28, 5 }
 0x435   : > { %v6313_v61 = vsel %vm10889_vm6, %v6308_v18, %v6312_v53  ;;  %v6706_v1 = vunpack.c.l.bf16 %v6303_v12  ;;  %v6326_v39 = vrot.slane %v6324_v33, 5  ;;  %v6169_v6 = vmul.f32 %v11504_v26, %v11508_v19  ;;  %v11511_v33 = vld [vmem:[#allocation28_spill] sm:$0xff]  ;;  %v11512_v19 = vld [vmem:[#allocation29_spill] sm:$0xff] }
 0x436   : > { %v5818_v23 = vmin.f32 %v5754_v9, 6.0  ;;  %v5820_v37 = vmin.f32 %v5756_v54, 6.0  ;;  %v6707_v55 = vunpack.c.l.bf16 %v6313_v61  ;;  %v6321_v17 = vor.u32 %v6320_v20, %v6317_v35  ;;  %v7125_v35 = vld [vmem:[%s7488_s11 + $0x34] sm:$0xf] }
 0x437   : > { %v6330_v7 = vrot.slane %v6328_v57, 4  ;;  %v6738_v40 = vadd.f32 %v6706_v1, %v6204_v52  ;;  %v6334_v2 = vshll.u32 %v7120_v14, 16  ;;  %v6170_v63 = vmul.f32 %v11504_v26, %v11509_v34 }
 0x438   : > { %v5852_v38 = vpack.c.bf16 %v5820_v37, %v5818_v23  ;;  %v6739_v22 = vadd.f32 %v6707_v55, %v6205_v50  ;;  %v6322_v46 = vrot.slane %v6321_v17, 4  ;;  %v6339_v44 = vshrl.u32 %v7121_v27, 16  ;;  %v7124_v50 = vld [vmem:[%s7488_s11 + $0x30] sm:$0xf]  ;;  %v7126_v55 = vld [vmem:[%s7488_s11 + $0x38] sm:$0x1] }
 0x439   : > { %v6331_v8 = vor.u32 %v6330_v7, %v6326_v39  ;;  %v7252_v56 = vpack.c.bf16 %v6738_v40, %v6738_v40  ;;  %v6336_v42 = vrot.slane %v6334_v2, 5  ;;  %v6342_v10 = vshll.u32 %v7121_v27, 16  ;;  %v7127_v7 = vld [vmem:[%s7488_s11 + $0x3c] sm:$0xf] }
 0x43a   : > { %6152 = vmatmul.mubr.bf16.gmra.mrb[60].mxu1 %v5852_v38  ;;  %v7253_v25 = vpack.c.bf16 %v6739_v22, %v6739_v22  ;;  %v6327_v41 = vsel %vm10889_vm6, %v6322_v46, %v6326_v39  ;;  %v6207_v24 = vadd.f32 %v11505_v59, %v6169_v6  ;;  %v6341_v52 = vrot.slane %v6339_v44, 4 }
 0x43b   : > { %v6332_v36 = vrot.slane %v6331_v8, 4  ;;  %6902 = vst.msk [vmem:[%s10911_s26] sm:$0xf] %vm6901_vm5, %v7252_v56  ;;  %v6708_v62 = vunpack.c.l.bf16 %v6327_v41  ;;  %v6344_v21 = vrot.slane %v6342_v10, 5  ;;  %v6348_v3 = vshll.u32 %v7122_v32, 16 }
 0x43c   : > { %6903 = vst.msk [vmem:[%s10911_s26 + $0x4] sm:$0xf] %vm6901_vm5, %v7253_v25  ;;  %v6352_v30 = vshrl.u32 %v7122_v32, 16  ;;  %v6208_v43 = vadd.f32 %v11505_v59, %v6170_v63  ;;  %v6171_v51 = vmul.f32 %v11504_v26, %v11510_v13  ;;  %v6358_v29 = vshll.u32 %v7123_v4, 16  ;;  %v7128_v25 = vld [vmem:[%s7488_s11 + $0x40] sm:$0xf] }
 0x43d   : > { %v6337_v16 = vsel %vm10889_vm6, %v6332_v36, %v6336_v42  ;;  %v6740_v53 = vadd.f32 %v6708_v62, %v6206_v5  ;;  %v6345_v58 = vor.u32 %v6344_v21, %v6341_v52  ;;  %v6350_v18 = vrot.slane %v6348_v3, 5  ;;  %v7129_v52 = vld [vmem:[%s7488_s11 + $0x44] sm:$0x1] }
 0x43e   : > { %v6709_v48 = vunpack.c.l.bf16 %v6337_v16  ;;  %v6209_v28 = vadd.f32 %v11505_v59, %v6171_v51  ;;  %v6354_v9 = vrot.slane %v6352_v30, 4  ;;  %v6360_v54 = vrot.slane %v6358_v29, 5 }
 0x43f   : > { %v6172_v57 = vmul.f32 %v11504_v26, %v11511_v33  ;;  %v7254_v12 = vpack.c.bf16 %v6740_v53, %v6740_v53  ;;  %v6346_v20 = vrot.slane %v6345_v58, 4  ;;  %v6363_v14 = vshrl.u32 %v7124_v50, 16  ;;  %v11514_v53 = vld [vmem:[#allocation13_spill] sm:$0xff] }
 0x440   : > { %v6741_v61 = vadd.f32 %v6709_v48, %v6207_v24  ;;  %v6355_v5 = vor.u32 %v6354_v9, %v6350_v18  ;;  %v6366_v23 = vshll.u32 %v7124_v50, 16  ;;  %v6372_v37 = vshll.u32 %v7125_v35, 16  ;;  %v11513_v24 = vld [vmem:[#allocation25_spill] sm:$0xff] }
 0x441   : > { %v6376_v1 = vshrl.u32 %v7125_v35, 16  ;;  %6904 = vst.msk [vmem:[%s10911_s26 + $0x8] sm:$0xf] %vm6901_vm5, %v7254_v12  ;;  %v6351_v17 = vsel %vm10889_vm6, %v6346_v20, %v6350_v18  ;;  %v6365_v39 = vrot.slane %v6363_v14, 4  ;;  %v6173_v6 = vmul.f32 %v11504_v26, %v11512_v19  ;;  %v7130_v18 = vld [vmem:[%s7488_s11 + $0x48] sm:$0xf] }
 0x442   : > { %v7255_v27 = vpack.c.bf16 %v6741_v61, %v6741_v61  ;;  %v6710_v38 = vunpack.c.l.bf16 %v6351_v17  ;;  %v6356_v40 = vrot.slane %v6355_v5, 4  ;;  %v6368_v22 = vrot.slane %v6366_v23, 5  ;;  %v7131_v20 = vld [vmem:[%s7488_s11 + $0x4c] sm:$0xf]  ;;  %v11515_v23 = vld [vmem:[#allocation16_spill] sm:$0xff] }
 0x443   : > { %v6374_v2 = vrot.slane %v6372_v37, 5  ;;  %v6210_v46 = vadd.f32 %v11505_v59, %v6172_v57  ;;  %v6211_v8 = vadd.f32 %v11505_v59, %v6173_v6  ;;  %v6378_v34 = vrot.slane %v6376_v1, 4 }
 0x444   : > { %6905 = vst.msk [vmem:[%s10911_s26 + $0xc] sm:$0xf] %vm6901_vm5, %v7255_v27  ;;  %v6382_v63 = vshll.u32 %v7126_v55, 16  ;;  %v6742_v32 = vadd.f32 %v6710_v38, %v6208_v43  ;;  %v6361_v44 = vsel %vm10889_vm6, %v6356_v40, %v6360_v54  ;;  %v6369_v56 = vor.u32 %v6368_v22, %v6365_v39  ;;  %v7132_v40 = vld [vmem:[%s7488_s11 + $0x50] sm:$0x1] }
 0x445   : > { %v6387_v42 = vshrl.u32 %v7127_v7, 16  ;;  %v6711_v10 = vunpack.c.l.bf16 %v6361_v44  ;;  %v6379_v4 = vor.u32 %v6378_v34, %v6374_v2  ;;  %v6174_v36 = vmul.f32 %v11504_v26, %v11513_v24  ;;  %v11516_v44 = vld [vmem:[#allocation36_spill] sm:$0xff] }
 0x446   : > { %v6384_v41 = vrot.slane %v6382_v63, 5  ;;  %v7256_v62 = vpack.c.bf16 %v6742_v32, %v6742_v32  ;;  %v6370_v21 = vrot.slane %v6369_v56, 4  ;;  %v6390_v30 = vshll.u32 %v7127_v7, 16 }
 0x447   : > { %v6389_v3 = vrot.slane %v6387_v42, 4  ;;  %v6743_v16 = vadd.f32 %v6711_v10, %v6209_v28  ;;  %v6380_v43 = vrot.slane %v6379_v4, 4  ;;  %v6396_v13 = vshll.u32 %v7128_v25, 16 }
 0x448   : > { %v6400_v51 = vshrl.u32 %v7128_v25, 16  ;;  %6906 = vst.msk [vmem:[%s10911_s26 + $0x10] sm:$0xf] %vm6901_vm5, %v7256_v62  ;;  %v6375_v29 = vsel %vm10889_vm6, %v6370_v21, %v6374_v2  ;;  %v6392_v50 = vrot.slane %v6390_v30, 5  ;;  %v6175_v48 = vmul.f32 %v11504_v26, %v11514_v53  ;;  %v7133_v25 = vld [vmem:[%s7488_s11 + $0x54] sm:$0xf] }
 0x449   : > { %v6406_v58 = vshll.u32 %v7129_v52, 16  ;;  %v7257_v35 = vpack.c.bf16 %v6743_v16, %v6743_v16  ;;  %v6712_v9 = vunpack.c.l.bf16 %v6375_v29  ;;  %v6385_v28 = vsel %vm10889_vm6, %v6380_v43, %v6384_v41  ;;  %v11517_v62 = vld [vmem:[#allocation20_spill] sm:$0xff] }
 0x44a   : > { %v6398_v54 = vrot.slane %v6396_v13, 5  ;;  %v6713_v33 = vunpack.c.l.bf16 %v6385_v28  ;;  %v6212_v57 = vadd.f32 %v11505_v59, %v6174_v36  ;;  %v6393_v12 = vor.u32 %v6392_v50, %v6389_v3  ;;  %v7134_v3 = vld [vmem:[%s7488_s11 + $0x58] sm:$0xf] }
 0x44b   : > { %v6402_v61 = vrot.slane %v6400_v51, 4  ;;  %6907 = vst.msk [vmem:[%s10911_s26 + $0x14] sm:$0xf] %vm6901_vm5, %v7257_v35  ;;  %v6744_v14 = vadd.f32 %v6712_v9, %v6210_v46  ;;  %v6408_v5 = vrot.slane %v6406_v58, 5  ;;  %v6176_v37 = vmul.f32 %v11504_v26, %v11515_v23  ;;  %v7136_v23 = vld [vmem:[%s7488_s11 + $0x60] sm:$0xf] }
 0x44c   : > { %v6411_v1 = vshrl.u32 %v7130_v18, 16  ;;  %v6745_v55 = vadd.f32 %v6713_v33, %v6211_v8  ;;  %v6394_v27 = vrot.slane %v6393_v12, 4  ;;  %v6414_v39 = vshll.u32 %v7130_v18, 16 }
 0x44d   : > { %v6403_v17 = vor.u32 %v6402_v61, %v6398_v54  ;;  %v7258_v19 = vpack.c.bf16 %v6744_v14, %v6744_v14  ;;  %v6213_v6 = vadd.f32 %v11505_v59, %v6175_v48  ;;  %v6420_v38 = vshll.u32 %v7131_v20, 16  ;;  %v7135_v48 = vld [vmem:[%s7488_s11 + $0x5c] sm:$0x1]  ;;  %v11518_v61 = vld [vmem:[#allocation38_spill] sm:$0xff] }
 0x44e   : > { %v6413_v7 = vrot.slane %v6411_v1, 4  ;;  %v7259_v22 = vpack.c.bf16 %v6745_v55, %v6745_v55  ;;  %v6399_v2 = vsel %vm10889_vm6, %v6394_v27, %v6398_v54  ;;  %v6416_v34 = vrot.slane %v6414_v39, 5 }
 0x44f   : > { %v6404_v46 = vrot.slane %v6403_v17, 4  ;;  %6908 = vst.msk [vmem:[%s10911_s26 + $0x18] sm:$0xf] %vm6901_vm5, %v7258_v19  ;;  %v6714_v8 = vunpack.c.l.bf16 %v6399_v2  ;;  %v6422_v63 = vrot.slane %v6420_v38, 5  ;;  %v6424_v32 = vshrl.u32 %v7131_v20, 16 }
 0x450   : > { %v6177_v56 = vmul.f32 %v11504_v26, %v11516_v44  ;;  %6909 = vst.msk [vmem:[%s10911_s26 + $0x1c] sm:$0xf] %vm6901_vm5, %v7259_v22  ;;  %v6214_v10 = vadd.f32 %v11505_v59, %v6176_v37  ;;  %v6417_v4 = vor.u32 %v6416_v34, %v6413_v7  ;;  %v6430_v41 = vshll.u32 %v7132_v40, 16  ;;  %v7137_v17 = vld [vmem:[%s7488_s11 + $0x64] sm:$0xf]  ;;  %v11519_v7 = vld [vmem:[#allocation39_spill] sm:$0xff] }
 0x451   : > { %v6409_v42 = vsel %vm10889_vm6, %v6404_v46, %v6408_v5  ;;  %v6746_v24 = vadd.f32 %v6714_v8, %v6212_v57  ;;  %v6426_v52 = vrot.slane %v6424_v32, 4  ;;  %v6178_v21 = vmul.f32 %v11504_v26, %v11517_v62 }
 0x452   : > { %v6715_v36 = vunpack.c.l.bf16 %v6409_v42  ;;  %v6418_v30 = vrot.slane %v6417_v4, 4  ;;  %v6215_v16 = vadd.f32 %v11505_v59, %v6177_v56  ;;  %v6432_v43 = vrot.slane %v6430_v41, 5 }
 0x453   : > { %v6435_v13 = vshrl.u32 %v7133_v25, 16  ;;  %v7260_v51 = vpack.c.bf16 %v6746_v24, %v6746_v24  ;;  %v6427_v50 = vor.u32 %v6426_v52, %v6422_v63  ;;  %v6438_v53 = vshll.u32 %v7133_v25, 16  ;;  %v7139_v52 = vld [vmem:[%s7488_s11 + $0x6c] sm:$0xf] }
 0x454   : > { %v6747_v29 = vadd.f32 %v6715_v36, %v6213_v6  ;;  %v6423_v58 = vsel %vm10889_vm6, %v6418_v30, %v6422_v63  ;;  %v6444_v35 = vshll.u32 %v7134_v3, 16  ;;  %v6448_v9 = vshrl.u32 %v7134_v3, 16 }
 0x455   : > { %v6437_v18 = vrot.slane %v6435_v13, 4  ;;  %6910 = vst.msk [vmem:[%s10911_s26 + $0x20] sm:$0xf] %vm6901_vm5, %v7260_v51  ;;  %v6716_v54 = vunpack.c.l.bf16 %v6423_v58  ;;  %v6428_v33 = vrot.slane %v6427_v50, 4  ;;  %v6440_v57 = vrot.slane %v6438_v53, 5 }
 0x456   : > { %v7261_v28 = vpack.c.bf16 %v6747_v29, %v6747_v29  ;;  %v6446_v12 = vrot.slane %v6444_v35, 5  ;;  %v6179_v20 = vmul.f32 %v11504_v26, %v11518_v61  ;;  %v6450_v14 = vrot.slane %v6448_v9, 4  ;;  %v7140_v53 = vld [vmem:[%s7488_s11 + $0x70] sm:$0xf] }
 0x457   : > { %v6454_v5 = vshll.u32 %v7135_v48, 16  ;;  %v6748_v37 = vadd.f32 %v6716_v54, %v6214_v10  ;;  %v6433_v1 = vsel %vm10889_vm6, %v6428_v33, %v6432_v43  ;;  %v6216_v55 = vadd.f32 %v11505_v59, %v6178_v21  ;;  %v7138_v10 = vld [vmem:[%s7488_s11 + $0x68] sm:$0x1]  ;;  %v7141_v33 = vld [vmem:[%s7488_s11 + $0x74] sm:$0x1] }
 0x458   : > { %6911 = vst.msk [vmem:[%s10911_s26 + $0x24] sm:$0xf] %vm6901_vm5, %v7261_v28  ;;  %v6441_v27 = vor.u32 %v6440_v57, %v6437_v18  ;;  %v6717_v39 = vunpack.c.l.bf16 %v6433_v1  ;;  %v6451_v19 = vor.u32 %v6450_v14, %v6446_v12  ;;  %v6180_v38 = vmul.f32 %v11504_v26, %v11519_v7 }
 0x459   : > { %v6456_v6 = vrot.slane %v6454_v5, 5  ;;  %v7262_v40 = vpack.c.bf16 %v6748_v37, %v6748_v37  ;;  %v6217_v2 = vadd.f32 %v11505_v59, %v6179_v20  ;;  %v6459_v46 = vshrl.u32 %v7136_v23, 16 }
 0x45a   : > { %v6442_v22 = vrot.slane %v6441_v27, 4  ;;  %v6749_v34 = vadd.f32 %v6717_v39, %v6215_v16  ;;  %v6452_v8 = vrot.slane %v6451_v19, 4  ;;  %v6462_v63 = vshll.u32 %v7136_v23, 16  ;;  %v7142_v19 = vld [vmem:[%s7488_s11 + $0x78] sm:$0xf] }
 0x45b   : > { %v6468_v32 = vshll.u32 %v7137_v17, 16  ;;  %6912 = vst.msk [vmem:[%s10911_s26 + $0x28] sm:$0xf] %vm6901_vm5, %v7262_v40  ;;  %v6461_v56 = vrot.slane %v6459_v46, 4  ;;  %v6472_v25 = vshrl.u32 %v7137_v17, 16  ;;  %v6181_v42 = vmul.f32 %v11504_v26, %v10661_v31 }
 0x45c   : > { %v6447_v44 = vsel %vm10889_vm6, %v6442_v22, %v6446_v12  ;;  %v7263_v4 = vpack.c.bf16 %v6749_v34, %v6749_v34  ;;  %v6457_v24 = vsel %vm10889_vm6, %v6452_v8, %v6456_v6  ;;  %v6464_v36 = vrot.slane %v6462_v63, 5  ;;  %v7143_v22 = vld [vmem:[%s7488_s11 + $0x7c] sm:$0xf] }
 0x45d   : > { %v6718_v41 = vunpack.c.l.bf16 %v6447_v44  ;;  %v6719_v62 = vunpack.c.l.bf16 %v6457_v24  ;;  %v6218_v21 = vadd.f32 %v11505_v59, %v6180_v38  ;;  %v6470_v3 = vrot.slane %v6468_v32, 5 }
 0x45e   : > { %v6474_v30 = vrot.slane %v6472_v25, 4  ;;  %6913 = vst.msk [vmem:[%s10911_s26 + $0x2c] sm:$0xf] %vm6901_vm5, %v7263_v4  ;;  %v6465_v43 = vor.u32 %v6464_v36, %v6461_v56  ;;  %v6219_v31 = vadd.f32 %v11505_v59, %v6181_v42  ;;  %v6478_v13 = vshll.u32 %v7138_v10, 16  ;;  %v7144_v4 = vld [vmem:[%s7488_s11 + $0x80] sm:$0x1] }
 0x45f   : > { %v6750_v16 = vadd.f32 %v6718_v41, %v6216_v55  ;;  %v11009_v51 = vpop.f32.mrb[44].mxu1  ;;  %v6751_v29 = vadd.f32 %v6719_v62, %v6217_v2  ;;  %v6483_v48 = vshrl.u32 %v7139_v52, 16  ;;  %v6486_v58 = vshll.u32 %v7139_v52, 16 }
 0x460   : > { %v6475_v50 = vor.u32 %v6474_v30, %v6470_v3  ;;  %v6123_v18 = vpop.f32.mrb[45].mxu1  ;;  %v6466_v9 = vrot.slane %v6465_v43, 4  ;;  %v6480_v28 = vrot.slane %v6478_v13, 5  ;;  %v6182_v54 = vmul.f32 %v11504_v26, %v10669_v0  ;;  %v7145_v30 = vld [vmem:[%s7488_s11 + $0x84] sm:$0xf] }
 0x461   : > { %v7264_v35 = vpack.c.bf16 %v6750_v16, %v6750_v16  ;;  %v11015_v57 = vpop.f32.mrb[46].mxu1  ;;  %v7265_v12 = vpack.c.bf16 %v6751_v29, %v6751_v29  ;;  %v6485_v20 = vrot.slane %v6483_v48, 4  ;;  %v6488_v14 = vrot.slane %v6486_v58, 5  ;;  %v7146_v58 = vld [vmem:[%s7488_s11 + $0x88] sm:$0xf] }
 0x462   : > { %v6476_v61 = vrot.slane %v6475_v50, 4  ;;  %v6126_v5 = vpop.f32.mrb[47].mxu1  ;;  %v6471_v23 = vsel %vm10889_vm6, %v6466_v9, %v6470_v3  ;;  %v6492_v37 = vshll.u32 %v7140_v53, 16  ;;  %v6496_v1 = vshrl.u32 %v7140_v53, 16 }
 0x463   : > { %6914 = vst.msk [vmem:[%s10911_s26 + $0x30] sm:$0xf] %vm6901_vm5, %v7264_v35  ;;  %v6183_v0 = vmul.f32 %v11504_v26, %v10680_v45  ;;  %6915 = vst.msk [vmem:[%s10911_s26 + $0x34] sm:$0xf] %vm6901_vm5, %v7265_v12  ;;  %v6720_v55 = vunpack.c.l.bf16 %v6471_v23  ;;  %v6489_v17 = vor.u32 %v6488_v14, %v6485_v20  ;;  %v6502_v39 = vshll.u32 %v7141_v33, 16 }
 0x464   : > { %v6481_v27 = vsel %vm10889_vm6, %v6476_v61, %v6480_v28  ;;  %v6220_v7 = vadd.f32 %v11505_v59, %v6182_v54  ;;  %v6494_v38 = vrot.slane %v6492_v37, 5  ;;  %v6498_v40 = vrot.slane %v6496_v1, 4  ;;  %v7147_v5 = vld [vmem:[%s7488_s11 + $0x8c] sm:$0x1] }
 0x465   : > { %v6721_v6 = vunpack.c.l.bf16 %v6481_v27  ;;  %v6752_v2 = vadd.f32 %v6720_v55, %v6218_v21  ;;  %v6490_v46 = vrot.slane %v6489_v17, 4  ;;  %v6504_v45 = vrot.slane %v6502_v39, 5  ;;  %v7148_v55 = vld [vmem:[%s7488_s11 + $0x90] sm:$0xf] }
 0x466   : > { %v6184_v34 = vmul.f32 %v11504_v26, %v10719_v49  ;;  %v6499_v63 = vor.u32 %v6498_v40, %v6494_v38  ;;  %v6507_v32 = vshrl.u32 %v7142_v19, 16  ;;  %v6510_v44 = vshll.u32 %v7142_v19, 16 }
 0x467   : > { %v6753_v8 = vadd.f32 %v6721_v6, %v6219_v31  ;;  %v7266_v56 = vpack.c.bf16 %v6752_v2, %v6752_v2  ;;  %v6495_v25 = vsel %vm10889_vm6, %v6490_v46, %v6494_v38  ;;  %v6221_v42 = vadd.f32 %v11505_v59, %v6183_v0  ;;  %v7149_v46 = vld [vmem:[%s7488_s11 + $0x94] sm:$0xf] }
 0x468   : > { %v6516_v10 = vshll.u32 %v7143_v22, 16  ;;  %v6722_v24 = vunpack.c.l.bf16 %v6495_v25  ;;  %v6500_v36 = vrot.slane %v6499_v63, 4  ;;  %v6509_v52 = vrot.slane %v6507_v32, 4 }
 0x469   : > { %v7267_v41 = vpack.c.bf16 %v6753_v8, %v6753_v8  ;;  %6916 = vst.msk [vmem:[%s10911_s26 + $0x38] sm:$0xf] %vm6901_vm5, %v7266_v56  ;;  %v6512_v49 = vrot.slane %v6510_v44, 5  ;;  %v6520_v21 = vshrl.u32 %v7143_v22, 16  ;;  %v6185_v3 = vmul.f32 %v11504_v26, %v10726_v11 }
 0x46a   : > { %v6518_v62 = vrot.slane %v6516_v10, 5  ;;  %v6754_v16 = vadd.f32 %v6722_v24, %v6220_v7  ;;  %v6505_v43 = vsel %vm10889_vm6, %v6500_v36, %v6504_v45  ;;  %v6222_v31 = vadd.f32 %v11505_v59, %v6184_v34  ;;  %v7150_v10 = vld [vmem:[%s7488_s11 + $0x98] sm:$0x1] }
 0x46b   : > { %6917 = vst.msk [vmem:[%s10911_s26 + $0x3c] sm:$0xf] %vm6901_vm5, %v7267_v41  ;;  %v6526_v13 = vshll.u32 %v7144_v4, 16  ;;  %v6723_v29 = vunpack.c.l.bf16 %v6505_v43  ;;  %v6513_v50 = vor.u32 %v6512_v49, %v6509_v52  ;;  %v6522_v53 = vrot.slane %v6520_v21, 4  ;;  %v7151_v52 = vld [vmem:[%s7488_s11 + $0x9c] sm:$0xf] }
 0x46c   : > { %v6186_v48 = vmul.f32 %v11504_v26, %v10875_v15  ;;  %v7268_v11 = vpack.c.bf16 %v6754_v16, %v6754_v16  ;;  %v6223_v18 = vadd.f32 %v11505_v59, %v6185_v3  ;;  %v6531_v9 = vshrl.u32 %v7145_v30, 16 }
 0x46d   : > { %v6528_v35 = vrot.slane %v6526_v13, 5  ;;  %v6755_v28 = vadd.f32 %v6723_v29, %v6221_v42  ;;  %v6514_v54 = vrot.slane %v6513_v50, 4  ;;  %v6523_v33 = vor.u32 %v6522_v53, %v6518_v62 }
 0x46e   : > { %v6534_v12 = vshll.u32 %v7145_v30, 16  ;;  %6918 = vst.msk [vmem:[%s10911_s26 + $0x40] sm:$0xf] %vm6901_vm5, %v7268_v11  ;;  %v6533_v61 = vrot.slane %v6531_v9, 4  ;;  %v6540_v20 = vshll.u32 %v7146_v58, 16  ;;  %v6544_v14 = vshrl.u32 %v7146_v58, 16 }
 0x46f   : > { %v6187_v15 = vmul.f32 %v11504_v26, %v10883_v60  ;;  %v7269_v23 = vpack.c.bf16 %v6755_v28, %v6755_v28  ;;  %v6519_v37 = vsel %vm10889_vm6, %v6514_v54, %v6518_v62  ;;  %v6524_v1 = vrot.slane %v6523_v33, 4 }
 0x470   : > { %v6536_v0 = vrot.slane %v6534_v12, 5  ;;  %v6724_v27 = vunpack.c.l.bf16 %v6519_v37  ;;  %v6224_v17 = vadd.f32 %v11505_v59, %v6186_v48  ;;  %v6542_v39 = vrot.slane %v6540_v20, 5 }
 0x471   : > { %v6546_v19 = vrot.slane %v6544_v14, 4  ;;  %6919 = vst.msk [vmem:[%s10911_s26 + $0x44] sm:$0xf] %vm6901_vm5, %v7269_v23  ;;  %v6529_v6 = vsel %vm10889_vm6, %v6524_v1, %v6528_v35  ;;  %v6225_v7 = vadd.f32 %v11505_v59, %v6187_v15  ;;  %v6550_v38 = vshll.u32 %v7147_v5, 16 }
 0x472   : > { %v6537_v60 = vor.u32 %v6536_v0, %v6533_v61  ;;  %v6756_v40 = vadd.f32 %v6724_v27, %v6222_v31  ;;  %v6725_v22 = vunpack.c.l.bf16 %v6529_v6  ;;  %v6555_v45 = vshrl.u32 %v7148_v55, 16  ;;  %v7152_v31 = vld [vmem:[%s7488_s11 + $0xa0] sm:$0xf] }
 0x473   : > { %v6547_v2 = vor.u32 %v6546_v19, %v6542_v39  ;;  %v6552_v8 = vrot.slane %v6550_v38, 5  ;;  %v6188_v63 = vmul.f32 %v11504_v26, %v11009_v51  ;;  %v6558_v32 = vshll.u32 %v7148_v55, 16  ;;  %v7153_v55 = vld [vmem:[%s7488_s11 + $0xa4] sm:$0x1] }
 0x474   : > { %v6538_v34 = vrot.slane %v6537_v60, 4  ;;  %v7270_v44 = vpack.c.bf16 %v6756_v40, %v6756_v40  ;;  %v6757_v56 = vadd.f32 %v6725_v22, %v6223_v18  ;;  %v6557_v42 = vrot.slane %v6555_v45, 4 }
 0x475   : > { %v6548_v25 = vrot.slane %v6547_v2, 4  ;;  %v6560_v41 = vrot.slane %v6558_v32, 5  ;;  %v6564_v24 = vshll.u32 %v7149_v46, 16  ;;  %v6568_v36 = vshrl.u32 %v7149_v46, 16 }
 0x476   : > { %v6543_v4 = vsel %vm10889_vm6, %v6538_v34, %v6542_v39  ;;  %6920 = vst.msk [vmem:[%s10911_s26 + $0x48] sm:$0xf] %vm6901_vm5, %v7270_v44  ;;  %v7271_v49 = vpack.c.bf16 %v6757_v56, %v6757_v56  ;;  %v6189_v21 = vmul.f32 %v11504_v26, %v11015_v57  ;;  %v6574_v29 = vshll.u32 %v7150_v10, 16 }
 0x477   : > { %v6726_v62 = vunpack.c.l.bf16 %v6543_v4  ;;  %v6553_v51 = vsel %vm10889_vm6, %v6548_v25, %v6552_v8  ;;  %v6561_v30 = vor.u32 %v6560_v41, %v6557_v42  ;;  %v6566_v16 = vrot.slane %v6564_v24, 5 }
 0x478   : > { %v6727_v3 = vunpack.c.l.bf16 %v6553_v51  ;;  %v6570_v43 = vrot.slane %v6568_v36, 4  ;;  %6921 = vst.msk [vmem:[%s10911_s26 + $0x4c] sm:$0xf] %vm6901_vm5, %v7271_v49  ;;  %v6579_v50 = vshrl.u32 %v7151_v52, 16  ;;  %v6582_v11 = vshll.u32 %v7151_v52, 16 }
 0x479   : > { %v6758_v13 = vadd.f32 %v6726_v62, %v6224_v17  ;;  %v6562_v48 = vrot.slane %v6561_v30, 4  ;;  %v6226_v35 = vadd.f32 %v11505_v59, %v6188_v63  ;;  %v6576_v57 = vrot.slane %v6574_v29, 5  ;;  %v7154_v36 = vld [vmem:[%s7488_s11 + $0xa8] sm:$0xf]  ;;  %v7155_v52 = vld [vmem:[%s7488_s11 + $0xac] sm:$0xf] }
 0x47a   : > { %v6759_v53 = vadd.f32 %v6727_v3, %v6225_v7  ;;  %v6571_v58 = vor.u32 %v6570_v43, %v6566_v16  ;;  %v6588_v9 = vshll.u32 %v7152_v31, 16  ;;  %v6227_v33 = vadd.f32 %v11505_v59, %v6189_v21 }
 0x47b   : > { %v7272_v18 = vpack.c.bf16 %v6758_v13, %v6758_v13  ;;  %v6567_v54 = vsel %vm10889_vm6, %v6562_v48, %v6566_v16  ;;  %v6581_v20 = vrot.slane %v6579_v50, 4  ;;  %v6584_v14 = vrot.slane %v6582_v11, 5 }
 0x47c   : > { %v7273_v28 = vpack.c.bf16 %v6759_v53, %v6759_v53  ;;  %v6572_v12 = vrot.slane %v6571_v58, 4  ;;  %v6728_v61 = vunpack.c.l.bf16 %v6567_v54  ;;  %v6592_v15 = vshrl.u32 %v7152_v31, 16  ;;  %v7156_v31 = vld [vmem:[%s7488_s11 + $0xb0] sm:$0x1] }
 0x47d   : > { %6922 = vst.msk [vmem:[%s10911_s26 + $0x50] sm:$0xf] %vm6901_vm5, %v7272_v18  ;;  %v6590_v1 = vrot.slane %v6588_v9, 5  ;;  %v6585_v39 = vor.u32 %v6584_v14, %v6581_v20  ;;  %v6598_v60 = vshll.u32 %v7153_v55, 16  ;;  %v6603_v49 = vshrl.u32 %v7154_v36, 16 }
 0x47e   : > { %6923 = vst.msk [vmem:[%s10911_s26 + $0x54] sm:$0xf] %vm6901_vm5, %v7273_v28  ;;  %v6577_v5 = vsel %vm10889_vm6, %v6572_v12, %v6576_v57  ;;  %v6760_v23 = vadd.f32 %v6728_v61, %v6226_v35  ;;  %v6594_v0 = vrot.slane %v6592_v15, 4  ;;  %v6606_v62 = vshll.u32 %v7154_v36, 16 }
 0x47f   : > { %v6729_v37 = vunpack.c.l.bf16 %v6577_v5  ;;  %v6586_v7 = vrot.slane %v6585_v39, 4  ;;  %v6600_v40 = vrot.slane %v6598_v60, 5  ;;  %v6612_v51 = vshll.u32 %v7155_v52, 16 }
 0x480   : > { %v7274_v27 = vpack.c.bf16 %v6760_v23, %v6760_v23  ;;  %v6595_v6 = vor.u32 %v6594_v0, %v6590_v1  ;;  %v6616_v21 = vshrl.u32 %v7155_v52, 16  ;;  %v6605_v3 = vrot.slane %v6603_v49, 4  ;;  %v7158_v0 = vld [vmem:[%s7488_s11 + $0xb8] sm:$0xf] }
 0x481   : > { %v6761_v17 = vadd.f32 %v6729_v37, %v6227_v33  ;;  %v6591_v22 = vsel %vm10889_vm6, %v6586_v7, %v6590_v1  ;;  %v6608_v30 = vrot.slane %v6606_v62, 5  ;;  %v6614_v16 = vrot.slane %v6612_v51, 5  ;;  %v7157_v1 = vld [vmem:[%s7488_s11 + $0xb4] sm:$0xf] }
 0x482   : > { %6924 = vst.msk [vmem:[%s10911_s26 + $0x58] sm:$0xf] %vm6901_vm5, %v7274_v27  ;;  %v6596_v38 = vrot.slane %v6595_v6, 4  ;;  %v6730_v34 = vunpack.c.l.bf16 %v6591_v22  ;;  %v6618_v43 = vrot.slane %v6616_v21, 4  ;;  %v6622_v50 = vshll.u32 %v7156_v31, 16 }
 0x483   : > { %v7275_v19 = vpack.c.bf16 %v6761_v17, %v6761_v17  ;;  %v6609_v13 = vor.u32 %v6608_v30, %v6605_v3  ;;  %v6627_v55 = vshrl.u32 %v7157_v1, 16  ;;  %v6630_v27 = vshll.u32 %v7157_v1, 16  ;;  %v7160_v21 = vld [vmem:[%s7488_s11 + $0xc0] sm:$0xf]  ;;  %v7161_v3 = vld [vmem:[%s7488_s11 + $0xc4] sm:$0xf] }
 0x484   : > { %v6601_v46 = vsel %vm10889_vm6, %v6596_v38, %v6600_v40  ;;  %v6619_v29 = vor.u32 %v6618_v43, %v6614_v16  ;;  %v6624_v58 = vrot.slane %v6622_v50, 5  ;;  %v6636_v17 = vshll.u32 %v7158_v0, 16  ;;  %v7159_v38 = vld [vmem:[%s7488_s11 + $0xbc] sm:$0x1] }
 0x485   : > { %6925 = vst.msk [vmem:[%s10911_s26 + $0x5c] sm:$0xf] %vm6901_vm5, %v7275_v19  ;;  %v6731_v56 = vunpack.c.l.bf16 %v6601_v46  ;;  %v6610_v53 = vrot.slane %v6609_v13, 4  ;;  %v6640_v39 = vshrl.u32 %v7158_v0, 16  ;;  %v6629_v19 = vrot.slane %v6627_v55, 4 }
 0x486   : > { %v6620_v48 = vrot.slane %v6619_v29, 4  ;;  %v6632_v6 = vrot.slane %v6630_v27, 5  ;;  %v6638_v60 = vrot.slane %v6636_v17, 5  ;;  %v6651_v30 = vshrl.u32 %v7160_v21, 16 }
 0x487   : > { %v6615_v11 = vsel %vm10889_vm6, %v6610_v53, %v6614_v16  ;;  %v6642_v7 = vrot.slane %v6640_v39, 4  ;;  %v6654_v16 = vshll.u32 %v7160_v21, 16  ;;  %v6660_v43 = vshll.u32 %v7161_v3, 16 }
 0x488   : > { %v6625_v35 = vsel %vm10889_vm6, %v6620_v48, %v6624_v58  ;;  %v6732_v9 = vunpack.c.l.bf16 %v6615_v11  ;;  %v6633_v40 = vor.u32 %v6632_v6, %v6629_v19  ;;  %v6664_v31 = vshrl.u32 %v7161_v3, 16  ;;  %v7162_v48 = vld [vmem:[%s7488_s11 + $0xc8] sm:$0x1]  ;;  %s7377_s11 = smov (%p45_p0), [#allocation3]  }
 0x489   : > { %v6733_v61 = vunpack.c.l.bf16 %v6625_v35  ;;  %v6643_v22 = vor.u32 %v6642_v7, %v6638_v60  ;;  %v6653_v13 = vrot.slane %v6651_v30, 4  ;;  %v6656_v29 = vrot.slane %v6654_v16, 5  ;;  %s6939_s27 = sshll.u32 (%p45_p0), %s7377_s11, 4  ;;  %s6940_s27 = int_to_ptr.vmem [resolvable:$true] %s6939_s27 }
 0x48a   : > { %v6634_v46 = vrot.slane %v6633_v40, 4  ;;  %v6662_v50 = vrot.slane %v6660_v43, 5  ;;  %v6666_v53 = vrot.slane %v6664_v31, 4  ;;  %s7344_s28 = scalar_lea.vmem (%p45_p0), %s6940_s27, 4096  ;;  %p7349_p2 = scmp.lt.s32.totalorder (%p45_p0), %s6940_s27, %s6940_s27 }
 0x48b   : > { %v6129_v2 = vpop.f32.mrb[48].mxu1  ;;  %v6657_v58 = vor.u32 %v6656_v29, %v6653_v13  ;;  %p7345_p1 = scmp.ne.s32.totalorder (%p45_p0), %s6940_s27, %s7344_s28  ;;  %p7350_p3 = scmp.lt.s32.totalorder (%p45_p0), %s7344_s28, %s7344_s28 }
 0x48c   : > { %v6190_v45 = vmul.f32 %v11504_v26, %v6129_v2  ;;  %v6131_v8 = vpop.f32.mrb[49].mxu1  ;;  %v6646_v2 = vshll.u32 %v7159_v38, 16  ;;  %v6667_v11 = vor.u32 %v6666_v53, %v6662_v50 }
 0x48d   : > { %v6132_v63 = vpop.f32.mrb[50].mxu1  ;;  %v6639_v8 = vsel %vm10889_vm6, %v6634_v46, %v6638_v60  ;;  %v6658_v35 = vrot.slane %v6657_v58, 4  ;;  %p7351_p4 = por (%p45_p0), %p7350_p3, %p7349_p2 }
 0x48e   : > { %v6228_v32 = vadd.f32 %v11505_v59, %v6190_v45  ;;  %v6191_v44 = vmul.f32 %v11504_v26, %v6132_v63  ;;  %v6134_v25 = vpop.f32.mrb[51].mxu1  ;;  %v6644_v45 = vrot.slane %v6643_v22, 4 }
 0x48f   :  { %p7352_p5 = pnand (%p45_p0), %p7351_p4, %p7345_p1 }
 0x490   : > { %v6762_v42 = vadd.f32 %v6730_v34, %v6228_v32  ;;  %v6229_v10 = vadd.f32 %v11505_v59, %v6191_v44  ;;  %v6648_v34 = vrot.slane %v6646_v2, 5 }
 0x492   : > { %v7276_v4 = vpack.c.bf16 %v6762_v42, %v6762_v42  ;;  %v6763_v41 = vadd.f32 %v6731_v56, %v6229_v10  ;;  %v6649_v32 = vsel %vm10889_vm6, %v6644_v45, %v6648_v34  ;;  %v6734_v56 = vunpack.c.l.bf16 %v6639_v8 }
 0x494   : > { %6926 = vst.msk [vmem:[%s10911_s26 + $0x60] sm:$0xf] %vm6901_vm5, %v7276_v4  ;;  %v7277_v24 = vpack.c.bf16 %v6763_v41, %v6763_v41  ;;  %v6735_v41 = vunpack.c.l.bf16 %v6649_v32 }
 0x496   : > { %6927 = vst.msk [vmem:[%s10911_s26 + $0x64] sm:$0xf] %vm6901_vm5, %v7277_v24 }
 0x4b6   : > { %v6137_v18 = vpop.f32.mrb[52].mxu1 }
 0x4b7   : > { %v6192_v57 = vmul.f32 %v11504_v26, %v6137_v18  ;;  %v6139_v28 = vpop.f32.mrb[53].mxu1  ;;  %v6670_v18 = vshll.u32 %v7162_v48, 16 }
 0x4b8   : > { %v6140_v54 = vpop.f32.mrb[54].mxu1  ;;  %v6663_v28 = vsel %vm10889_vm6, %v6658_v35, %v6662_v50 }
 0x4b9   : > { %v6230_v33 = vadd.f32 %v11505_v59, %v6192_v57  ;;  %v6193_v12 = vmul.f32 %v11504_v26, %v6140_v54  ;;  %v6142_v20 = vpop.f32.mrb[55].mxu1  ;;  %v6668_v57 = vrot.slane %v6667_v11, 4 }
 0x4bb   : > { %v6764_v14 = vadd.f32 %v6732_v9, %v6230_v33  ;;  %v6231_v15 = vadd.f32 %v11505_v59, %v6193_v12  ;;  %v6672_v9 = vrot.slane %v6670_v18, 5 }
 0x4bd   : > { %v7278_v5 = vpack.c.bf16 %v6764_v14, %v6764_v14  ;;  %v6765_v23 = vadd.f32 %v6733_v61, %v6231_v15  ;;  %v6673_v33 = vsel %vm10889_vm6, %v6668_v57, %v6672_v9  ;;  %v6736_v61 = vunpack.c.l.bf16 %v6663_v28 }
 0x4bf   : > { %6928 = vst.msk [vmem:[%s10911_s26 + $0x68] sm:$0xf] %vm6901_vm5, %v7278_v5  ;;  %v7279_v37 = vpack.c.bf16 %v6765_v23, %v6765_v23  ;;  %v6737_v23 = vunpack.c.l.bf16 %v6673_v33 }
 0x4c1   : > { %6929 = vst.msk [vmem:[%s10911_s26 + $0x6c] sm:$0xf] %vm6901_vm5, %v7279_v37 }
 0x4e2   : > { %v6145_v63 = vpop.f32.mrb[56].mxu1 }
 0x4e3   : > { %v6194_v44 = vmul.f32 %v11504_v26, %v6145_v63  ;;  %v6147_v25 = vpop.f32.mrb[57].mxu1 }
 0x4e4   : > { %v6148_v42 = vpop.f32.mrb[58].mxu1 }
 0x4e5   : > { %v6232_v10 = vadd.f32 %v11505_v59, %v6194_v44  ;;  %v6195_v4 = vmul.f32 %v11504_v26, %v6148_v42  ;;  %v6150_v24 = vpop.f32.mrb[59].mxu1 }
 0x4e7   : > { %v6766_v36 = vadd.f32 %v6734_v56, %v6232_v10  ;;  %v6233_v52 = vadd.f32 %v11505_v59, %v6195_v4 }
 0x4e9   : > { %v7280_v49 = vpack.c.bf16 %v6766_v36, %v6766_v36  ;;  %v6767_v62 = vadd.f32 %v6735_v41, %v6233_v52 }
 0x4eb   : > { %6930 = vst.msk [vmem:[%s10911_s26 + $0x70] sm:$0xf] %vm6901_vm5, %v7280_v49  ;;  %v7281_v51 = vpack.c.bf16 %v6767_v62, %v6767_v62 }
 0x4ed   : > { %6931 = vst.msk [vmem:[%s10911_s26 + $0x74] sm:$0xf] %vm6901_vm5, %v7281_v51 }
 0x50d   : > { %v6153_v54 = vpop.f32.mrb[60].mxu1 }
 0x50e   : > { %v6196_v12 = vmul.f32 %v11504_v26, %v6153_v54  ;;  %v6155_v20 = vpop.f32.mrb[61].mxu1 }
 0x50f   : > { %v6156_v14 = vpop.f32.mrb[62].mxu1 }
 0x510   : > { %v6234_v15 = vadd.f32 %v11505_v59, %v6196_v12  ;;  %v6197_v5 = vmul.f32 %v11504_v26, %v6156_v14  ;;  %v6158_v37 = vpop.f32.mrb[63].mxu1 }
 0x512   : > { %v6768_v1 = vadd.f32 %v6736_v61, %v6234_v15  ;;  %v6235_v0 = vadd.f32 %v11505_v59, %v6197_v5  ;;  %47 = sbr.rel (!%p45_p0) target bundleno = 8 (0x8), region = 81 }
 0x514   : > { %v7282_v55 = vpack.c.bf16 %v6768_v1, %v6768_v1  ;;  %v6769_v27 = vadd.f32 %v6737_v23, %v6235_v0 }
 0x516   : > { %6932 = vst.msk [vmem:[%s10911_s26 + $0x78] sm:$0xf] %vm6901_vm5, %v7282_v55  ;;  %v7283_v47 = vpack.c.bf16 %v6769_v27, %v6769_v27 }
 0x518   : > { %6933 = vst.msk [vmem:[%s10911_s26 + $0x7c] sm:$0xf] %vm6901_vm5, %v7283_v47 }
 0x519   :  { %7355 = shalt.err (!%p7352_p5)
}
 0x51a   :  { %s7356_s12 = scalar_lea.hbm %s11177_s10, 4096 }
 0x51b   :  { %p7357_p6 = scmp.ne.s32.totalorder %s11177_s10, %s7356_s12  ;;  %p7360_p7 = scmp.lt.u32.totalorder %s7356_s12, %s11177_s10 }
 0x51d   :  { %p7362_p8 = pnand %p7360_p7, %p7357_p6 }
 0x51f   :  { %7365 = shalt.err (!%p7362_p8)
}
 0x520   :  { %s7378_s0 = smov 64   ;;  %s7379_s1 = smov 4  }
 0x521   :  { %6945 = dma.vmem_to_hbm [thread:$0]  %s6940_s27, 4096, %s11177_s10, [#allocation4], %s7378_s0, %s7378_s0, %s7379_s1  }
 0x522   :  { %7370 = dma.done.wait [#allocation4], 4096  }
 0x523   :  { %7371 = vsyncadd [#allocation4], 4294963200 }
 0x524   :  { %6949 = vsyncpa [#allocation4], 1 }

</bundles_post_ra>
